<compile_context>
chip_gen: v5e
topology: v5e:2x2
jax: 0.10.0
libtpu: 0.0.40
codegen_flags: <defaults>
</compile_context>

<pallas_src>
import functools
import numpy as np

import jax
import jax.numpy as jnp
from jax.experimental import pallas as pl
from jax.experimental.pallas import tpu as pltpu


ACT = jnp.bfloat16                       # activation / weight storage dtype
_SQRT_HALF = np.float32(0.7071067811865476)


# ----------------------------------------------------------------------------
# Tiling helpers
# ----------------------------------------------------------------------------
def _round8(n):
    return max(8, (n + 7) // 8 * 8)


def _row_tile(m, cap=512):
    """Row tile: <= cap, and >= 2 grid steps whenever m > 8 (v7x dual-TC)."""
    if m <= 8:
        return m
    half = _round8((m + 1) // 2)
    return max(8, min(cap, m, half))


def _divisor_tile(n, cap, min_steps=1):
    """Largest divisor of n that is <= cap (and yields >= min_steps steps)."""
    cap = min(cap, n)
    if min_steps > 1:
        cap = min(cap, max(1, n // min_steps))
    d = max(1, cap)
    while d > 1 and n % d:
        d -= 1
    return d


def _na_row_cap(kc_bytes):
    """Cap NA row tile so a (tm, k2*C) block stays within ~3 MiB (v7x VMEM)."""
    cap = (3 * 1024 * 1024) // max(1, kc_bytes)
    return max(8, min(512, cap // 8 * 8))


# ----------------------------------------------------------------------------
# Fused (pre-LN?) + matmul + bias (+ post-LN) (+ output split) kernel family
# Used for: norm1+qkv(+split), im2col convs, conv + tokenizer/downsampler norm
# ----------------------------------------------------------------------------
def _make_mm_kernel(has_ln, has_oln, split, eps):
    def kernel(*refs):
        i = 0
        x_ref = refs[i]; i += 1
        if has_ln:
            g_ref, b1_ref = refs[i], refs[i + 1]; i += 2
        w_ref, b_ref = refs[i], refs[i + 1]; i += 2
        if has_oln:
            og_ref, ob_ref = refs[i], refs[i + 1]; i += 2
        out_refs = refs[i:]

        x = x_ref[...]
        if has_ln:
            xf = x.astype(jnp.float32)
            mu = jnp.mean(xf, axis=-1, keepdims=True)
            xc = xf - mu
            var = jnp.mean(xc * xc, axis=-1, keepdims=True)
            xf = xc * jax.lax.rsqrt(var + eps)
            xf = xf * g_ref[...].astype(jnp.float32) + b1_ref[...].astype(jnp.float32)
            x = xf.astype(w_ref.dtype)
        acc = jnp.dot(x, w_ref[...], preferred_element_type=jnp.float32)
        acc = acc + b_ref[...].astype(jnp.float32)
        if has_oln:
            mu = jnp.mean(acc, axis=-1, keepdims=True)
            xc = acc - mu
            var = jnp.mean(xc * xc, axis=-1, keepdims=True)
            acc = xc * jax.lax.rsqrt(var + eps)
            acc = acc * og_ref[...].astype(jnp.float32) + ob_ref[...].astype(jnp.float32)
        if split == 1:
            out_refs[0][...] = acc.astype(out_refs[0].dtype)
        else:
            n = acc.shape[-1] // split
            for s in range(split):
                out_refs[s][...] = acc[:, s * n:(s + 1) * n].astype(out_refs[s].dtype)

    return kernel


def fused_matmul(x, w, b=None, *, ln=None, out_ln=None, split=1, eps=1e-5,
                 out_dtype=None, tm_cap=512):
    """x:(M,K) @ w:(K,N) + b with optional fused pre-LN / post-LN / q,k,v split."""
    M, Kd = x.shape
    N = w.shape[1]
    out_dtype = out_dtype or x.dtype
    if b is None:
        b = jnp.zeros((N,), jnp.float32)
    tm = _row_tile(M, tm_cap)
    grid = (pl.cdiv(M, tm),)

    in_arrays = [x]
    in_specs = [pl.BlockSpec((tm, Kd), lambda i: (i, 0))]
    if ln is not None:
        g, bb = ln
        in_arrays += [g.reshape(1, Kd), bb.reshape(1, Kd)]
        in_specs += [pl.BlockSpec((1, Kd), lambda i: (0, 0)),
                     pl.BlockSpec((1, Kd), lambda i: (0, 0))]
    in_arrays += [w, b.reshape(1, N)]
    in_specs += [pl.BlockSpec((Kd, N), lambda i: (0, 0)),
                 pl.BlockSpec((1, N), lambda i: (0, 0))]
    if out_ln is not None:
        g, bb = out_ln
        in_arrays += [g.reshape(1, N), bb.reshape(1, N)]
        in_specs += [pl.BlockSpec((1, N), lambda i: (0, 0)),
                     pl.BlockSpec((1, N), lambda i: (0, 0))]

    if split == 1:
        out_shape = jax.ShapeDtypeStruct((M, N), out_dtype)
        out_specs = pl.BlockSpec((tm, N), lambda i: (i, 0))
    else:
        n = N // split
        out_shape = tuple(jax.ShapeDtypeStruct((M, n), out_dtype) for _ in range(split))
        out_specs = tuple(pl.BlockSpec((tm, n), lambda i: (i, 0)) for _ in range(split))

    kern = _make_mm_kernel(ln is not None, out_ln is not None, split, eps)
    return pl.pallas_call(
        kern,
        out_shape=out_shape,
        grid=grid,
        in_specs=in_specs,
        out_specs=out_specs,
        compiler_params=pltpu.CompilerParams(dimension_semantics=("parallel",)),
    )(*in_arrays)


# ----------------------------------------------------------------------------
# Standalone LayerNorm (per-stage output norms only; others are fused)
# ----------------------------------------------------------------------------
def _ln_kernel(x_ref, w_ref, b_ref, o_ref, *, eps):
    x = x_ref[...].astype(jnp.float32)
    mu = jnp.mean(x, axis=-1, keepdims=True)
    xc = x - mu
    var = jnp.mean(xc * xc, axis=-1, keepdims=True)
    y = xc * jax.lax.rsqrt(var + eps)
    o_ref[...] = (y * w_ref[...].astype(jnp.float32)
                  + b_ref[...].astype(jnp.float32)).astype(o_ref.dtype)


def layernorm(x, w, b, eps=1e-5, out_dtype=None, tm_cap=512):
    C = x.shape[-1]
    x2 = x.reshape(-1, C)
    M = x2.shape[0]
    out_dtype = out_dtype or x.dtype
    tm = _row_tile(M, tm_cap)
    return pl.pallas_call(
        functools.partial(_ln_kernel, eps=eps),
        out_shape=jax.ShapeDtypeStruct((M, C), out_dtype),
        grid=(pl.cdiv(M, tm),),
        in_specs=[pl.BlockSpec((tm, C), lambda i: (i, 0)),
                  pl.BlockSpec((1, C), lambda i: (0, 0)),
                  pl.BlockSpec((1, C), lambda i: (0, 0))],
        out_specs=pl.BlockSpec((tm, C), lambda i: (i, 0)),
        compiler_params=pltpu.CompilerParams(dimension_semantics=("parallel",)),
    )(x2, w.reshape(1, C), b.reshape(1, C))


# ----------------------------------------------------------------------------
# Fused MLP block: LN(norm2) + fc1 + exact GELU + fc2 + residual, one kernel
# ----------------------------------------------------------------------------
def _mlp_kernel(x_ref, g_ref, b_ref, w1_ref, b1_ref, w2_ref, b2_ref, o_ref, *, eps):
    x = x_ref[...].astype(jnp.float32)
    mu = jnp.mean(x, axis=-1, keepdims=True)
    xc = x - mu
    var = jnp.mean(xc * xc, axis=-1, keepdims=True)
    xn = xc * jax.lax.rsqrt(var + eps)
    xn = xn * g_ref[...].astype(jnp.float32) + b_ref[...].astype(jnp.float32)
    h = jnp.dot(xn.astype(w1_ref.dtype), w1_ref[...],
                preferred_element_type=jnp.float32)
    h = h + b1_ref[...].astype(jnp.float32)
    h = 0.5 * h * (1.0 + jax.lax.erf(h * _SQRT_HALF))        # exact GELU
    y = jnp.dot(h.astype(w2_ref.dtype), w2_ref[...],
                preferred_element_type=jnp.float32)
    y = y + b2_ref[...].astype(jnp.float32) + x               # residual (pre-LN x)
    o_ref[...] = y.astype(o_ref.dtype)


def mlp_block(x, gamma, beta, w1, b1, w2, b2, eps=1e-5, tm_cap=256):
    M, C = x.shape
    Hd = w1.shape[1]
    tm = _row_tile(M, tm_cap)
    return pl.pallas_call(
        functools.partial(_mlp_kernel, eps=eps),
        out_shape=jax.ShapeDtypeStruct((M, C), x.dtype),
        grid=(pl.cdiv(M, tm),),
        in_specs=[pl.BlockSpec((tm, C), lambda i: (i, 0)),
                  pl.BlockSpec((1, C), lambda i: (0, 0)),
                  pl.BlockSpec((1, C), lambda i: (0, 0)),
                  pl.BlockSpec((C, Hd), lambda i: (0, 0)),
                  pl.BlockSpec((1, Hd), lambda i: (0, 0)),
                  pl.BlockSpec((Hd, C), lambda i: (0, 0)),
                  pl.BlockSpec((1, C), lambda i: (0, 0))],
        out_specs=pl.BlockSpec((tm, C), lambda i: (i, 0)),
        compiler_params=pltpu.CompilerParams(dimension_semantics=("parallel",)),
    )(x, gamma.reshape(1, C), beta.reshape(1, C), w1, b1.reshape(1, Hd),
      w2, b2.reshape(1, C))


# ----------------------------------------------------------------------------
# Dilated neighborhood attention core (scores + rpb + softmax + AV + proj + res)
# ----------------------------------------------------------------------------
def _na_kernel(q_ref, kn_ref, vn_ref, bias_ref, eh_ref, bc_ref,
               pw_ref, pb_ref, res_ref, o_ref, *, num_heads, k2, scale):
    C = q_ref.shape[-1]
    nH = num_heads
    q = q_ref[...]                                           # (tm, C) bf16
    eh = eh_ref[...]                                         # (C, nH) 0/1

    # --- per-tap scores: tiny head-reduce matmuls, softmax stats element-wise
    scores = []
    for t in range(k2):
        prod = q * kn_ref[:, t * C:(t + 1) * C]
        s = jnp.dot(prod, eh, preferred_element_type=jnp.float32)     # (tm, nH)
        s = s * scale + bias_ref[:, t * nH:(t + 1) * nH].astype(jnp.float32)
        scores.append(s)
    m = scores[0]
    for t in range(1, k2):
        m = jnp.maximum(m, scores[t])                        # per-head max (VPU)
    es = [jnp.exp(s - m) for s in scores]
    den = es[0]
    for t in range(1, k2):
        den = den + es[t]
    inv = pl.reciprocal(den, approx=True)                    # (tm, nH)

    # --- AV: head->channel broadcast via tiny (nH, C) matmul, accumulate taps
    bc = bc_ref[...]                                         # (nH, C) 0/1
    acc = jnp.zeros((q.shape[0], C), jnp.float32)
    for t in range(k2):
        w = jnp.dot((es[t] * inv).astype(bc.dtype), bc,
                    preferred_element_type=jnp.float32)      # (tm, C)
        acc = acc + w * vn_ref[:, t * C:(t + 1) * C].astype(jnp.float32)

    # --- fused output projection + shortcut residual
    out = jnp.dot(acc.astype(pw_ref.dtype), pw_ref[...],
                  preferred_element_type=jnp.float32)
    out = out + pb_ref[...].astype(jnp.float32) + res_ref[...].astype(jnp.float32)
    o_ref[...] = out.astype(o_ref.dtype)


def _na_starts(length, kernel_size, dilation):
    """NATTEN window-start / rpb-start indices per axis (static numpy ints)."""
    nh = kernel_size // 2
    starts = np.zeros((length,), np.int32)
    pb = np.zeros((length,), np.int32)
    for i in range(length):
        if dilation <= 1:
            s = max(i - nh, 0)
            if i + nh >= length:
                s += length - i - nh - 1
            p = nh
            if i < nh:
                p += nh - i
            if i + nh >= length:
                p += length - i - 1 - nh
        else:
            if i - nh * dilation < 0:
                s = i % dilation
                p = kernel_size - 1 - (i // dilation)
            elif i + nh * dilation >= length:
                imodd = i % dilation
                a = (length // dilation) * dilation
                bb = length - a
                if imodd < bb:
                    s = length - bb + imodd - 2 * nh * dilation
                else:
                    s = a + imodd - kernel_size * dilation
                p = (length - i - 1) // dilation
            else:
                s = i - nh * dilation
                p = nh
        starts[i] = s
        pb[i] = p
    return starts, pb


def na_attend(q, k, v, x_res, rpb, proj_w, proj_b,
              B, H, W, kernel_size, dilation, num_heads):
    """q/k/v/x_res: (B*H*W, C) bf16 -> NA + proj + residual, (B*H*W, C) bf16."""
    C = q.shape[-1]
    hd = C // num_heads
    K = kernel_size
    k2 = K * K
    HW = H * W
    scale = np.float32(hd ** -0.5)

    sh, ph = _na_starts(H, K, dilation)
    sw, pw = _na_starts(W, K, dilation)
    ks = np.arange(K)
    h_idx = sh[:, None] + ks[None, :] * dilation             # (H, K)
    w_idx = sw[:, None] + ks[None, :] * dilation             # (W, K)

    # flat neighbor table (H, W, K, K) -> (HW*k2,)
    nbr = h_idx[:, None, :, None] * W + w_idx[None, :, None, :]
    nbr_flat = jnp.asarray(nbr.reshape(-1).astype(np.int32))

    k3 = k.reshape(B, HW, C)
    v3 = v.reshape(B, HW, C)
    # TODO(synk): move this k2-times-expanded gather in-kernel (halo-band DMA +
    # static tap slices); kept host-side (bf16) for now.
    kn = jnp.take(k3, nbr_flat, axis=1).reshape(B, HW, k2 * C)
    vn = jnp.take(v3, nbr_flat, axis=1).reshape(B, HW, k2 * C)

    # RPB bias table (HW, k2*nH), tap-major, shared across batch
    bh = jnp.asarray((ph[:, None] + ks[None, :]).astype(np.int32))    # (H, K)
    bw = jnp.asarray((pw[:, None] + ks[None, :]).astype(np.int32))    # (W, K)
    bias = jnp.take(rpb, bh, axis=1)                 # (nH, H, K, 2K-1)
    bias = jnp.take(bias, bw, axis=3)                # (nH, H, K, W, K)
    bias = bias.transpose(1, 3, 2, 4, 0).reshape(HW, k2 * num_heads)

    # tiny 0/1 head<->channel indicator matrices
    rows = np.arange(C)
    eh_np = np.zeros((C, num_heads), np.float32)
    eh_np[rows, rows // hd] = 1.0
    eh = jnp.asarray(eh_np, ACT)                     # (C, nH) channel->head reduce
    bc = jnp.asarray(np.ascontiguousarray(eh_np.T), ACT)   # (nH, C) head->chan bcast

    kc = k2 * C
    nk = k2 * num_heads
    tm_cap = _na_row_cap(kc * jnp.dtype(ACT).itemsize)
    tm = _divisor_tile(HW, tm_cap, min_steps=2 if B == 1 else 1)

    q3 = q.reshape(B, HW, C)
    res3 = x_res.reshape(B, HW, C)

    out = pl.pallas_call(
        functools.partial(_na_kernel, num_heads=num_heads, k2=k2, scale=scale),
        out_shape=jax.ShapeDtypeStruct((B, HW, C), q.dtype),
        grid=(B, HW // tm),
        in_specs=[
            pl.BlockSpec((None, tm, C), lambda b, i: (b, i, 0)),     # q
            pl.BlockSpec((None, tm, kc), lambda b, i: (b, i, 0)),    # kn
            pl.BlockSpec((None, tm, kc), lambda b, i: (b, i, 0)),    # vn
            pl.BlockSpec((tm, nk), lambda b, i: (i, 0)),             # rpb bias
            pl.BlockSpec((C, num_heads), lambda b, i: (0, 0)),       # eh
            pl.BlockSpec((num_heads, C), lambda b, i: (0, 0)),       # bc
            pl.BlockSpec((C, C), lambda b, i: (0, 0)),               # proj_w
            pl.BlockSpec((1, C), lambda b, i: (0, 0)),               # proj_b
            pl.BlockSpec((None, tm, C), lambda b, i: (b, i, 0)),     # shortcut
        ],
        out_specs=pl.BlockSpec((None, tm, C), lambda b, i: (b, i, 0)),
        compiler_params=pltpu.CompilerParams(
            dimension_semantics=("parallel", "parallel")),
    )(q3, kn, vn, bias, eh, bc, proj_w, proj_b.reshape(1, C), res3)
    return out.reshape(B * HW, C)


# ----------------------------------------------------------------------------
# Model components
# ----------------------------------------------------------------------------
def conv3x3_s2(x, w, b=None, out_ln=None):
    """3x3 conv, stride 2, padding 1 via im2col + fused matmul (+ fused post-LN).
    x: (B, H, W, Cin) bf16; w: (3, 3, Cin, Cout) bf16."""
    # TODO(synk): replace im2col (2.25x expansion at stride 2) with in-kernel
    # tap accumulation over shifted row bands.
    B, H, W, Cin = x.shape
    Cout = w.shape[-1]
    Ho = (H + 2 - 3) // 2 + 1
    Wo = (W + 2 - 3) // 2 + 1
    xp = jnp.pad(x, ((0, 0), (1, 1), (1, 1), (0, 0)))
    patches = []
    for di in range(3):
        for dj in range(3):
            patches.append(
                xp[:, di:di + 2 * (Ho - 1) + 1:2, dj:dj + 2 * (Wo - 1) + 1:2, :])
    patches = jnp.stack(patches, axis=3).reshape(B * Ho * Wo, 9 * Cin)
    out = fused_matmul(patches, w.reshape(9 * Cin, Cout), b, out_ln=out_ln)
    return out.reshape(B, Ho, Wo, Cout)


def nat_block(x2, p, B, H, W, kernel_size, dilation, num_heads):
    """x2: (B*H*W, C) bf16 -> (B*H*W, C) bf16."""
    # fused: LN(norm1) + qkv projection + q/k/v split
    q, k, v = fused_matmul(x2, p["attn"]["qkv_w"], p["attn"]["qkv_b"],
                           ln=(p["norm1_w"], p["norm1_b"]), split=3)
    # fused: neighborhood attention + rpb + softmax + AV + proj + residual
    x2 = na_attend(q, k, v, x2, p["attn"]["rpb"],
                   p["attn"]["proj_w"], p["attn"]["proj_b"],
                   B, H, W, kernel_size, dilation, num_heads)
    # fused: LN(norm2) + fc1 + GELU + fc2 + residual (hidden stays in VMEM)
    x2 = mlp_block(x2, p["norm2_w"], p["norm2_b"],
                   p["mlp"]["fc1_w"], p["mlp"]["fc1_b"],
                   p["mlp"]["fc2_w"], p["mlp"]["fc2_b"])
    return x2


def dinat_forward(params, x_nchw, config):
    x = jnp.transpose(x_nchw, (0, 2, 3, 1)).astype(ACT)      # NCHW -> NHWC bf16

    pe = params["patch_embed"]
    x = conv3x3_s2(x, pe["conv1_w"], pe["conv1_b"])
    x = conv3x3_s2(x, pe["conv2_w"], pe["conv2_b"],
                   out_ln=(pe["norm_w"], pe["norm_b"]))      # fused tokenizer norm
    B, H, W, C = x.shape
    x2 = x.reshape(-1, C)

    outs = {}
    num_levels = len(config["depths"])
    for i in range(num_levels):
        lvl = params["levels"][i]
        for bi in range(config["depths"][i]):
            x2 = nat_block(x2, lvl["blocks"][bi], B, H, W, config["kernel_size"],
                           config["dilations"][i][bi], config["num_heads"][i])
        x_out2, (Ho, Wo, Co) = x2, (H, W, C)
        if lvl["downsample"] is not None:
            ds = lvl["downsample"]
            y = conv3x3_s2(x2.reshape(B, H, W, C), ds["red_w"], None,
                           out_ln=(ds["norm_w"], ds["norm_b"]))  # fused ds norm
            B, H, W, C = y.shape
            x2 = y.reshape(-1, C)
        if i in config["out_indices"]:
            no = params[f"norm{i}"]
            y = layernorm(x_out2, no["w"], no["b"],
                          out_dtype=jnp.float32).reshape(B, Ho, Wo, Co)
            outs[f"res{i + 2}"] = jnp.transpose(y, (0, 3, 1, 2))  # back to NCHW
    return outs


# ----------------------------------------------------------------------------
# Deterministic parameter initialization (mirrors the module's __init__ shapes)
# ----------------------------------------------------------------------------
def init_params(key, config):
    keys = iter(jax.random.split(key, 512))

    def nrm(shape, std=0.02, dtype=ACT):
        return (jax.random.normal(next(keys), shape, jnp.float32) * std).astype(dtype)

    in_chans = config["in_chans"]
    ed = config["embed_dim"]
    K = config["kernel_size"]
    mlp_ratio = config["mlp_ratio"]
    depths = config["depths"]
    num_heads = config["num_heads"]
    num_levels = len(depths)
    num_features = [ed * (2 ** i) for i in range(num_levels)]

    params = {
        "patch_embed": {
            "conv1_w": nrm((3, 3, in_chans, ed // 2)),
            "conv1_b": jnp.zeros((ed // 2,), jnp.float32),
            "conv2_w": nrm((3, 3, ed // 2, ed)),
            "conv2_b": jnp.zeros((ed,), jnp.float32),
            "norm_w": jnp.ones((ed,), jnp.float32),
            "norm_b": jnp.zeros((ed,), jnp.float32),
        },
        "levels": [],
    }

    for i in range(num_levels):
        dim = num_features[i]
        hidden = int(dim * mlp_ratio)
        blocks = []
        for _ in range(depths[i]):
            blocks.append({
                "norm1_w": jnp.ones((dim,), jnp.float32),
                "norm1_b": jnp.zeros((dim,), jnp.float32),
                "attn": {
                    "qkv_w": nrm((dim, 3 * dim)),
                    "qkv_b": jnp.zeros((3 * dim,), jnp.float32),
                    "rpb": nrm((num_heads[i], 2 * K - 1, 2 * K - 1), dtype=jnp.float32),
                    "proj_w": nrm((dim, dim)),
                    "proj_b": jnp.zeros((dim,), jnp.float32),
                },
                "norm2_w": jnp.ones((dim,), jnp.float32),
                "norm2_b": jnp.zeros((dim,), jnp.float32),
                "mlp": {
                    "fc1_w": nrm((dim, hidden)),
                    "fc1_b": jnp.zeros((hidden,), jnp.float32),
                    "fc2_w": nrm((hidden, dim)),
                    "fc2_b": jnp.zeros((dim,), jnp.float32),
                },
            })
        downsample = None
        if i < num_levels - 1:
            downsample = {
                "red_w": nrm((3, 3, dim, 2 * dim)),
                "norm_w": jnp.ones((2 * dim,), jnp.float32),
                "norm_b": jnp.zeros((2 * dim,), jnp.float32),
            }
        params["levels"].append({"blocks": blocks, "downsample": downsample})

    for i in config["out_indices"]:
        params[f"norm{i}"] = {
            "w": jnp.ones((num_features[i],), jnp.float32),
            "b": jnp.zeros((num_features[i],), jnp.float32),
        }
    return params


# ----------------------------------------------------------------------------
if __name__ == "__main__":
    config = dict(
        in_chans=3,
        embed_dim=32,
        depths=[2, 1],
        num_heads=[2, 4],
        kernel_size=3,
        dilations=[[1, 2], [1]],
        mlp_ratio=4.0,
        out_indices=(0, 1),
    )

    key = jax.random.PRNGKey(0)
    pkey, xkey = jax.random.split(key)
    params = init_params(pkey, config)

    # PyTorch-style NCHW input
    x = jax.random.normal(xkey, (2, 3, 32, 32), jnp.float32)

    fwd = jax.jit(functools.partial(dinat_forward, config=config))
    outs = fwd(params, x)
    outs = jax.tree_util.tree_map(jax.block_until_ready, outs)

    assert outs["res2"].shape == (2, 32, 8, 8), outs["res2"].shape
    assert outs["res3"].shape == (2, 64, 4, 4), outs["res3"].shape
    assert all(bool(jnp.all(jnp.isfinite(v))) for v in outs.values())
    print("KERNEL_OK")
</pallas_src>

<mosaic_0001>
module attributes {stable_mosaic.version = 11 : i64} {
  func.func @kernel(%arg0: i32, %arg1: memref<256x27xbf16, #tpu.memory_space<vmem>>, %arg2: memref<27x16xbf16, #tpu.memory_space<vmem>>, %arg3: memref<1x16xf32, #tpu.memory_space<vmem>>, %arg4: memref<256x16xbf16, #tpu.memory_space<vmem>>) attributes {dimension_semantics = [#tpu.dimension_semantics<parallel>], iteration_bounds = array<i64: 2>, scalar_prefetch = 0 : i64, scratch_operands = 0 : i64, tpu.core_type = #tpu.core_type<tc>, window_params = [{transform_indices = @transform_0, window_bounds = array<i64: 256, 27>}, {pipeline_mode = #tpu.pipeline_mode<synchronous>, transform_indices = @transform_1, window_bounds = array<i64: 27, 16>}, {pipeline_mode = #tpu.pipeline_mode<synchronous>, transform_indices = @transform_2, window_bounds = array<i64: 1, 16>}, {transform_indices = @transform_3, window_bounds = array<i64: 256, 16>}]} {
    %c0 = arith.constant 0 : index
    %c0_0 = arith.constant 0 : index
    %0 = vector.load %arg1[%c0, %c0_0] : memref<256x27xbf16, #tpu.memory_space<vmem>>, vector<256x27xbf16>
    %c0_1 = arith.constant 0 : index
    %c0_2 = arith.constant 0 : index
    %1 = vector.load %arg2[%c0_1, %c0_2] : memref<27x16xbf16, #tpu.memory_space<vmem>>, vector<27x16xbf16>
    %cst = arith.constant dense<0.000000e+00> : vector<256x16xf32>
    %2 = tpu.matmul %0, %1, %cst {dimension_numbers = #tpu.dot_dimension_numbers<[1], [0], [0], [1], [0, 0, 1, 1], [], []>} : vector<256x27xbf16>, vector<27x16xbf16>, vector<256x16xf32> -> vector<256x16xf32>
    %c0_3 = arith.constant 0 : index
    %c0_4 = arith.constant 0 : index
    %3 = vector.load %arg3[%c0_3, %c0_4] : memref<1x16xf32, #tpu.memory_space<vmem>>, vector<1x16xf32>
    %4 = vector.broadcast %3 : vector<1x16xf32> to vector<256x16xf32>
    %5 = arith.addf %2, %4 : vector<256x16xf32>
    %6 = arith.truncf %5 : vector<256x16xf32> to vector<256x16xbf16>
    %c0_5 = arith.constant 0 : index
    %c0_6 = arith.constant 0 : index
    %7 = vector.load %arg4[%c0_5, %c0_6] : memref<256x16xbf16, #tpu.memory_space<vmem>>, vector<256x16xbf16>
    tpu.vector_store %arg4[%c0_5, %c0_6], %6 {strides = array<i32>} : memref<256x16xbf16, #tpu.memory_space<vmem>>, vector<256x16xbf16>,
    return
  }
  func.func @transform_0(%arg0: i32) -> (i32, i32) {
    %c0_i32 = arith.constant 0 : i32
    %c0_i32_0 = arith.constant 0 : i32
    return %arg0, %c0_i32 : i32, i32
  }
  func.func @transform_1(%arg0: i32) -> (i32, i32) {
    %c0_i32 = arith.constant 0 : i32
    %c0_i32_0 = arith.constant 0 : i32
    %c0_i32_1 = arith.constant 0 : i32
    return %c0_i32, %c0_i32_0 : i32, i32
  }
  func.func @transform_2(%arg0: i32) -> (i32, i32) {
    %c0_i32 = arith.constant 0 : i32
    %c0_i32_0 = arith.constant 0 : i32
    %c0_i32_1 = arith.constant 0 : i32
    return %c0_i32, %c0_i32_0 : i32, i32
  }
  func.func @transform_3(%arg0: i32) -> (i32, i32) {
    %c0_i32 = arith.constant 0 : i32
    %c0_i32_0 = arith.constant 0 : i32
    return %arg0, %c0_i32 : i32, i32
  }
}

module attributes {stable_mosaic.version = 11 : i64} {
  func.func @kernel(%arg0: i32, %arg1: memref<64x144xbf16, #tpu.memory_space<vmem>>, %arg2: memref<144x32xbf16, #tpu.memory_space<vmem>>, %arg3: memref<1x32xf32, #tpu.memory_space<vmem>>, %arg4: memref<1x32xf32, #tpu.memory_space<vmem>>, %arg5: memref<1x32xf32, #tpu.memory_space<vmem>>, %arg6: memref<64x32xbf16, #tpu.memory_space<vmem>>) attributes {dimension_semantics = [#tpu.dimension_semantics<parallel>], iteration_bounds = array<i64: 2>, scalar_prefetch = 0 : i64, scratch_operands = 0 : i64, tpu.core_type = #tpu.core_type<tc>, window_params = [{transform_indices = @transform_0, window_bounds = array<i64: 64, 144>}, {pipeline_mode = #tpu.pipeline_mode<synchronous>, transform_indices = @transform_1, window_bounds = array<i64: 144, 32>}, {pipeline_mode = #tpu.pipeline_mode<synchronous>, transform_indices = @transform_2, window_bounds = array<i64: 1, 32>}, {pipeline_mode = #tpu.pipeline_mode<synchronous>, transform_indices = @transform_3, window_bounds = array<i64: 1, 32>}, {pipeline_mode = #tpu.pipeline_mode<synchronous>, transform_indices = @transform_4, window_bounds = array<i64: 1, 32>}, {transform_indices = @transform_5, window_bounds = array<i64: 64, 32>}]} {
    %c0 = arith.constant 0 : index
    %c0_0 = arith.constant 0 : index
    %0 = vector.load %arg1[%c0, %c0_0] : memref<64x144xbf16, #tpu.memory_space<vmem>>, vector<64x144xbf16>
    %c0_1 = arith.constant 0 : index
    %c0_2 = arith.constant 0 : index
    %1 = vector.load %arg2[%c0_1, %c0_2] : memref<144x32xbf16, #tpu.memory_space<vmem>>, vector<144x32xbf16>
    %cst = arith.constant dense<0.000000e+00> : vector<64x32xf32>
    %2 = tpu.matmul %0, %1, %cst {dimension_numbers = #tpu.dot_dimension_numbers<[1], [0], [0], [1], [0, 0, 1, 1], [], []>} : vector<64x144xbf16>, vector<144x32xbf16>, vector<64x32xf32> -> vector<64x32xf32>
    %c0_3 = arith.constant 0 : index
    %c0_4 = arith.constant 0 : index
    %3 = vector.load %arg3[%c0_3, %c0_4] : memref<1x32xf32, #tpu.memory_space<vmem>>, vector<1x32xf32>
    %4 = vector.broadcast %3 : vector<1x32xf32> to vector<64x32xf32>
    %5 = arith.addf %2, %4 : vector<64x32xf32>
    %cst_5 = arith.constant dense<0.000000e+00> : vector<64xf32>
    %6 = vector.multi_reduction <add>, %5, %cst_5 [1] : vector<64x32xf32> to vector<64xf32>
    %7 = vector.shape_cast %6 : vector<64xf32> to vector<64x1xf32>
    %cst_6 = arith.constant 3.200000e+01 : f32
    %8 = vector.broadcast %cst_6 : f32 to vector<64x1xf32>
    %9 = arith.divf %7, %8 : vector<64x1xf32>
    %10 = vector.broadcast %9 : vector<64x1xf32> to vector<64x32xf32>
    %11 = arith.subf %5, %10 : vector<64x32xf32>
    %12 = arith.mulf %11, %11 : vector<64x32xf32>
    %cst_7 = arith.constant dense<0.000000e+00> : vector<64xf32>
    %13 = vector.multi_reduction <add>, %12, %cst_7 [1] : vector<64x32xf32> to vector<64xf32>
    %14 = vector.shape_cast %13 : vector<64xf32> to vector<64x1xf32>
    %cst_8 = arith.constant 3.200000e+01 : f32
    %15 = vector.broadcast %cst_8 : f32 to vector<64x1xf32>
    %16 = arith.divf %14, %15 : vector<64x1xf32>
    %cst_9 = arith.constant 9.99999974E-6 : f32
    %17 = vector.broadcast %cst_9 : f32 to vector<64x1xf32>
    %18 = arith.addf %16, %17 : vector<64x1xf32>
    %19 = math.rsqrt %18 : vector<64x1xf32>
    %20 = vector.broadcast %19 : vector<64x1xf32> to vector<64x32xf32>
    %21 = arith.mulf %11, %20 : vector<64x32xf32>
    %c0_10 = arith.constant 0 : index
    %c0_11 = arith.constant 0 : index
    %22 = vector.load %arg4[%c0_10, %c0_11] : memref<1x32xf32, #tpu.memory_space<vmem>>, vector<1x32xf32>
    %23 = vector.broadcast %22 : vector<1x32xf32> to vector<64x32xf32>
    %24 = arith.mulf %21, %23 : vector<64x32xf32>
    %c0_12 = arith.constant 0 : index
    %c0_13 = arith.constant 0 : index
    %25 = vector.load %arg5[%c0_12, %c0_13] : memref<1x32xf32, #tpu.memory_space<vmem>>, vector<1x32xf32>
    %26 = vector.broadcast %25 : vector<1x32xf32> to vector<64x32xf32>
    %27 = arith.addf %24, %26 : vector<64x32xf32>
    %28 = arith.truncf %27 : vector<64x32xf32> to vector<64x32xbf16>
    %c0_14 = arith.constant 0 : index
    %c0_15 = arith.constant 0 : index
    %29 = vector.load %arg6[%c0_14, %c0_15] : memref<64x32xbf16, #tpu.memory_space<vmem>>, vector<64x32xbf16>
    tpu.vector_store %arg6[%c0_14, %c0_15], %28 {strides = array<i32>} : memref<64x32xbf16, #tpu.memory_space<vmem>>, vector<64x32xbf16>,
    return
  }
  func.func @transform_0(%arg0: i32) -> (i32, i32) {
    %c0_i32 = arith.constant 0 : i32
    %c0_i32_0 = arith.constant 0 : i32
    return %arg0, %c0_i32 : i32, i32
  }
  func.func @transform_1(%arg0: i32) -> (i32, i32) {
    %c0_i32 = arith.constant 0 : i32
    %c0_i32_0 = arith.constant 0 : i32
    %c0_i32_1 = arith.constant 0 : i32
    return %c0_i32, %c0_i32_0 : i32, i32
  }
  func.func @transform_2(%arg0: i32) -> (i32, i32) {
    %c0_i32 = arith.constant 0 : i32
    %c0_i32_0 = arith.constant 0 : i32
    %c0_i32_1 = arith.constant 0 : i32
    return %c0_i32, %c0_i32_0 : i32, i32
  }
  func.func @transform_3(%arg0: i32) -> (i32, i32) {
    %c0_i32 = arith.constant 0 : i32
    %c0_i32_0 = arith.constant 0 : i32
    %c0_i32_1 = arith.constant 0 : i32
    return %c0_i32, %c0_i32_0 : i32, i32
  }
  func.func @transform_4(%arg0: i32) -> (i32, i32) {
    %c0_i32 = arith.constant 0 : i32
    %c0_i32_0 = arith.constant 0 : i32
    %c0_i32_1 = arith.constant 0 : i32
    return %c0_i32, %c0_i32_0 : i32, i32
  }
  func.func @transform_5(%arg0: i32) -> (i32, i32) {
    %c0_i32 = arith.constant 0 : i32
    %c0_i32_0 = arith.constant 0 : i32
    return %arg0, %c0_i32 : i32, i32
  }
}

module attributes {stable_mosaic.version = 11 : i64} {
  func.func @kernel(%arg0: i32, %arg1: memref<64x32xbf16, #tpu.memory_space<vmem>>, %arg2: memref<1x32xf32, #tpu.memory_space<vmem>>, %arg3: memref<1x32xf32, #tpu.memory_space<vmem>>, %arg4: memref<32x96xbf16, #tpu.memory_space<vmem>>, %arg5: memref<1x96xf32, #tpu.memory_space<vmem>>, %arg6: memref<64x32xbf16, #tpu.memory_space<vmem>>, %arg7: memref<64x32xbf16, #tpu.memory_space<vmem>>, %arg8: memref<64x32xbf16, #tpu.memory_space<vmem>>) attributes {dimension_semantics = [#tpu.dimension_semantics<parallel>], iteration_bounds = array<i64: 2>, scalar_prefetch = 0 : i64, scratch_operands = 0 : i64, tpu.core_type = #tpu.core_type<tc>, window_params = [{transform_indices = @transform_0, window_bounds = array<i64: 64, 32>}, {pipeline_mode = #tpu.pipeline_mode<synchronous>, transform_indices = @transform_1, window_bounds = array<i64: 1, 32>}, {pipeline_mode = #tpu.pipeline_mode<synchronous>, transform_indices = @transform_2, window_bounds = array<i64: 1, 32>}, {pipeline_mode = #tpu.pipeline_mode<synchronous>, transform_indices = @transform_3, window_bounds = array<i64: 32, 96>}, {pipeline_mode = #tpu.pipeline_mode<synchronous>, transform_indices = @transform_4, window_bounds = array<i64: 1, 96>}, {transform_indices = @transform_5, window_bounds = array<i64: 64, 32>}, {transform_indices = @transform_6, window_bounds = array<i64: 64, 32>}, {transform_indices = @transform_7, window_bounds = array<i64: 64, 32>}]} {
    %c0 = arith.constant 0 : index
    %c0_0 = arith.constant 0 : index
    %0 = vector.load %arg1[%c0, %c0_0] : memref<64x32xbf16, #tpu.memory_space<vmem>>, vector<64x32xbf16>
    %1 = arith.extf %0 : vector<64x32xbf16> to vector<64x32xf32>
    %cst = arith.constant dense<0.000000e+00> : vector<64xf32>
    %2 = vector.multi_reduction <add>, %1, %cst [1] : vector<64x32xf32> to vector<64xf32>
    %3 = vector.shape_cast %2 : vector<64xf32> to vector<64x1xf32>
    %cst_1 = arith.constant 3.200000e+01 : f32
    %4 = vector.broadcast %cst_1 : f32 to vector<64x1xf32>
    %5 = arith.divf %3, %4 : vector<64x1xf32>
    %6 = vector.broadcast %5 : vector<64x1xf32> to vector<64x32xf32>
    %7 = arith.subf %1, %6 : vector<64x32xf32>
    %8 = arith.mulf %7, %7 : vector<64x32xf32>
    %cst_2 = arith.constant dense<0.000000e+00> : vector<64xf32>
    %9 = vector.multi_reduction <add>, %8, %cst_2 [1] : vector<64x32xf32> to vector<64xf32>
    %10 = vector.shape_cast %9 : vector<64xf32> to vector<64x1xf32>
    %cst_3 = arith.constant 3.200000e+01 : f32
    %11 = vector.broadcast %cst_3 : f32 to vector<64x1xf32>
    %12 = arith.divf %10, %11 : vector<64x1xf32>
    %cst_4 = arith.constant 9.99999974E-6 : f32
    %13 = vector.broadcast %cst_4 : f32 to vector<64x1xf32>
    %14 = arith.addf %12, %13 : vector<64x1xf32>
    %15 = math.rsqrt %14 : vector<64x1xf32>
    %16 = vector.broadcast %15 : vector<64x1xf32> to vector<64x32xf32>
    %17 = arith.mulf %7, %16 : vector<64x32xf32>
    %c0_5 = arith.constant 0 : index
    %c0_6 = arith.constant 0 : index
    %18 = vector.load %arg2[%c0_5, %c0_6] : memref<1x32xf32, #tpu.memory_space<vmem>>, vector<1x32xf32>
    %19 = vector.broadcast %18 : vector<1x32xf32> to vector<64x32xf32>
    %20 = arith.mulf %17, %19 : vector<64x32xf32>
    %c0_7 = arith.constant 0 : index
    %c0_8 = arith.constant 0 : index
    %21 = vector.load %arg3[%c0_7, %c0_8] : memref<1x32xf32, #tpu.memory_space<vmem>>, vector<1x32xf32>
    %22 = vector.broadcast %21 : vector<1x32xf32> to vector<64x32xf32>
    %23 = arith.addf %20, %22 : vector<64x32xf32>
    %24 = arith.truncf %23 : vector<64x32xf32> to vector<64x32xbf16>
    %c0_9 = arith.constant 0 : index
    %c0_10 = arith.constant 0 : index
    %25 = vector.load %arg4[%c0_9, %c0_10] : memref<32x96xbf16, #tpu.memory_space<vmem>>, vector<32x96xbf16>
    %cst_11 = arith.constant dense<0.000000e+00> : vector<64x96xf32>
    %26 = tpu.matmul %24, %25, %cst_11 {dimension_numbers = #tpu.dot_dimension_numbers<[1], [0], [0], [1], [0, 0, 1, 1], [], []>} : vector<64x32xbf16>, vector<32x96xbf16>, vector<64x96xf32> -> vector<64x96xf32>
    %c0_12 = arith.constant 0 : index
    %c0_13 = arith.constant 0 : index
    %27 = vector.load %arg5[%c0_12, %c0_13] : memref<1x96xf32, #tpu.memory_space<vmem>>, vector<1x96xf32>
    %28 = vector.broadcast %27 : vector<1x96xf32> to vector<64x96xf32>
    %29 = arith.addf %26, %28 : vector<64x96xf32>
    %30 = vector.extract_strided_slice %29 {offsets = [0, 0], sizes = [64, 32], strides = [1, 1]} : vector<64x96xf32> to vector<64x32xf32>
    %31 = arith.truncf %30 : vector<64x32xf32> to vector<64x32xbf16>
    %c0_14 = arith.constant 0 : index
    %c0_15 = arith.constant 0 : index
    %32 = vector.load %arg6[%c0_14, %c0_15] : memref<64x32xbf16, #tpu.memory_space<vmem>>, vector<64x32xbf16>
    tpu.vector_store %arg6[%c0_14, %c0_15], %31 {strides = array<i32>} : memref<64x32xbf16, #tpu.memory_space<vmem>>, vector<64x32xbf16>,
    %33 = vector.extract_strided_slice %29 {offsets = [0, 32], sizes = [64, 32], strides = [1, 1]} : vector<64x96xf32> to vector<64x32xf32>
    %34 = arith.truncf %33 : vector<64x32xf32> to vector<64x32xbf16>
    %c0_16 = arith.constant 0 : index
    %c0_17 = arith.constant 0 : index
    %35 = vector.load %arg7[%c0_16, %c0_17] : memref<64x32xbf16, #tpu.memory_space<vmem>>, vector<64x32xbf16>
    tpu.vector_store %arg7[%c0_16, %c0_17], %34 {strides = array<i32>} : memref<64x32xbf16, #tpu.memory_space<vmem>>, vector<64x32xbf16>,
    %36 = vector.extract_strided_slice %29 {offsets = [0, 64], sizes = [64, 32], strides = [1, 1]} : vector<64x96xf32> to vector<64x32xf32>
    %37 = arith.truncf %36 : vector<64x32xf32> to vector<64x32xbf16>
    %c0_18 = arith.constant 0 : index
    %c0_19 = arith.constant 0 : index
    %38 = vector.load %arg8[%c0_18, %c0_19] : memref<64x32xbf16, #tpu.memory_space<vmem>>, vector<64x32xbf16>
    tpu.vector_store %arg8[%c0_18, %c0_19], %37 {strides = array<i32>} : memref<64x32xbf16, #tpu.memory_space<vmem>>, vector<64x32xbf16>,
    return
  }
  func.func @transform_0(%arg0: i32) -> (i32, i32) {
    %c0_i32 = arith.constant 0 : i32
    %c0_i32_0 = arith.constant 0 : i32
    return %arg0, %c0_i32 : i32, i32
  }
  func.func @transform_1(%arg0: i32) -> (i32, i32) {
    %c0_i32 = arith.constant 0 : i32
    %c0_i32_0 = arith.constant 0 : i32
    %c0_i32_1 = arith.constant 0 : i32
    return %c0_i32, %c0_i32_0 : i32, i32
  }
  func.func @transform_2(%arg0: i32) -> (i32, i32) {
    %c0_i32 = arith.constant 0 : i32
    %c0_i32_0 = arith.constant 0 : i32
    %c0_i32_1 = arith.constant 0 : i32
    return %c0_i32, %c0_i32_0 : i32, i32
  }
  func.func @transform_3(%arg0: i32) -> (i32, i32) {
    %c0_i32 = arith.constant 0 : i32
    %c0_i32_0 = arith.constant 0 : i32
    %c0_i32_1 = arith.constant 0 : i32
    return %c0_i32, %c0_i32_0 : i32, i32
  }
  func.func @transform_4(%arg0: i32) -> (i32, i32) {
    %c0_i32 = arith.constant 0 : i32
    %c0_i32_0 = arith.constant 0 : i32
    %c0_i32_1 = arith.constant 0 : i32
    return %c0_i32, %c0_i32_0 : i32, i32
  }
  func.func @transform_5(%arg0: i32) -> (i32, i32) {
    %c0_i32 = arith.constant 0 : i32
    %c0_i32_0 = arith.constant 0 : i32
    return %arg0, %c0_i32 : i32, i32
  }
  func.func @transform_6(%arg0: i32) -> (i32, i32) {
    %c0_i32 = arith.constant 0 : i32
    %c0_i32_0 = arith.constant 0 : i32
    return %arg0, %c0_i32 : i32, i32
  }
  func.func @transform_7(%arg0: i32) -> (i32, i32) {
    %c0_i32 = arith.constant 0 : i32
    %c0_i32_0 = arith.constant 0 : i32
    return %arg0, %c0_i32 : i32, i32
  }
}

module attributes {stable_mosaic.version = 11 : i64} {
  func.func @_mlp_kernel(%arg0: i32, %arg1: memref<64x32xbf16, #tpu.memory_space<vmem>>, %arg2: memref<1x32xf32, #tpu.memory_space<vmem>>, %arg3: memref<1x32xf32, #tpu.memory_space<vmem>>, %arg4: memref<32x128xbf16, #tpu.memory_space<vmem>>, %arg5: memref<1x128xf32, #tpu.memory_space<vmem>>, %arg6: memref<128x32xbf16, #tpu.memory_space<vmem>>, %arg7: memref<1x32xf32, #tpu.memory_space<vmem>>, %arg8: memref<64x32xbf16, #tpu.memory_space<vmem>>) attributes {dimension_semantics = [#tpu.dimension_semantics<parallel>], iteration_bounds = array<i64: 2>, scalar_prefetch = 0 : i64, scratch_operands = 0 : i64, tpu.core_type = #tpu.core_type<tc>, window_params = [{transform_indices = @transform_0, window_bounds = array<i64: 64, 32>}, {pipeline_mode = #tpu.pipeline_mode<synchronous>, transform_indices = @transform_1, window_bounds = array<i64: 1, 32>}, {pipeline_mode = #tpu.pipeline_mode<synchronous>, transform_indices = @transform_2, window_bounds = array<i64: 1, 32>}, {pipeline_mode = #tpu.pipeline_mode<synchronous>, transform_indices = @transform_3, window_bounds = array<i64: 32, 128>}, {pipeline_mode = #tpu.pipeline_mode<synchronous>, transform_indices = @transform_4, window_bounds = array<i64: 1, 128>}, {pipeline_mode = #tpu.pipeline_mode<synchronous>, transform_indices = @transform_5, window_bounds = array<i64: 128, 32>}, {pipeline_mode = #tpu.pipeline_mode<synchronous>, transform_indices = @transform_6, window_bounds = array<i64: 1, 32>}, {transform_indices = @transform_7, window_bounds = array<i64: 64, 32>}]} {
    %c0 = arith.constant 0 : index
    %c0_0 = arith.constant 0 : index
    %0 = vector.load %arg1[%c0, %c0_0] : memref<64x32xbf16, #tpu.memory_space<vmem>>, vector<64x32xbf16>
    %1 = arith.extf %0 : vector<64x32xbf16> to vector<64x32xf32>
    %cst = arith.constant dense<0.000000e+00> : vector<64xf32>
    %2 = vector.multi_reduction <add>, %1, %cst [1] : vector<64x32xf32> to vector<64xf32>
    %3 = vector.shape_cast %2 : vector<64xf32> to vector<64x1xf32>
    %cst_1 = arith.constant 3.200000e+01 : f32
    %4 = vector.broadcast %cst_1 : f32 to vector<64x1xf32>
    %5 = arith.divf %3, %4 : vector<64x1xf32>
    %6 = vector.broadcast %5 : vector<64x1xf32> to vector<64x32xf32>
    %7 = arith.subf %1, %6 : vector<64x32xf32>
    %8 = arith.mulf %7, %7 : vector<64x32xf32>
    %cst_2 = arith.constant dense<0.000000e+00> : vector<64xf32>
    %9 = vector.multi_reduction <add>, %8, %cst_2 [1] : vector<64x32xf32> to vector<64xf32>
    %10 = vector.shape_cast %9 : vector<64xf32> to vector<64x1xf32>
    %cst_3 = arith.constant 3.200000e+01 : f32
    %11 = vector.broadcast %cst_3 : f32 to vector<64x1xf32>
    %12 = arith.divf %10, %11 : vector<64x1xf32>
    %cst_4 = arith.constant 9.99999974E-6 : f32
    %13 = vector.broadcast %cst_4 : f32 to vector<64x1xf32>
    %14 = arith.addf %12, %13 : vector<64x1xf32>
    %15 = math.rsqrt %14 : vector<64x1xf32>
    %16 = vector.broadcast %15 : vector<64x1xf32> to vector<64x32xf32>
    %17 = arith.mulf %7, %16 : vector<64x32xf32>
    %c0_5 = arith.constant 0 : index
    %c0_6 = arith.constant 0 : index
    %18 = vector.load %arg2[%c0_5, %c0_6] : memref<1x32xf32, #tpu.memory_space<vmem>>, vector<1x32xf32>
    %19 = vector.broadcast %18 : vector<1x32xf32> to vector<64x32xf32>
    %20 = arith.mulf %17, %19 : vector<64x32xf32>
    %c0_7 = arith.constant 0 : index
    %c0_8 = arith.constant 0 : index
    %21 = vector.load %arg3[%c0_7, %c0_8] : memref<1x32xf32, #tpu.memory_space<vmem>>, vector<1x32xf32>
    %22 = vector.broadcast %21 : vector<1x32xf32> to vector<64x32xf32>
    %23 = arith.addf %20, %22 : vector<64x32xf32>
    %24 = arith.truncf %23 : vector<64x32xf32> to vector<64x32xbf16>
    %c0_9 = arith.constant 0 : index
    %c0_10 = arith.constant 0 : index
    %25 = vector.load %arg4[%c0_9, %c0_10] : memref<32x128xbf16, #tpu.memory_space<vmem>>, vector<32x128xbf16>
    %cst_11 = arith.constant dense<0.000000e+00> : vector<64x128xf32>
    %26 = tpu.matmul %24, %25, %cst_11 {dimension_numbers = #tpu.dot_dimension_numbers<[1], [0], [0], [1], [0, 0, 1, 1], [], []>} : vector<64x32xbf16>, vector<32x128xbf16>, vector<64x128xf32> -> vector<64x128xf32>
    %c0_12 = arith.constant 0 : index
    %c0_13 = arith.constant 0 : index
    %27 = vector.load %arg5[%c0_12, %c0_13] : memref<1x128xf32, #tpu.memory_space<vmem>>, vector<1x128xf32>
    %28 = vector.broadcast %27 : vector<1x128xf32> to vector<64x128xf32>
    %29 = arith.addf %26, %28 : vector<64x128xf32>
    %cst_14 = arith.constant 5.000000e-01 : f32
    %30 = vector.broadcast %cst_14 : f32 to vector<64x128xf32>
    %31 = arith.mulf %30, %29 : vector<64x128xf32>
    %cst_15 = arith.constant 0.707106769 : f32
    %32 = vector.broadcast %cst_15 : f32 to vector<64x128xf32>
    %33 = arith.mulf %29, %32 : vector<64x128xf32>
    %34 = math.erf %33 : vector<64x128xf32>
    %cst_16 = arith.constant 1.000000e+00 : f32
    %35 = vector.broadcast %cst_16 : f32 to vector<64x128xf32>
    %36 = arith.addf %35, %34 : vector<64x128xf32>
    %37 = arith.mulf %31, %36 : vector<64x128xf32>
    %38 = arith.truncf %37 : vector<64x128xf32> to vector<64x128xbf16>
    %c0_17 = arith.constant 0 : index
    %c0_18 = arith.constant 0 : index
    %39 = vector.load %arg6[%c0_17, %c0_18] : memref<128x32xbf16, #tpu.memory_space<vmem>>, vector<128x32xbf16>
    %cst_19 = arith.constant dense<0.000000e+00> : vector<64x32xf32>
    %40 = tpu.matmul %38, %39, %cst_19 {dimension_numbers = #tpu.dot_dimension_numbers<[1], [0], [0], [1], [0, 0, 1, 1], [], []>} : vector<64x128xbf16>, vector<128x32xbf16>, vector<64x32xf32> -> vector<64x32xf32>
    %c0_20 = arith.constant 0 : index
    %c0_21 = arith.constant 0 : index
    %41 = vector.load %arg7[%c0_20, %c0_21] : memref<1x32xf32, #tpu.memory_space<vmem>>, vector<1x32xf32>
    %42 = vector.broadcast %41 : vector<1x32xf32> to vector<64x32xf32>
    %43 = arith.addf %40, %42 : vector<64x32xf32>
    %44 = arith.addf %43, %1 : vector<64x32xf32>
    %45 = arith.truncf %44 : vector<64x32xf32> to vector<64x32xbf16>
    %c0_22 = arith.constant 0 : index
    %c0_23 = arith.constant 0 : index
    %46 = vector.load %arg8[%c0_22, %c0_23] : memref<64x32xbf16, #tpu.memory_space<vmem>>, vector<64x32xbf16>
    tpu.vector_store %arg8[%c0_22, %c0_23], %45 {strides = array<i32>} : memref<64x32xbf16, #tpu.memory_space<vmem>>, vector<64x32xbf16>,
    return
  }
  func.func @transform_0(%arg0: i32) -> (i32, i32) {
    %c0_i32 = arith.constant 0 : i32
    %c0_i32_0 = arith.constant 0 : i32
    return %arg0, %c0_i32 : i32, i32
  }
  func.func @transform_1(%arg0: i32) -> (i32, i32) {
    %c0_i32 = arith.constant 0 : i32
    %c0_i32_0 = arith.constant 0 : i32
    %c0_i32_1 = arith.constant 0 : i32
    return %c0_i32, %c0_i32_0 : i32, i32
  }
  func.func @transform_2(%arg0: i32) -> (i32, i32) {
    %c0_i32 = arith.constant 0 : i32
    %c0_i32_0 = arith.constant 0 : i32
    %c0_i32_1 = arith.constant 0 : i32
    return %c0_i32, %c0_i32_0 : i32, i32
  }
  func.func @transform_3(%arg0: i32) -> (i32, i32) {
    %c0_i32 = arith.constant 0 : i32
    %c0_i32_0 = arith.constant 0 : i32
    %c0_i32_1 = arith.constant 0 : i32
    return %c0_i32, %c0_i32_0 : i32, i32
  }
  func.func @transform_4(%arg0: i32) -> (i32, i32) {
    %c0_i32 = arith.constant 0 : i32
    %c0_i32_0 = arith.constant 0 : i32
    %c0_i32_1 = arith.constant 0 : i32
    return %c0_i32, %c0_i32_0 : i32, i32
  }
  func.func @transform_5(%arg0: i32) -> (i32, i32) {
    %c0_i32 = arith.constant 0 : i32
    %c0_i32_0 = arith.constant 0 : i32
    %c0_i32_1 = arith.constant 0 : i32
    return %c0_i32, %c0_i32_0 : i32, i32
  }
  func.func @transform_6(%arg0: i32) -> (i32, i32) {
    %c0_i32 = arith.constant 0 : i32
    %c0_i32_0 = arith.constant 0 : i32
    %c0_i32_1 = arith.constant 0 : i32
    return %c0_i32, %c0_i32_0 : i32, i32
  }
  func.func @transform_7(%arg0: i32) -> (i32, i32) {
    %c0_i32 = arith.constant 0 : i32
    %c0_i32_0 = arith.constant 0 : i32
    return %arg0, %c0_i32 : i32, i32
  }
}

module attributes {stable_mosaic.version = 11 : i64} {
  func.func @_na_kernel(%arg0: i32, %arg1: i32, %arg2: memref<1x64x32xbf16, #tpu.memory_space<vmem>>, %arg3: memref<1x64x288xbf16, #tpu.memory_space<vmem>>, %arg4: memref<1x64x288xbf16, #tpu.memory_space<vmem>>, %arg5: memref<64x18xf32, #tpu.memory_space<vmem>>, %arg6: memref<32x2xbf16, #tpu.memory_space<vmem>>, %arg7: memref<2x32xbf16, #tpu.memory_space<vmem>>, %arg8: memref<32x32xbf16, #tpu.memory_space<vmem>>, %arg9: memref<1x32xf32, #tpu.memory_space<vmem>>, %arg10: memref<1x64x32xbf16, #tpu.memory_space<vmem>>, %arg11: memref<1x64x32xbf16, #tpu.memory_space<vmem>>) attributes {dimension_semantics = [#tpu.dimension_semantics<parallel>, #tpu.dimension_semantics<parallel>], iteration_bounds = array<i64: 2, 1>, scalar_prefetch = 0 : i64, scratch_operands = 0 : i64, tpu.core_type = #tpu.core_type<tc>, window_params = [{transform_indices = @transform_0, window_bounds = array<i64: 1, 64, 32>}, {transform_indices = @transform_1, window_bounds = array<i64: 1, 64, 288>}, {transform_indices = @transform_2, window_bounds = array<i64: 1, 64, 288>}, {transform_indices = @transform_3, window_bounds = array<i64: 64, 18>}, {pipeline_mode = #tpu.pipeline_mode<synchronous>, transform_indices = @transform_4, window_bounds = array<i64: 32, 2>}, {pipeline_mode = #tpu.pipeline_mode<synchronous>, transform_indices = @transform_5, window_bounds = array<i64: 2, 32>}, {pipeline_mode = #tpu.pipeline_mode<synchronous>, transform_indices = @transform_6, window_bounds = array<i64: 32, 32>}, {pipeline_mode = #tpu.pipeline_mode<synchronous>, transform_indices = @transform_7, window_bounds = array<i64: 1, 32>}, {transform_indices = @transform_8, window_bounds = array<i64: 1, 64, 32>}, {transform_indices = @transform_9, window_bounds = array<i64: 1, 64, 32>}]} {
    %c0 = arith.constant 0 : index
    %c0_0 = arith.constant 0 : index
    %c0_1 = arith.constant 0 : index
    %0 = vector.load %arg2[%c0, %c0_0, %c0_1] : memref<1x64x32xbf16, #tpu.memory_space<vmem>>, vector<1x64x32xbf16>
    %1 = vector.shape_cast %0 : vector<1x64x32xbf16> to vector<64x32xbf16>
    %c0_2 = arith.constant 0 : index
    %c0_3 = arith.constant 0 : index
    %2 = vector.load %arg6[%c0_2, %c0_3] : memref<32x2xbf16, #tpu.memory_space<vmem>>, vector<32x2xbf16>
    %c0_4 = arith.constant 0 : index
    %c0_5 = arith.constant 0 : index
    %c0_6 = arith.constant 0 : index
    %3 = vector.load %arg3[%c0_4, %c0_5, %c0_6] : memref<1x64x288xbf16, #tpu.memory_space<vmem>>, vector<1x64x32xbf16>
    %4 = vector.shape_cast %3 : vector<1x64x32xbf16> to vector<64x32xbf16>
    %5 = arith.mulf %1, %4 : vector<64x32xbf16>
    %cst = arith.constant dense<0.000000e+00> : vector<64x2xf32>
    %6 = tpu.matmul %5, %2, %cst {dimension_numbers = #tpu.dot_dimension_numbers<[1], [0], [0], [1], [0, 0, 1, 1], [], []>} : vector<64x32xbf16>, vector<32x2xbf16>, vector<64x2xf32> -> vector<64x2xf32>
    %cst_7 = arith.constant 2.500000e-01 : f32
    %7 = vector.broadcast %cst_7 : f32 to vector<64x2xf32>
    %8 = arith.mulf %6, %7 : vector<64x2xf32>
    %c0_8 = arith.constant 0 : index
    %c0_9 = arith.constant 0 : index
    %9 = vector.load %arg5[%c0_8, %c0_9] : memref<64x18xf32, #tpu.memory_space<vmem>>, vector<64x2xf32>
    %10 = arith.addf %8, %9 : vector<64x2xf32>
    %c0_10 = arith.constant 0 : index
    %c0_11 = arith.constant 0 : index
    %c32 = arith.constant 32 : index
    %11 = vector.load %arg3[%c0_10, %c0_11, %c32] : memref<1x64x288xbf16, #tpu.memory_space<vmem>>, vector<1x64x32xbf16>
    %12 = vector.shape_cast %11 : vector<1x64x32xbf16> to vector<64x32xbf16>
    %13 = arith.mulf %1, %12 : vector<64x32xbf16>
    %cst_12 = arith.constant dense<0.000000e+00> : vector<64x2xf32>
    %14 = tpu.matmul %13, %2, %cst_12 {dimension_numbers = #tpu.dot_dimension_numbers<[1], [0], [0], [1], [0, 0, 1, 1], [], []>} : vector<64x32xbf16>, vector<32x2xbf16>, vector<64x2xf32> -> vector<64x2xf32>
    %cst_13 = arith.constant 2.500000e-01 : f32
    %15 = vector.broadcast %cst_13 : f32 to vector<64x2xf32>
    %16 = arith.mulf %14, %15 : vector<64x2xf32>
    %c0_14 = arith.constant 0 : index
    %c2 = arith.constant 2 : index
    %17 = vector.load %arg5[%c0_14, %c2] : memref<64x18xf32, #tpu.memory_space<vmem>>, vector<64x2xf32>
    %18 = arith.addf %16, %17 : vector<64x2xf32>
    %c0_15 = arith.constant 0 : index
    %c0_16 = arith.constant 0 : index
    %c64 = arith.constant 64 : index
    %19 = vector.load %arg3[%c0_15, %c0_16, %c64] : memref<1x64x288xbf16, #tpu.memory_space<vmem>>, vector<1x64x32xbf16>
    %20 = vector.shape_cast %19 : vector<1x64x32xbf16> to vector<64x32xbf16>
    %21 = arith.mulf %1, %20 : vector<64x32xbf16>
    %cst_17 = arith.constant dense<0.000000e+00> : vector<64x2xf32>
    %22 = tpu.matmul %21, %2, %cst_17 {dimension_numbers = #tpu.dot_dimension_numbers<[1], [0], [0], [1], [0, 0, 1, 1], [], []>} : vector<64x32xbf16>, vector<32x2xbf16>, vector<64x2xf32> -> vector<64x2xf32>
    %cst_18 = arith.constant 2.500000e-01 : f32
    %23 = vector.broadcast %cst_18 : f32 to vector<64x2xf32>
    %24 = arith.mulf %22, %23 : vector<64x2xf32>
    %c0_19 = arith.constant 0 : index
    %c4 = arith.constant 4 : index
    %25 = vector.load %arg5[%c0_19, %c4] : memref<64x18xf32, #tpu.memory_space<vmem>>, vector<64x2xf32>
    %26 = arith.addf %24, %25 : vector<64x2xf32>
    %c0_20 = arith.constant 0 : index
    %c0_21 = arith.constant 0 : index
    %c96 = arith.constant 96 : index
    %27 = vector.load %arg3[%c0_20, %c0_21, %c96] : memref<1x64x288xbf16, #tpu.memory_space<vmem>>, vector<1x64x32xbf16>
    %28 = vector.shape_cast %27 : vector<1x64x32xbf16> to vector<64x32xbf16>
    %29 = arith.mulf %1, %28 : vector<64x32xbf16>
    %cst_22 = arith.constant dense<0.000000e+00> : vector<64x2xf32>
    %30 = tpu.matmul %29, %2, %cst_22 {dimension_numbers = #tpu.dot_dimension_numbers<[1], [0], [0], [1], [0, 0, 1, 1], [], []>} : vector<64x32xbf16>, vector<32x2xbf16>, vector<64x2xf32> -> vector<64x2xf32>
    %cst_23 = arith.constant 2.500000e-01 : f32
    %31 = vector.broadcast %cst_23 : f32 to vector<64x2xf32>
    %32 = arith.mulf %30, %31 : vector<64x2xf32>
    %c0_24 = arith.constant 0 : index
    %c6 = arith.constant 6 : index
    %33 = vector.load %arg5[%c0_24, %c6] : memref<64x18xf32, #tpu.memory_space<vmem>>, vector<64x2xf32>
    %34 = arith.addf %32, %33 : vector<64x2xf32>
    %c0_25 = arith.constant 0 : index
    %c0_26 = arith.constant 0 : index
    %c128 = arith.constant 128 : index
    %35 = vector.load %arg3[%c0_25, %c0_26, %c128] : memref<1x64x288xbf16, #tpu.memory_space<vmem>>, vector<1x64x32xbf16>
    %36 = vector.shape_cast %35 : vector<1x64x32xbf16> to vector<64x32xbf16>
    %37 = arith.mulf %1, %36 : vector<64x32xbf16>
    %cst_27 = arith.constant dense<0.000000e+00> : vector<64x2xf32>
    %38 = tpu.matmul %37, %2, %cst_27 {dimension_numbers = #tpu.dot_dimension_numbers<[1], [0], [0], [1], [0, 0, 1, 1], [], []>} : vector<64x32xbf16>, vector<32x2xbf16>, vector<64x2xf32> -> vector<64x2xf32>
    %cst_28 = arith.constant 2.500000e-01 : f32
    %39 = vector.broadcast %cst_28 : f32 to vector<64x2xf32>
    %40 = arith.mulf %38, %39 : vector<64x2xf32>
    %c0_29 = arith.constant 0 : index
    %c8 = arith.constant 8 : index
    %41 = vector.load %arg5[%c0_29, %c8] : memref<64x18xf32, #tpu.memory_space<vmem>>, vector<64x2xf32>
    %42 = arith.addf %40, %41 : vector<64x2xf32>
    %c0_30 = arith.constant 0 : index
    %c0_31 = arith.constant 0 : index
    %c160 = arith.constant 160 : index
    %43 = vector.load %arg3[%c0_30, %c0_31, %c160] : memref<1x64x288xbf16, #tpu.memory_space<vmem>>, vector<1x64x32xbf16>
    %44 = vector.shape_cast %43 : vector<1x64x32xbf16> to vector<64x32xbf16>
    %45 = arith.mulf %1, %44 : vector<64x32xbf16>
    %cst_32 = arith.constant dense<0.000000e+00> : vector<64x2xf32>
    %46 = tpu.matmul %45, %2, %cst_32 {dimension_numbers = #tpu.dot_dimension_numbers<[1], [0], [0], [1], [0, 0, 1, 1], [], []>} : vector<64x32xbf16>, vector<32x2xbf16>, vector<64x2xf32> -> vector<64x2xf32>
    %cst_33 = arith.constant 2.500000e-01 : f32
    %47 = vector.broadcast %cst_33 : f32 to vector<64x2xf32>
    %48 = arith.mulf %46, %47 : vector<64x2xf32>
    %c0_34 = arith.constant 0 : index
    %c10 = arith.constant 10 : index
    %49 = vector.load %arg5[%c0_34, %c10] : memref<64x18xf32, #tpu.memory_space<vmem>>, vector<64x2xf32>
    %50 = arith.addf %48, %49 : vector<64x2xf32>
    %c0_35 = arith.constant 0 : index
    %c0_36 = arith.constant 0 : index
    %c192 = arith.constant 192 : index
    %51 = vector.load %arg3[%c0_35, %c0_36, %c192] : memref<1x64x288xbf16, #tpu.memory_space<vmem>>, vector<1x64x32xbf16>
    %52 = vector.shape_cast %51 : vector<1x64x32xbf16> to vector<64x32xbf16>
    %53 = arith.mulf %1, %52 : vector<64x32xbf16>
    %cst_37 = arith.constant dense<0.000000e+00> : vector<64x2xf32>
    %54 = tpu.matmul %53, %2, %cst_37 {dimension_numbers = #tpu.dot_dimension_numbers<[1], [0], [0], [1], [0, 0, 1, 1], [], []>} : vector<64x32xbf16>, vector<32x2xbf16>, vector<64x2xf32> -> vector<64x2xf32>
    %cst_38 = arith.constant 2.500000e-01 : f32
    %55 = vector.broadcast %cst_38 : f32 to vector<64x2xf32>
    %56 = arith.mulf %54, %55 : vector<64x2xf32>
    %c0_39 = arith.constant 0 : index
    %c12 = arith.constant 12 : index
    %57 = vector.load %arg5[%c0_39, %c12] : memref<64x18xf32, #tpu.memory_space<vmem>>, vector<64x2xf32>
    %58 = arith.addf %56, %57 : vector<64x2xf32>
    %c0_40 = arith.constant 0 : index
    %c0_41 = arith.constant 0 : index
    %c224 = arith.constant 224 : index
    %59 = vector.load %arg3[%c0_40, %c0_41, %c224] : memref<1x64x288xbf16, #tpu.memory_space<vmem>>, vector<1x64x32xbf16>
    %60 = vector.shape_cast %59 : vector<1x64x32xbf16> to vector<64x32xbf16>
    %61 = arith.mulf %1, %60 : vector<64x32xbf16>
    %cst_42 = arith.constant dense<0.000000e+00> : vector<64x2xf32>
    %62 = tpu.matmul %61, %2, %cst_42 {dimension_numbers = #tpu.dot_dimension_numbers<[1], [0], [0], [1], [0, 0, 1, 1], [], []>} : vector<64x32xbf16>, vector<32x2xbf16>, vector<64x2xf32> -> vector<64x2xf32>
    %cst_43 = arith.constant 2.500000e-01 : f32
    %63 = vector.broadcast %cst_43 : f32 to vector<64x2xf32>
    %64 = arith.mulf %62, %63 : vector<64x2xf32>
    %c0_44 = arith.constant 0 : index
    %c14 = arith.constant 14 : index
    %65 = vector.load %arg5[%c0_44, %c14] : memref<64x18xf32, #tpu.memory_space<vmem>>, vector<64x2xf32>
    %66 = arith.addf %64, %65 : vector<64x2xf32>
    %c0_45 = arith.constant 0 : index
    %c0_46 = arith.constant 0 : index
    %c256 = arith.constant 256 : index
    %67 = vector.load %arg3[%c0_45, %c0_46, %c256] : memref<1x64x288xbf16, #tpu.memory_space<vmem>>, vector<1x64x32xbf16>
    %68 = vector.shape_cast %67 : vector<1x64x32xbf16> to vector<64x32xbf16>
    %69 = arith.mulf %1, %68 : vector<64x32xbf16>
    %cst_47 = arith.constant dense<0.000000e+00> : vector<64x2xf32>
    %70 = tpu.matmul %69, %2, %cst_47 {dimension_numbers = #tpu.dot_dimension_numbers<[1], [0], [0], [1], [0, 0, 1, 1], [], []>} : vector<64x32xbf16>, vector<32x2xbf16>, vector<64x2xf32> -> vector<64x2xf32>
    %cst_48 = arith.constant 2.500000e-01 : f32
    %71 = vector.broadcast %cst_48 : f32 to vector<64x2xf32>
    %72 = arith.mulf %70, %71 : vector<64x2xf32>
    %c0_49 = arith.constant 0 : index
    %c16 = arith.constant 16 : index
    %73 = vector.load %arg5[%c0_49, %c16] : memref<64x18xf32, #tpu.memory_space<vmem>>, vector<64x2xf32>
    %74 = arith.addf %72, %73 : vector<64x2xf32>
    %75 = arith.maximumf %10, %18 : vector<64x2xf32>
    %76 = arith.maximumf %75, %26 : vector<64x2xf32>
    %77 = arith.maximumf %76, %34 : vector<64x2xf32>
    %78 = arith.maximumf %77, %42 : vector<64x2xf32>
    %79 = arith.maximumf %78, %50 : vector<64x2xf32>
    %80 = arith.maximumf %79, %58 : vector<64x2xf32>
    %81 = arith.maximumf %80, %66 : vector<64x2xf32>
    %82 = arith.maximumf %81, %74 : vector<64x2xf32>
    %83 = arith.subf %10, %82 : vector<64x2xf32>
    %84 = math.exp %83 : vector<64x2xf32>
    %85 = arith.subf %18, %82 : vector<64x2xf32>
    %86 = math.exp %85 : vector<64x2xf32>
    %87 = arith.subf %26, %82 : vector<64x2xf32>
    %88 = math.exp %87 : vector<64x2xf32>
    %89 = arith.subf %34, %82 : vector<64x2xf32>
    %90 = math.exp %89 : vector<64x2xf32>
    %91 = arith.subf %42, %82 : vector<64x2xf32>
    %92 = math.exp %91 : vector<64x2xf32>
    %93 = arith.subf %50, %82 : vector<64x2xf32>
    %94 = math.exp %93 : vector<64x2xf32>
    %95 = arith.subf %58, %82 : vector<64x2xf32>
    %96 = math.exp %95 : vector<64x2xf32>
    %97 = arith.subf %66, %82 : vector<64x2xf32>
    %98 = math.exp %97 : vector<64x2xf32>
    %99 = arith.subf %74, %82 : vector<64x2xf32>
    %100 = math.exp %99 : vector<64x2xf32>
    %101 = arith.addf %84, %86 : vector<64x2xf32>
    %102 = arith.addf %101, %88 : vector<64x2xf32>
    %103 = arith.addf %102, %90 : vector<64x2xf32>
    %104 = arith.addf %103, %92 : vector<64x2xf32>
    %105 = arith.addf %104, %94 : vector<64x2xf32>
    %106 = arith.addf %105, %96 : vector<64x2xf32>
    %107 = arith.addf %106, %98 : vector<64x2xf32>
    %108 = arith.addf %107, %100 : vector<64x2xf32>
    %109 = tpu.reciprocal %108 {approx = true} : vector<64x2xf32> -> vector<64x2xf32>
    %c0_50 = arith.constant 0 : index
    %c0_51 = arith.constant 0 : index
    %110 = vector.load %arg7[%c0_50, %c0_51] : memref<2x32xbf16, #tpu.memory_space<vmem>>, vector<2x32xbf16>
    %cst_52 = arith.constant 0.000000e+00 : f32
    %111 = vector.broadcast %cst_52 : f32 to vector<64x32xf32>
    %112 = arith.mulf %84, %109 : vector<64x2xf32>
    %113 = arith.truncf %112 : vector<64x2xf32> to vector<64x2xbf16>
    %cst_53 = arith.constant dense<0.000000e+00> : vector<64x32xf32>
    %114 = tpu.matmul %113, %110, %cst_53 {dimension_numbers = #tpu.dot_dimension_numbers<[1], [0], [0], [1], [0, 0, 1, 1], [], []>} : vector<64x2xbf16>, vector<2x32xbf16>, vector<64x32xf32> -> vector<64x32xf32>
    %c0_54 = arith.constant 0 : index
    %c0_55 = arith.constant 0 : index
    %c0_56 = arith.constant 0 : index
    %115 = vector.load %arg4[%c0_54, %c0_55, %c0_56] : memref<1x64x288xbf16, #tpu.memory_space<vmem>>, vector<1x64x32xbf16>
    %116 = vector.shape_cast %115 : vector<1x64x32xbf16> to vector<64x32xbf16>
    %117 = arith.extf %116 : vector<64x32xbf16> to vector<64x32xf32>
    %118 = arith.mulf %114, %117 : vector<64x32xf32>
    %119 = arith.addf %111, %118 : vector<64x32xf32>
    %120 = arith.mulf %86, %109 : vector<64x2xf32>
    %121 = arith.truncf %120 : vector<64x2xf32> to vector<64x2xbf16>
    %cst_57 = arith.constant dense<0.000000e+00> : vector<64x32xf32>
    %122 = tpu.matmul %121, %110, %cst_57 {dimension_numbers = #tpu.dot_dimension_numbers<[1], [0], [0], [1], [0, 0, 1, 1], [], []>} : vector<64x2xbf16>, vector<2x32xbf16>, vector<64x32xf32> -> vector<64x32xf32>
    %c0_58 = arith.constant 0 : index
    %c0_59 = arith.constant 0 : index
    %c32_60 = arith.constant 32 : index
    %123 = vector.load %arg4[%c0_58, %c0_59, %c32_60] : memref<1x64x288xbf16, #tpu.memory_space<vmem>>, vector<1x64x32xbf16>
    %124 = vector.shape_cast %123 : vector<1x64x32xbf16> to vector<64x32xbf16>
    %125 = arith.extf %124 : vector<64x32xbf16> to vector<64x32xf32>
    %126 = arith.mulf %122, %125 : vector<64x32xf32>
    %127 = arith.addf %119, %126 : vector<64x32xf32>
    %128 = arith.mulf %88, %109 : vector<64x2xf32>
    %129 = arith.truncf %128 : vector<64x2xf32> to vector<64x2xbf16>
    %cst_61 = arith.constant dense<0.000000e+00> : vector<64x32xf32>
    %130 = tpu.matmul %129, %110, %cst_61 {dimension_numbers = #tpu.dot_dimension_numbers<[1], [0], [0], [1], [0, 0, 1, 1], [], []>} : vector<64x2xbf16>, vector<2x32xbf16>, vector<64x32xf32> -> vector<64x32xf32>
    %c0_62 = arith.constant 0 : index
    %c0_63 = arith.constant 0 : index
    %c64_64 = arith.constant 64 : index
    %131 = vector.load %arg4[%c0_62, %c0_63, %c64_64] : memref<1x64x288xbf16, #tpu.memory_space<vmem>>, vector<1x64x32xbf16>
    %132 = vector.shape_cast %131 : vector<1x64x32xbf16> to vector<64x32xbf16>
    %133 = arith.extf %132 : vector<64x32xbf16> to vector<64x32xf32>
    %134 = arith.mulf %130, %133 : vector<64x32xf32>
    %135 = arith.addf %127, %134 : vector<64x32xf32>
    %136 = arith.mulf %90, %109 : vector<64x2xf32>
    %137 = arith.truncf %136 : vector<64x2xf32> to vector<64x2xbf16>
    %cst_65 = arith.constant dense<0.000000e+00> : vector<64x32xf32>
    %138 = tpu.matmul %137, %110, %cst_65 {dimension_numbers = #tpu.dot_dimension_numbers<[1], [0], [0], [1], [0, 0, 1, 1], [], []>} : vector<64x2xbf16>, vector<2x32xbf16>, vector<64x32xf32> -> vector<64x32xf32>
    %c0_66 = arith.constant 0 : index
    %c0_67 = arith.constant 0 : index
    %c96_68 = arith.constant 96 : index
    %139 = vector.load %arg4[%c0_66, %c0_67, %c96_68] : memref<1x64x288xbf16, #tpu.memory_space<vmem>>, vector<1x64x32xbf16>
    %140 = vector.shape_cast %139 : vector<1x64x32xbf16> to vector<64x32xbf16>
    %141 = arith.extf %140 : vector<64x32xbf16> to vector<64x32xf32>
    %142 = arith.mulf %138, %141 : vector<64x32xf32>
    %143 = arith.addf %135, %142 : vector<64x32xf32>
    %144 = arith.mulf %92, %109 : vector<64x2xf32>
    %145 = arith.truncf %144 : vector<64x2xf32> to vector<64x2xbf16>
    %cst_69 = arith.constant dense<0.000000e+00> : vector<64x32xf32>
    %146 = tpu.matmul %145, %110, %cst_69 {dimension_numbers = #tpu.dot_dimension_numbers<[1], [0], [0], [1], [0, 0, 1, 1], [], []>} : vector<64x2xbf16>, vector<2x32xbf16>, vector<64x32xf32> -> vector<64x32xf32>
    %c0_70 = arith.constant 0 : index
    %c0_71 = arith.constant 0 : index
    %c128_72 = arith.constant 128 : index
    %147 = vector.load %arg4[%c0_70, %c0_71, %c128_72] : memref<1x64x288xbf16, #tpu.memory_space<vmem>>, vector<1x64x32xbf16>
    %148 = vector.shape_cast %147 : vector<1x64x32xbf16> to vector<64x32xbf16>
    %149 = arith.extf %148 : vector<64x32xbf16> to vector<64x32xf32>
    %150 = arith.mulf %146, %149 : vector<64x32xf32>
    %151 = arith.addf %143, %150 : vector<64x32xf32>
    %152 = arith.mulf %94, %109 : vector<64x2xf32>
    %153 = arith.truncf %152 : vector<64x2xf32> to vector<64x2xbf16>
    %cst_73 = arith.constant dense<0.000000e+00> : vector<64x32xf32>
    %154 = tpu.matmul %153, %110, %cst_73 {dimension_numbers = #tpu.dot_dimension_numbers<[1], [0], [0], [1], [0, 0, 1, 1], [], []>} : vector<64x2xbf16>, vector<2x32xbf16>, vector<64x32xf32> -> vector<64x32xf32>
    %c0_74 = arith.constant 0 : index
    %c0_75 = arith.constant 0 : index
    %c160_76 = arith.constant 160 : index
    %155 = vector.load %arg4[%c0_74, %c0_75, %c160_76] : memref<1x64x288xbf16, #tpu.memory_space<vmem>>, vector<1x64x32xbf16>
    %156 = vector.shape_cast %155 : vector<1x64x32xbf16> to vector<64x32xbf16>
    %157 = arith.extf %156 : vector<64x32xbf16> to vector<64x32xf32>
    %158 = arith.mulf %154, %157 : vector<64x32xf32>
    %159 = arith.addf %151, %158 : vector<64x32xf32>
    %160 = arith.mulf %96, %109 : vector<64x2xf32>
    %161 = arith.truncf %160 : vector<64x2xf32> to vector<64x2xbf16>
    %cst_77 = arith.constant dense<0.000000e+00> : vector<64x32xf32>
    %162 = tpu.matmul %161, %110, %cst_77 {dimension_numbers = #tpu.dot_dimension_numbers<[1], [0], [0], [1], [0, 0, 1, 1], [], []>} : vector<64x2xbf16>, vector<2x32xbf16>, vector<64x32xf32> -> vector<64x32xf32>
    %c0_78 = arith.constant 0 : index
    %c0_79 = arith.constant 0 : index
    %c192_80 = arith.constant 192 : index
    %163 = vector.load %arg4[%c0_78, %c0_79, %c192_80] : memref<1x64x288xbf16, #tpu.memory_space<vmem>>, vector<1x64x32xbf16>
    %164 = vector.shape_cast %163 : vector<1x64x32xbf16> to vector<64x32xbf16>
    %165 = arith.extf %164 : vector<64x32xbf16> to vector<64x32xf32>
    %166 = arith.mulf %162, %165 : vector<64x32xf32>
    %167 = arith.addf %159, %166 : vector<64x32xf32>
    %168 = arith.mulf %98, %109 : vector<64x2xf32>
    %169 = arith.truncf %168 : vector<64x2xf32> to vector<64x2xbf16>
    %cst_81 = arith.constant dense<0.000000e+00> : vector<64x32xf32>
    %170 = tpu.matmul %169, %110, %cst_81 {dimension_numbers = #tpu.dot_dimension_numbers<[1], [0], [0], [1], [0, 0, 1, 1], [], []>} : vector<64x2xbf16>, vector<2x32xbf16>, vector<64x32xf32> -> vector<64x32xf32>
    %c0_82 = arith.constant 0 : index
    %c0_83 = arith.constant 0 : index
    %c224_84 = arith.constant 224 : index
    %171 = vector.load %arg4[%c0_82, %c0_83, %c224_84] : memref<1x64x288xbf16, #tpu.memory_space<vmem>>, vector<1x64x32xbf16>
    %172 = vector.shape_cast %171 : vector<1x64x32xbf16> to vector<64x32xbf16>
    %173 = arith.extf %172 : vector<64x32xbf16> to vector<64x32xf32>
    %174 = arith.mulf %170, %173 : vector<64x32xf32>
    %175 = arith.addf %167, %174 : vector<64x32xf32>
    %176 = arith.mulf %100, %109 : vector<64x2xf32>
    %177 = arith.truncf %176 : vector<64x2xf32> to vector<64x2xbf16>
    %cst_85 = arith.constant dense<0.000000e+00> : vector<64x32xf32>
    %178 = tpu.matmul %177, %110, %cst_85 {dimension_numbers = #tpu.dot_dimension_numbers<[1], [0], [0], [1], [0, 0, 1, 1], [], []>} : vector<64x2xbf16>, vector<2x32xbf16>, vector<64x32xf32> -> vector<64x32xf32>
    %c0_86 = arith.constant 0 : index
    %c0_87 = arith.constant 0 : index
    %c256_88 = arith.constant 256 : index
    %179 = vector.load %arg4[%c0_86, %c0_87, %c256_88] : memref<1x64x288xbf16, #tpu.memory_space<vmem>>, vector<1x64x32xbf16>
    %180 = vector.shape_cast %179 : vector<1x64x32xbf16> to vector<64x32xbf16>
    %181 = arith.extf %180 : vector<64x32xbf16> to vector<64x32xf32>
    %182 = arith.mulf %178, %181 : vector<64x32xf32>
    %183 = arith.addf %175, %182 : vector<64x32xf32>
    %184 = arith.truncf %183 : vector<64x32xf32> to vector<64x32xbf16>
    %c0_89 = arith.constant 0 : index
    %c0_90 = arith.constant 0 : index
    %185 = vector.load %arg8[%c0_89, %c0_90] : memref<32x32xbf16, #tpu.memory_space<vmem>>, vector<32x32xbf16>
    %cst_91 = arith.constant dense<0.000000e+00> : vector<64x32xf32>
    %186 = tpu.matmul %184, %185, %cst_91 {dimension_numbers = #tpu.dot_dimension_numbers<[1], [0], [0], [1], [0, 0, 1, 1], [], []>} : vector<64x32xbf16>, vector<32x32xbf16>, vector<64x32xf32> -> vector<64x32xf32>
    %c0_92 = arith.constant 0 : index
    %c0_93 = arith.constant 0 : index
    %187 = vector.load %arg9[%c0_92, %c0_93] : memref<1x32xf32, #tpu.memory_space<vmem>>, vector<1x32xf32>
    %188 = vector.broadcast %187 : vector<1x32xf32> to vector<64x32xf32>
    %189 = arith.addf %186, %188 : vector<64x32xf32>
    %c0_94 = arith.constant 0 : index
    %c0_95 = arith.constant 0 : index
    %c0_96 = arith.constant 0 : index
    %190 = vector.load %arg10[%c0_94, %c0_95, %c0_96] : memref<1x64x32xbf16, #tpu.memory_space<vmem>>, vector<1x64x32xbf16>
    %191 = vector.shape_cast %190 : vector<1x64x32xbf16> to vector<64x32xbf16>
    %192 = arith.extf %191 : vector<64x32xbf16> to vector<64x32xf32>
    %193 = arith.addf %189, %192 : vector<64x32xf32>
    %194 = arith.truncf %193 : vector<64x32xf32> to vector<64x32xbf16>
    %c0_97 = arith.constant 0 : index
    %c0_98 = arith.constant 0 : index
    %c0_99 = arith.constant 0 : index
    %195 = vector.load %arg11[%c0_97, %c0_98, %c0_99] : memref<1x64x32xbf16, #tpu.memory_space<vmem>>, vector<1x64x32xbf16>
    %196 = vector.shape_cast %195 : vector<1x64x32xbf16> to vector<64x32xbf16>
    %197 = vector.shape_cast %194 : vector<64x32xbf16> to vector<1x64x32xbf16>
    tpu.vector_store %arg11[%c0_97, %c0_98, %c0_99], %197 {strides = array<i32>} : memref<1x64x32xbf16, #tpu.memory_space<vmem>>, vector<1x64x32xbf16>,
    return
  }
  func.func @transform_0(%arg0: i32, %arg1: i32) -> (i32, i32, i32) {
    %c0_i32 = arith.constant 0 : i32
    %c0_i32_0 = arith.constant 0 : i32
    return %arg0, %arg1, %c0_i32 : i32, i32, i32
  }
  func.func @transform_1(%arg0: i32, %arg1: i32) -> (i32, i32, i32) {
    %c0_i32 = arith.constant 0 : i32
    %c0_i32_0 = arith.constant 0 : i32
    return %arg0, %arg1, %c0_i32 : i32, i32, i32
  }
  func.func @transform_2(%arg0: i32, %arg1: i32) -> (i32, i32, i32) {
    %c0_i32 = arith.constant 0 : i32
    %c0_i32_0 = arith.constant 0 : i32
    return %arg0, %arg1, %c0_i32 : i32, i32, i32
  }
  func.func @transform_3(%arg0: i32, %arg1: i32) -> (i32, i32) {
    %c0_i32 = arith.constant 0 : i32
    %c0_i32_0 = arith.constant 0 : i32
    return %arg1, %c0_i32 : i32, i32
  }
  func.func @transform_4(%arg0: i32, %arg1: i32) -> (i32, i32) {
    %c0_i32 = arith.constant 0 : i32
    %c0_i32_0 = arith.constant 0 : i32
    %c0_i32_1 = arith.constant 0 : i32
    return %c0_i32, %c0_i32_0 : i32, i32
  }
  func.func @transform_5(%arg0: i32, %arg1: i32) -> (i32, i32) {
    %c0_i32 = arith.constant 0 : i32
    %c0_i32_0 = arith.constant 0 : i32
    %c0_i32_1 = arith.constant 0 : i32
    return %c0_i32, %c0_i32_0 : i32, i32
  }
  func.func @transform_6(%arg0: i32, %arg1: i32) -> (i32, i32) {
    %c0_i32 = arith.constant 0 : i32
    %c0_i32_0 = arith.constant 0 : i32
    %c0_i32_1 = arith.constant 0 : i32
    return %c0_i32, %c0_i32_0 : i32, i32
  }
  func.func @transform_7(%arg0: i32, %arg1: i32) -> (i32, i32) {
    %c0_i32 = arith.constant 0 : i32
    %c0_i32_0 = arith.constant 0 : i32
    %c0_i32_1 = arith.constant 0 : i32
    return %c0_i32, %c0_i32_0 : i32, i32
  }
  func.func @transform_8(%arg0: i32, %arg1: i32) -> (i32, i32, i32) {
    %c0_i32 = arith.constant 0 : i32
    %c0_i32_0 = arith.constant 0 : i32
    return %arg0, %arg1, %c0_i32 : i32, i32, i32
  }
  func.func @transform_9(%arg0: i32, %arg1: i32) -> (i32, i32, i32) {
    %c0_i32 = arith.constant 0 : i32
    %c0_i32_0 = arith.constant 0 : i32
    return %arg0, %arg1, %c0_i32 : i32, i32, i32
  }
}

module attributes {stable_mosaic.version = 11 : i64} {
  func.func @kernel(%arg0: i32, %arg1: memref<16x288xbf16, #tpu.memory_space<vmem>>, %arg2: memref<288x64xbf16, #tpu.memory_space<vmem>>, %arg3: memref<1x64xf32, #tpu.memory_space<vmem>>, %arg4: memref<1x64xf32, #tpu.memory_space<vmem>>, %arg5: memref<1x64xf32, #tpu.memory_space<vmem>>, %arg6: memref<16x64xbf16, #tpu.memory_space<vmem>>) attributes {dimension_semantics = [#tpu.dimension_semantics<parallel>], iteration_bounds = array<i64: 2>, scalar_prefetch = 0 : i64, scratch_operands = 0 : i64, tpu.core_type = #tpu.core_type<tc>, window_params = [{transform_indices = @transform_0, window_bounds = array<i64: 16, 288>}, {pipeline_mode = #tpu.pipeline_mode<synchronous>, transform_indices = @transform_1, window_bounds = array<i64: 288, 64>}, {pipeline_mode = #tpu.pipeline_mode<synchronous>, transform_indices = @transform_2, window_bounds = array<i64: 1, 64>}, {pipeline_mode = #tpu.pipeline_mode<synchronous>, transform_indices = @transform_3, window_bounds = array<i64: 1, 64>}, {pipeline_mode = #tpu.pipeline_mode<synchronous>, transform_indices = @transform_4, window_bounds = array<i64: 1, 64>}, {transform_indices = @transform_5, window_bounds = array<i64: 16, 64>}]} {
    %c0 = arith.constant 0 : index
    %c0_0 = arith.constant 0 : index
    %0 = vector.load %arg1[%c0, %c0_0] : memref<16x288xbf16, #tpu.memory_space<vmem>>, vector<16x288xbf16>
    %c0_1 = arith.constant 0 : index
    %c0_2 = arith.constant 0 : index
    %1 = vector.load %arg2[%c0_1, %c0_2] : memref<288x64xbf16, #tpu.memory_space<vmem>>, vector<288x64xbf16>
    %cst = arith.constant dense<0.000000e+00> : vector<16x64xf32>
    %2 = tpu.matmul %0, %1, %cst {dimension_numbers = #tpu.dot_dimension_numbers<[1], [0], [0], [1], [0, 0, 1, 1], [], []>} : vector<16x288xbf16>, vector<288x64xbf16>, vector<16x64xf32> -> vector<16x64xf32>
    %c0_3 = arith.constant 0 : index
    %c0_4 = arith.constant 0 : index
    %3 = vector.load %arg3[%c0_3, %c0_4] : memref<1x64xf32, #tpu.memory_space<vmem>>, vector<1x64xf32>
    %4 = vector.broadcast %3 : vector<1x64xf32> to vector<16x64xf32>
    %5 = arith.addf %2, %4 : vector<16x64xf32>
    %cst_5 = arith.constant dense<0.000000e+00> : vector<16xf32>
    %6 = vector.multi_reduction <add>, %5, %cst_5 [1] : vector<16x64xf32> to vector<16xf32>
    %7 = vector.shape_cast %6 : vector<16xf32> to vector<16x1xf32>
    %cst_6 = arith.constant 6.400000e+01 : f32
    %8 = vector.broadcast %cst_6 : f32 to vector<16x1xf32>
    %9 = arith.divf %7, %8 : vector<16x1xf32>
    %10 = vector.broadcast %9 : vector<16x1xf32> to vector<16x64xf32>
    %11 = arith.subf %5, %10 : vector<16x64xf32>
    %12 = arith.mulf %11, %11 : vector<16x64xf32>
    %cst_7 = arith.constant dense<0.000000e+00> : vector<16xf32>
    %13 = vector.multi_reduction <add>, %12, %cst_7 [1] : vector<16x64xf32> to vector<16xf32>
    %14 = vector.shape_cast %13 : vector<16xf32> to vector<16x1xf32>
    %cst_8 = arith.constant 6.400000e+01 : f32
    %15 = vector.broadcast %cst_8 : f32 to vector<16x1xf32>
    %16 = arith.divf %14, %15 : vector<16x1xf32>
    %cst_9 = arith.constant 9.99999974E-6 : f32
    %17 = vector.broadcast %cst_9 : f32 to vector<16x1xf32>
    %18 = arith.addf %16, %17 : vector<16x1xf32>
    %19 = math.rsqrt %18 : vector<16x1xf32>
    %20 = vector.broadcast %19 : vector<16x1xf32> to vector<16x64xf32>
    %21 = arith.mulf %11, %20 : vector<16x64xf32>
    %c0_10 = arith.constant 0 : index
    %c0_11 = arith.constant 0 : index
    %22 = vector.load %arg4[%c0_10, %c0_11] : memref<1x64xf32, #tpu.memory_space<vmem>>, vector<1x64xf32>
    %23 = vector.broadcast %22 : vector<1x64xf32> to vector<16x64xf32>
    %24 = arith.mulf %21, %23 : vector<16x64xf32>
    %c0_12 = arith.constant 0 : index
    %c0_13 = arith.constant 0 : index
    %25 = vector.load %arg5[%c0_12, %c0_13] : memref<1x64xf32, #tpu.memory_space<vmem>>, vector<1x64xf32>
    %26 = vector.broadcast %25 : vector<1x64xf32> to vector<16x64xf32>
    %27 = arith.addf %24, %26 : vector<16x64xf32>
    %28 = arith.truncf %27 : vector<16x64xf32> to vector<16x64xbf16>
    %c0_14 = arith.constant 0 : index
    %c0_15 = arith.constant 0 : index
    %29 = vector.load %arg6[%c0_14, %c0_15] : memref<16x64xbf16, #tpu.memory_space<vmem>>, vector<16x64xbf16>
    tpu.vector_store %arg6[%c0_14, %c0_15], %28 {strides = array<i32>} : memref<16x64xbf16, #tpu.memory_space<vmem>>, vector<16x64xbf16>,
    return
  }
  func.func @transform_0(%arg0: i32) -> (i32, i32) {
    %c0_i32 = arith.constant 0 : i32
    %c0_i32_0 = arith.constant 0 : i32
    return %arg0, %c0_i32 : i32, i32
  }
  func.func @transform_1(%arg0: i32) -> (i32, i32) {
    %c0_i32 = arith.constant 0 : i32
    %c0_i32_0 = arith.constant 0 : i32
    %c0_i32_1 = arith.constant 0 : i32
    return %c0_i32, %c0_i32_0 : i32, i32
  }
  func.func @transform_2(%arg0: i32) -> (i32, i32) {
    %c0_i32 = arith.constant 0 : i32
    %c0_i32_0 = arith.constant 0 : i32
    %c0_i32_1 = arith.constant 0 : i32
    return %c0_i32, %c0_i32_0 : i32, i32
  }
  func.func @transform_3(%arg0: i32) -> (i32, i32) {
    %c0_i32 = arith.constant 0 : i32
    %c0_i32_0 = arith.constant 0 : i32
    %c0_i32_1 = arith.constant 0 : i32
    return %c0_i32, %c0_i32_0 : i32, i32
  }
  func.func @transform_4(%arg0: i32) -> (i32, i32) {
    %c0_i32 = arith.constant 0 : i32
    %c0_i32_0 = arith.constant 0 : i32
    %c0_i32_1 = arith.constant 0 : i32
    return %c0_i32, %c0_i32_0 : i32, i32
  }
  func.func @transform_5(%arg0: i32) -> (i32, i32) {
    %c0_i32 = arith.constant 0 : i32
    %c0_i32_0 = arith.constant 0 : i32
    return %arg0, %c0_i32 : i32, i32
  }
}

module attributes {stable_mosaic.version = 11 : i64} {
  func.func @kernel(%arg0: i32, %arg1: memref<16x64xbf16, #tpu.memory_space<vmem>>, %arg2: memref<1x64xf32, #tpu.memory_space<vmem>>, %arg3: memref<1x64xf32, #tpu.memory_space<vmem>>, %arg4: memref<64x192xbf16, #tpu.memory_space<vmem>>, %arg5: memref<1x192xf32, #tpu.memory_space<vmem>>, %arg6: memref<16x64xbf16, #tpu.memory_space<vmem>>, %arg7: memref<16x64xbf16, #tpu.memory_space<vmem>>, %arg8: memref<16x64xbf16, #tpu.memory_space<vmem>>) attributes {dimension_semantics = [#tpu.dimension_semantics<parallel>], iteration_bounds = array<i64: 2>, scalar_prefetch = 0 : i64, scratch_operands = 0 : i64, tpu.core_type = #tpu.core_type<tc>, window_params = [{transform_indices = @transform_0, window_bounds = array<i64: 16, 64>}, {pipeline_mode = #tpu.pipeline_mode<synchronous>, transform_indices = @transform_1, window_bounds = array<i64: 1, 64>}, {pipeline_mode = #tpu.pipeline_mode<synchronous>, transform_indices = @transform_2, window_bounds = array<i64: 1, 64>}, {pipeline_mode = #tpu.pipeline_mode<synchronous>, transform_indices = @transform_3, window_bounds = array<i64: 64, 192>}, {pipeline_mode = #tpu.pipeline_mode<synchronous>, transform_indices = @transform_4, window_bounds = array<i64: 1, 192>}, {transform_indices = @transform_5, window_bounds = array<i64: 16, 64>}, {transform_indices = @transform_6, window_bounds = array<i64: 16, 64>}, {transform_indices = @transform_7, window_bounds = array<i64: 16, 64>}]} {
    %c0 = arith.constant 0 : index
    %c0_0 = arith.constant 0 : index
    %0 = vector.load %arg1[%c0, %c0_0] : memref<16x64xbf16, #tpu.memory_space<vmem>>, vector<16x64xbf16>
    %1 = arith.extf %0 : vector<16x64xbf16> to vector<16x64xf32>
    %cst = arith.constant dense<0.000000e+00> : vector<16xf32>
    %2 = vector.multi_reduction <add>, %1, %cst [1] : vector<16x64xf32> to vector<16xf32>
    %3 = vector.shape_cast %2 : vector<16xf32> to vector<16x1xf32>
    %cst_1 = arith.constant 6.400000e+01 : f32
    %4 = vector.broadcast %cst_1 : f32 to vector<16x1xf32>
    %5 = arith.divf %3, %4 : vector<16x1xf32>
    %6 = vector.broadcast %5 : vector<16x1xf32> to vector<16x64xf32>
    %7 = arith.subf %1, %6 : vector<16x64xf32>
    %8 = arith.mulf %7, %7 : vector<16x64xf32>
    %cst_2 = arith.constant dense<0.000000e+00> : vector<16xf32>
    %9 = vector.multi_reduction <add>, %8, %cst_2 [1] : vector<16x64xf32> to vector<16xf32>
    %10 = vector.shape_cast %9 : vector<16xf32> to vector<16x1xf32>
    %cst_3 = arith.constant 6.400000e+01 : f32
    %11 = vector.broadcast %cst_3 : f32 to vector<16x1xf32>
    %12 = arith.divf %10, %11 : vector<16x1xf32>
    %cst_4 = arith.constant 9.99999974E-6 : f32
    %13 = vector.broadcast %cst_4 : f32 to vector<16x1xf32>
    %14 = arith.addf %12, %13 : vector<16x1xf32>
    %15 = math.rsqrt %14 : vector<16x1xf32>
    %16 = vector.broadcast %15 : vector<16x1xf32> to vector<16x64xf32>
    %17 = arith.mulf %7, %16 : vector<16x64xf32>
    %c0_5 = arith.constant 0 : index
    %c0_6 = arith.constant 0 : index
    %18 = vector.load %arg2[%c0_5, %c0_6] : memref<1x64xf32, #tpu.memory_space<vmem>>, vector<1x64xf32>
    %19 = vector.broadcast %18 : vector<1x64xf32> to vector<16x64xf32>
    %20 = arith.mulf %17, %19 : vector<16x64xf32>
    %c0_7 = arith.constant 0 : index
    %c0_8 = arith.constant 0 : index
    %21 = vector.load %arg3[%c0_7, %c0_8] : memref<1x64xf32, #tpu.memory_space<vmem>>, vector<1x64xf32>
    %22 = vector.broadcast %21 : vector<1x64xf32> to vector<16x64xf32>
    %23 = arith.addf %20, %22 : vector<16x64xf32>
    %24 = arith.truncf %23 : vector<16x64xf32> to vector<16x64xbf16>
    %c0_9 = arith.constant 0 : index
    %c0_10 = arith.constant 0 : index
    %25 = vector.load %arg4[%c0_9, %c0_10] : memref<64x192xbf16, #tpu.memory_space<vmem>>, vector<64x192xbf16>
    %cst_11 = arith.constant dense<0.000000e+00> : vector<16x192xf32>
    %26 = tpu.matmul %24, %25, %cst_11 {dimension_numbers = #tpu.dot_dimension_numbers<[1], [0], [0], [1], [0, 0, 1, 1], [], []>} : vector<16x64xbf16>, vector<64x192xbf16>, vector<16x192xf32> -> vector<16x192xf32>
    %c0_12 = arith.constant 0 : index
    %c0_13 = arith.constant 0 : index
    %27 = vector.load %arg5[%c0_12, %c0_13] : memref<1x192xf32, #tpu.memory_space<vmem>>, vector<1x192xf32>
    %28 = vector.broadcast %27 : vector<1x192xf32> to vector<16x192xf32>
    %29 = arith.addf %26, %28 : vector<16x192xf32>
    %30 = vector.extract_strided_slice %29 {offsets = [0, 0], sizes = [16, 64], strides = [1, 1]} : vector<16x192xf32> to vector<16x64xf32>
    %31 = arith.truncf %30 : vector<16x64xf32> to vector<16x64xbf16>
    %c0_14 = arith.constant 0 : index
    %c0_15 = arith.constant 0 : index
    %32 = vector.load %arg6[%c0_14, %c0_15] : memref<16x64xbf16, #tpu.memory_space<vmem>>, vector<16x64xbf16>
    tpu.vector_store %arg6[%c0_14, %c0_15], %31 {strides = array<i32>} : memref<16x64xbf16, #tpu.memory_space<vmem>>, vector<16x64xbf16>,
    %33 = vector.extract_strided_slice %29 {offsets = [0, 64], sizes = [16, 64], strides = [1, 1]} : vector<16x192xf32> to vector<16x64xf32>
    %34 = arith.truncf %33 : vector<16x64xf32> to vector<16x64xbf16>
    %c0_16 = arith.constant 0 : index
    %c0_17 = arith.constant 0 : index
    %35 = vector.load %arg7[%c0_16, %c0_17] : memref<16x64xbf16, #tpu.memory_space<vmem>>, vector<16x64xbf16>
    tpu.vector_store %arg7[%c0_16, %c0_17], %34 {strides = array<i32>} : memref<16x64xbf16, #tpu.memory_space<vmem>>, vector<16x64xbf16>,
    %36 = vector.extract_strided_slice %29 {offsets = [0, 128], sizes = [16, 64], strides = [1, 1]} : vector<16x192xf32> to vector<16x64xf32>
    %37 = arith.truncf %36 : vector<16x64xf32> to vector<16x64xbf16>
    %c0_18 = arith.constant 0 : index
    %c0_19 = arith.constant 0 : index
    %38 = vector.load %arg8[%c0_18, %c0_19] : memref<16x64xbf16, #tpu.memory_space<vmem>>, vector<16x64xbf16>
    tpu.vector_store %arg8[%c0_18, %c0_19], %37 {strides = array<i32>} : memref<16x64xbf16, #tpu.memory_space<vmem>>, vector<16x64xbf16>,
    return
  }
  func.func @transform_0(%arg0: i32) -> (i32, i32) {
    %c0_i32 = arith.constant 0 : i32
    %c0_i32_0 = arith.constant 0 : i32
    return %arg0, %c0_i32 : i32, i32
  }
  func.func @transform_1(%arg0: i32) -> (i32, i32) {
    %c0_i32 = arith.constant 0 : i32
    %c0_i32_0 = arith.constant 0 : i32
    %c0_i32_1 = arith.constant 0 : i32
    return %c0_i32, %c0_i32_0 : i32, i32
  }
  func.func @transform_2(%arg0: i32) -> (i32, i32) {
    %c0_i32 = arith.constant 0 : i32
    %c0_i32_0 = arith.constant 0 : i32
    %c0_i32_1 = arith.constant 0 : i32
    return %c0_i32, %c0_i32_0 : i32, i32
  }
  func.func @transform_3(%arg0: i32) -> (i32, i32) {
    %c0_i32 = arith.constant 0 : i32
    %c0_i32_0 = arith.constant 0 : i32
    %c0_i32_1 = arith.constant 0 : i32
    return %c0_i32, %c0_i32_0 : i32, i32
  }
  func.func @transform_4(%arg0: i32) -> (i32, i32) {
    %c0_i32 = arith.constant 0 : i32
    %c0_i32_0 = arith.constant 0 : i32
    %c0_i32_1 = arith.constant 0 : i32
    return %c0_i32, %c0_i32_0 : i32, i32
  }
  func.func @transform_5(%arg0: i32) -> (i32, i32) {
    %c0_i32 = arith.constant 0 : i32
    %c0_i32_0 = arith.constant 0 : i32
    return %arg0, %c0_i32 : i32, i32
  }
  func.func @transform_6(%arg0: i32) -> (i32, i32) {
    %c0_i32 = arith.constant 0 : i32
    %c0_i32_0 = arith.constant 0 : i32
    return %arg0, %c0_i32 : i32, i32
  }
  func.func @transform_7(%arg0: i32) -> (i32, i32) {
    %c0_i32 = arith.constant 0 : i32
    %c0_i32_0 = arith.constant 0 : i32
    return %arg0, %c0_i32 : i32, i32
  }
}

module attributes {stable_mosaic.version = 11 : i64} {
  func.func @_na_kernel(%arg0: i32, %arg1: i32, %arg2: memref<1x16x64xbf16, #tpu.memory_space<vmem>>, %arg3: memref<1x16x576xbf16, #tpu.memory_space<vmem>>, %arg4: memref<1x16x576xbf16, #tpu.memory_space<vmem>>, %arg5: memref<16x36xf32, #tpu.memory_space<vmem>>, %arg6: memref<64x4xbf16, #tpu.memory_space<vmem>>, %arg7: memref<4x64xbf16, #tpu.memory_space<vmem>>, %arg8: memref<64x64xbf16, #tpu.memory_space<vmem>>, %arg9: memref<1x64xf32, #tpu.memory_space<vmem>>, %arg10: memref<1x16x64xbf16, #tpu.memory_space<vmem>>, %arg11: memref<1x16x64xbf16, #tpu.memory_space<vmem>>) attributes {dimension_semantics = [#tpu.dimension_semantics<parallel>, #tpu.dimension_semantics<parallel>], iteration_bounds = array<i64: 2, 1>, scalar_prefetch = 0 : i64, scratch_operands = 0 : i64, tpu.core_type = #tpu.core_type<tc>, window_params = [{transform_indices = @transform_0, window_bounds = array<i64: 1, 16, 64>}, {transform_indices = @transform_1, window_bounds = array<i64: 1, 16, 576>}, {transform_indices = @transform_2, window_bounds = array<i64: 1, 16, 576>}, {transform_indices = @transform_3, window_bounds = array<i64: 16, 36>}, {pipeline_mode = #tpu.pipeline_mode<synchronous>, transform_indices = @transform_4, window_bounds = array<i64: 64, 4>}, {pipeline_mode = #tpu.pipeline_mode<synchronous>, transform_indices = @transform_5, window_bounds = array<i64: 4, 64>}, {pipeline_mode = #tpu.pipeline_mode<synchronous>, transform_indices = @transform_6, window_bounds = array<i64: 64, 64>}, {pipeline_mode = #tpu.pipeline_mode<synchronous>, transform_indices = @transform_7, window_bounds = array<i64: 1, 64>}, {transform_indices = @transform_8, window_bounds = array<i64: 1, 16, 64>}, {transform_indices = @transform_9, window_bounds = array<i64: 1, 16, 64>}]} {
    %c0 = arith.constant 0 : index
    %c0_0 = arith.constant 0 : index
    %c0_1 = arith.constant 0 : index
    %0 = vector.load %arg2[%c0, %c0_0, %c0_1] : memref<1x16x64xbf16, #tpu.memory_space<vmem>>, vector<1x16x64xbf16>
    %1 = vector.shape_cast %0 : vector<1x16x64xbf16> to vector<16x64xbf16>
    %c0_2 = arith.constant 0 : index
    %c0_3 = arith.constant 0 : index
    %2 = vector.load %arg6[%c0_2, %c0_3] : memref<64x4xbf16, #tpu.memory_space<vmem>>, vector<64x4xbf16>
    %c0_4 = arith.constant 0 : index
    %c0_5 = arith.constant 0 : index
    %c0_6 = arith.constant 0 : index
    %3 = vector.load %arg3[%c0_4, %c0_5, %c0_6] : memref<1x16x576xbf16, #tpu.memory_space<vmem>>, vector<1x16x64xbf16>
    %4 = vector.shape_cast %3 : vector<1x16x64xbf16> to vector<16x64xbf16>
    %5 = arith.mulf %1, %4 : vector<16x64xbf16>
    %cst = arith.constant dense<0.000000e+00> : vector<16x4xf32>
    %6 = tpu.matmul %5, %2, %cst {dimension_numbers = #tpu.dot_dimension_numbers<[1], [0], [0], [1], [0, 0, 1, 1], [], []>} : vector<16x64xbf16>, vector<64x4xbf16>, vector<16x4xf32> -> vector<16x4xf32>
    %cst_7 = arith.constant 2.500000e-01 : f32
    %7 = vector.broadcast %cst_7 : f32 to vector<16x4xf32>
    %8 = arith.mulf %6, %7 : vector<16x4xf32>
    %c0_8 = arith.constant 0 : index
    %c0_9 = arith.constant 0 : index
    %9 = vector.load %arg5[%c0_8, %c0_9] : memref<16x36xf32, #tpu.memory_space<vmem>>, vector<16x4xf32>
    %10 = arith.addf %8, %9 : vector<16x4xf32>
    %c0_10 = arith.constant 0 : index
    %c0_11 = arith.constant 0 : index
    %c64 = arith.constant 64 : index
    %11 = vector.load %arg3[%c0_10, %c0_11, %c64] : memref<1x16x576xbf16, #tpu.memory_space<vmem>>, vector<1x16x64xbf16>
    %12 = vector.shape_cast %11 : vector<1x16x64xbf16> to vector<16x64xbf16>
    %13 = arith.mulf %1, %12 : vector<16x64xbf16>
    %cst_12 = arith.constant dense<0.000000e+00> : vector<16x4xf32>
    %14 = tpu.matmul %13, %2, %cst_12 {dimension_numbers = #tpu.dot_dimension_numbers<[1], [0], [0], [1], [0, 0, 1, 1], [], []>} : vector<16x64xbf16>, vector<64x4xbf16>, vector<16x4xf32> -> vector<16x4xf32>
    %cst_13 = arith.constant 2.500000e-01 : f32
    %15 = vector.broadcast %cst_13 : f32 to vector<16x4xf32>
    %16 = arith.mulf %14, %15 : vector<16x4xf32>
    %c0_14 = arith.constant 0 : index
    %c4 = arith.constant 4 : index
    %17 = vector.load %arg5[%c0_14, %c4] : memref<16x36xf32, #tpu.memory_space<vmem>>, vector<16x4xf32>
    %18 = arith.addf %16, %17 : vector<16x4xf32>
    %c0_15 = arith.constant 0 : index
    %c0_16 = arith.constant 0 : index
    %c128 = arith.constant 128 : index
    %19 = vector.load %arg3[%c0_15, %c0_16, %c128] : memref<1x16x576xbf16, #tpu.memory_space<vmem>>, vector<1x16x64xbf16>
    %20 = vector.shape_cast %19 : vector<1x16x64xbf16> to vector<16x64xbf16>
    %21 = arith.mulf %1, %20 : vector<16x64xbf16>
    %cst_17 = arith.constant dense<0.000000e+00> : vector<16x4xf32>
    %22 = tpu.matmul %21, %2, %cst_17 {dimension_numbers = #tpu.dot_dimension_numbers<[1], [0], [0], [1], [0, 0, 1, 1], [], []>} : vector<16x64xbf16>, vector<64x4xbf16>, vector<16x4xf32> -> vector<16x4xf32>
    %cst_18 = arith.constant 2.500000e-01 : f32
    %23 = vector.broadcast %cst_18 : f32 to vector<16x4xf32>
    %24 = arith.mulf %22, %23 : vector<16x4xf32>
    %c0_19 = arith.constant 0 : index
    %c8 = arith.constant 8 : index
    %25 = vector.load %arg5[%c0_19, %c8] : memref<16x36xf32, #tpu.memory_space<vmem>>, vector<16x4xf32>
    %26 = arith.addf %24, %25 : vector<16x4xf32>
    %c0_20 = arith.constant 0 : index
    %c0_21 = arith.constant 0 : index
    %c192 = arith.constant 192 : index
    %27 = vector.load %arg3[%c0_20, %c0_21, %c192] : memref<1x16x576xbf16, #tpu.memory_space<vmem>>, vector<1x16x64xbf16>
    %28 = vector.shape_cast %27 : vector<1x16x64xbf16> to vector<16x64xbf16>
    %29 = arith.mulf %1, %28 : vector<16x64xbf16>
    %cst_22 = arith.constant dense<0.000000e+00> : vector<16x4xf32>
    %30 = tpu.matmul %29, %2, %cst_22 {dimension_numbers = #tpu.dot_dimension_numbers<[1], [0], [0], [1], [0, 0, 1, 1], [], []>} : vector<16x64xbf16>, vector<64x4xbf16>, vector<16x4xf32> -> vector<16x4xf32>
    %cst_23 = arith.constant 2.500000e-01 : f32
    %31 = vector.broadcast %cst_23 : f32 to vector<16x4xf32>
    %32 = arith.mulf %30, %31 : vector<16x4xf32>
    %c0_24 = arith.constant 0 : index
    %c12 = arith.constant 12 : index
    %33 = vector.load %arg5[%c0_24, %c12] : memref<16x36xf32, #tpu.memory_space<vmem>>, vector<16x4xf32>
    %34 = arith.addf %32, %33 : vector<16x4xf32>
    %c0_25 = arith.constant 0 : index
    %c0_26 = arith.constant 0 : index
    %c256 = arith.constant 256 : index
    %35 = vector.load %arg3[%c0_25, %c0_26, %c256] : memref<1x16x576xbf16, #tpu.memory_space<vmem>>, vector<1x16x64xbf16>
    %36 = vector.shape_cast %35 : vector<1x16x64xbf16> to vector<16x64xbf16>
    %37 = arith.mulf %1, %36 : vector<16x64xbf16>
    %cst_27 = arith.constant dense<0.000000e+00> : vector<16x4xf32>
    %38 = tpu.matmul %37, %2, %cst_27 {dimension_numbers = #tpu.dot_dimension_numbers<[1], [0], [0], [1], [0, 0, 1, 1], [], []>} : vector<16x64xbf16>, vector<64x4xbf16>, vector<16x4xf32> -> vector<16x4xf32>
    %cst_28 = arith.constant 2.500000e-01 : f32
    %39 = vector.broadcast %cst_28 : f32 to vector<16x4xf32>
    %40 = arith.mulf %38, %39 : vector<16x4xf32>
    %c0_29 = arith.constant 0 : index
    %c16 = arith.constant 16 : index
    %41 = vector.load %arg5[%c0_29, %c16] : memref<16x36xf32, #tpu.memory_space<vmem>>, vector<16x4xf32>
    %42 = arith.addf %40, %41 : vector<16x4xf32>
    %c0_30 = arith.constant 0 : index
    %c0_31 = arith.constant 0 : index
    %c320 = arith.constant 320 : index
    %43 = vector.load %arg3[%c0_30, %c0_31, %c320] : memref<1x16x576xbf16, #tpu.memory_space<vmem>>, vector<1x16x64xbf16>
    %44 = vector.shape_cast %43 : vector<1x16x64xbf16> to vector<16x64xbf16>
    %45 = arith.mulf %1, %44 : vector<16x64xbf16>
    %cst_32 = arith.constant dense<0.000000e+00> : vector<16x4xf32>
    %46 = tpu.matmul %45, %2, %cst_32 {dimension_numbers = #tpu.dot_dimension_numbers<[1], [0], [0], [1], [0, 0, 1, 1], [], []>} : vector<16x64xbf16>, vector<64x4xbf16>, vector<16x4xf32> -> vector<16x4xf32>
    %cst_33 = arith.constant 2.500000e-01 : f32
    %47 = vector.broadcast %cst_33 : f32 to vector<16x4xf32>
    %48 = arith.mulf %46, %47 : vector<16x4xf32>
    %c0_34 = arith.constant 0 : index
    %c20 = arith.constant 20 : index
    %49 = vector.load %arg5[%c0_34, %c20] : memref<16x36xf32, #tpu.memory_space<vmem>>, vector<16x4xf32>
    %50 = arith.addf %48, %49 : vector<16x4xf32>
    %c0_35 = arith.constant 0 : index
    %c0_36 = arith.constant 0 : index
    %c384 = arith.constant 384 : index
    %51 = vector.load %arg3[%c0_35, %c0_36, %c384] : memref<1x16x576xbf16, #tpu.memory_space<vmem>>, vector<1x16x64xbf16>
    %52 = vector.shape_cast %51 : vector<1x16x64xbf16> to vector<16x64xbf16>
    %53 = arith.mulf %1, %52 : vector<16x64xbf16>
    %cst_37 = arith.constant dense<0.000000e+00> : vector<16x4xf32>
    %54 = tpu.matmul %53, %2, %cst_37 {dimension_numbers = #tpu.dot_dimension_numbers<[1], [0], [0], [1], [0, 0, 1, 1], [], []>} : vector<16x64xbf16>, vector<64x4xbf16>, vector<16x4xf32> -> vector<16x4xf32>
    %cst_38 = arith.constant 2.500000e-01 : f32
    %55 = vector.broadcast %cst_38 : f32 to vector<16x4xf32>
    %56 = arith.mulf %54, %55 : vector<16x4xf32>
    %c0_39 = arith.constant 0 : index
    %c24 = arith.constant 24 : index
    %57 = vector.load %arg5[%c0_39, %c24] : memref<16x36xf32, #tpu.memory_space<vmem>>, vector<16x4xf32>
    %58 = arith.addf %56, %57 : vector<16x4xf32>
    %c0_40 = arith.constant 0 : index
    %c0_41 = arith.constant 0 : index
    %c448 = arith.constant 448 : index
    %59 = vector.load %arg3[%c0_40, %c0_41, %c448] : memref<1x16x576xbf16, #tpu.memory_space<vmem>>, vector<1x16x64xbf16>
    %60 = vector.shape_cast %59 : vector<1x16x64xbf16> to vector<16x64xbf16>
    %61 = arith.mulf %1, %60 : vector<16x64xbf16>
    %cst_42 = arith.constant dense<0.000000e+00> : vector<16x4xf32>
    %62 = tpu.matmul %61, %2, %cst_42 {dimension_numbers = #tpu.dot_dimension_numbers<[1], [0], [0], [1], [0, 0, 1, 1], [], []>} : vector<16x64xbf16>, vector<64x4xbf16>, vector<16x4xf32> -> vector<16x4xf32>
    %cst_43 = arith.constant 2.500000e-01 : f32
    %63 = vector.broadcast %cst_43 : f32 to vector<16x4xf32>
    %64 = arith.mulf %62, %63 : vector<16x4xf32>
    %c0_44 = arith.constant 0 : index
    %c28 = arith.constant 28 : index
    %65 = vector.load %arg5[%c0_44, %c28] : memref<16x36xf32, #tpu.memory_space<vmem>>, vector<16x4xf32>
    %66 = arith.addf %64, %65 : vector<16x4xf32>
    %c0_45 = arith.constant 0 : index
    %c0_46 = arith.constant 0 : index
    %c512 = arith.constant 512 : index
    %67 = vector.load %arg3[%c0_45, %c0_46, %c512] : memref<1x16x576xbf16, #tpu.memory_space<vmem>>, vector<1x16x64xbf16>
    %68 = vector.shape_cast %67 : vector<1x16x64xbf16> to vector<16x64xbf16>
    %69 = arith.mulf %1, %68 : vector<16x64xbf16>
    %cst_47 = arith.constant dense<0.000000e+00> : vector<16x4xf32>
    %70 = tpu.matmul %69, %2, %cst_47 {dimension_numbers = #tpu.dot_dimension_numbers<[1], [0], [0], [1], [0, 0, 1, 1], [], []>} : vector<16x64xbf16>, vector<64x4xbf16>, vector<16x4xf32> -> vector<16x4xf32>
    %cst_48 = arith.constant 2.500000e-01 : f32
    %71 = vector.broadcast %cst_48 : f32 to vector<16x4xf32>
    %72 = arith.mulf %70, %71 : vector<16x4xf32>
    %c0_49 = arith.constant 0 : index
    %c32 = arith.constant 32 : index
    %73 = vector.load %arg5[%c0_49, %c32] : memref<16x36xf32, #tpu.memory_space<vmem>>, vector<16x4xf32>
    %74 = arith.addf %72, %73 : vector<16x4xf32>
    %75 = arith.maximumf %10, %18 : vector<16x4xf32>
    %76 = arith.maximumf %75, %26 : vector<16x4xf32>
    %77 = arith.maximumf %76, %34 : vector<16x4xf32>
    %78 = arith.maximumf %77, %42 : vector<16x4xf32>
    %79 = arith.maximumf %78, %50 : vector<16x4xf32>
    %80 = arith.maximumf %79, %58 : vector<16x4xf32>
    %81 = arith.maximumf %80, %66 : vector<16x4xf32>
    %82 = arith.maximumf %81, %74 : vector<16x4xf32>
    %83 = arith.subf %10, %82 : vector<16x4xf32>
    %84 = math.exp %83 : vector<16x4xf32>
    %85 = arith.subf %18, %82 : vector<16x4xf32>
    %86 = math.exp %85 : vector<16x4xf32>
    %87 = arith.subf %26, %82 : vector<16x4xf32>
    %88 = math.exp %87 : vector<16x4xf32>
    %89 = arith.subf %34, %82 : vector<16x4xf32>
    %90 = math.exp %89 : vector<16x4xf32>
    %91 = arith.subf %42, %82 : vector<16x4xf32>
    %92 = math.exp %91 : vector<16x4xf32>
    %93 = arith.subf %50, %82 : vector<16x4xf32>
    %94 = math.exp %93 : vector<16x4xf32>
    %95 = arith.subf %58, %82 : vector<16x4xf32>
    %96 = math.exp %95 : vector<16x4xf32>
    %97 = arith.subf %66, %82 : vector<16x4xf32>
    %98 = math.exp %97 : vector<16x4xf32>
    %99 = arith.subf %74, %82 : vector<16x4xf32>
    %100 = math.exp %99 : vector<16x4xf32>
    %101 = arith.addf %84, %86 : vector<16x4xf32>
    %102 = arith.addf %101, %88 : vector<16x4xf32>
    %103 = arith.addf %102, %90 : vector<16x4xf32>
    %104 = arith.addf %103, %92 : vector<16x4xf32>
    %105 = arith.addf %104, %94 : vector<16x4xf32>
    %106 = arith.addf %105, %96 : vector<16x4xf32>
    %107 = arith.addf %106, %98 : vector<16x4xf32>
    %108 = arith.addf %107, %100 : vector<16x4xf32>
    %109 = tpu.reciprocal %108 {approx = true} : vector<16x4xf32> -> vector<16x4xf32>
    %c0_50 = arith.constant 0 : index
    %c0_51 = arith.constant 0 : index
    %110 = vector.load %arg7[%c0_50, %c0_51] : memref<4x64xbf16, #tpu.memory_space<vmem>>, vector<4x64xbf16>
    %cst_52 = arith.constant 0.000000e+00 : f32
    %111 = vector.broadcast %cst_52 : f32 to vector<16x64xf32>
    %112 = arith.mulf %84, %109 : vector<16x4xf32>
    %113 = arith.truncf %112 : vector<16x4xf32> to vector<16x4xbf16>
    %cst_53 = arith.constant dense<0.000000e+00> : vector<16x64xf32>
    %114 = tpu.matmul %113, %110, %cst_53 {dimension_numbers = #tpu.dot_dimension_numbers<[1], [0], [0], [1], [0, 0, 1, 1], [], []>} : vector<16x4xbf16>, vector<4x64xbf16>, vector<16x64xf32> -> vector<16x64xf32>
    %c0_54 = arith.constant 0 : index
    %c0_55 = arith.constant 0 : index
    %c0_56 = arith.constant 0 : index
    %115 = vector.load %arg4[%c0_54, %c0_55, %c0_56] : memref<1x16x576xbf16, #tpu.memory_space<vmem>>, vector<1x16x64xbf16>
    %116 = vector.shape_cast %115 : vector<1x16x64xbf16> to vector<16x64xbf16>
    %117 = arith.extf %116 : vector<16x64xbf16> to vector<16x64xf32>
    %118 = arith.mulf %114, %117 : vector<16x64xf32>
    %119 = arith.addf %111, %118 : vector<16x64xf32>
    %120 = arith.mulf %86, %109 : vector<16x4xf32>
    %121 = arith.truncf %120 : vector<16x4xf32> to vector<16x4xbf16>
    %cst_57 = arith.constant dense<0.000000e+00> : vector<16x64xf32>
    %122 = tpu.matmul %121, %110, %cst_57 {dimension_numbers = #tpu.dot_dimension_numbers<[1], [0], [0], [1], [0, 0, 1, 1], [], []>} : vector<16x4xbf16>, vector<4x64xbf16>, vector<16x64xf32> -> vector<16x64xf32>
    %c0_58 = arith.constant 0 : index
    %c0_59 = arith.constant 0 : index
    %c64_60 = arith.constant 64 : index
    %123 = vector.load %arg4[%c0_58, %c0_59, %c64_60] : memref<1x16x576xbf16, #tpu.memory_space<vmem>>, vector<1x16x64xbf16>
    %124 = vector.shape_cast %123 : vector<1x16x64xbf16> to vector<16x64xbf16>
    %125 = arith.extf %124 : vector<16x64xbf16> to vector<16x64xf32>
    %126 = arith.mulf %122, %125 : vector<16x64xf32>
    %127 = arith.addf %119, %126 : vector<16x64xf32>
    %128 = arith.mulf %88, %109 : vector<16x4xf32>
    %129 = arith.truncf %128 : vector<16x4xf32> to vector<16x4xbf16>
    %cst_61 = arith.constant dense<0.000000e+00> : vector<16x64xf32>
    %130 = tpu.matmul %129, %110, %cst_61 {dimension_numbers = #tpu.dot_dimension_numbers<[1], [0], [0], [1], [0, 0, 1, 1], [], []>} : vector<16x4xbf16>, vector<4x64xbf16>, vector<16x64xf32> -> vector<16x64xf32>
    %c0_62 = arith.constant 0 : index
    %c0_63 = arith.constant 0 : index
    %c128_64 = arith.constant 128 : index
    %131 = vector.load %arg4[%c0_62, %c0_63, %c128_64] : memref<1x16x576xbf16, #tpu.memory_space<vmem>>, vector<1x16x64xbf16>
    %132 = vector.shape_cast %131 : vector<1x16x64xbf16> to vector<16x64xbf16>
    %133 = arith.extf %132 : vector<16x64xbf16> to vector<16x64xf32>
    %134 = arith.mulf %130, %133 : vector<16x64xf32>
    %135 = arith.addf %127, %134 : vector<16x64xf32>
    %136 = arith.mulf %90, %109 : vector<16x4xf32>
    %137 = arith.truncf %136 : vector<16x4xf32> to vector<16x4xbf16>
    %cst_65 = arith.constant dense<0.000000e+00> : vector<16x64xf32>
    %138 = tpu.matmul %137, %110, %cst_65 {dimension_numbers = #tpu.dot_dimension_numbers<[1], [0], [0], [1], [0, 0, 1, 1], [], []>} : vector<16x4xbf16>, vector<4x64xbf16>, vector<16x64xf32> -> vector<16x64xf32>
    %c0_66 = arith.constant 0 : index
    %c0_67 = arith.constant 0 : index
    %c192_68 = arith.constant 192 : index
    %139 = vector.load %arg4[%c0_66, %c0_67, %c192_68] : memref<1x16x576xbf16, #tpu.memory_space<vmem>>, vector<1x16x64xbf16>
    %140 = vector.shape_cast %139 : vector<1x16x64xbf16> to vector<16x64xbf16>
    %141 = arith.extf %140 : vector<16x64xbf16> to vector<16x64xf32>
    %142 = arith.mulf %138, %141 : vector<16x64xf32>
    %143 = arith.addf %135, %142 : vector<16x64xf32>
    %144 = arith.mulf %92, %109 : vector<16x4xf32>
    %145 = arith.truncf %144 : vector<16x4xf32> to vector<16x4xbf16>
    %cst_69 = arith.constant dense<0.000000e+00> : vector<16x64xf32>
    %146 = tpu.matmul %145, %110, %cst_69 {dimension_numbers = #tpu.dot_dimension_numbers<[1], [0], [0], [1], [0, 0, 1, 1], [], []>} : vector<16x4xbf16>, vector<4x64xbf16>, vector<16x64xf32> -> vector<16x64xf32>
    %c0_70 = arith.constant 0 : index
    %c0_71 = arith.constant 0 : index
    %c256_72 = arith.constant 256 : index
    %147 = vector.load %arg4[%c0_70, %c0_71, %c256_72] : memref<1x16x576xbf16, #tpu.memory_space<vmem>>, vector<1x16x64xbf16>
    %148 = vector.shape_cast %147 : vector<1x16x64xbf16> to vector<16x64xbf16>
    %149 = arith.extf %148 : vector<16x64xbf16> to vector<16x64xf32>
    %150 = arith.mulf %146, %149 : vector<16x64xf32>
    %151 = arith.addf %143, %150 : vector<16x64xf32>
    %152 = arith.mulf %94, %109 : vector<16x4xf32>
    %153 = arith.truncf %152 : vector<16x4xf32> to vector<16x4xbf16>
    %cst_73 = arith.constant dense<0.000000e+00> : vector<16x64xf32>
    %154 = tpu.matmul %153, %110, %cst_73 {dimension_numbers = #tpu.dot_dimension_numbers<[1], [0], [0], [1], [0, 0, 1, 1], [], []>} : vector<16x4xbf16>, vector<4x64xbf16>, vector<16x64xf32> -> vector<16x64xf32>
    %c0_74 = arith.constant 0 : index
    %c0_75 = arith.constant 0 : index
    %c320_76 = arith.constant 320 : index
    %155 = vector.load %arg4[%c0_74, %c0_75, %c320_76] : memref<1x16x576xbf16, #tpu.memory_space<vmem>>, vector<1x16x64xbf16>
    %156 = vector.shape_cast %155 : vector<1x16x64xbf16> to vector<16x64xbf16>
    %157 = arith.extf %156 : vector<16x64xbf16> to vector<16x64xf32>
    %158 = arith.mulf %154, %157 : vector<16x64xf32>
    %159 = arith.addf %151, %158 : vector<16x64xf32>
    %160 = arith.mulf %96, %109 : vector<16x4xf32>
    %161 = arith.truncf %160 : vector<16x4xf32> to vector<16x4xbf16>
    %cst_77 = arith.constant dense<0.000000e+00> : vector<16x64xf32>
    %162 = tpu.matmul %161, %110, %cst_77 {dimension_numbers = #tpu.dot_dimension_numbers<[1], [0], [0], [1], [0, 0, 1, 1], [], []>} : vector<16x4xbf16>, vector<4x64xbf16>, vector<16x64xf32> -> vector<16x64xf32>
    %c0_78 = arith.constant 0 : index
    %c0_79 = arith.constant 0 : index
    %c384_80 = arith.constant 384 : index
    %163 = vector.load %arg4[%c0_78, %c0_79, %c384_80] : memref<1x16x576xbf16, #tpu.memory_space<vmem>>, vector<1x16x64xbf16>
    %164 = vector.shape_cast %163 : vector<1x16x64xbf16> to vector<16x64xbf16>
    %165 = arith.extf %164 : vector<16x64xbf16> to vector<16x64xf32>
    %166 = arith.mulf %162, %165 : vector<16x64xf32>
    %167 = arith.addf %159, %166 : vector<16x64xf32>
    %168 = arith.mulf %98, %109 : vector<16x4xf32>
    %169 = arith.truncf %168 : vector<16x4xf32> to vector<16x4xbf16>
    %cst_81 = arith.constant dense<0.000000e+00> : vector<16x64xf32>
    %170 = tpu.matmul %169, %110, %cst_81 {dimension_numbers = #tpu.dot_dimension_numbers<[1], [0], [0], [1], [0, 0, 1, 1], [], []>} : vector<16x4xbf16>, vector<4x64xbf16>, vector<16x64xf32> -> vector<16x64xf32>
    %c0_82 = arith.constant 0 : index
    %c0_83 = arith.constant 0 : index
    %c448_84 = arith.constant 448 : index
    %171 = vector.load %arg4[%c0_82, %c0_83, %c448_84] : memref<1x16x576xbf16, #tpu.memory_space<vmem>>, vector<1x16x64xbf16>
    %172 = vector.shape_cast %171 : vector<1x16x64xbf16> to vector<16x64xbf16>
    %173 = arith.extf %172 : vector<16x64xbf16> to vector<16x64xf32>
    %174 = arith.mulf %170, %173 : vector<16x64xf32>
    %175 = arith.addf %167, %174 : vector<16x64xf32>
    %176 = arith.mulf %100, %109 : vector<16x4xf32>
    %177 = arith.truncf %176 : vector<16x4xf32> to vector<16x4xbf16>
    %cst_85 = arith.constant dense<0.000000e+00> : vector<16x64xf32>
    %178 = tpu.matmul %177, %110, %cst_85 {dimension_numbers = #tpu.dot_dimension_numbers<[1], [0], [0], [1], [0, 0, 1, 1], [], []>} : vector<16x4xbf16>, vector<4x64xbf16>, vector<16x64xf32> -> vector<16x64xf32>
    %c0_86 = arith.constant 0 : index
    %c0_87 = arith.constant 0 : index
    %c512_88 = arith.constant 512 : index
    %179 = vector.load %arg4[%c0_86, %c0_87, %c512_88] : memref<1x16x576xbf16, #tpu.memory_space<vmem>>, vector<1x16x64xbf16>
    %180 = vector.shape_cast %179 : vector<1x16x64xbf16> to vector<16x64xbf16>
    %181 = arith.extf %180 : vector<16x64xbf16> to vector<16x64xf32>
    %182 = arith.mulf %178, %181 : vector<16x64xf32>
    %183 = arith.addf %175, %182 : vector<16x64xf32>
    %184 = arith.truncf %183 : vector<16x64xf32> to vector<16x64xbf16>
    %c0_89 = arith.constant 0 : index
    %c0_90 = arith.constant 0 : index
    %185 = vector.load %arg8[%c0_89, %c0_90] : memref<64x64xbf16, #tpu.memory_space<vmem>>, vector<64x64xbf16>
    %cst_91 = arith.constant dense<0.000000e+00> : vector<16x64xf32>
    %186 = tpu.matmul %184, %185, %cst_91 {dimension_numbers = #tpu.dot_dimension_numbers<[1], [0], [0], [1], [0, 0, 1, 1], [], []>} : vector<16x64xbf16>, vector<64x64xbf16>, vector<16x64xf32> -> vector<16x64xf32>
    %c0_92 = arith.constant 0 : index
    %c0_93 = arith.constant 0 : index
    %187 = vector.load %arg9[%c0_92, %c0_93] : memref<1x64xf32, #tpu.memory_space<vmem>>, vector<1x64xf32>
    %188 = vector.broadcast %187 : vector<1x64xf32> to vector<16x64xf32>
    %189 = arith.addf %186, %188 : vector<16x64xf32>
    %c0_94 = arith.constant 0 : index
    %c0_95 = arith.constant 0 : index
    %c0_96 = arith.constant 0 : index
    %190 = vector.load %arg10[%c0_94, %c0_95, %c0_96] : memref<1x16x64xbf16, #tpu.memory_space<vmem>>, vector<1x16x64xbf16>
    %191 = vector.shape_cast %190 : vector<1x16x64xbf16> to vector<16x64xbf16>
    %192 = arith.extf %191 : vector<16x64xbf16> to vector<16x64xf32>
    %193 = arith.addf %189, %192 : vector<16x64xf32>
    %194 = arith.truncf %193 : vector<16x64xf32> to vector<16x64xbf16>
    %c0_97 = arith.constant 0 : index
    %c0_98 = arith.constant 0 : index
    %c0_99 = arith.constant 0 : index
    %195 = vector.load %arg11[%c0_97, %c0_98, %c0_99] : memref<1x16x64xbf16, #tpu.memory_space<vmem>>, vector<1x16x64xbf16>
    %196 = vector.shape_cast %195 : vector<1x16x64xbf16> to vector<16x64xbf16>
    %197 = vector.shape_cast %194 : vector<16x64xbf16> to vector<1x16x64xbf16>
    tpu.vector_store %arg11[%c0_97, %c0_98, %c0_99], %197 {strides = array<i32>} : memref<1x16x64xbf16, #tpu.memory_space<vmem>>, vector<1x16x64xbf16>,
    return
  }
  func.func @transform_0(%arg0: i32, %arg1: i32) -> (i32, i32, i32) {
    %c0_i32 = arith.constant 0 : i32
    %c0_i32_0 = arith.constant 0 : i32
    return %arg0, %arg1, %c0_i32 : i32, i32, i32
  }
  func.func @transform_1(%arg0: i32, %arg1: i32) -> (i32, i32, i32) {
    %c0_i32 = arith.constant 0 : i32
    %c0_i32_0 = arith.constant 0 : i32
    return %arg0, %arg1, %c0_i32 : i32, i32, i32
  }
  func.func @transform_2(%arg0: i32, %arg1: i32) -> (i32, i32, i32) {
    %c0_i32 = arith.constant 0 : i32
    %c0_i32_0 = arith.constant 0 : i32
    return %arg0, %arg1, %c0_i32 : i32, i32, i32
  }
  func.func @transform_3(%arg0: i32, %arg1: i32) -> (i32, i32) {
    %c0_i32 = arith.constant 0 : i32
    %c0_i32_0 = arith.constant 0 : i32
    return %arg1, %c0_i32 : i32, i32
  }
  func.func @transform_4(%arg0: i32, %arg1: i32) -> (i32, i32) {
    %c0_i32 = arith.constant 0 : i32
    %c0_i32_0 = arith.constant 0 : i32
    %c0_i32_1 = arith.constant 0 : i32
    return %c0_i32, %c0_i32_0 : i32, i32
  }
  func.func @transform_5(%arg0: i32, %arg1: i32) -> (i32, i32) {
    %c0_i32 = arith.constant 0 : i32
    %c0_i32_0 = arith.constant 0 : i32
    %c0_i32_1 = arith.constant 0 : i32
    return %c0_i32, %c0_i32_0 : i32, i32
  }
  func.func @transform_6(%arg0: i32, %arg1: i32) -> (i32, i32) {
    %c0_i32 = arith.constant 0 : i32
    %c0_i32_0 = arith.constant 0 : i32
    %c0_i32_1 = arith.constant 0 : i32
    return %c0_i32, %c0_i32_0 : i32, i32
  }
  func.func @transform_7(%arg0: i32, %arg1: i32) -> (i32, i32) {
    %c0_i32 = arith.constant 0 : i32
    %c0_i32_0 = arith.constant 0 : i32
    %c0_i32_1 = arith.constant 0 : i32
    return %c0_i32, %c0_i32_0 : i32, i32
  }
  func.func @transform_8(%arg0: i32, %arg1: i32) -> (i32, i32, i32) {
    %c0_i32 = arith.constant 0 : i32
    %c0_i32_0 = arith.constant 0 : i32
    return %arg0, %arg1, %c0_i32 : i32, i32, i32
  }
  func.func @transform_9(%arg0: i32, %arg1: i32) -> (i32, i32, i32) {
    %c0_i32 = arith.constant 0 : i32
    %c0_i32_0 = arith.constant 0 : i32
    return %arg0, %arg1, %c0_i32 : i32, i32, i32
  }
}

module attributes {stable_mosaic.version = 11 : i64} {
  func.func @_mlp_kernel(%arg0: i32, %arg1: memref<16x64xbf16, #tpu.memory_space<vmem>>, %arg2: memref<1x64xf32, #tpu.memory_space<vmem>>, %arg3: memref<1x64xf32, #tpu.memory_space<vmem>>, %arg4: memref<64x256xbf16, #tpu.memory_space<vmem>>, %arg5: memref<1x256xf32, #tpu.memory_space<vmem>>, %arg6: memref<256x64xbf16, #tpu.memory_space<vmem>>, %arg7: memref<1x64xf32, #tpu.memory_space<vmem>>, %arg8: memref<16x64xbf16, #tpu.memory_space<vmem>>) attributes {dimension_semantics = [#tpu.dimension_semantics<parallel>], iteration_bounds = array<i64: 2>, scalar_prefetch = 0 : i64, scratch_operands = 0 : i64, tpu.core_type = #tpu.core_type<tc>, window_params = [{transform_indices = @transform_0, window_bounds = array<i64: 16, 64>}, {pipeline_mode = #tpu.pipeline_mode<synchronous>, transform_indices = @transform_1, window_bounds = array<i64: 1, 64>}, {pipeline_mode = #tpu.pipeline_mode<synchronous>, transform_indices = @transform_2, window_bounds = array<i64: 1, 64>}, {pipeline_mode = #tpu.pipeline_mode<synchronous>, transform_indices = @transform_3, window_bounds = array<i64: 64, 256>}, {pipeline_mode = #tpu.pipeline_mode<synchronous>, transform_indices = @transform_4, window_bounds = array<i64: 1, 256>}, {pipeline_mode = #tpu.pipeline_mode<synchronous>, transform_indices = @transform_5, window_bounds = array<i64: 256, 64>}, {pipeline_mode = #tpu.pipeline_mode<synchronous>, transform_indices = @transform_6, window_bounds = array<i64: 1, 64>}, {transform_indices = @transform_7, window_bounds = array<i64: 16, 64>}]} {
    %c0 = arith.constant 0 : index
    %c0_0 = arith.constant 0 : index
    %0 = vector.load %arg1[%c0, %c0_0] : memref<16x64xbf16, #tpu.memory_space<vmem>>, vector<16x64xbf16>
    %1 = arith.extf %0 : vector<16x64xbf16> to vector<16x64xf32>
    %cst = arith.constant dense<0.000000e+00> : vector<16xf32>
    %2 = vector.multi_reduction <add>, %1, %cst [1] : vector<16x64xf32> to vector<16xf32>
    %3 = vector.shape_cast %2 : vector<16xf32> to vector<16x1xf32>
    %cst_1 = arith.constant 6.400000e+01 : f32
    %4 = vector.broadcast %cst_1 : f32 to vector<16x1xf32>
    %5 = arith.divf %3, %4 : vector<16x1xf32>
    %6 = vector.broadcast %5 : vector<16x1xf32> to vector<16x64xf32>
    %7 = arith.subf %1, %6 : vector<16x64xf32>
    %8 = arith.mulf %7, %7 : vector<16x64xf32>
    %cst_2 = arith.constant dense<0.000000e+00> : vector<16xf32>
    %9 = vector.multi_reduction <add>, %8, %cst_2 [1] : vector<16x64xf32> to vector<16xf32>
    %10 = vector.shape_cast %9 : vector<16xf32> to vector<16x1xf32>
    %cst_3 = arith.constant 6.400000e+01 : f32
    %11 = vector.broadcast %cst_3 : f32 to vector<16x1xf32>
    %12 = arith.divf %10, %11 : vector<16x1xf32>
    %cst_4 = arith.constant 9.99999974E-6 : f32
    %13 = vector.broadcast %cst_4 : f32 to vector<16x1xf32>
    %14 = arith.addf %12, %13 : vector<16x1xf32>
    %15 = math.rsqrt %14 : vector<16x1xf32>
    %16 = vector.broadcast %15 : vector<16x1xf32> to vector<16x64xf32>
    %17 = arith.mulf %7, %16 : vector<16x64xf32>
    %c0_5 = arith.constant 0 : index
    %c0_6 = arith.constant 0 : index
    %18 = vector.load %arg2[%c0_5, %c0_6] : memref<1x64xf32, #tpu.memory_space<vmem>>, vector<1x64xf32>
    %19 = vector.broadcast %18 : vector<1x64xf32> to vector<16x64xf32>
    %20 = arith.mulf %17, %19 : vector<16x64xf32>
    %c0_7 = arith.constant 0 : index
    %c0_8 = arith.constant 0 : index
    %21 = vector.load %arg3[%c0_7, %c0_8] : memref<1x64xf32, #tpu.memory_space<vmem>>, vector<1x64xf32>
    %22 = vector.broadcast %21 : vector<1x64xf32> to vector<16x64xf32>
    %23 = arith.addf %20, %22 : vector<16x64xf32>
    %24 = arith.truncf %23 : vector<16x64xf32> to vector<16x64xbf16>
    %c0_9 = arith.constant 0 : index
    %c0_10 = arith.constant 0 : index
    %25 = vector.load %arg4[%c0_9, %c0_10] : memref<64x256xbf16, #tpu.memory_space<vmem>>, vector<64x256xbf16>
    %cst_11 = arith.constant dense<0.000000e+00> : vector<16x256xf32>
    %26 = tpu.matmul %24, %25, %cst_11 {dimension_numbers = #tpu.dot_dimension_numbers<[1], [0], [0], [1], [0, 0, 1, 1], [], []>} : vector<16x64xbf16>, vector<64x256xbf16>, vector<16x256xf32> -> vector<16x256xf32>
    %c0_12 = arith.constant 0 : index
    %c0_13 = arith.constant 0 : index
    %27 = vector.load %arg5[%c0_12, %c0_13] : memref<1x256xf32, #tpu.memory_space<vmem>>, vector<1x256xf32>
    %28 = vector.broadcast %27 : vector<1x256xf32> to vector<16x256xf32>
    %29 = arith.addf %26, %28 : vector<16x256xf32>
    %cst_14 = arith.constant 5.000000e-01 : f32
    %30 = vector.broadcast %cst_14 : f32 to vector<16x256xf32>
    %31 = arith.mulf %30, %29 : vector<16x256xf32>
    %cst_15 = arith.constant 0.707106769 : f32
    %32 = vector.broadcast %cst_15 : f32 to vector<16x256xf32>
    %33 = arith.mulf %29, %32 : vector<16x256xf32>
    %34 = math.erf %33 : vector<16x256xf32>
    %cst_16 = arith.constant 1.000000e+00 : f32
    %35 = vector.broadcast %cst_16 : f32 to vector<16x256xf32>
    %36 = arith.addf %35, %34 : vector<16x256xf32>
    %37 = arith.mulf %31, %36 : vector<16x256xf32>
    %38 = arith.truncf %37 : vector<16x256xf32> to vector<16x256xbf16>
    %c0_17 = arith.constant 0 : index
    %c0_18 = arith.constant 0 : index
    %39 = vector.load %arg6[%c0_17, %c0_18] : memref<256x64xbf16, #tpu.memory_space<vmem>>, vector<256x64xbf16>
    %cst_19 = arith.constant dense<0.000000e+00> : vector<16x64xf32>
    %40 = tpu.matmul %38, %39, %cst_19 {dimension_numbers = #tpu.dot_dimension_numbers<[1], [0], [0], [1], [0, 0, 1, 1], [], []>} : vector<16x256xbf16>, vector<256x64xbf16>, vector<16x64xf32> -> vector<16x64xf32>
    %c0_20 = arith.constant 0 : index
    %c0_21 = arith.constant 0 : index
    %41 = vector.load %arg7[%c0_20, %c0_21] : memref<1x64xf32, #tpu.memory_space<vmem>>, vector<1x64xf32>
    %42 = vector.broadcast %41 : vector<1x64xf32> to vector<16x64xf32>
    %43 = arith.addf %40, %42 : vector<16x64xf32>
    %44 = arith.addf %43, %1 : vector<16x64xf32>
    %45 = arith.truncf %44 : vector<16x64xf32> to vector<16x64xbf16>
    %c0_22 = arith.constant 0 : index
    %c0_23 = arith.constant 0 : index
    %46 = vector.load %arg8[%c0_22, %c0_23] : memref<16x64xbf16, #tpu.memory_space<vmem>>, vector<16x64xbf16>
    tpu.vector_store %arg8[%c0_22, %c0_23], %45 {strides = array<i32>} : memref<16x64xbf16, #tpu.memory_space<vmem>>, vector<16x64xbf16>,
    return
  }
  func.func @transform_0(%arg0: i32) -> (i32, i32) {
    %c0_i32 = arith.constant 0 : i32
    %c0_i32_0 = arith.constant 0 : i32
    return %arg0, %c0_i32 : i32, i32
  }
  func.func @transform_1(%arg0: i32) -> (i32, i32) {
    %c0_i32 = arith.constant 0 : i32
    %c0_i32_0 = arith.constant 0 : i32
    %c0_i32_1 = arith.constant 0 : i32
    return %c0_i32, %c0_i32_0 : i32, i32
  }
  func.func @transform_2(%arg0: i32) -> (i32, i32) {
    %c0_i32 = arith.constant 0 : i32
    %c0_i32_0 = arith.constant 0 : i32
    %c0_i32_1 = arith.constant 0 : i32
    return %c0_i32, %c0_i32_0 : i32, i32
  }
  func.func @transform_3(%arg0: i32) -> (i32, i32) {
    %c0_i32 = arith.constant 0 : i32
    %c0_i32_0 = arith.constant 0 : i32
    %c0_i32_1 = arith.constant 0 : i32
    return %c0_i32, %c0_i32_0 : i32, i32
  }
  func.func @transform_4(%arg0: i32) -> (i32, i32) {
    %c0_i32 = arith.constant 0 : i32
    %c0_i32_0 = arith.constant 0 : i32
    %c0_i32_1 = arith.constant 0 : i32
    return %c0_i32, %c0_i32_0 : i32, i32
  }
  func.func @transform_5(%arg0: i32) -> (i32, i32) {
    %c0_i32 = arith.constant 0 : i32
    %c0_i32_0 = arith.constant 0 : i32
    %c0_i32_1 = arith.constant 0 : i32
    return %c0_i32, %c0_i32_0 : i32, i32
  }
  func.func @transform_6(%arg0: i32) -> (i32, i32) {
    %c0_i32 = arith.constant 0 : i32
    %c0_i32_0 = arith.constant 0 : i32
    %c0_i32_1 = arith.constant 0 : i32
    return %c0_i32, %c0_i32_0 : i32, i32
  }
  func.func @transform_7(%arg0: i32) -> (i32, i32) {
    %c0_i32 = arith.constant 0 : i32
    %c0_i32_0 = arith.constant 0 : i32
    return %arg0, %c0_i32 : i32, i32
  }
}

module attributes {stable_mosaic.version = 11 : i64} {
  func.func @_ln_kernel(%arg0: i32, %arg1: memref<16x64xbf16, #tpu.memory_space<vmem>>, %arg2: memref<1x64xf32, #tpu.memory_space<vmem>>, %arg3: memref<1x64xf32, #tpu.memory_space<vmem>>, %arg4: memref<16x64xf32, #tpu.memory_space<vmem>>) attributes {dimension_semantics = [#tpu.dimension_semantics<parallel>], iteration_bounds = array<i64: 2>, scalar_prefetch = 0 : i64, scratch_operands = 0 : i64, tpu.core_type = #tpu.core_type<tc>, window_params = [{transform_indices = @transform_0, window_bounds = array<i64: 16, 64>}, {pipeline_mode = #tpu.pipeline_mode<synchronous>, transform_indices = @transform_1, window_bounds = array<i64: 1, 64>}, {pipeline_mode = #tpu.pipeline_mode<synchronous>, transform_indices = @transform_2, window_bounds = array<i64: 1, 64>}, {transform_indices = @transform_3, window_bounds = array<i64: 16, 64>}]} {
    %c0 = arith.constant 0 : index
    %c0_0 = arith.constant 0 : index
    %0 = vector.load %arg1[%c0, %c0_0] : memref<16x64xbf16, #tpu.memory_space<vmem>>, vector<16x64xbf16>
    %1 = arith.extf %0 : vector<16x64xbf16> to vector<16x64xf32>
    %cst = arith.constant dense<0.000000e+00> : vector<16xf32>
    %2 = vector.multi_reduction <add>, %1, %cst [1] : vector<16x64xf32> to vector<16xf32>
    %3 = vector.shape_cast %2 : vector<16xf32> to vector<16x1xf32>
    %cst_1 = arith.constant 6.400000e+01 : f32
    %4 = vector.broadcast %cst_1 : f32 to vector<16x1xf32>
    %5 = arith.divf %3, %4 : vector<16x1xf32>
    %6 = vector.broadcast %5 : vector<16x1xf32> to vector<16x64xf32>
    %7 = arith.subf %1, %6 : vector<16x64xf32>
    %8 = arith.mulf %7, %7 : vector<16x64xf32>
    %cst_2 = arith.constant dense<0.000000e+00> : vector<16xf32>
    %9 = vector.multi_reduction <add>, %8, %cst_2 [1] : vector<16x64xf32> to vector<16xf32>
    %10 = vector.shape_cast %9 : vector<16xf32> to vector<16x1xf32>
    %cst_3 = arith.constant 6.400000e+01 : f32
    %11 = vector.broadcast %cst_3 : f32 to vector<16x1xf32>
    %12 = arith.divf %10, %11 : vector<16x1xf32>
    %cst_4 = arith.constant 9.99999974E-6 : f32
    %13 = vector.broadcast %cst_4 : f32 to vector<16x1xf32>
    %14 = arith.addf %12, %13 : vector<16x1xf32>
    %15 = math.rsqrt %14 : vector<16x1xf32>
    %16 = vector.broadcast %15 : vector<16x1xf32> to vector<16x64xf32>
    %17 = arith.mulf %7, %16 : vector<16x64xf32>
    %c0_5 = arith.constant 0 : index
    %c0_6 = arith.constant 0 : index
    %18 = vector.load %arg2[%c0_5, %c0_6] : memref<1x64xf32, #tpu.memory_space<vmem>>, vector<1x64xf32>
    %19 = vector.broadcast %18 : vector<1x64xf32> to vector<16x64xf32>
    %20 = arith.mulf %17, %19 : vector<16x64xf32>
    %c0_7 = arith.constant 0 : index
    %c0_8 = arith.constant 0 : index
    %21 = vector.load %arg3[%c0_7, %c0_8] : memref<1x64xf32, #tpu.memory_space<vmem>>, vector<1x64xf32>
    %22 = vector.broadcast %21 : vector<1x64xf32> to vector<16x64xf32>
    %23 = arith.addf %20, %22 : vector<16x64xf32>
    %c0_9 = arith.constant 0 : index
    %c0_10 = arith.constant 0 : index
    %24 = vector.load %arg4[%c0_9, %c0_10] : memref<16x64xf32, #tpu.memory_space<vmem>>, vector<16x64xf32>
    tpu.vector_store %arg4[%c0_9, %c0_10], %23 {strides = array<i32>} : memref<16x64xf32, #tpu.memory_space<vmem>>, vector<16x64xf32>,
    return
  }
  func.func @transform_0(%arg0: i32) -> (i32, i32) {
    %c0_i32 = arith.constant 0 : i32
    %c0_i32_0 = arith.constant 0 : i32
    return %arg0, %c0_i32 : i32, i32
  }
  func.func @transform_1(%arg0: i32) -> (i32, i32) {
    %c0_i32 = arith.constant 0 : i32
    %c0_i32_0 = arith.constant 0 : i32
    %c0_i32_1 = arith.constant 0 : i32
    return %c0_i32, %c0_i32_0 : i32, i32
  }
  func.func @transform_2(%arg0: i32) -> (i32, i32) {
    %c0_i32 = arith.constant 0 : i32
    %c0_i32_0 = arith.constant 0 : i32
    %c0_i32_1 = arith.constant 0 : i32
    return %c0_i32, %c0_i32_0 : i32, i32
  }
  func.func @transform_3(%arg0: i32) -> (i32, i32) {
    %c0_i32 = arith.constant 0 : i32
    %c0_i32_0 = arith.constant 0 : i32
    return %arg0, %c0_i32 : i32, i32
  }
}

module attributes {stable_mosaic.version = 11 : i64} {
  func.func @_ln_kernel(%arg0: i32, %arg1: memref<64x32xbf16, #tpu.memory_space<vmem>>, %arg2: memref<1x32xf32, #tpu.memory_space<vmem>>, %arg3: memref<1x32xf32, #tpu.memory_space<vmem>>, %arg4: memref<64x32xf32, #tpu.memory_space<vmem>>) attributes {dimension_semantics = [#tpu.dimension_semantics<parallel>], iteration_bounds = array<i64: 2>, scalar_prefetch = 0 : i64, scratch_operands = 0 : i64, tpu.core_type = #tpu.core_type<tc>, window_params = [{transform_indices = @transform_0, window_bounds = array<i64: 64, 32>}, {pipeline_mode = #tpu.pipeline_mode<synchronous>, transform_indices = @transform_1, window_bounds = array<i64: 1, 32>}, {pipeline_mode = #tpu.pipeline_mode<synchronous>, transform_indices = @transform_2, window_bounds = array<i64: 1, 32>}, {transform_indices = @transform_3, window_bounds = array<i64: 64, 32>}]} {
    %c0 = arith.constant 0 : index
    %c0_0 = arith.constant 0 : index
    %0 = vector.load %arg1[%c0, %c0_0] : memref<64x32xbf16, #tpu.memory_space<vmem>>, vector<64x32xbf16>
    %1 = arith.extf %0 : vector<64x32xbf16> to vector<64x32xf32>
    %cst = arith.constant dense<0.000000e+00> : vector<64xf32>
    %2 = vector.multi_reduction <add>, %1, %cst [1] : vector<64x32xf32> to vector<64xf32>
    %3 = vector.shape_cast %2 : vector<64xf32> to vector<64x1xf32>
    %cst_1 = arith.constant 3.200000e+01 : f32
    %4 = vector.broadcast %cst_1 : f32 to vector<64x1xf32>
    %5 = arith.divf %3, %4 : vector<64x1xf32>
    %6 = vector.broadcast %5 : vector<64x1xf32> to vector<64x32xf32>
    %7 = arith.subf %1, %6 : vector<64x32xf32>
    %8 = arith.mulf %7, %7 : vector<64x32xf32>
    %cst_2 = arith.constant dense<0.000000e+00> : vector<64xf32>
    %9 = vector.multi_reduction <add>, %8, %cst_2 [1] : vector<64x32xf32> to vector<64xf32>
    %10 = vector.shape_cast %9 : vector<64xf32> to vector<64x1xf32>
    %cst_3 = arith.constant 3.200000e+01 : f32
    %11 = vector.broadcast %cst_3 : f32 to vector<64x1xf32>
    %12 = arith.divf %10, %11 : vector<64x1xf32>
    %cst_4 = arith.constant 9.99999974E-6 : f32
    %13 = vector.broadcast %cst_4 : f32 to vector<64x1xf32>
    %14 = arith.addf %12, %13 : vector<64x1xf32>
    %15 = math.rsqrt %14 : vector<64x1xf32>
    %16 = vector.broadcast %15 : vector<64x1xf32> to vector<64x32xf32>
    %17 = arith.mulf %7, %16 : vector<64x32xf32>
    %c0_5 = arith.constant 0 : index
    %c0_6 = arith.constant 0 : index
    %18 = vector.load %arg2[%c0_5, %c0_6] : memref<1x32xf32, #tpu.memory_space<vmem>>, vector<1x32xf32>
    %19 = vector.broadcast %18 : vector<1x32xf32> to vector<64x32xf32>
    %20 = arith.mulf %17, %19 : vector<64x32xf32>
    %c0_7 = arith.constant 0 : index
    %c0_8 = arith.constant 0 : index
    %21 = vector.load %arg3[%c0_7, %c0_8] : memref<1x32xf32, #tpu.memory_space<vmem>>, vector<1x32xf32>
    %22 = vector.broadcast %21 : vector<1x32xf32> to vector<64x32xf32>
    %23 = arith.addf %20, %22 : vector<64x32xf32>
    %c0_9 = arith.constant 0 : index
    %c0_10 = arith.constant 0 : index
    %24 = vector.load %arg4[%c0_9, %c0_10] : memref<64x32xf32, #tpu.memory_space<vmem>>, vector<64x32xf32>
    tpu.vector_store %arg4[%c0_9, %c0_10], %23 {strides = array<i32>} : memref<64x32xf32, #tpu.memory_space<vmem>>, vector<64x32xf32>,
    return
  }
  func.func @transform_0(%arg0: i32) -> (i32, i32) {
    %c0_i32 = arith.constant 0 : i32
    %c0_i32_0 = arith.constant 0 : i32
    return %arg0, %c0_i32 : i32, i32
  }
  func.func @transform_1(%arg0: i32) -> (i32, i32) {
    %c0_i32 = arith.constant 0 : i32
    %c0_i32_0 = arith.constant 0 : i32
    %c0_i32_1 = arith.constant 0 : i32
    return %c0_i32, %c0_i32_0 : i32, i32
  }
  func.func @transform_2(%arg0: i32) -> (i32, i32) {
    %c0_i32 = arith.constant 0 : i32
    %c0_i32_0 = arith.constant 0 : i32
    %c0_i32_1 = arith.constant 0 : i32
    return %c0_i32, %c0_i32_0 : i32, i32
  }
  func.func @transform_3(%arg0: i32) -> (i32, i32) {
    %c0_i32 = arith.constant 0 : i32
    %c0_i32_0 = arith.constant 0 : i32
    return %arg0, %c0_i32 : i32, i32
  }
}

</mosaic_0001>

<bundles_post_ra>
// kernel: dinat_forward.14
= control target key start
LH: loop header
LB: loop body
LE: loop exit
PB: predicated region body
PF: predicated region fallthrough
CT: control target
= control target key end

     0   :  { %s734_s12 = smov 0   ;;  %s904_s0 = inlined_call_operand.vmem [shape: bf16[512,27], index: 0, kind: input, shape index: {}]   ;;  %s905_s1 = inlined_call_operand.vmem [shape: bf16[27,16], index: 1, kind: input, shape index: {}]   ;;  %s906_s2 = inlined_call_operand.vmem [shape: f32[1,16], index: 2, kind: input, shape index: {}]   ;;  %s907_s3 = inlined_call_operand.vmem [shape: bf16[512,16], index: 3, kind: output, shape index: {}]  }
   0x1 LB: > { %s572_s13 = sadd.s32 4294967295, %s711_s12   ;;  %p576_p0 = scmp.ge.s32.totalorder %s711_s12, 1  ;;  %s711_s12 = sphi %s734_s12, %s13_s12  }
   0x2   : > { %p138_p1 = scmp.lt.s32.totalorder %s711_s12, 3 }
   0x4   : > { %p139_p2 = pnand %p576_p0, %p138_p1 }
   0x5   : > { %s577_s18 = sshll.u32 (!%p139_p2), %s572_s13, 5 }
   0x6   : > { %142 = sbr.rel (%p139_p2) target bundleno = 219 (0xdb), region = 32  ;;  %p163_p3 = scmp.lt.s32.totalorder (!%p139_p2), %s577_s18, 63 }
   0xb   : > { %v651_v0 = vld [vmem:[%s905_s1 + $0x8] sm:$0xf]  ;;  %v688_v1 = vld [vmem:[%s905_s1 + $0x8] sm:$0x30]  ;;  %vm355_vm0 = vcmask 1044480   ;;  %vm356_vm1 = vcmask 1045504  }
   0xc   : > { %v652_v2 = vor.u32 %v688_v1, %v651_v0  ;;  %v713_v3 = vmov 65535   ;;  %s909_s18 = smov (!%p163_p3, %s577_s18), 63  ;;  %v687_v7 = vld [vmem:[%s905_s1] sm:$0xff]  ;;  %vm306_vm2 = vcmask 220160   ;;  %vm483_vm3 = vcmask 125952  }
   0xd   : > { %v357_v4 = vsel %vm355_vm0, 4294967295, %v713_v3  ;;  %s578_s21 = sshll.u32 %s909_s18, 2  ;;  %v796_v24 = vld [vmem:[%s906_s2] ss:$0 sm:$0xff] }
   0xe   : > { %v358_v5 = vsel %vm356_vm1, %v357_v4, 0  ;;  %s759_s24 = scalar_lea.vmem %s904_s0, %s578_s21  ;;  %s805_s29 = scalar_lea.vmem %s907_s3, %s578_s21 }
   0xf   : > { %v360_v6 = vand.u32 %v652_v2, %v358_v5  ;;  %v671_v8 = vld [vmem:[%s759_s24] sm:$0xff]  ;;  %v672_v12 = vld [vmem:[%s759_s24 + $0x8] sm:$0xff]  ;;  %v673_v16 = vld [vmem:[%s759_s24 + $0x10] sm:$0xff] }
  0x10   : > { %v675_v9 = vld [vmem:[%s759_s24 + $0x20] sm:$0xff]  ;;  %v676_v13 = vld [vmem:[%s759_s24 + $0x28] sm:$0xff]  ;;  %v677_v17 = vld [vmem:[%s759_s24 + $0x30] sm:$0xff] }
  0x11   : > { %368 = vmatpush.bf16.msra.mxu0 %v360_v6  ;;  %689 = vmatpush.bf16.msra.mxu1 %v360_v6  ;;  %v679_v10 = vld [vmem:[%s759_s24 + $0x40] sm:$0xff]  ;;  %v680_v14 = vld [vmem:[%s759_s24 + $0x48] sm:$0xff]  ;;  %v681_v18 = vld [vmem:[%s759_s24 + $0x50] sm:$0xff] }
  0x12   : > { %690 = vmatpush.bf16.msra.mxu2 %v360_v6  ;;  %691 = vmatpush.bf16.msra.mxu3 %v360_v6  ;;  %v683_v11 = vld [vmem:[%s759_s24 + $0x60] sm:$0xff]  ;;  %v684_v15 = vld [vmem:[%s759_s24 + $0x68] sm:$0xff]  ;;  %v685_v19 = vld [vmem:[%s759_s24 + $0x70] sm:$0xff] }
  0x13   : > { %v674_v20 = vld [vmem:[%s759_s24 + $0x18] sm:$0xff] }
  0x14   : > { %v678_v21 = vld [vmem:[%s759_s24 + $0x38] sm:$0xff] }
  0x15   : > { %369 = vmatpush.bf16.msra.mxu0 %v687_v7  ;;  %692 = vmatpush.bf16.msra.mxu1 %v687_v7  ;;  %v682_v22 = vld [vmem:[%s759_s24 + $0x58] sm:$0xff] }
  0x16   : > { %693 = vmatpush.bf16.msra.mxu2 %v687_v7  ;;  %694 = vmatpush.bf16.msra.mxu3 %v687_v7  ;;  %v686_v23 = vld [vmem:[%s759_s24 + $0x78] sm:$0xff] }
  0x18   : > { %653 = vmatmul.msk.bf16.vlgmr.msra.gmra.mxu0 %vm306_vm2, %v671_v8  ;;  %657 = vmatmul.msk.bf16.vlgmr.msra.gmra.mxu1 %vm306_vm2, %v675_v9 }
  0x19   : > { %661 = vmatmul.msk.bf16.vlgmr.msra.gmra.mxu2 %vm306_vm2, %v679_v10  ;;  %665 = vmatmul.msk.bf16.vlgmr.msra.gmra.mxu3 %vm306_vm2, %v683_v11 }
  0x28   : > { %654 = vmatmul.msk.bf16.gmra.mxu0 %vm306_vm2, %v672_v12  ;;  %658 = vmatmul.msk.bf16.gmra.mxu1 %vm306_vm2, %v676_v13 }
  0x29   : > { %662 = vmatmul.msk.bf16.gmra.mxu2 %vm306_vm2, %v680_v14  ;;  %666 = vmatmul.msk.bf16.gmra.mxu3 %vm306_vm2, %v684_v15 }
  0x38   : > { %655 = vmatmul.msk.bf16.gmra.mxu0 %vm306_vm2, %v673_v16  ;;  %659 = vmatmul.msk.bf16.gmra.mxu1 %vm306_vm2, %v677_v17 }
  0x39   : > { %663 = vmatmul.msk.bf16.gmra.mxu2 %vm306_vm2, %v681_v18  ;;  %667 = vmatmul.msk.bf16.gmra.mxu3 %vm306_vm2, %v685_v19 }
  0x48   : > { %656 = vmatmul.msk.bf16.gmra.mxu0 %vm306_vm2, %v674_v20  ;;  %660 = vmatmul.msk.bf16.gmra.mxu1 %vm306_vm2, %v678_v21 }
  0x49   : > { %664 = vmatmul.msk.bf16.gmra.mxu2 %vm306_vm2, %v682_v22  ;;  %668 = vmatmul.msk.bf16.gmra.mxu3 %vm306_vm2, %v686_v23 }
  0x95   : > { %v371_v25 = vpop.f32.mrf.mxu0  ;;  %v391_v26 = vpop.f32.mrf.mxu1 }
  0x96   : > { %v372_v27 = vadd.f32 %v796_v24, %v371_v25  ;;  %v392_v28 = vadd.f32 %v796_v24, %v391_v26 }
  0x98   : > { %v451_v29 = vpack.c.bf16 %v372_v27, %v372_v27  ;;  %v459_v30 = vpack.c.bf16 %v392_v28, %v392_v28 }
  0x9a   : > { %484 = vst.msk [vmem:[%s805_s29] sm:$0xf] %vm483_vm3, %v451_v29 }
  0x9b   : > { %492 = vst.msk [vmem:[%s805_s29 + $0x20] sm:$0xf] %vm483_vm3, %v459_v30 }
  0x9c   : > { %v411_v31 = vpop.f32.mrf.mxu2  ;;  %v431_v32 = vpop.f32.mrf.mxu3 }
  0x9d   : > { %v412_v33 = vadd.f32 %v796_v24, %v411_v31  ;;  %v432_v34 = vadd.f32 %v796_v24, %v431_v32  ;;  %v373_v35 = vpop.f32.mrf.mxu0  ;;  %v393_v36 = vpop.f32.mrf.mxu1 }
  0x9e   : > { %v374_v37 = vadd.f32 %v796_v24, %v373_v35  ;;  %v394_v38 = vadd.f32 %v796_v24, %v393_v36 }
  0x9f   : > { %v467_v39 = vpack.c.bf16 %v412_v33, %v412_v33  ;;  %v475_v40 = vpack.c.bf16 %v432_v34, %v432_v34 }
  0xa0   : > { %v452_v41 = vpack.c.bf16 %v374_v37, %v374_v37  ;;  %v460_v42 = vpack.c.bf16 %v394_v38, %v394_v38 }
  0xa1   : > { %500 = vst.msk [vmem:[%s805_s29 + $0x40] sm:$0xf] %vm483_vm3, %v467_v39 }
  0xa2   : > { %508 = vst.msk [vmem:[%s805_s29 + $0x60] sm:$0xf] %vm483_vm3, %v475_v40 }
  0xa3   : > { %485 = vst.msk [vmem:[%s805_s29 + $0x4] sm:$0xf] %vm483_vm3, %v452_v41 }
  0xa4   : > { %493 = vst.msk [vmem:[%s805_s29 + $0x24] sm:$0xf] %vm483_vm3, %v460_v42  ;;  %v413_v43 = vpop.f32.mrf.mxu2  ;;  %v433_v44 = vpop.f32.mrf.mxu3 }
  0xa5   : > { %v414_v45 = vadd.f32 %v796_v24, %v413_v43  ;;  %v434_v46 = vadd.f32 %v796_v24, %v433_v44  ;;  %v376_v47 = vpop.f32.mrf.mxu0  ;;  %v396_v48 = vpop.f32.mrf.mxu1 }
  0xa6   : > { %v377_v49 = vadd.f32 %v796_v24, %v376_v47  ;;  %v397_v50 = vadd.f32 %v796_v24, %v396_v48 }
  0xa7   : > { %v468_v51 = vpack.c.bf16 %v414_v45, %v414_v45  ;;  %v476_v52 = vpack.c.bf16 %v434_v46, %v434_v46 }
  0xa8   : > { %v453_v53 = vpack.c.bf16 %v377_v49, %v377_v49  ;;  %v461_v54 = vpack.c.bf16 %v397_v50, %v397_v50 }
  0xa9   : > { %501 = vst.msk [vmem:[%s805_s29 + $0x44] sm:$0xf] %vm483_vm3, %v468_v51 }
  0xaa   : > { %509 = vst.msk [vmem:[%s805_s29 + $0x64] sm:$0xf] %vm483_vm3, %v476_v52 }
  0xab   : > { %486 = vst.msk [vmem:[%s805_s29 + $0x8] sm:$0xf] %vm483_vm3, %v453_v53 }
  0xac   : > { %494 = vst.msk [vmem:[%s805_s29 + $0x28] sm:$0xf] %vm483_vm3, %v461_v54  ;;  %v416_v55 = vpop.f32.mrf.mxu2  ;;  %v436_v56 = vpop.f32.mrf.mxu3 }
  0xad   : > { %v417_v57 = vadd.f32 %v796_v24, %v416_v55  ;;  %v437_v58 = vadd.f32 %v796_v24, %v436_v56  ;;  %v378_v59 = vpop.f32.mrf.mxu0  ;;  %v398_v60 = vpop.f32.mrf.mxu1 }
  0xae   : > { %v379_v61 = vadd.f32 %v796_v24, %v378_v59  ;;  %v399_v62 = vadd.f32 %v796_v24, %v398_v60 }
  0xaf   : > { %v469_v63 = vpack.c.bf16 %v417_v57, %v417_v57  ;;  %v477_v0 = vpack.c.bf16 %v437_v58, %v437_v58 }
  0xb0   : > { %v454_v1 = vpack.c.bf16 %v379_v61, %v379_v61  ;;  %v462_v2 = vpack.c.bf16 %v399_v62, %v399_v62 }
  0xb1   : > { %502 = vst.msk [vmem:[%s805_s29 + $0x48] sm:$0xf] %vm483_vm3, %v469_v63 }
  0xb2   : > { %510 = vst.msk [vmem:[%s805_s29 + $0x68] sm:$0xf] %vm483_vm3, %v477_v0 }
  0xb3   : > { %487 = vst.msk [vmem:[%s805_s29 + $0xc] sm:$0xf] %vm483_vm3, %v454_v1 }
  0xb4   : > { %495 = vst.msk [vmem:[%s805_s29 + $0x2c] sm:$0xf] %vm483_vm3, %v462_v2  ;;  %v418_v3 = vpop.f32.mrf.mxu2  ;;  %v438_v4 = vpop.f32.mrf.mxu3 }
  0xb5   : > { %v419_v5 = vadd.f32 %v796_v24, %v418_v3  ;;  %v439_v6 = vadd.f32 %v796_v24, %v438_v4  ;;  %v381_v7 = vpop.f32.mrf.mxu0  ;;  %v401_v8 = vpop.f32.mrf.mxu1 }
  0xb6   : > { %v382_v9 = vadd.f32 %v796_v24, %v381_v7  ;;  %v402_v10 = vadd.f32 %v796_v24, %v401_v8 }
  0xb7   : > { %v470_v11 = vpack.c.bf16 %v419_v5, %v419_v5  ;;  %v478_v12 = vpack.c.bf16 %v439_v6, %v439_v6 }
  0xb8   : > { %v455_v13 = vpack.c.bf16 %v382_v9, %v382_v9  ;;  %v463_v14 = vpack.c.bf16 %v402_v10, %v402_v10 }
  0xb9   : > { %503 = vst.msk [vmem:[%s805_s29 + $0x4c] sm:$0xf] %vm483_vm3, %v470_v11 }
  0xba   : > { %511 = vst.msk [vmem:[%s805_s29 + $0x6c] sm:$0xf] %vm483_vm3, %v478_v12 }
  0xbb   : > { %488 = vst.msk [vmem:[%s805_s29 + $0x10] sm:$0xf] %vm483_vm3, %v455_v13 }
  0xbc   : > { %496 = vst.msk [vmem:[%s805_s29 + $0x30] sm:$0xf] %vm483_vm3, %v463_v14  ;;  %v421_v15 = vpop.f32.mrf.mxu2  ;;  %v441_v16 = vpop.f32.mrf.mxu3 }
  0xbd   : > { %v422_v17 = vadd.f32 %v796_v24, %v421_v15  ;;  %v442_v18 = vadd.f32 %v796_v24, %v441_v16  ;;  %v383_v19 = vpop.f32.mrf.mxu0  ;;  %v403_v20 = vpop.f32.mrf.mxu1 }
  0xbe   : > { %v384_v21 = vadd.f32 %v796_v24, %v383_v19  ;;  %v404_v22 = vadd.f32 %v796_v24, %v403_v20 }
  0xbf   : > { %v471_v23 = vpack.c.bf16 %v422_v17, %v422_v17  ;;  %v479_v25 = vpack.c.bf16 %v442_v18, %v442_v18 }
  0xc0   : > { %v456_v26 = vpack.c.bf16 %v384_v21, %v384_v21  ;;  %v464_v27 = vpack.c.bf16 %v404_v22, %v404_v22 }
  0xc1   : > { %504 = vst.msk [vmem:[%s805_s29 + $0x50] sm:$0xf] %vm483_vm3, %v471_v23 }
  0xc2   : > { %512 = vst.msk [vmem:[%s805_s29 + $0x70] sm:$0xf] %vm483_vm3, %v479_v25 }
  0xc3   : > { %489 = vst.msk [vmem:[%s805_s29 + $0x14] sm:$0xf] %vm483_vm3, %v456_v26 }
  0xc4   : > { %497 = vst.msk [vmem:[%s805_s29 + $0x34] sm:$0xf] %vm483_vm3, %v464_v27  ;;  %v423_v28 = vpop.f32.mrf.mxu2  ;;  %v443_v29 = vpop.f32.mrf.mxu3 }
  0xc5   : > { %v424_v30 = vadd.f32 %v796_v24, %v423_v28  ;;  %v444_v31 = vadd.f32 %v796_v24, %v443_v29  ;;  %v386_v32 = vpop.f32.mrf.mxu0  ;;  %v406_v33 = vpop.f32.mrf.mxu1 }
  0xc6   : > { %v387_v34 = vadd.f32 %v796_v24, %v386_v32  ;;  %v407_v35 = vadd.f32 %v796_v24, %v406_v33 }
  0xc7   : > { %v472_v36 = vpack.c.bf16 %v424_v30, %v424_v30  ;;  %v480_v37 = vpack.c.bf16 %v444_v31, %v444_v31 }
  0xc8   : > { %v457_v38 = vpack.c.bf16 %v387_v34, %v387_v34  ;;  %v465_v39 = vpack.c.bf16 %v407_v35, %v407_v35 }
  0xc9   : > { %505 = vst.msk [vmem:[%s805_s29 + $0x54] sm:$0xf] %vm483_vm3, %v472_v36 }
  0xca   : > { %513 = vst.msk [vmem:[%s805_s29 + $0x74] sm:$0xf] %vm483_vm3, %v480_v37 }
  0xcb   : > { %490 = vst.msk [vmem:[%s805_s29 + $0x18] sm:$0xf] %vm483_vm3, %v457_v38 }
  0xcc   : > { %498 = vst.msk [vmem:[%s805_s29 + $0x38] sm:$0xf] %vm483_vm3, %v465_v39  ;;  %v426_v40 = vpop.f32.mrf.mxu2  ;;  %v446_v41 = vpop.f32.mrf.mxu3 }
  0xcd   : > { %v427_v42 = vadd.f32 %v796_v24, %v426_v40  ;;  %v447_v43 = vadd.f32 %v796_v24, %v446_v41  ;;  %v388_v44 = vpop.f32.mrf.mxu0  ;;  %v408_v45 = vpop.f32.mrf.mxu1 }
  0xce   : > { %v389_v46 = vadd.f32 %v796_v24, %v388_v44  ;;  %v409_v47 = vadd.f32 %v796_v24, %v408_v45 }
  0xcf   : > { %v473_v48 = vpack.c.bf16 %v427_v42, %v427_v42  ;;  %v481_v49 = vpack.c.bf16 %v447_v43, %v447_v43 }
  0xd0   : > { %v458_v50 = vpack.c.bf16 %v389_v46, %v389_v46  ;;  %v466_v51 = vpack.c.bf16 %v409_v47, %v409_v47 }
  0xd1   : > { %506 = vst.msk [vmem:[%s805_s29 + $0x58] sm:$0xf] %vm483_vm3, %v473_v48 }
  0xd2   : > { %514 = vst.msk [vmem:[%s805_s29 + $0x78] sm:$0xf] %vm483_vm3, %v481_v49 }
  0xd3   : > { %491 = vst.msk [vmem:[%s805_s29 + $0x1c] sm:$0xf] %vm483_vm3, %v458_v50 }
  0xd4   : > { %499 = vst.msk [vmem:[%s805_s29 + $0x3c] sm:$0xf] %vm483_vm3, %v466_v51  ;;  %v428_v52 = vpop.f32.mrf.mxu2  ;;  %v448_v53 = vpop.f32.mrf.mxu3 }
  0xd5   : > { %v429_v54 = vadd.f32 %v796_v24, %v428_v52  ;;  %v449_v55 = vadd.f32 %v796_v24, %v448_v53 }
  0xd7   : > { %v474_v56 = vpack.c.bf16 %v429_v54, %v429_v54  ;;  %v482_v57 = vpack.c.bf16 %v449_v55, %v449_v55 }
  0xd9   : > { %507 = vst.msk [vmem:[%s805_s29 + $0x5c] sm:$0xf] %vm483_vm3, %v474_v56 }
  0xda   : > { %515 = vst.msk [vmem:[%s805_s29 + $0x7c] sm:$0xf] %vm483_vm3, %v482_v57 }
  0xdb PF: > { %s13_s12 = sadd.s32 1, %s711_s12  }
  0xdc   : > { %p10_p4 = scmp.ge.s32.totalorder %s13_s12, 4  }
  0xde   :  { %12 = sbr.rel (!%p10_p4) target bundleno = 1 (0x1), region = 62 }

// kernel: dinat_forward.15
= control target key start
LH: loop header
LB: loop body
LE: loop exit
PB: predicated region body
PF: predicated region fallthrough
CT: control target
= control target key end

     0   :  { %s884_s18 = smov 0   ;;  %s1095_s0 = inlined_call_operand.vmem [shape: bf16[128,144], index: 0, kind: input, shape index: {}]   ;;  %s1096_s1 = inlined_call_operand.vmem [shape: bf16[144,32], index: 1, kind: input, shape index: {}]   ;;  %s1097_s2 = inlined_call_operand.vmem [shape: f32[1,32], index: 2, kind: input, shape index: {}]   ;;  %s1098_s3 = inlined_call_operand.vmem [shape: f32[1,32], index: 3, kind: input, shape index: {}]   ;;  %s1099_s4 = inlined_call_operand.vmem [shape: f32[1,32], index: 4, kind: input, shape index: {}]   ;;  %s1100_s5 = inlined_call_operand.vmem [shape: bf16[128,32], index: 5, kind: output, shape index: {}]  }
   0x1 LB: > { %s704_s19 = sadd.s32 4294967295, %s851_s18   ;;  %p708_p0 = scmp.ge.s32.totalorder %s851_s18, 1  ;;  %s851_s18 = sphi %s884_s18, %s15_s18  }
   0x2   : > { %p189_p1 = scmp.lt.s32.totalorder %s851_s18, 3 }
   0x4   : > { %p190_p2 = pnand %p708_p0, %p189_p1 }
   0x5   : > { %s709_s22 = sshll.u32 (!%p190_p2), %s704_s19, 3 }
   0x6   : > { %193 = sbr.rel (%p190_p2) target bundleno = 477 (0x1dd), region = 40  ;;  %p219_p3 = scmp.lt.s32.totalorder (!%p190_p2), %s709_s22, 15 }
   0xb   : > { %v804_v0 = vld [vmem:[%s1096_s1 + $0x38] sm:$0xff]  ;;  %v805_v1 = vld [vmem:[%s1096_s1 + $0x40] sm:$0xff]  ;;  %v803_v2 = vld [vmem:[%s1096_s1 + $0x30] sm:$0xff]  ;;  %s1102_s22 = smov (!%p219_p3, %s709_s22), 15  ;;  %vm352_vm0 = vcmask 130048   ;;  %vm423_vm1 = vcmask 261120  }
   0xc   : > { %365 = vmatpush.bf16.msra.mxu0 %v804_v0  ;;  %806 = vmatpush.bf16.msra.mxu2 %v804_v0  ;;  %s788_s27 = sshll.u32 %s1102_s22, 3  ;;  %v802_v3 = vld [vmem:[%s1096_s1 + $0x28] sm:$0xff]  ;;  %v801_v8 = vld [vmem:[%s1096_s1 + $0x20] sm:$0xff]  ;;  %v800_v11 = vld [vmem:[%s1096_s1 + $0x18] sm:$0xff]  ;;  %s713_s26 = sshll.u32 %s1102_s22, 2  ;;  %vm639_vm9 = vcmask 257024  }
   0xd   : > { %814 = vmatpush.bf16.msra.mxu3 %v805_v1  ;;  %401 = vmatpush.bf16.msra.mxu1 %v805_v1  ;;  %s910_s7 = scalar_lea.vmem %s1095_s0, %s788_s27  ;;  %v799_v12 = vld [vmem:[%s1096_s1 + $0x10] sm:$0xff]  ;;  %v798_v15 = vld [vmem:[%s1096_s1 + $0x8] sm:$0xff]  ;;  %v797_v17 = vld [vmem:[%s1096_s1] sm:$0xff]  ;;  %s1038_s22 = scalar_lea.vmem %s1100_s5, %s713_s26 }
   0xe   : > { %v791_v4 = vld [vmem:[%s910_s7 + $0x14] sm:$0xf]  ;;  %v726_v5 = vld [vmem:[%s910_s7 + $0x18] sm:$0xf0]  ;;  %v789_v7 = vld [vmem:[%s910_s7 + $0x4] sm:$0xf] }
   0xf   : > { %v729_v6 = vor.u32 %v791_v4, %v726_v5  ;;  %v718_v9 = vld [vmem:[%s910_s7 + $0x8] sm:$0xf0]  ;;  %v793_v13 = vld [vmem:[%s910_s7 + $0x24] sm:$0xf]  ;;  %v716_v18 = vld [vmem:[%s910_s7] sm:$0xf] }
  0x10   : > { %366 = vmatpush.bf16.msra.mxu0 %v803_v2  ;;  %807 = vmatpush.bf16.msra.mxu2 %v803_v2  ;;  %v721_v10 = vor.u32 %v789_v7, %v718_v9  ;;  %v734_v14 = vld [vmem:[%s910_s7 + $0x28] sm:$0xf0]  ;;  %v790_v19 = vld [vmem:[%s910_s7 + $0x4] sm:$0xf0]  ;;  %v732_v20 = vld [vmem:[%s910_s7 + $0x20] sm:$0xf] }
  0x11   : > { %783 = vmatmul.msk.bf16.vlgmr.msra.gmra.mxu3 %vm352_vm0, %v729_v6  ;;  %v737_v16 = vor.u32 %v793_v13, %v734_v14  ;;  %v794_v21 = vld [vmem:[%s910_s7 + $0x24] sm:$0xf0]  ;;  %v717_v22 = vor.u32 %v790_v19, %v716_v18  ;;  %v795_v24 = vld [vmem:[%s910_s7 + $0x34] sm:$0xf]  ;;  %v742_v25 = vld [vmem:[%s910_s7 + $0x38] sm:$0xf0] }
  0x12   : > { %782 = vmatmul.msk.bf16.vlgmr.msra.gmra.mxu1 %vm352_vm0, %v721_v10  ;;  %v733_v23 = vor.u32 %v794_v21, %v732_v20  ;;  %v745_v26 = vor.u32 %v795_v24, %v742_v25  ;;  %v724_v27 = vld [vmem:[%s910_s7 + $0x10] sm:$0xf]  ;;  %v792_v28 = vld [vmem:[%s910_s7 + $0x14] sm:$0xf0]  ;;  %v824_v35 = vld [vmem:[%s1097_s2] ss:$0 sm:$0xff] }
  0x13   : > { %v740_v29 = vld [vmem:[%s910_s7 + $0x30] sm:$0xf]  ;;  %v796_v30 = vld [vmem:[%s910_s7 + $0x34] sm:$0xf0]  ;;  %v725_v31 = vor.u32 %v792_v28, %v724_v27  ;;  %v853_v10 = vmov 32.0  }
  0x14   : > { %367 = vmatpush.bf16.msra.mxu0 %v802_v3  ;;  %808 = vmatpush.bf16.msra.mxu2 %v802_v3  ;;  %v741_v32 = vor.u32 %v796_v30, %v740_v29  ;;  %827 = vrcp.f32 %v853_v10 }
  0x18   : > { %368 = vmatpush.bf16.msra.mxu0 %v801_v8  ;;  %809 = vmatpush.bf16.msra.mxu2 %v801_v8 }
  0x1c   : > { %369 = vmatpush.bf16.msra.mxu0 %v800_v11  ;;  %810 = vmatpush.bf16.msra.mxu2 %v800_v11  ;;  %v828_v11 = vpop.eup %827 }
  0x1d   : > { %vm453_vm2 = vweird.f32 %v828_v11 }
  0x20   : > { %370 = vmatpush.bf16.msra.mxu0 %v799_v12  ;;  %811 = vmatpush.bf16.msra.mxu2 %v799_v12  ;;  %v449_v12 = vmul.f32 32.0, %v828_v11 }
  0x21   : > { %784 = vmatmul.msk.bf16.gmra.mxu3 %vm352_vm0, %v737_v16 }
  0x22   : > { %v450_v13 = vsub.f32 1.0, %v449_v12 }
  0x24   : > { %371 = vmatpush.bf16.msra.mxu0 %v798_v15  ;;  %812 = vmatpush.bf16.msra.mxu2 %v798_v15  ;;  %v451_v14 = vmul.f32 %v828_v11, %v450_v13 }
  0x26   : > { %v452_v15 = vadd.f32 %v828_v11, %v451_v14  ;;  %v1017_v14 = vld [vmem:[%s1098_s3] ss:$0 sm:$0xff] }
  0x28   : > { %372 = vmatpush.bf16.msra.mxu0 %v797_v17  ;;  %813 = vmatpush.bf16.msra.mxu2 %v797_v17  ;;  %v958_v16 = vsel %vm453_vm2, %v828_v11, %v452_v15 }
  0x2b   : > { %373 = vmatmul.bf16.vlgmr.msra.gmra.mxu0 %v717_v22  ;;  %383 = vmatmul.bf16.vlgmr.msra.gmra.mxu2 %v733_v23 }
  0x31   : > { %785 = vmatmul.msk.bf16.gmra.mxu3 %vm352_vm0, %v745_v26 }
  0x3b   : > { %378 = vmatmul.bf16.gmra.mxu0 %v725_v31  ;;  %388 = vmatmul.bf16.gmra.mxu2 %v741_v32 }
  0x8f   : > { %v403_v36 = vpop.f32.mrf.mxu1 }
  0x94   : > { %v408_v33 = vpop.f32.mrf.mxu3 }
  0x97   : > { %v405_v45 = vpop.f32.mrf.mxu1 }
  0x9c   : > { %v410_v34 = vpop.f32.mrf.mxu3 }
  0xa4   : > { %v413_v39 = vpop.f32.mrf.mxu3 }
  0xa8   : > { %v374_v37 = vpop.f32.mrf.mxu0 }
  0xa9   : > { %v375_v38 = vadd.f32 %v824_v35, %v374_v37 }
  0xab   : > { %v404_v40 = vadd.f32 %v403_v36, %v375_v38 }
  0xac   : > { %v415_v50 = vpop.f32.mrf.mxu3 }
  0xad   : > { %v424_v41 = vsel %vm423_vm1, %v404_v40, 0.0 }
  0xae   : > { %v384_v42 = vpop.f32.mrf.mxu2  ;;  %425 = vadd.xlane.f32.xlu0 %v424_v41 }
  0xaf   : > { %v385_v43 = vadd.f32 %v824_v35, %v384_v42 }
  0xb0   : > { %v376_v44 = vpop.f32.mrf.mxu0 }
  0xb1   : > { %v377_v46 = vadd.f32 %v824_v35, %v376_v44  ;;  %v414_v47 = vadd.f32 %v413_v39, %v385_v43 }
  0xb3   : > { %v406_v48 = vadd.f32 %v405_v45, %v377_v46  ;;  %v436_v49 = vsel %vm423_vm1, %v414_v47, 0.0 }
  0xb4   : > { %437 = vadd.xlane.f32.xlu2 %v436_v49  ;;  %v418_v60 = vpop.f32.mrf.mxu3 }
  0xb5   : > { %v427_v51 = vsel %vm423_vm1, %v406_v48, 0.0 }
  0xb6   : > { %v386_v52 = vpop.f32.mrf.mxu2  ;;  %428 = vadd.xlane.f32.xlu0 %v427_v51 }
  0xb7   : > { %v387_v53 = vadd.f32 %v824_v35, %v386_v52 }
  0xb8   : > { %v379_v54 = vpop.f32.mrf.mxu0 }
  0xb9   : > { %v380_v55 = vadd.f32 %v824_v35, %v379_v54  ;;  %v416_v56 = vadd.f32 %v415_v50, %v387_v53 }
  0xbb   : > { %v439_v57 = vsel %vm423_vm1, %v416_v56, 0.0  ;;  %v409_v58 = vadd.f32 %v408_v33, %v380_v55 }
  0xbc   : > { %440 = vadd.xlane.f32.xlu2 %v439_v57  ;;  %v420_v7 = vpop.f32.mrf.mxu3 }
  0xbd   : > { %v430_v59 = vsel %vm423_vm1, %v409_v58, 0.0 }
  0xbe   : > { %v389_v61 = vpop.f32.mrf.mxu2  ;;  %431 = vadd.xlane.f32.xlu1 %v430_v59 }
  0xbf   : > { %v390_v62 = vadd.f32 %v824_v35, %v389_v61 }
  0xc0   : > { %v381_v63 = vpop.f32.mrf.mxu0 }
  0xc1   : > { %v382_v0 = vadd.f32 %v824_v35, %v381_v63  ;;  %v419_v1 = vadd.f32 %v418_v60, %v390_v62 }
  0xc3   : > { %v442_v2 = vsel %vm423_vm1, %v419_v1, 0.0  ;;  %v411_v3 = vadd.f32 %v410_v34, %v382_v0 }
  0xc4   : > { %443 = vadd.xlane.f32.xlu0 %v442_v2 }
  0xc5   : > { %v433_v4 = vsel %vm423_vm1, %v411_v3, 0.0 }
  0xc6   : > { %v391_v5 = vpop.f32.mrf.mxu2  ;;  %434 = vadd.xlane.f32.xlu1 %v433_v4 }
  0xc7   : > { %v392_v6 = vadd.f32 %v824_v35, %v391_v5 }
  0xc9   : > { %v421_v8 = vadd.f32 %v420_v7, %v392_v6 }
  0xcb   : > { %v445_v9 = vsel %vm423_vm1, %v421_v8, 0.0 }
  0xce   : > { %446 = vadd.xlane.f32.xlu1 %v445_v9 }
 0x121   : > { %v426_v17 = vpop.xlane.xlu0 %425 }
 0x122   : > { %v455_v18 = vmul.f32 %v958_v16, %v426_v17 }
 0x124   : > { %v961_v19 = vsub.f32 %v404_v40, %v455_v18  ;;  %v1023_v18 = vld [vmem:[%s1099_s4] ss:$0 sm:$0xff] }
 0x126   : > { %v471_v20 = vmul.f32 %v961_v19, %v961_v19 }
 0x127   : > { %v438_v21 = vpop.xlane.xlu2 %437 }
 0x128   : > { %v459_v22 = vmul.f32 %v958_v16, %v438_v21  ;;  %v479_v23 = vsel %vm423_vm1, %v471_v20, 0.0 }
 0x129   : > { %480 = vadd.xlane.f32.xlu2 %v479_v23  ;;  %v429_v24 = vpop.xlane.xlu0 %428 }
 0x12a   : > { %v967_v25 = vsub.f32 %v414_v47, %v459_v22  ;;  %v456_v26 = vmul.f32 %v958_v16, %v429_v24 }
 0x12c   : > { %v475_v27 = vmul.f32 %v967_v25, %v967_v25  ;;  %v972_v28 = vsub.f32 %v406_v48, %v456_v26 }
 0x12e   : > { %v491_v29 = vsel %vm423_vm1, %v475_v27, 0.0  ;;  %v472_v33 = vmul.f32 %v972_v28, %v972_v28 }
 0x12f   : > { %492 = vadd.xlane.f32.xlu0 %v491_v29  ;;  %v441_v30 = vpop.xlane.xlu2 %440 }
 0x130   : > { %v460_v34 = vmul.f32 %v958_v16, %v441_v30  ;;  %v482_v36 = vsel %vm423_vm1, %v472_v33, 0.0 }
 0x131   : > { %v432_v31 = vpop.xlane.xlu1 %431 }
 0x132   : > { %v457_v32 = vmul.f32 %v958_v16, %v432_v31  ;;  %v984_v38 = vsub.f32 %v416_v56, %v460_v34 }
 0x134   : > { %v979_v35 = vsub.f32 %v409_v58, %v457_v32  ;;  %v476_v45 = vmul.f32 %v984_v38, %v984_v38 }
 0x136   : > { %v473_v37 = vmul.f32 %v979_v35, %v979_v35  ;;  %v494_v48 = vsel %vm423_vm1, %v476_v45, 0.0 }
 0x137   : > { %483 = vadd.xlane.f32.xlu0 %v482_v36  ;;  %v444_v40 = vpop.xlane.xlu0 %443 }
 0x138   : > { %v485_v39 = vsel %vm423_vm1, %v473_v37, 0.0  ;;  %v461_v43 = vmul.f32 %v958_v16, %v444_v40 }
 0x139   : > { %486 = vadd.xlane.f32.xlu1 %v485_v39  ;;  %v435_v41 = vpop.xlane.xlu1 %434 }
 0x13a   : > { %v458_v42 = vmul.f32 %v958_v16, %v435_v41  ;;  %v995_v47 = vsub.f32 %v419_v1, %v461_v43 }
 0x13c   : > { %v989_v44 = vsub.f32 %v411_v3, %v458_v42  ;;  %v477_v53 = vmul.f32 %v995_v47, %v995_v47 }
 0x13e   : > { %v474_v46 = vmul.f32 %v989_v44, %v989_v44  ;;  %v497_v56 = vsel %vm423_vm1, %v477_v53, 0.0 }
 0x140   : > { %v488_v49 = vsel %vm423_vm1, %v474_v46, 0.0 }
 0x141   : > { %495 = vadd.xlane.f32.xlu1 %v494_v48  ;;  %v447_v50 = vpop.xlane.xlu1 %446  ;;  %489 = vadd.xlane.f32.xlu2 %v488_v49 }
 0x142   : > { %v462_v51 = vmul.f32 %v958_v16, %v447_v50 }
 0x144   : > { %v1000_v52 = vsub.f32 %v421_v8, %v462_v51 }
 0x146   : > { %v478_v54 = vmul.f32 %v1000_v52, %v1000_v52 }
 0x148   : > { %v500_v55 = vsel %vm423_vm1, %v478_v54, 0.0 }
 0x149   : > { %501 = vadd.xlane.f32.xlu0 %v500_v55  ;;  %498 = vadd.xlane.f32.xlu2 %v497_v56 }
 0x19c   : > { %v481_v57 = vpop.xlane.xlu2 %480 }
 0x19d   : > { %v503_v58 = vmul.f32 %v481_v57, %v958_v16 }
 0x19f   : > { %v511_v59 = vadd.f32 1e-05, %v503_v58 }
 0x1a1   : > { %829 = vrsqrt.f32 %v511_v59  ;;  %vm525_vm4 = vweird.f32 %v511_v59 }
 0x1a2   : > { %v493_v60 = vpop.xlane.xlu0 %492 }
 0x1a3   : > { %v507_v61 = vmul.f32 %v493_v60, %v958_v16 }
 0x1a5   : > { %v515_v62 = vadd.f32 1e-05, %v507_v61 }
 0x1a7   : > { %v830_v63 = vpop.eup %829  ;;  %831 = vrsqrt.f32 %v515_v62  ;;  %vm565_vm7 = vweird.f32 %v515_v62 }
 0x1a8   : > { %v520_v0 = vmul.f32 %v830_v63, %v511_v59  ;;  %vm526_vm3 = vweird.f32 %v830_v63 }
 0x1a9   : > { %vm527_vm5 = vmor %vm525_vm4, %vm526_vm3 }
 0x1aa   : > { %v521_v1 = vmul.f32 %v830_v63, %v520_v0  ;;  %v484_v2 = vpop.xlane.xlu0 %483 }
 0x1ab   : > { %v504_v3 = vmul.f32 %v484_v2, %v958_v16 }
 0x1ac   : > { %v522_v4 = vmul.f32 0.5, %v521_v1  ;;  %v487_v5 = vpop.xlane.xlu1 %486 }
 0x1ad   : > { %v832_v6 = vpop.eup %831  ;;  %v512_v7 = vadd.f32 1e-05, %v504_v3  ;;  %v505_v8 = vmul.f32 %v487_v5, %v958_v16 }
 0x1ae   : > { %v523_v9 = vsub.f32 1.5, %v522_v4  ;;  %v560_v10 = vmul.f32 %v832_v6, %v515_v62  ;;  %vm566_vm6 = vweird.f32 %v832_v6 }
 0x1af   : > { %833 = vrsqrt.f32 %v512_v7  ;;  %v1012_v11 = vadd.f32 1e-05, %v505_v8  ;;  %vm567_vm8 = vmor %vm565_vm7, %vm566_vm6  ;;  %vm535_vm11 = vweird.f32 %v512_v7 }
 0x1b0   : > { %v524_v12 = vmul.f32 %v830_v63, %v523_v9  ;;  %v561_v13 = vmul.f32 %v832_v6, %v560_v10 }
 0x1b1   : > { %835 = vrsqrt.f32 %v1012_v11  ;;  %vm545_vm14 = vweird.f32 %v1012_v11 }
 0x1b2   : > { %v528_v15 = vsel %vm527_vm5, %v830_v63, %v524_v12  ;;  %v562_v17 = vmul.f32 0.5, %v561_v13 }
 0x1b3   : > { %v599_v20 = vmul.f32 %v528_v15, %v961_v19 }
 0x1b4   : > { %v563_v21 = vsub.f32 1.5, %v562_v17  ;;  %v496_v22 = vpop.xlane.xlu1 %495  ;;  %v490_v23 = vpop.xlane.xlu2 %489 }
 0x1b5   : > { %v834_v24 = vpop.eup %833  ;;  %v611_v26 = vmul.f32 %v1017_v14, %v599_v20  ;;  %v508_v27 = vmul.f32 %v496_v22, %v958_v16  ;;  %v506_v29 = vmul.f32 %v490_v23, %v958_v16 }
 0x1b6   : > { %v564_v30 = vmul.f32 %v832_v6, %v563_v21  ;;  %v530_v31 = vmul.f32 %v834_v24, %v512_v7  ;;  %vm536_vm10 = vweird.f32 %v834_v24 }
 0x1b7   : > { %v836_v32 = vpop.eup %835  ;;  %v623_v33 = vadd.f32 %v1023_v18, %v611_v26  ;;  %v1031_v19 = vadd.f32 1e-05, %v508_v27  ;;  %v1033_v34 = vadd.f32 1e-05, %v506_v29  ;;  %vm537_vm13 = vmor %vm535_vm11, %vm536_vm10 }
 0x1b8   : > { %v568_v36 = vsel %vm567_vm8, %v832_v6, %v564_v30  ;;  %v531_v37 = vmul.f32 %v834_v24, %v530_v31  ;;  %v540_v39 = vmul.f32 %v836_v32, %v1012_v11  ;;  %vm546_vm12 = vweird.f32 %v836_v32 }
 0x1b9   : > { %v631_v40 = vpack.c.bf16 %v623_v33, %v623_v33  ;;  %v603_v41 = vmul.f32 %v568_v36, %v967_v25  ;;  %837 = vrsqrt.f32 %v1031_v19  ;;  %vm547_vm15 = vmor %vm545_vm14, %vm546_vm12  ;;  %vm575_vm2 = vweird.f32 %v1031_v19 }
 0x1ba   : > { %v532_v42 = vmul.f32 0.5, %v531_v37  ;;  %v541_v43 = vmul.f32 %v836_v32, %v540_v39  ;;  %839 = vrsqrt.f32 %v1033_v34  ;;  %vm555_vm4 = vweird.f32 %v1033_v34 }
 0x1bb   : > { %640 = vst.msk [vmem:[%s1038_s22] sm:$0xf] %vm639_vm9, %v631_v40  ;;  %v615_v45 = vmul.f32 %v1017_v14, %v603_v41 }
 0x1bc   : > { %v533_v46 = vsub.f32 1.5, %v532_v42  ;;  %v542_v48 = vmul.f32 0.5, %v541_v43  ;;  %v499_v49 = vpop.xlane.xlu2 %498  ;;  %v502_v50 = vpop.xlane.xlu0 %501 }
 0x1bd   : > { %v627_v51 = vadd.f32 %v1023_v18, %v615_v45  ;;  %v509_v53 = vmul.f32 %v499_v49, %v958_v16  ;;  %v510_v25 = vmul.f32 %v502_v50, %v958_v16 }
 0x1be   : > { %v534_v54 = vmul.f32 %v834_v24, %v533_v46  ;;  %v543_v55 = vsub.f32 1.5, %v542_v48 }
 0x1bf   : > { %v838_v56 = vpop.eup %837  ;;  %v635_v57 = vpack.c.bf16 %v627_v51, %v627_v51  ;;  %v517_v58 = vadd.f32 1e-05, %v509_v53  ;;  %v1050_v59 = vadd.f32 1e-05, %v510_v25 }
 0x1c0   : > { %v840_v60 = vpop.eup %839  ;;  %v538_v61 = vsel %vm537_vm13, %v834_v24, %v534_v54  ;;  %v544_v62 = vmul.f32 %v836_v32, %v543_v55  ;;  %v570_v63 = vmul.f32 %v838_v56, %v1031_v19  ;;  %vm576_vm0 = vweird.f32 %v838_v56 }
 0x1c1   : > { %644 = vst.msk [vmem:[%s1038_s22 + $0x10] sm:$0xf] %vm639_vm9, %v635_v57  ;;  %v600_v16 = vmul.f32 %v538_v61, %v972_v28  ;;  %v550_v0 = vmul.f32 %v840_v60, %v1033_v34  ;;  %841 = vrsqrt.f32 %v517_v58  ;;  %vm556_vm1 = vweird.f32 %v840_v60  ;;  %vm577_vm3 = vmor %vm575_vm2, %vm576_vm0 }
 0x1c2   : > { %v548_v1 = vsel %vm547_vm15, %v836_v32, %v544_v62  ;;  %v571_v2 = vmul.f32 %v838_v56, %v570_v63  ;;  %843 = vrsqrt.f32 %v1050_v59  ;;  %vm557_vm5 = vmor %vm555_vm4, %vm556_vm1  ;;  %vm585_vm8 = vweird.f32 %v517_v58 }
 0x1c3   : > { %v612_v3 = vmul.f32 %v1017_v14, %v600_v16  ;;  %v601_v4 = vmul.f32 %v548_v1, %v979_v35  ;;  %v551_v5 = vmul.f32 %v840_v60, %v550_v0  ;;  %vm595_vm11 = vweird.f32 %v1050_v59 }
 0x1c4   : > { %v572_v6 = vmul.f32 0.5, %v571_v2 }
 0x1c5   : > { %v624_v7 = vadd.f32 %v1023_v18, %v612_v3  ;;  %v613_v8 = vmul.f32 %v1017_v14, %v601_v4  ;;  %v552_v28 = vmul.f32 0.5, %v551_v5 }
 0x1c6   : > { %v573_v9 = vsub.f32 1.5, %v572_v6 }
 0x1c7   : > { %v842_v10 = vpop.eup %841  ;;  %v632_v11 = vpack.c.bf16 %v624_v7, %v624_v7  ;;  %v625_v12 = vadd.f32 %v1023_v18, %v613_v8  ;;  %v553_v13 = vsub.f32 1.5, %v552_v28 }
 0x1c8   : > { %v844_v15 = vpop.eup %843  ;;  %v574_v17 = vmul.f32 %v838_v56, %v573_v9  ;;  %v580_v35 = vmul.f32 %v842_v10, %v517_v58  ;;  %vm586_vm6 = vweird.f32 %v842_v10 }
 0x1c9   : > { %641 = vst.msk [vmem:[%s1038_s22 + $0x4] sm:$0xf] %vm639_vm9, %v632_v11  ;;  %v633_v20 = vpack.c.bf16 %v625_v12, %v625_v12  ;;  %v554_v21 = vmul.f32 %v840_v60, %v553_v13  ;;  %v590_v22 = vmul.f32 %v844_v15, %v1050_v59  ;;  %vm596_vm7 = vweird.f32 %v844_v15  ;;  %vm587_vm10 = vmor %vm585_vm8, %vm586_vm6 }
 0x1ca   : > { %v578_v23 = vsel %vm577_vm3, %v838_v56, %v574_v17  ;;  %v581_v24 = vmul.f32 %v842_v10, %v580_v35  ;;  %vm597_vm12 = vmor %vm595_vm11, %vm596_vm7 }
 0x1cb   : > { %642 = vst.msk [vmem:[%s1038_s22 + $0x8] sm:$0xf] %vm639_vm9, %v633_v20  ;;  %v604_v26 = vmul.f32 %v578_v23, %v984_v38  ;;  %v558_v27 = vsel %vm557_vm5, %v840_v60, %v554_v21  ;;  %v591_v29 = vmul.f32 %v844_v15, %v590_v22 }
 0x1cc   : > { %v602_v30 = vmul.f32 %v558_v27, %v989_v44  ;;  %v582_v31 = vmul.f32 0.5, %v581_v24 }
 0x1cd   : > { %v616_v32 = vmul.f32 %v1017_v14, %v604_v26  ;;  %v592_v33 = vmul.f32 0.5, %v591_v29 }
 0x1ce   : > { %v614_v19 = vmul.f32 %v1017_v14, %v602_v30  ;;  %v583_v34 = vsub.f32 1.5, %v582_v31 }
 0x1cf   : > { %v628_v36 = vadd.f32 %v1023_v18, %v616_v32  ;;  %v593_v37 = vsub.f32 1.5, %v592_v33 }
 0x1d0   : > { %v626_v38 = vadd.f32 %v1023_v18, %v614_v19  ;;  %v584_v39 = vmul.f32 %v842_v10, %v583_v34 }
 0x1d1   : > { %v636_v40 = vpack.c.bf16 %v628_v36, %v628_v36  ;;  %v594_v44 = vmul.f32 %v844_v15, %v593_v37 }
 0x1d2   : > { %v634_v41 = vpack.c.bf16 %v626_v38, %v626_v38  ;;  %v588_v42 = vsel %vm587_vm10, %v842_v10, %v584_v39 }
 0x1d3   : > { %645 = vst.msk [vmem:[%s1038_s22 + $0x14] sm:$0xf] %vm639_vm9, %v636_v40  ;;  %v605_v43 = vmul.f32 %v588_v42, %v995_v47  ;;  %v598_v45 = vsel %vm597_vm12, %v844_v15, %v594_v44 }
 0x1d4   : > { %643 = vst.msk [vmem:[%s1038_s22 + $0xc] sm:$0xf] %vm639_vm9, %v634_v41  ;;  %v606_v46 = vmul.f32 %v598_v45, %v1000_v52 }
 0x1d5   : > { %v617_v48 = vmul.f32 %v1017_v14, %v605_v43 }
 0x1d6   : > { %v618_v49 = vmul.f32 %v1017_v14, %v606_v46 }
 0x1d7   : > { %v629_v50 = vadd.f32 %v1023_v18, %v617_v48 }
 0x1d8   : > { %v630_v51 = vadd.f32 %v1023_v18, %v618_v49 }
 0x1d9   : > { %v637_v53 = vpack.c.bf16 %v629_v50, %v629_v50 }
 0x1da   : > { %v638_v25 = vpack.c.bf16 %v630_v51, %v630_v51 }
 0x1db   : > { %646 = vst.msk [vmem:[%s1038_s22 + $0x18] sm:$0xf] %vm639_vm9, %v637_v53 }
 0x1dc   : > { %647 = vst.msk [vmem:[%s1038_s22 + $0x1c] sm:$0xf] %vm639_vm9, %v638_v25 }
 0x1dd PF: > { %s15_s18 = sadd.s32 1, %s851_s18  }
 0x1de   : > { %p12_p4 = scmp.ge.s32.totalorder %s15_s18, 4  }
 0x1e0   :  { %14 = sbr.rel (!%p12_p4) target bundleno = 1 (0x1), region = 70 }

// kernel: dinat_forward.16
= control target key start
LH: loop header
LB: loop body
LE: loop exit
PB: predicated region body
PF: predicated region fallthrough
CT: control target
= control target key end

     0   :  { %s949_s24 = smov 0   ;;  %s1183_s0 = inlined_call_operand.vmem [shape: bf16[128,32], index: 0, kind: input, shape index: {}]   ;;  %s1184_s1 = inlined_call_operand.vmem [shape: f32[1,32], index: 1, kind: input, shape index: {}]   ;;  %s1185_s2 = inlined_call_operand.vmem [shape: f32[1,32], index: 2, kind: input, shape index: {}]   ;;  %s1186_s3 = inlined_call_operand.vmem [shape: bf16[32,96], index: 3, kind: input, shape index: {}]   ;;  %s1187_s4 = inlined_call_operand.vmem [shape: f32[1,96], index: 4, kind: input, shape index: {}]   ;;  %s1188_s5 = inlined_call_operand.vmem [shape: bf16[128,32], index: 5, kind: output, shape index: {0}]   ;;  %s1189_s6 = inlined_call_operand.vmem [shape: bf16[128,32], index: 6, kind: output, shape index: {1}]   ;;  %s1190_s7 = inlined_call_operand.vmem [shape: bf16[128,32], index: 7, kind: output, shape index: {2}]  }
   0x1 LB: > { %s812_s25 = sadd.s32 4294967295, %s904_s24   ;;  %p816_p0 = scmp.ge.s32.totalorder %s904_s24, 1  ;;  %s904_s24 = sphi %s949_s24, %s18_s24  }
   0x2   : > { %p243_p1 = scmp.lt.s32.totalorder %s904_s24, 3 }
   0x4   : > { %p244_p2 = pnand %p816_p0, %p243_p1 }
   0x5   : > { %s817_s26 = sshll.u32 (!%p244_p2), %s812_s25, 3  ;;  %s907_s21 = smov (!%p244_p2), 96  }
   0x6   : > { %247 = sbr.rel (%p244_p2) target bundleno = 590 (0x24e), region = 40  ;;  %p286_p3 = scmp.lt.s32.totalorder (!%p244_p2), %s817_s26, 15 }
   0x7   : > { %s908_s22 = smov (!%p244_p2), 64  }
   0xb   : > { %s1198_s26 = smov (!%p286_p3, %s817_s26), 15  ;;  %vm326_vm0 = vcmask 261120   ;;  %v906_v20 = vmov 32.0  }
   0xc   : > { %s957_s27 = sshll.u32 %s1198_s26, 2  ;;  %880 = vrcp.f32 %v906_v20 }
   0xd   : > { %s289_s30 = scalar_lea.vmem %s1183_s0, %s957_s27  ;;  %s1120_s20 = scalar_lea.vmem %s1188_s5, %s957_s27 }
   0xe   : > { %v859_v0 = vld [vmem:[%s289_s30 + $0x18] sm:$0xff]   ;;  %v858_v1 = vld [vmem:[%s289_s30 + $0x10] sm:$0xff]   ;;  %v842_v2 = vld [vmem:[%s289_s30] sm:$0xff]   ;;  %s1150_s26 = scalar_lea.vmem %s1189_s6, %s957_s27 }
   0xf   : > { %v855_v3 = vunpack.c.l.bf16 %v859_v0  ;;  %v851_v4 = vunpack.c.l.bf16 %v858_v1  ;;  %v843_v5 = vunpack.c.l.bf16 %v842_v2  ;;  %v856_v9 = vunpack.c.h.bf16 %v859_v0  ;;  %v857_v15 = vld [vmem:[%s289_s30 + $0x8] sm:$0xff]   ;;  %s307_s30 = scalar_lea.vmem %s1190_s7, %s957_s27 }
  0x10   : > { %v852_v10 = vunpack.c.h.bf16 %v858_v1  ;;  %v844_v11 = vunpack.c.h.bf16 %v842_v2  ;;  %v847_v16 = vunpack.c.l.bf16 %v857_v15  ;;  %v848_v17 = vunpack.c.h.bf16 %v857_v15 }
  0x11   : > { %v345_v6 = vsel %vm326_vm0, %v855_v3, 0.0  ;;  %v339_v7 = vsel %vm326_vm0, %v851_v4, 0.0  ;;  %v327_v8 = vsel %vm326_vm0, %v843_v5, 0.0  ;;  %v348_v12 = vsel %vm326_vm0, %v856_v9, 0.0 }
  0x12   : > { %346 = vadd.xlane.f32.xlu1 %v345_v6  ;;  %340 = vadd.xlane.f32.xlu0 %v339_v7  ;;  %v342_v13 = vsel %vm326_vm0, %v852_v10, 0.0  ;;  %v330_v14 = vsel %vm326_vm0, %v844_v11, 0.0  ;;  %v333_v18 = vsel %vm326_vm0, %v847_v16, 0.0  ;;  %v336_v19 = vsel %vm326_vm0, %v848_v17, 0.0  ;;  %v881_v21 = vpop.eup %880  ;;  %v840_v7 = vld [vmem:[%s1186_s3 + $0x8] sm:$0xff] }
  0x13   : > { %328 = vadd.xlane.f32.xlu2 %v327_v8  ;;  %v352_v22 = vmul.f32 32.0, %v881_v21  ;;  %vm356_vm1 = vweird.f32 %v881_v21  ;;  %861 = vmatpush.bf16.msra.mxu2 %v840_v7 }
  0x14   : > { %862 = vmatpush.bf16.msra.mxu3 %v840_v7  ;;  %576 = vmatpush.bf16.msra.mxu0 %v840_v7 }
  0x15   : > { %v353_v23 = vsub.f32 1.0, %v352_v22  ;;  %860 = vmatpush.bf16.msra.mxu1 %v840_v7 }
  0x17   : > { %v354_v24 = vmul.f32 %v881_v21, %v353_v23 }
  0x19   : > { %v355_v25 = vadd.f32 %v881_v21, %v354_v24 }
  0x1a   : > { %349 = vadd.xlane.f32.xlu1 %v348_v12  ;;  %343 = vadd.xlane.f32.xlu0 %v342_v13 }
  0x1b   : > { %331 = vadd.xlane.f32.xlu2 %v330_v14  ;;  %v971_v26 = vsel %vm356_vm1, %v881_v21, %v355_v25 }
  0x22   : > { %334 = vadd.xlane.f32.xlu0 %v333_v18  ;;  %337 = vadd.xlane.f32.xlu1 %v336_v19 }
  0x85   : > { %v347_v27 = vpop.xlane.xlu1 %346  ;;  %v341_v28 = vpop.xlane.xlu0 %340 }
  0x86   : > { %v364_v29 = vmul.f32 %v971_v26, %v347_v27  ;;  %v362_v30 = vmul.f32 %v971_v26, %v341_v28  ;;  %v329_v31 = vpop.xlane.xlu2 %328 }
  0x87   : > { %v358_v40 = vmul.f32 %v971_v26, %v329_v31 }
  0x88   : > { %v975_v32 = vsub.f32 %v855_v3, %v364_v29  ;;  %v977_v33 = vsub.f32 %v851_v4, %v362_v30 }
  0x89   : > { %v995_v48 = vsub.f32 %v843_v5, %v358_v40 }
  0x8a   : > { %v380_v34 = vmul.f32 %v975_v32, %v975_v32  ;;  %v378_v35 = vmul.f32 %v977_v33, %v977_v33 }
  0x8b   : > { %v374_v59 = vmul.f32 %v995_v48, %v995_v48 }
  0x8c   : > { %v400_v36 = vsel %vm326_vm0, %v380_v34, 0.0  ;;  %v394_v37 = vsel %vm326_vm0, %v378_v35, 0.0 }
  0x8d   : > { %v350_v38 = vpop.xlane.xlu1 %349  ;;  %v344_v39 = vpop.xlane.xlu0 %343  ;;  %401 = vadd.xlane.f32.xlu1 %v400_v36  ;;  %395 = vadd.xlane.f32.xlu2 %v394_v37  ;;  %v382_v63 = vsel %vm326_vm0, %v374_v59, 0.0 }
  0x8e   : > { %v365_v41 = vmul.f32 %v971_v26, %v350_v38  ;;  %v363_v42 = vmul.f32 %v971_v26, %v344_v39  ;;  %v332_v43 = vpop.xlane.xlu2 %331 }
  0x8f   : > { %v359_v44 = vmul.f32 %v971_v26, %v332_v43 }
  0x90   : > { %v989_v45 = vsub.f32 %v856_v9, %v365_v41  ;;  %v991_v46 = vsub.f32 %v852_v10, %v363_v42  ;;  %v839_v10 = vld [vmem:[%s1186_s3] sm:$0xff] }
  0x91   : > { %v993_v47 = vsub.f32 %v844_v11, %v359_v44  ;;  %864 = vmatpush.bf16.msra.mxu2 %v839_v10  ;;  %865 = vmatpush.bf16.msra.mxu3 %v839_v10 }
  0x92   : > { %v379_v49 = vmul.f32 %v991_v46, %v991_v46  ;;  %v381_v50 = vmul.f32 %v989_v45, %v989_v45  ;;  %577 = vmatpush.bf16.msra.mxu0 %v839_v10  ;;  %863 = vmatpush.bf16.msra.mxu1 %v839_v10 }
  0x93   : > { %v375_v51 = vmul.f32 %v993_v47, %v993_v47 }
  0x94   : > { %v397_v52 = vsel %vm326_vm0, %v379_v49, 0.0  ;;  %v403_v53 = vsel %vm326_vm0, %v381_v50, 0.0 }
  0x95   : > { %398 = vadd.xlane.f32.xlu0 %v397_v52  ;;  %v335_v54 = vpop.xlane.xlu0 %334  ;;  %404 = vadd.xlane.f32.xlu2 %v403_v53  ;;  %v385_v55 = vsel %vm326_vm0, %v375_v51, 0.0  ;;  %v338_v56 = vpop.xlane.xlu1 %337 }
  0x96   : > { %v360_v57 = vmul.f32 %v971_v26, %v335_v54  ;;  %386 = vadd.xlane.f32.xlu1 %v385_v55  ;;  %v361_v58 = vmul.f32 %v971_v26, %v338_v56 }
  0x98   : > { %v1010_v60 = vsub.f32 %v847_v16, %v360_v57  ;;  %v1012_v61 = vsub.f32 %v848_v17, %v361_v58 }
  0x9a   : > { %v376_v62 = vmul.f32 %v1010_v60, %v1010_v60  ;;  %v377_v1 = vmul.f32 %v1012_v61, %v1012_v61 }
  0x9c   : > { %v388_v0 = vsel %vm326_vm0, %v376_v62, 0.0  ;;  %v391_v2 = vsel %vm326_vm0, %v377_v1, 0.0 }
  0x9d   : > { %389 = vadd.xlane.f32.xlu2 %v388_v0  ;;  %383 = vadd.xlane.f32.xlu0 %v382_v63 }
  0xa5   : > { %392 = vadd.xlane.f32.xlu0 %v391_v2 }
 0x100   : > { %v402_v3 = vpop.xlane.xlu1 %401  ;;  %v396_v4 = vpop.xlane.xlu2 %395 }
 0x101   : > { %v412_v5 = vmul.f32 %v402_v3, %v971_v26  ;;  %v410_v6 = vmul.f32 %v396_v4, %v971_v26  ;;  %v1068_v3 = vld [vmem:[%s1184_s1] ss:$0 sm:$0xff] }
 0x103   : > { %v420_v8 = vadd.f32 1e-05, %v412_v5  ;;  %v418_v9 = vadd.f32 1e-05, %v410_v6 }
 0x105   : > { %882 = vrsqrt.f32 %v420_v8  ;;  %vm488_vm2 = vweird.f32 %v420_v8  ;;  %vm468_vm5 = vweird.f32 %v418_v9 }
 0x106   : > { %884 = vrsqrt.f32 %v418_v9 }
 0x108   : > { %v399_v11 = vpop.xlane.xlu0 %398  ;;  %v405_v12 = vpop.xlane.xlu2 %404 }
 0x109   : > { %v411_v13 = vmul.f32 %v399_v11, %v971_v26  ;;  %v387_v14 = vpop.xlane.xlu1 %386  ;;  %v413_v15 = vmul.f32 %v405_v12, %v971_v26 }
 0x10a   : > { %v407_v16 = vmul.f32 %v387_v14, %v971_v26 }
 0x10b   : > { %v883_v17 = vpop.eup %882  ;;  %v419_v18 = vadd.f32 1e-05, %v411_v13  ;;  %v1032_v19 = vadd.f32 1e-05, %v413_v15  ;;  %v878_v15 = vld [vmem:[%s1185_s2] ss:$0 sm:$0xff] }
 0x10c   : > { %v885_v20 = vpop.eup %884  ;;  %v483_v21 = vmul.f32 %v883_v17, %v420_v8  ;;  %v415_v22 = vadd.f32 1e-05, %v407_v16  ;;  %vm489_vm4 = vweird.f32 %v883_v17 }
 0x10d   : > { %v463_v23 = vmul.f32 %v885_v20, %v418_v9  ;;  %886 = vrsqrt.f32 %v419_v18  ;;  %vm469_vm3 = vweird.f32 %v885_v20  ;;  %vm478_vm7 = vweird.f32 %v419_v18  ;;  %vm1055_vm8 = vmor %vm488_vm2, %vm489_vm4 }
 0x10e   : > { %v484_v24 = vmul.f32 %v883_v17, %v483_v21  ;;  %888 = vrsqrt.f32 %v415_v22  ;;  %vm1045_vm6 = vmor %vm468_vm5, %vm469_vm3  ;;  %vm438_vm9 = vweird.f32 %v415_v22  ;;  %vm498_vm12 = vweird.f32 %v1032_v19 }
 0x10f   : > { %v464_v25 = vmul.f32 %v885_v20, %v463_v23  ;;  %890 = vrsqrt.f32 %v1032_v19 }
 0x110   : > { %v485_v27 = vmul.f32 0.5, %v484_v24  ;;  %v384_v28 = vpop.xlane.xlu0 %383  ;;  %v390_v29 = vpop.xlane.xlu2 %389 }
 0x111   : > { %v465_v30 = vmul.f32 0.5, %v464_v25  ;;  %v406_v31 = vmul.f32 %v384_v28, %v971_v26  ;;  %v408_v34 = vmul.f32 %v390_v29, %v971_v26 }
 0x112   : > { %v486_v35 = vsub.f32 1.5, %v485_v27 }
 0x113   : > { %v887_v36 = vpop.eup %886  ;;  %v466_v37 = vsub.f32 1.5, %v465_v30  ;;  %v1037_v38 = vadd.f32 1e-05, %v406_v31  ;;  %v1041_v41 = vadd.f32 1e-05, %v408_v34 }
 0x114   : > { %v1039_v39 = vpop.eup %888  ;;  %v473_v40 = vmul.f32 %v887_v36, %v419_v18  ;;  %v487_v43 = vmul.f32 %v883_v17, %v486_v35  ;;  %vm479_vm10 = vweird.f32 %v887_v36 }
 0x115   : > { %v891_v42 = vpop.eup %890  ;;  %v467_v44 = vmul.f32 %v885_v20, %v466_v37  ;;  %v433_v49 = vmul.f32 %v1039_v39, %v415_v22  ;;  %892 = vrsqrt.f32 %v1037_v38  ;;  %vm439_vm11 = vweird.f32 %v1039_v39  ;;  %vm480_vm14 = vmor %vm478_vm7, %vm479_vm10 }
 0x116   : > { %v474_v51 = vmul.f32 %v887_v36, %v473_v40  ;;  %v493_v52 = vmul.f32 %v891_v42, %v1032_v19  ;;  %894 = vrsqrt.f32 %v1041_v41  ;;  %v491_v59 = vsel %vm1055_vm8, %v883_v17, %v487_v43  ;;  %vm1077_vm15 = vmor %vm438_vm9, %vm439_vm11 }
 0x117   : > { %v471_v53 = vsel %vm1045_vm6, %v885_v20, %v467_v44  ;;  %v434_v54 = vmul.f32 %v1039_v39, %v433_v49  ;;  %vm499_vm13 = vweird.f32 %v891_v42  ;;  %v508_v7 = vmul.f32 %v491_v59, %v975_v32 }
 0x118   : > { %v475_v56 = vmul.f32 0.5, %v474_v51  ;;  %v494_v57 = vmul.f32 %v891_v42, %v493_v52  ;;  %v393_v58 = vpop.xlane.xlu0 %392  ;;  %v506_v0 = vmul.f32 %v471_v53, %v977_v33  ;;  %vm500_vm1 = vmor %vm498_vm12, %vm499_vm13  ;;  %vm428_vm2 = vweird.f32 %v1037_v38 }
 0x119   : > { %v435_v62 = vmul.f32 0.5, %v434_v54  ;;  %v409_v63 = vmul.f32 %v393_v58, %v971_v26  ;;  %v520_v22 = vmul.f32 %v1068_v3, %v508_v7  ;;  %vm448_vm4 = vweird.f32 %v1041_v41 }
 0x11a   : > { %v476_v1 = vsub.f32 1.5, %v475_v56  ;;  %v495_v2 = vmul.f32 0.5, %v494_v57  ;;  %v518_v32 = vmul.f32 %v1068_v3, %v506_v0  ;;  %vm607_vm11 = vcmask 257024  }
 0x11b   : > { %v893_v4 = vpop.eup %892  ;;  %v436_v5 = vsub.f32 1.5, %v435_v62  ;;  %v417_v6 = vadd.f32 1e-05, %v409_v63 }
 0x11c   : > { %v477_v26 = vmul.f32 %v887_v36, %v476_v1  ;;  %v496_v33 = vsub.f32 1.5, %v495_v2  ;;  %v423_v8 = vmul.f32 %v893_v4, %v1037_v38  ;;  %v895_v11 = vpop.eup %894  ;;  %vm429_vm3 = vweird.f32 %v893_v4 }
 0x11d   : > { %v437_v9 = vmul.f32 %v1039_v39, %v436_v5  ;;  %896 = vrsqrt.f32 %v417_v6  ;;  %v443_v17 = vmul.f32 %v895_v11, %v1041_v41  ;;  %v530_v19 = vadd.f32 %v878_v15, %v518_v32  ;;  %vm430_vm5 = vmor %vm428_vm2, %vm429_vm3 }
 0x11e   : > { %v481_v12 = vsel %vm480_vm14, %v887_v36, %v477_v26  ;;  %v497_v13 = vmul.f32 %v891_v42, %v496_v33  ;;  %v424_v14 = vmul.f32 %v893_v4, %v423_v8  ;;  %vm449_vm6 = vweird.f32 %v895_v11 }
 0x11f   : > { %v507_v16 = vmul.f32 %v481_v12, %v991_v46  ;;  %v441_v18 = vsel %vm1077_vm15, %v1039_v39, %v437_v9  ;;  %v444_v24 = vmul.f32 %v895_v11, %v443_v17  ;;  %vm450_vm7 = vmor %vm448_vm4, %vm449_vm6  ;;  %vm458_vm9 = vweird.f32 %v417_v6 }
 0x120   : > { %v501_v20 = vsel %vm500_vm1, %v891_v42, %v497_v13  ;;  %v425_v21 = vmul.f32 0.5, %v424_v14  ;;  %v503_v28 = vmul.f32 %v441_v18, %v993_v47 }
 0x121   : > { %v509_v23 = vmul.f32 %v501_v20, %v989_v45  ;;  %v519_v25 = vmul.f32 %v1068_v3, %v507_v16  ;;  %v445_v29 = vmul.f32 0.5, %v444_v24  ;;  %v532_v45 = vadd.f32 %v878_v15, %v520_v22 }
 0x122   : > { %v426_v46 = vsub.f32 1.5, %v425_v21  ;;  %v515_v44 = vmul.f32 %v1068_v3, %v503_v28 }
 0x123   : > { %v897_v27 = vpop.eup %896  ;;  %v531_v30 = vadd.f32 %v878_v15, %v519_v25  ;;  %v521_v31 = vmul.f32 %v1068_v3, %v509_v23  ;;  %v446_v36 = vsub.f32 1.5, %v445_v29 }
 0x124   : > { %v427_v34 = vmul.f32 %v893_v4, %v426_v46  ;;  %v453_v35 = vmul.f32 %v897_v27, %v417_v6  ;;  %vm459_vm8 = vweird.f32 %v897_v27  ;;  %v527_v54 = vadd.f32 %v878_v15, %v515_v44 }
 0x125   : > { %v536_v37 = vpack.c.bf16 %v531_v30, %v530_v19  ;;  %v533_v39 = vadd.f32 %v878_v15, %v521_v31  ;;  %v447_v43 = vmul.f32 %v895_v11, %v446_v36  ;;  %vm460_vm10 = vmor %vm458_vm9, %vm459_vm8 }
 0x126   : > { %v431_v38 = vsel %vm430_vm5, %v893_v4, %v427_v34  ;;  %v454_v40 = vmul.f32 %v897_v27, %v453_v35 }
 0x127   : > { %v502_v42 = vmul.f32 %v431_v38, %v995_v48  ;;  %835 = vmatmul.msk.bf16.vlgmr.msra.gmra.mxu2 %vm326_vm0, %v536_v37  ;;  %v537_v47 = vpack.c.bf16 %v533_v39, %v532_v45  ;;  %v451_v50 = vsel %vm450_vm7, %v895_v11, %v447_v43 }
 0x128   : > { %v455_v49 = vmul.f32 0.5, %v454_v40  ;;  %v504_v53 = vmul.f32 %v451_v50, %v1010_v60  ;;  %v879_v60 = vld [vmem:[%s1187_s4] ss:$0 sm:$0xff] }
 0x129   : > { %836 = vmatmul.msk.bf16.vlgmr.msra.gmra.mxu3 %vm326_vm0, %v537_v47  ;;  %v514_v51 = vmul.f32 %v1068_v3, %v502_v42 }
 0x12a   : > { %v456_v52 = vsub.f32 1.5, %v455_v49  ;;  %v516_v58 = vmul.f32 %v1068_v3, %v504_v53 }
 0x12b   : > { %v526_v48 = vadd.f32 %v878_v15, %v514_v51 }
 0x12c   : > { %v457_v55 = vmul.f32 %v897_v27, %v456_v52  ;;  %v528_v62 = vadd.f32 %v878_v15, %v516_v58 }
 0x12d   : > { %v534_v56 = vpack.c.bf16 %v527_v54, %v526_v48 }
 0x12e   : > { %v461_v57 = vsel %vm460_vm10, %v897_v27, %v457_v55 }
 0x12f   : > { %v505_v41 = vmul.f32 %v461_v57, %v1012_v61  ;;  %833 = vmatmul.msk.bf16.vlgmr.msra.gmra.mxu0 %vm326_vm0, %v534_v56 }
 0x131   : > { %v517_v59 = vmul.f32 %v1068_v3, %v505_v41 }
 0x133   : > { %v529_v63 = vadd.f32 %v878_v15, %v517_v59 }
 0x135   : > { %v535_v0 = vpack.c.bf16 %v529_v63, %v528_v62 }
 0x137   : > { %834 = vmatmul.msk.bf16.vlgmr.msra.gmra.mxu1 %vm326_vm0, %v535_v0 }
 0x1aa   : > { %v589_v1 = vpop.f32.mrf.mxu2 }
 0x1ab   : > { %v590_v2 = vadd.f32 %v879_v60, %v589_v1 }
 0x1ac   : > { %v594_v61 = vpop.f32.mrf.mxu3  ;;  %v579_v3 = vpop.f32.mrf.mxu0 }
 0x1ad   : > { %v603_v4 = vpack.c.bf16 %v590_v2, %v590_v2  ;;  %v595_v5 = vadd.f32 %v879_v60, %v594_v61  ;;  %v580_v6 = vadd.f32 %v879_v60, %v579_v3 }
 0x1af   : > { %612 = vst.msk [vmem:[%s1120_s20 + $0x10] sm:$0xf] %vm607_vm11, %v603_v4  ;;  %v605_v7 = vpack.c.bf16 %v595_v5, %v595_v5  ;;  %v599_v26 = vpack.c.bf16 %v580_v6, %v580_v6 }
 0x1b1   : > { %614 = vst.msk [vmem:[%s1120_s20 + $0x18] sm:$0xf] %vm607_vm11, %v605_v7  ;;  %636 = vrot.lane.b32.xlu2 %v605_v7, %s907_s21  ;;  %624 = vrot.lane.b32.xlu1 %v599_v26, %s907_s21 }
 0x1b2   : > { %608 = vst.msk [vmem:[%s1120_s20] sm:$0xf] %vm607_vm11, %v599_v26  ;;  %v591_v33 = vpop.f32.mrf.mxu2 }
 0x1b3   : > { %v592_v8 = vadd.f32 %v879_v60, %v591_v33 }
 0x1b4   : > { %v596_v9 = vpop.f32.mrf.mxu3  ;;  %v581_v10 = vpop.f32.mrf.mxu0 }
 0x1b5   : > { %v604_v11 = vpack.c.bf16 %v592_v8, %v592_v8  ;;  %v597_v12 = vadd.f32 %v879_v60, %v596_v9  ;;  %v582_v13 = vadd.f32 %v879_v60, %v581_v10  ;;  %v584_v14 = vpop.f32.mrf.mxu1 }
 0x1b6   : > { %v585_v32 = vadd.f32 %v879_v60, %v584_v14 }
 0x1b7   : > { %613 = vst.msk [vmem:[%s1120_s20 + $0x14] sm:$0xf] %vm607_vm11, %v604_v11  ;;  %v606_v15 = vpack.c.bf16 %v597_v12, %v597_v12  ;;  %v600_v16 = vpack.c.bf16 %v582_v13, %v582_v13 }
 0x1b8   : > { %v601_v17 = vpack.c.bf16 %v585_v32, %v585_v32 }
 0x1b9   : > { %615 = vst.msk [vmem:[%s1120_s20 + $0x1c] sm:$0xf] %vm607_vm11, %v606_v15  ;;  %664 = vrot.lane.b32.xlu2 %v603_v4, %s908_s22 }
 0x1ba   : > { %609 = vst.msk [vmem:[%s1120_s20 + $0x4] sm:$0xf] %vm607_vm11, %v600_v16  ;;  %660 = vrot.lane.b32.xlu1 %v601_v17, %s908_s22  ;;  %628 = vrot.lane.b32.xlu0 %v601_v17, %s907_s21 }
 0x1bb   : > { %610 = vst.msk [vmem:[%s1120_s20 + $0x8] sm:$0xf] %vm607_vm11, %v601_v17 }
 0x1bd   : > { %v586_v18 = vpop.f32.mrf.mxu1 }
 0x1be   : > { %v587_v20 = vadd.f32 %v879_v60, %v586_v18 }
 0x1c0   : > { %v602_v21 = vpack.c.bf16 %v587_v20, %v587_v20 }
 0x1c1   : > { %626 = vrot.lane.b32.xlu2 %v600_v16, %s907_s21 }
 0x1c2   : > { %611 = vst.msk [vmem:[%s1120_s20 + $0xc] sm:$0xf] %vm607_vm11, %v602_v21  ;;  %632 = vrot.lane.b32.xlu1 %v603_v4, %s907_s21  ;;  %656 = vrot.lane.b32.xlu0 %v599_v26, %s908_s22 }
 0x1c9   : > { %630 = vrot.lane.b32.xlu2 %v602_v21, %s907_s21 }
 0x1ca   : > { %638 = vrot.lane.b32.xlu1 %v606_v15, %s907_s21  ;;  %662 = vrot.lane.b32.xlu0 %v602_v21, %s908_s22 }
 0x1d1   : > { %658 = vrot.lane.b32.xlu2 %v600_v16, %s908_s22 }
 0x1d2   : > { %666 = vrot.lane.b32.xlu1 %v604_v11, %s908_s22  ;;  %634 = vrot.lane.b32.xlu0 %v604_v11, %s907_s21 }
 0x1d9   : > { %670 = vrot.lane.b32.xlu2 %v606_v15, %s908_s22 }
 0x1da   : > { %668 = vrot.lane.b32.xlu0 %v605_v7, %s908_s22 }
 0x20b   : > { %v637_v22 = vpop.permute.xlu2 %636 }
 0x20c   : > { %654 = vst.msk [vmem:[%s1150_s26 + $0x18] sm:$0xf] %vm607_vm11, %v637_v22 }
 0x213   : > { %v665_v23 = vpop.permute.xlu2 %664 }
 0x214   : > { %684 = vst.msk [vmem:[%s307_s30 + $0x10] sm:$0xf] %vm607_vm11, %v665_v23 }
 0x21b   : > { %v627_v24 = vpop.permute.xlu2 %626 }
 0x21c   : > { %649 = vst.msk [vmem:[%s1150_s26 + $0x4] sm:$0xf] %vm607_vm11, %v627_v24 }
 0x223   : > { %v631_v25 = vpop.permute.xlu2 %630  ;;  %v625_v46 = vpop.permute.xlu1 %624 }
 0x224   : > { %651 = vst.msk [vmem:[%s1150_s26 + $0xc] sm:$0xf] %vm607_vm11, %v631_v25 }
 0x225   : > { %648 = vst.msk [vmem:[%s1150_s26] sm:$0xf] %vm607_vm11, %v625_v46 }
 0x22b   : > { %v659_v19 = vpop.permute.xlu2 %658 }
 0x22c   : > { %681 = vst.msk [vmem:[%s307_s30 + $0x4] sm:$0xf] %vm607_vm11, %v659_v19  ;;  %v661_v27 = vpop.permute.xlu1 %660  ;;  %v629_v28 = vpop.permute.xlu0 %628 }
 0x22d   : > { %682 = vst.msk [vmem:[%s307_s30 + $0x8] sm:$0xf] %vm607_vm11, %v661_v27 }
 0x22e   : > { %650 = vst.msk [vmem:[%s1150_s26 + $0x8] sm:$0xf] %vm607_vm11, %v629_v28 }
 0x233   : > { %v671_v29 = vpop.permute.xlu2 %670 }
 0x234   : > { %687 = vst.msk [vmem:[%s307_s30 + $0x1c] sm:$0xf] %vm607_vm11, %v671_v29  ;;  %v633_v30 = vpop.permute.xlu1 %632  ;;  %v657_v31 = vpop.permute.xlu0 %656 }
 0x235   : > { %652 = vst.msk [vmem:[%s1150_s26 + $0x10] sm:$0xf] %vm607_vm11, %v633_v30 }
 0x236   : > { %680 = vst.msk [vmem:[%s307_s30] sm:$0xf] %vm607_vm11, %v657_v31 }
 0x23c   : > { %v639_v34 = vpop.permute.xlu1 %638  ;;  %v663_v35 = vpop.permute.xlu0 %662 }
 0x23d   : > { %655 = vst.msk [vmem:[%s1150_s26 + $0x1c] sm:$0xf] %vm607_vm11, %v639_v34 }
 0x23e   : > { %683 = vst.msk [vmem:[%s307_s30 + $0xc] sm:$0xf] %vm607_vm11, %v663_v35 }
 0x244   : > { %v667_v45 = vpop.permute.xlu1 %666  ;;  %v635_v36 = vpop.permute.xlu0 %634 }
 0x245   : > { %685 = vst.msk [vmem:[%s307_s30 + $0x14] sm:$0xf] %vm607_vm11, %v667_v45 }
 0x246   : > { %653 = vst.msk [vmem:[%s1150_s26 + $0x14] sm:$0xf] %vm607_vm11, %v635_v36 }
 0x24c   : > { %v669_v37 = vpop.permute.xlu0 %668 }
 0x24d   : > { %686 = vst.msk [vmem:[%s307_s30 + $0x18] sm:$0xf] %vm607_vm11, %v669_v37 }
 0x24e PF: > { %s18_s24 = sadd.s32 1, %s904_s24  }
 0x24f   : > { %p15_p4 = scmp.ge.s32.totalorder %s18_s24, 4  }
 0x251   :  { %17 = sbr.rel (!%p15_p4) target bundleno = 1 (0x1), region = 94 }

// kernel: dinat_forward.18
= control target key start
LH: loop header
LB: loop body
LE: loop exit
PB: predicated region body
PF: predicated region fallthrough
CT: control target
= control target key end

     0   :  { %s1312_s24 = smov 0   ;;  %s1875_s0 = inlined_call_operand.vmem [shape: bf16[128,32], index: 0, kind: input, shape index: {}]   ;;  %s1876_s1 = inlined_call_operand.vmem [shape: f32[1,32], index: 1, kind: input, shape index: {}]   ;;  %s1877_s2 = inlined_call_operand.vmem [shape: f32[1,32], index: 2, kind: input, shape index: {}]   ;;  %s1878_s3 = inlined_call_operand.vmem [shape: bf16[32,128], index: 3, kind: input, shape index: {}]   ;;  %s1879_s4 = inlined_call_operand.vmem [shape: f32[1,128], index: 4, kind: input, shape index: {}]   ;;  %s1880_s5 = inlined_call_operand.vmem [shape: bf16[128,32], index: 5, kind: input, shape index: {}]   ;;  %s1881_s6 = inlined_call_operand.vmem [shape: f32[1,32], index: 6, kind: input, shape index: {}]   ;;  %s1882_s7 = inlined_call_operand.vmem [shape: bf16[128,32], index: 7, kind: output, shape index: {}]  }
   0x1 LB: > { %s1106_s25 = sadd.s32 4294967295, %s1269_s24   ;;  %p1110_p0 = scmp.ge.s32.totalorder %s1269_s24, 1  ;;  %s1269_s24 = sphi %s1312_s24, %s17_s24  }
   0x2   : > { %p238_p1 = scmp.lt.s32.totalorder %s1269_s24, 3 }
   0x4   : > { %p239_p2 = pnand %p1110_p0, %p238_p1 }
   0x5   : > { %s1111_s26 = sshll.u32 (!%p239_p2), %s1106_s25, 3 }
   0x6   : > { %242 = sbr.rel (%p239_p2) target bundleno = 693 (0x2b5), region = 48  ;;  %p271_p3 = scmp.lt.s32.totalorder (!%p239_p2), %s1111_s26, 15 }
   0xb   : > { %s1892_s26 = smov (!%p271_p3, %s1111_s26), 15  ;;  %vm299_vm0 = vcmask 261120   ;;  %v1271_v20 = vmov 32.0  }
   0xc   : > { %s1112_s27 = sshll.u32 %s1892_s26, 2  ;;  %1229 = vrcp.f32 %v1271_v20 }
   0xd   : > { %s274_s30 = scalar_lea.vmem %s1875_s0, %s1112_s27  ;;  %s1847_s18 = scalar_lea.vmem %s1882_s7, %s1112_s27 }
   0xe   : > { %v1197_v0 = vld [vmem:[%s274_s30 + $0x18] sm:$0xff]   ;;  %v1196_v1 = vld [vmem:[%s274_s30 + $0x10] sm:$0xff]   ;;  %v1195_v2 = vld [vmem:[%s274_s30 + $0x8] sm:$0xff]  }
   0xf   : > { %v1328_v3 = vunpack.c.l.bf16 %v1197_v0  ;;  %v1330_v4 = vunpack.c.l.bf16 %v1196_v1  ;;  %v1332_v5 = vunpack.c.l.bf16 %v1195_v2  ;;  %v1340_v9 = vunpack.c.h.bf16 %v1197_v0  ;;  %v1180_v15 = vld [vmem:[%s274_s30] sm:$0xff]  }
  0x10   : > { %v1342_v10 = vunpack.c.h.bf16 %v1196_v1  ;;  %v1344_v11 = vunpack.c.h.bf16 %v1195_v2  ;;  %v1352_v16 = vunpack.c.h.bf16 %v1180_v15  ;;  %v1354_v17 = vunpack.c.l.bf16 %v1180_v15  ;;  %v1169_v15 = vld [vmem:[%s1878_s3] sm:$0xff] }
  0x11   : > { %v318_v6 = vsel %vm299_vm0, %v1328_v3, 0.0  ;;  %v312_v7 = vsel %vm299_vm0, %v1330_v4, 0.0  ;;  %v306_v8 = vsel %vm299_vm0, %v1332_v5, 0.0  ;;  %v321_v12 = vsel %vm299_vm0, %v1340_v9, 0.0 }
  0x12   : > { %319 = vadd.xlane.f32.xlu2 %v318_v6  ;;  %313 = vadd.xlane.f32.xlu1 %v312_v7  ;;  %v315_v13 = vsel %vm299_vm0, %v1342_v10, 0.0  ;;  %v309_v14 = vsel %vm299_vm0, %v1344_v11, 0.0  ;;  %v303_v18 = vsel %vm299_vm0, %v1352_v16, 0.0  ;;  %v300_v19 = vsel %vm299_vm0, %v1354_v17, 0.0  ;;  %v1230_v21 = vpop.eup %1229 }
  0x13   : > { %307 = vadd.xlane.f32.xlu0 %v306_v8  ;;  %v325_v22 = vmul.f32 32.0, %v1230_v21  ;;  %vm329_vm1 = vweird.f32 %v1230_v21 }
  0x15   : > { %v326_v23 = vsub.f32 1.0, %v325_v22 }
  0x17   : > { %v327_v24 = vmul.f32 %v1230_v21, %v326_v23 }
  0x19   : > { %v328_v25 = vadd.f32 %v1230_v21, %v327_v24 }
  0x1a   : > { %322 = vadd.xlane.f32.xlu2 %v321_v12  ;;  %316 = vadd.xlane.f32.xlu1 %v315_v13  ;;  %v1170_v12 = vld [vmem:[%s1878_s3 + $0x8] sm:$0xff] }
  0x1b   : > { %310 = vadd.xlane.f32.xlu0 %v309_v14  ;;  %v1360_v26 = vsel %vm329_vm1, %v1230_v21, %v328_v25  ;;  %1198 = vmatpush.bf16.msra.mxu3 %v1170_v12 }
  0x1c   : > { %549 = vmatpush.bf16.msra.mxu0 %v1170_v12 }
  0x1f   : > { %1199 = vmatpush.bf16.msra.mxu3 %v1169_v15 }
  0x20   : > { %550 = vmatpush.bf16.msra.mxu0 %v1169_v15 }
  0x22   : > { %304 = vadd.xlane.f32.xlu1 %v303_v18 }
  0x23   : > { %301 = vadd.xlane.f32.xlu0 %v300_v19 }
  0x85   : > { %v320_v27 = vpop.xlane.xlu2 %319  ;;  %v314_v28 = vpop.xlane.xlu1 %313 }
  0x86   : > { %v335_v29 = vmul.f32 %v1360_v26, %v314_v28  ;;  %v308_v30 = vpop.xlane.xlu0 %307  ;;  %v337_v43 = vmul.f32 %v1360_v26, %v320_v27 }
  0x87   : > { %v333_v31 = vmul.f32 %v1360_v26, %v308_v30 }
  0x88   : > { %v1365_v32 = vsub.f32 %v1330_v4, %v335_v29  ;;  %v1394_v50 = vsub.f32 %v1328_v3, %v337_v43 }
  0x89   : > { %v1368_v33 = vsub.f32 %v1332_v5, %v333_v31 }
  0x8a   : > { %v351_v34 = vmul.f32 %v1365_v32, %v1365_v32  ;;  %v353_v59 = vmul.f32 %v1394_v50, %v1394_v50 }
  0x8b   : > { %v349_v35 = vmul.f32 %v1368_v33, %v1368_v33 }
  0x8c   : > { %v367_v36 = vsel %vm299_vm0, %v351_v34, 0.0  ;;  %v373_v62 = vsel %vm299_vm0, %v353_v59, 0.0 }
  0x8d   : > { %v323_v37 = vpop.xlane.xlu2 %322  ;;  %v317_v38 = vpop.xlane.xlu1 %316  ;;  %v361_v39 = vsel %vm299_vm0, %v349_v35, 0.0  ;;  %368 = vadd.xlane.f32.xlu1 %v367_v36 }
  0x8e   : > { %v338_v40 = vmul.f32 %v1360_v26, %v323_v37  ;;  %v336_v41 = vmul.f32 %v1360_v26, %v317_v38  ;;  %362 = vadd.xlane.f32.xlu2 %v361_v39  ;;  %v311_v42 = vpop.xlane.xlu0 %310 }
  0x8f   : > { %v334_v44 = vmul.f32 %v1360_v26, %v311_v42 }
  0x90   : > { %v1381_v45 = vsub.f32 %v1340_v9, %v338_v40  ;;  %v1384_v46 = vsub.f32 %v1342_v10, %v336_v41 }
  0x91   : > { %v1387_v47 = vsub.f32 %v1344_v11, %v334_v44 }
  0x92   : > { %v352_v48 = vmul.f32 %v1384_v46, %v1384_v46  ;;  %v354_v49 = vmul.f32 %v1381_v45, %v1381_v45 }
  0x93   : > { %v350_v51 = vmul.f32 %v1387_v47, %v1387_v47 }
  0x94   : > { %v370_v52 = vsel %vm299_vm0, %v352_v48, 0.0  ;;  %v376_v53 = vsel %vm299_vm0, %v354_v49, 0.0 }
  0x95   : > { %377 = vadd.xlane.f32.xlu1 %v376_v53  ;;  %v364_v54 = vsel %vm299_vm0, %v350_v51, 0.0  ;;  %v305_v55 = vpop.xlane.xlu1 %304 }
  0x96   : > { %371 = vadd.xlane.f32.xlu2 %v370_v52  ;;  %365 = vadd.xlane.f32.xlu0 %v364_v54  ;;  %v302_v56 = vpop.xlane.xlu0 %301  ;;  %v332_v58 = vmul.f32 %v1360_v26, %v305_v55 }
  0x97   : > { %v331_v57 = vmul.f32 %v1360_v26, %v302_v56 }
  0x98   : > { %v1409_v61 = vsub.f32 %v1352_v16, %v332_v58 }
  0x99   : > { %v1406_v60 = vsub.f32 %v1354_v17, %v331_v57 }
  0x9a   : > { %v348_v1 = vmul.f32 %v1409_v61, %v1409_v61 }
  0x9b   : > { %v347_v63 = vmul.f32 %v1406_v60, %v1406_v60 }
  0x9c   : > { %v358_v2 = vsel %vm299_vm0, %v348_v1, 0.0 }
  0x9d   : > { %v355_v0 = vsel %vm299_vm0, %v347_v63, 0.0 }
  0x9e   : > { %374 = vadd.xlane.f32.xlu0 %v373_v62  ;;  %356 = vadd.xlane.f32.xlu2 %v355_v0 }
  0xa6   : > { %359 = vadd.xlane.f32.xlu0 %v358_v2 }
 0x100   : > { %v369_v7 = vpop.xlane.xlu1 %368 }
 0x101   : > { %v363_v6 = vpop.xlane.xlu2 %362  ;;  %v383_v14 = vmul.f32 %v369_v7, %v1360_v26  ;;  %v1461_v7 = vld [vmem:[%s1876_s1] ss:$0 sm:$0xff] }
 0x102   : > { %v381_v8 = vmul.f32 %v363_v6, %v1360_v26 }
 0x103   : > { %v1426_v18 = vadd.f32 1e-05, %v383_v14 }
 0x104   : > { %v389_v13 = vadd.f32 1e-05, %v381_v8 }
 0x105   : > { %vm441_vm10 = vweird.f32 %v1426_v18 }
 0x106   : > { %1231 = vrsqrt.f32 %v389_v13  ;;  %vm421_vm3 = vweird.f32 %v389_v13 }
 0x107   : > { %1233 = vrsqrt.f32 %v1426_v18 }
 0x108   : > { %v378_v29 = vpop.xlane.xlu1 %377 }
 0x109   : > { %v372_v19 = vpop.xlane.xlu2 %371  ;;  %v366_v20 = vpop.xlane.xlu0 %365  ;;  %v386_v36 = vmul.f32 %v378_v29, %v1360_v26 }
 0x10a   : > { %v384_v21 = vmul.f32 %v372_v19, %v1360_v26  ;;  %v382_v22 = vmul.f32 %v366_v20, %v1360_v26 }
 0x10b   : > { %v1447_v49 = vadd.f32 1e-05, %v386_v36 }
 0x10c   : > { %v1232_v23 = vpop.eup %1231  ;;  %v1431_v24 = vadd.f32 1e-05, %v384_v21  ;;  %v390_v25 = vadd.f32 1e-05, %v382_v22  ;;  %v1473_v22 = vld [vmem:[%s1877_s2] ss:$0 sm:$0xff] }
 0x10d   : > { %v416_v27 = vmul.f32 %v1232_v23, %v389_v13  ;;  %v1434_v35 = vpop.eup %1233  ;;  %vm422_vm2 = vweird.f32 %v1232_v23 }
 0x10e   : > { %1235 = vrsqrt.f32 %v1431_v24  ;;  %v436_v43 = vmul.f32 %v1434_v35, %v1426_v18  ;;  %vm423_vm4 = vmor %vm421_vm3, %vm422_vm2  ;;  %vm431_vm6 = vweird.f32 %v390_v25  ;;  %vm451_vm8 = vweird.f32 %v1431_v24 }
 0x10f   : > { %v417_v28 = vmul.f32 %v1232_v23, %v416_v27  ;;  %1237 = vrsqrt.f32 %v390_v25  ;;  %vm442_vm11 = vweird.f32 %v1434_v35 }
 0x110   : > { %v437_v55 = vmul.f32 %v1434_v35, %v436_v43  ;;  %vm1493_vm15 = vmor %vm441_vm10, %vm442_vm11 }
 0x111   : > { %v418_v30 = vmul.f32 0.5, %v417_v28  ;;  %v357_v31 = vpop.xlane.xlu2 %356  ;;  %v375_v34 = vpop.xlane.xlu0 %374 }
 0x112   : > { %v379_v37 = vmul.f32 %v357_v31, %v1360_v26  ;;  %v385_v39 = vmul.f32 %v375_v34, %v1360_v26  ;;  %v438_v6 = vmul.f32 0.5, %v437_v55 }
 0x113   : > { %v419_v38 = vsub.f32 1.5, %v418_v30  ;;  %v1177_v30 = vld [vmem:[%s1880_s5 + $0x30] sm:$0xff] }
 0x114   : > { %v1439_v40 = vpop.eup %1235  ;;  %v1441_v41 = vadd.f32 1e-05, %v379_v37  ;;  %v1450_v52 = vadd.f32 1e-05, %v385_v39  ;;  %v1176_v39 = vld [vmem:[%s1880_s5 + $0x28] sm:$0xff] }
 0x115   : > { %v1238_v42 = vpop.eup %1237  ;;  %v446_v44 = vmul.f32 %v1439_v40, %v1431_v24  ;;  %v420_v48 = vmul.f32 %v1232_v23, %v419_v38  ;;  %vm452_vm9 = vweird.f32 %v1439_v40 }
 0x116   : > { %v426_v51 = vmul.f32 %v1238_v42, %v390_v25  ;;  %1239 = vrsqrt.f32 %v1441_v41  ;;  %vm432_vm5 = vweird.f32 %v1238_v42  ;;  %vm401_vm12 = vweird.f32 %v1441_v41  ;;  %vm1485_vm14 = vmor %vm451_vm8, %vm452_vm9 }
 0x117   : > { %v447_v53 = vmul.f32 %v1439_v40, %v446_v44  ;;  %v424_v57 = vsel %vm423_vm4, %v1232_v23, %v420_v48  ;;  %1241 = vrsqrt.f32 %v1447_v49  ;;  %vm433_vm7 = vmor %vm431_vm6, %vm432_vm5  ;;  %vm461_vm5 = vweird.f32 %v1450_v52 }
 0x118   : > { %v427_v54 = vmul.f32 %v1238_v42, %v426_v51  ;;  %1243 = vrsqrt.f32 %v1450_v52  ;;  %v477_v2 = vmul.f32 %v424_v57, %v1368_v33  ;;  %v439_v33 = vsub.f32 1.5, %v438_v6 }
 0x119   : > { %v360_v56 = vpop.xlane.xlu0 %359  ;;  %v448_v62 = vmul.f32 0.5, %v447_v53 }
 0x11a   : > { %v428_v58 = vmul.f32 0.5, %v427_v54  ;;  %v380_v59 = vmul.f32 %v360_v56, %v1360_v26  ;;  %v489_v21 = vmul.f32 %v1461_v7, %v477_v2  ;;  %v440_v24 = vmul.f32 %v1434_v35, %v439_v33 }
 0x11b   : > { %v449_v13 = vsub.f32 1.5, %v448_v62 }
 0x11c   : > { %v429_v63 = vsub.f32 1.5, %v428_v58  ;;  %v388_v0 = vadd.f32 1e-05, %v380_v59  ;;  %v1240_v1 = vpop.eup %1239  ;;  %v501_v31 = vadd.f32 %v1473_v22, %v489_v21  ;;  %v444_v51 = vsel %vm1493_vm15, %v1434_v35, %v440_v24 }
 0x11d   : > { %v396_v12 = vmul.f32 %v1240_v1, %v1441_v41  ;;  %v1464_v26 = vpop.eup %1241  ;;  %v450_v25 = vmul.f32 %v1439_v40, %v449_v13  ;;  %vm402_vm13 = vweird.f32 %v1240_v1  ;;  %v479_v57 = vmul.f32 %v444_v51, %v1365_v32 }
 0x11e   : > { %v430_v8 = vmul.f32 %v1238_v42, %v429_v63  ;;  %1245 = vrsqrt.f32 %v388_v0  ;;  %v1466_v19 = vpop.eup %1243  ;;  %v466_v18 = vmul.f32 %v1464_v26, %v1447_v49  ;;  %vm1499_vm1 = vmor %vm401_vm12, %vm402_vm13  ;;  %vm411_vm2 = vweird.f32 %v388_v0 }
 0x11f   : > { %v397_v15 = vmul.f32 %v1240_v1, %v396_v12  ;;  %v456_v28 = vmul.f32 %v1466_v19, %v1450_v52  ;;  %v454_v43 = vsel %vm1485_vm14, %v1439_v40, %v450_v25  ;;  %v491_v6 = vmul.f32 %v1461_v7, %v479_v57 }
 0x120   : > { %v434_v14 = vsel %vm433_vm7, %v1238_v42, %v430_v8  ;;  %v467_v53 = vmul.f32 %v1464_v26, %v466_v18  ;;  %v480_v55 = vmul.f32 %v454_v43, %v1384_v46  ;;  %vm462_vm6 = vweird.f32 %v1466_v19 }
 0x121   : > { %v478_v20 = vmul.f32 %v434_v14, %v1387_v47  ;;  %v398_v23 = vmul.f32 0.5, %v397_v15  ;;  %v457_v44 = vmul.f32 %v1466_v19, %v456_v28  ;;  %vm471_vm7 = vweird.f32 %v1447_v49  ;;  %vm463_vm9 = vmor %vm461_vm5, %vm462_vm6 }
 0x122   : > { %v468_v35 = vmul.f32 0.5, %v467_v53  ;;  %v492_v62 = vmul.f32 %v1461_v7, %v480_v55  ;;  %vm472_vm8 = vweird.f32 %v1464_v26  ;;  %v503_v13 = vadd.f32 %v1473_v22, %v491_v6 }
 0x123   : > { %v490_v47 = vmul.f32 %v1461_v7, %v478_v20  ;;  %v399_v27 = vsub.f32 1.5, %v398_v23  ;;  %v458_v40 = vmul.f32 0.5, %v457_v44  ;;  %vm473_vm10 = vmor %vm471_vm7, %vm472_vm8 }
 0x124   : > { %v1246_v29 = vpop.eup %1245  ;;  %v469_v46 = vsub.f32 1.5, %v468_v35 }
 0x125   : > { %v502_v34 = vadd.f32 %v1473_v22, %v490_v47  ;;  %v400_v37 = vmul.f32 %v1240_v1, %v399_v27  ;;  %v406_v38 = vmul.f32 %v1246_v29, %v388_v0  ;;  %vm412_vm3 = vweird.f32 %v1246_v29 }
 0x126   : > { %vm413_vm4 = vmor %vm411_vm2, %vm412_vm3  ;;  %v459_v63 = vsub.f32 1.5, %v458_v40  ;;  %v470_v52 = vmul.f32 %v1464_v26, %v469_v46 }
 0x127   : > { %v508_v42 = vpack.c.bf16 %v502_v34, %v501_v31  ;;  %v407_v48 = vmul.f32 %v1246_v29, %v406_v38  ;;  %v404_v41 = vsel %vm1499_vm1, %v1240_v1, %v400_v37 }
 0x128   : > { %v475_v58 = vmul.f32 %v404_v41, %v1406_v60  ;;  %v504_v60 = vadd.f32 %v1473_v22, %v492_v62  ;;  %v460_v8 = vmul.f32 %v1466_v19, %v459_v63  ;;  %v474_v49 = vsel %vm473_vm10, %v1464_v26, %v470_v52 }
 0x129   : > { %1124 = vmatmul.msk.bf16.vlgmr.msra.gmra.mxu3 %vm299_vm0, %v508_v42  ;;  %v408_v54 = vmul.f32 0.5, %v407_v48  ;;  %v482_v21 = vmul.f32 %v474_v49, %v1381_v45 }
 0x12a   : > { %v487_v0 = vmul.f32 %v1461_v7, %v475_v58  ;;  %v509_v15 = vpack.c.bf16 %v504_v60, %v503_v13  ;;  %v464_v33 = vsel %vm463_vm9, %v1466_v19, %v460_v8  ;;  %v1546_v19 = vld [vmem:[%s1879_s4] ss:$0 sm:$0xff] }
 0x12b   : > { %v409_v56 = vsub.f32 1.5, %v408_v54  ;;  %v481_v20 = vmul.f32 %v464_v33, %v1394_v50  ;;  %v494_v47 = vmul.f32 %v1461_v7, %v482_v21  ;;  %v1175_v54 = vld [vmem:[%s1880_s5 + $0x20] sm:$0xff]  ;;  %v1173_v33 = vld [vmem:[%s1880_s5 + $0x10] sm:$0xff] }
 0x12d   : > { %v410_v59 = vmul.f32 %v1246_v29, %v409_v56  ;;  %v493_v23 = vmul.f32 %v1461_v7, %v481_v20  ;;  %v506_v27 = vadd.f32 %v1473_v22, %v494_v47 }
 0x12f   : > { %v414_v2 = vsel %vm413_vm4, %v1246_v29, %v410_v59  ;;  %v505_v25 = vadd.f32 %v1473_v22, %v493_v23 }
 0x130   : > { %v476_v1 = vmul.f32 %v414_v2, %v1409_v61  ;;  %v499_v61 = vadd.f32 %v1473_v22, %v487_v0 }
 0x131   : > { %v510_v28 = vpack.c.bf16 %v506_v27, %v505_v25 }
 0x132   : > { %v488_v32 = vmul.f32 %v1461_v7, %v476_v1  ;;  %v1178_v7 = vld [vmem:[%s1880_s5 + $0x38] sm:$0xff] }
 0x133   : > { %1200 = vmatpush.bf16.msra.mxu1 %v1178_v7  ;;  %996 = vmatpush.bf16.msrb.mxu0 %v1178_v7  ;;  %v1174_v1 = vld [vmem:[%s1880_s5 + $0x18] sm:$0xff] }
 0x134   : > { %v500_v12 = vadd.f32 %v1473_v22, %v488_v32  ;;  %1201 = vmatpush.bf16.msra.mxu2 %v1178_v7 }
 0x136   : > { %v507_v14 = vpack.c.bf16 %v500_v12, %v499_v61 }
 0x137   : > { %1202 = vmatpush.bf16.msra.mxu1 %v1177_v30  ;;  %997 = vmatpush.bf16.msrb.mxu0 %v1177_v30 }
 0x138   : > { %1123 = vmatmul.msk.bf16.vlgmr.msra.gmra.mxu0 %vm299_vm0, %v507_v14  ;;  %1203 = vmatpush.bf16.msra.mxu2 %v1177_v30 }
 0x139   : > { %1125 = vmatmul.msk.bf16.gmra.mxu3 %vm299_vm0, %v509_v15 }
 0x13b   : > { %1204 = vmatpush.bf16.msra.mxu1 %v1176_v39  ;;  %998 = vmatpush.bf16.msrb.mxu0 %v1176_v39 }
 0x13c   : > { %1205 = vmatpush.bf16.msra.mxu2 %v1176_v39 }
 0x13f   : > { %1206 = vmatpush.bf16.msra.mxu1 %v1175_v54  ;;  %999 = vmatpush.bf16.msrb.mxu0 %v1175_v54 }
 0x140   : > { %1207 = vmatpush.bf16.msra.mxu2 %v1175_v54 }
 0x143   : > { %1208 = vmatpush.bf16.msra.mxu1 %v1174_v1  ;;  %1000 = vmatpush.bf16.msrb.mxu0 %v1174_v1 }
 0x144   : > { %1209 = vmatpush.bf16.msra.mxu2 %v1174_v1 }
 0x147   : > { %1210 = vmatpush.bf16.msra.mxu1 %v1173_v33  ;;  %1001 = vmatpush.bf16.msrb.mxu0 %v1173_v33 }
 0x148   : > { %1211 = vmatpush.bf16.msra.mxu2 %v1173_v33 }
 0x149   : > { %1126 = vmatmul.msk.bf16.gmra.mxu3 %vm299_vm0, %v510_v28 }
 0x1ac   : > { %v557_v26 = vpop.f32.mrf.mxu3 }
 0x1ad   : > { %v1549_v50 = vadd.f32 %v1546_v19, %v557_v26 }
 0x1af   : > { %v1552_v45 = vmul.f32 0.70710677, %v1549_v50 }
 0x1b1   : > { %v668_v22 = vmul.f32 %v1552_v45, %v1552_v45 }
 0x1b3   : > { %v1559_v29 = vmin.f32 %v668_v22, 16.0 }
 0x1b4   : > { %v559_v24 = vpop.f32.mrf.mxu3 }
 0x1b5   : > { %v1565_v18 = vadd.f32 %v1546_v19, %v559_v24  ;;  %v681_v31 = vmul.f32 3.8918573e-05, %v1559_v29  ;;  %v552_v34 = vpop.f32.mrf.mxu0  ;;  %v670_v36 = vmul.f32 2.1237322e-06, %v1559_v29 }
 0x1b6   : > { %v1573_v38 = vadd.f32 %v1546_v19, %v552_v34 }
 0x1b7   : > { %v1570_v37 = vmul.f32 0.70710677, %v1565_v18  ;;  %v682_v42 = vadd.f32 0.001143296, %v681_v31  ;;  %v671_v48 = vadd.f32 0.00028619796, %v670_v36 }
 0x1b8   : > { %v1581_v44 = vmul.f32 0.70710677, %v1573_v38  ;;  %v1172_v31 = vld [vmem:[%s1880_s5 + $0x8] sm:$0xff] }
 0x1b9   : > { %v708_v43 = vmul.f32 %v1570_v37, %v1570_v37  ;;  %v683_v53 = vmul.f32 %v682_v42, %v1559_v29  ;;  %v672_v58 = vmul.f32 %v671_v48, %v1559_v29  ;;  %1212 = vmatpush.bf16.msra.mxu1 %v1172_v31  ;;  %1002 = vmatpush.bf16.msrb.mxu0 %v1172_v31 }
 0x1ba   : > { %v588_v51 = vmul.f32 %v1581_v44, %v1581_v44  ;;  %1213 = vmatpush.bf16.msra.mxu2 %v1172_v31 }
 0x1bb   : > { %v1589_v55 = vmin.f32 %v708_v43, 16.0  ;;  %v684_v62 = vadd.f32 0.014752088, %v683_v53  ;;  %v673_v8 = vadd.f32 0.0036580483, %v672_v58 }
 0x1bc   : > { %v562_v41 = vpop.f32.mrf.mxu3  ;;  %v1591_v40 = vmin.f32 %v588_v51, 16.0 }
 0x1bd   : > { %v1594_v56 = vadd.f32 %v1546_v19, %v562_v41  ;;  %v554_v57 = vpop.f32.mrf.mxu0  ;;  %v710_v0 = vmul.f32 2.1237322e-06, %v1589_v55  ;;  %v685_v12 = vmul.f32 %v684_v62, %v1559_v29  ;;  %v674_v47 = vmul.f32 %v673_v8, %v1559_v29 }
 0x1be   : > { %v590_v35 = vmul.f32 2.1237322e-06, %v1591_v40  ;;  %v1599_v59 = vadd.f32 %v1546_v19, %v554_v57  ;;  %v601_v63 = vmul.f32 3.8918573e-05, %v1591_v40  ;;  %v1171_v57 = vld [vmem:[%s1880_s5] sm:$0xff] }
 0x1bf   : > { %v1603_v2 = vmul.f32 0.70710677, %v1594_v56  ;;  %v711_v49 = vadd.f32 0.00028619796, %v710_v0  ;;  %v686_v27 = vadd.f32 0.112945676, %v685_v12  ;;  %1214 = vmatpush.bf16.msra.mxu1 %v1171_v57  ;;  %1003 = vmatpush.bf16.msrb.mxu0 %v1171_v57 }
 0x1c0   : > { %v591_v6 = vadd.f32 0.00028619796, %v590_v35  ;;  %v602_v46 = vadd.f32 0.001143296, %v601_v63  ;;  %v1612_v60 = vmul.f32 0.70710677, %v1599_v59  ;;  %1215 = vmatpush.bf16.msra.mxu2 %v1171_v57 }
 0x1c1   : > { %v748_v32 = vmul.f32 %v1603_v2, %v1603_v2  ;;  %v712_v24 = vmul.f32 %v711_v49, %v1589_v55  ;;  %v675_v42 = vadd.f32 0.05243302, %v674_v47  ;;  %v687_v48 = vmul.f32 %v686_v27, %v1559_v29 }
 0x1c2   : > { %v592_v61 = vmul.f32 %v591_v6, %v1591_v40  ;;  %v603_v13 = vmul.f32 %v602_v46, %v1591_v40  ;;  %v628_v14 = vmul.f32 %v1612_v60, %v1612_v60 }
 0x1c3   : > { %v1617_v52 = vmin.f32 %v748_v32, 16.0  ;;  %v713_v58 = vadd.f32 0.0036580483, %v712_v24  ;;  %v676_v6 = vmul.f32 %v675_v42, %v1559_v29  ;;  %v688_v12 = vadd.f32 0.4994258, %v687_v48 }
 0x1c4   : > { %v564_v15 = vpop.f32.mrf.mxu3  ;;  %v604_v21 = vadd.f32 0.014752088, %v603_v13  ;;  %v1627_v23 = vmin.f32 %v628_v14, 16.0  ;;  %v593_v25 = vadd.f32 0.0036580483, %v592_v61 }
 0x1c5   : > { %v1625_v20 = vadd.f32 %v1546_v19, %v564_v15  ;;  %v750_v26 = vmul.f32 2.1237322e-06, %v1617_v52  ;;  %v714_v14 = vmul.f32 %v713_v58, %v1589_v55  ;;  %v677_v47 = vadd.f32 0.18741608, %v676_v6 }
 0x1c6   : > { %v605_v28 = vmul.f32 %v604_v21, %v1591_v40  ;;  %v630_v7 = vmul.f32 2.1237322e-06, %v1627_v23  ;;  %v641_v22 = vmul.f32 3.8918573e-05, %v1627_v23  ;;  %v594_v43 = vmul.f32 %v593_v25, %v1591_v40 }
 0x1c7   : > { %v1636_v30 = vmul.f32 0.70710677, %v1625_v20  ;;  %v751_v53 = vadd.f32 0.00028619796, %v750_v26  ;;  %v689_v27 = vmul.f32 %v688_v12, %v1559_v29  ;;  %v715_v24 = vadd.f32 0.05243302, %v714_v14 }
 0x1c8   : > { %v606_v34 = vadd.f32 0.112945676, %v605_v28  ;;  %v631_v36 = vadd.f32 0.00028619796, %v630_v7  ;;  %v642_v39 = vadd.f32 0.001143296, %v641_v22  ;;  %v678_v42 = vmul.f32 %v677_v47, %v1559_v29 }
 0x1c9   : > { %v788_v35 = vmul.f32 %v1636_v30, %v1636_v30  ;;  %v595_v46 = vadd.f32 0.05243302, %v594_v43  ;;  %v752_v8 = vmul.f32 %v751_v53, %v1617_v52  ;;  %v721_v22 = vmul.f32 3.8918573e-05, %v1589_v55 }
 0x1ca   : > { %v607_v51 = vmul.f32 %v606_v34, %v1591_v40  ;;  %v632_v41 = vmul.f32 %v631_v36, %v1627_v23  ;;  %v643_v54 = vmul.f32 %v642_v39, %v1627_v23  ;;  %v1672_v48 = vadd.f32 1.0, %v689_v27 }
 0x1cb   : > { %v1655_v13 = vmin.f32 %v788_v35, 16.0  ;;  %v596_v21 = vmul.f32 %v595_v46, %v1591_v40  ;;  %v753_v25 = vadd.f32 0.0036580483, %v752_v8  ;;  %v1679_v58 = vmul.f32 0.5, %v1549_v50 }
 0x1cc   : > { %v567_v62 = vpop.f32.mrf.mxu3  ;;  %v608_v63 = vadd.f32 0.4994258, %v607_v51  ;;  %v633_v1 = vadd.f32 0.0036580483, %v632_v41  ;;  %v644_v0 = vadd.f32 0.014752088, %v643_v54  ;;  %v716_v35 = vmul.f32 %v715_v24, %v1589_v55 }
 0x1cd   : > { %v790_v26 = vmul.f32 2.1237322e-06, %v1655_v13  ;;  %v1667_v7 = vadd.f32 %v1546_v19, %v567_v62  ;;  %v597_v34 = vadd.f32 0.18741608, %v596_v21  ;;  %v754_v43 = vmul.f32 %v753_v25, %v1617_v52 }
 0x1ce   : > { %v609_v32 = vmul.f32 %v608_v63, %v1591_v40  ;;  %v645_v61 = vmul.f32 %v644_v0, %v1627_v23  ;;  %v634_v33 = vmul.f32 %v633_v1, %v1627_v23  ;;  %v722_v54 = vadd.f32 0.001143296, %v721_v22 }
 0x1cf   : > { %v791_v53 = vadd.f32 0.00028619796, %v790_v26  ;;  %v1676_v41 = vmul.f32 0.70710677, %v1667_v7  ;;  %v1687_v63 = vmul.f32 0.5, %v1565_v18  ;;  %v598_v1 = vmul.f32 %v597_v34, %v1591_v40 }
 0x1d0   : > { %v1658_v15 = vadd.f32 1.0, %v609_v32  ;;  %v646_v49 = vadd.f32 0.112945676, %v645_v61  ;;  %v635_v31 = vadd.f32 0.05243302, %v634_v33  ;;  %v1693_v50 = vmul.f32 0.5, %v1573_v38 }
 0x1d1   : > { %v679_v6 = vadd.f32 1.1283791, %v678_v42  ;;  %v755_v46 = vadd.f32 0.05243302, %v754_v43  ;;  %v828_v18 = vmul.f32 %v1676_v41, %v1676_v41  ;;  %v723_v61 = vmul.f32 %v722_v54, %v1589_v55 }
 0x1d2   : > { %1247 = vrcp.f32 %v1658_v15  ;;  %v647_v28 = vmul.f32 %v646_v49, %v1627_v23  ;;  %v636_v62 = vmul.f32 %v635_v31, %v1627_v23  ;;  %v717_v40 = vadd.f32 0.18741608, %v716_v35 }
 0x1d3   : > { %1249 = vrcp.f32 %v1672_v48  ;;  %v599_v38 = vadd.f32 1.1283791, %v598_v1  ;;  %v622_v49 = vand.u32 2147483648, %v1658_v15  ;;  %v1707_v21 = vmul.f32 %v679_v6, %v1552_v45 }
 0x1d4   : > { %v648_v36 = vadd.f32 0.4994258, %v647_v28  ;;  %v569_v39 = vpop.f32.mrf.mxu3  ;;  %v637_v12 = vadd.f32 0.18741608, %v636_v62  ;;  %v620_v47 = vand.u32 2147483647, %v1658_v15  ;;  %v756_v25 = vmul.f32 %v755_v46, %v1617_v52 }
 0x1d5   : > { %v1684_v29 = vadd.f32 %v1546_v19, %v569_v39  ;;  %v792_v19 = vmul.f32 %v791_v53, %v1655_v13  ;;  %v1712_v27 = vmul.f32 0.5, %v1599_v59  ;;  %vm616_vm11 = vweird.f32 %v1658_v15 }
 0x1d6   : > { %v649_v51 = vmul.f32 %v648_v36, %v1627_v23  ;;  %v1717_v24 = vmin.f32 %v828_v18, 16.0  ;;  %v638_v31 = vmul.f32 %v637_v12, %v1627_v23  ;;  %v724_v34 = vadd.f32 0.014752088, %v723_v61 }
 0x1d7   : > { %v1703_v14 = vmul.f32 0.70710677, %v1684_v29  ;;  %v793_v22 = vadd.f32 0.0036580483, %v792_v19  ;;  %v761_v36 = vmul.f32 3.8918573e-05, %v1617_v52  ;;  %v1724_v59 = vmul.f32 %v717_v40, %v1589_v55 }
 0x1d8   : > { %v1248_v57 = vpop.eup %1247  ;;  %v1695_v32 = vadd.f32 1.0, %v649_v51  ;;  %v600_v39 = vmul.f32 %v599_v38, %v1581_v44  ;;  %v623_v43 = vor.u32 1.1754944e-38, %v622_v49  ;;  %vm621_vm13 = vcmp.eq.f32.partialorder %v620_v47, 8.507059e+37 }
 0x1d9   : > { %v612_v0 = vmul.f32 %v1248_v57, %v1658_v15  ;;  %vm617_vm0 = vweird.f32 %v1248_v57  ;;  %v1714_v28 = vpop.eup %1249  ;;  %v868_v45 = vmul.f32 %v1703_v14, %v1703_v14  ;;  %v725_v23 = vmul.f32 %v724_v34, %v1589_v55 }
 0x1da   : > { %1251 = vrcp.f32 %v1695_v32  ;;  %vm618_vm12 = vmor %vm616_vm11, %vm617_vm0  ;;  %v692_v51 = vmul.f32 %v1714_v28, %v1672_v48  ;;  %v762_v53 = vadd.f32 0.001143296, %v761_v36  ;;  %v1730_v35 = vadd.f32 0.18741608, %v756_v25 }
 0x1db   : > { %v613_v8 = vsub.f32 1.0, %v612_v0  ;;  %v830_v1 = vmul.f32 2.1237322e-06, %v1717_v24  ;;  %v639_v0 = vadd.f32 1.1283791, %v638_v31  ;;  %v794_v44 = vmul.f32 %v793_v22, %v1655_v13 }
 0x1dc   : > { %v726_v6 = vadd.f32 0.112945676, %v725_v23  ;;  %v763_v19 = vmul.f32 %v762_v53, %v1617_v52  ;;  %v801_v18 = vmul.f32 3.8918573e-05, %v1655_v13  ;;  %v662_v40 = vand.u32 2147483648, %v1695_v32 }
 0x1dd   : > { %v614_v33 = vmul.f32 %v1248_v57, %v613_v8  ;;  %v660_v8 = vand.u32 2147483647, %v1695_v32  ;;  %v693_v12 = vsub.f32 1.0, %v692_v51  ;;  %v640_v25 = vmul.f32 %v639_v0, %v1612_v60 }
 0x1de   : > { %v727_v38 = vmul.f32 %v726_v6, %v1589_v55  ;;  %v764_v49 = vadd.f32 0.014752088, %v763_v19  ;;  %v802_v47 = vadd.f32 0.001143296, %v801_v18  ;;  %vm656_vm15 = vweird.f32 %v1695_v32 }
 0x1df   : > { %v615_v26 = vadd.f32 %v1248_v57, %v614_v33  ;;  %vm661_vm1 = vcmp.eq.f32.partialorder %v660_v8, 8.507059e+37  ;;  %v841_v53 = vmul.f32 3.8918573e-05, %v1717_v24  ;;  %vm697_vm3 = vweird.f32 %v1714_v28 }
 0x1e0   : > { %v1252_v15 = vpop.eup %1251  ;;  %v728_v31 = vadd.f32 0.4994258, %v727_v38  ;;  %v765_v34 = vmul.f32 %v764_v49, %v1617_v52  ;;  %v803_v60 = vmul.f32 %v802_v47, %v1655_v13  ;;  %vm696_vm4 = vweird.f32 %v1672_v48 }
 0x1e1   : > { %v619_v42 = vsel %vm618_vm12, %v1248_v57, %v615_v26  ;;  %v652_v62 = vmul.f32 %v1252_v15, %v1695_v32  ;;  %v1735_v57 = vmin.f32 %v868_v45, 16.0  ;;  %vm657_vm14 = vweird.f32 %v1252_v15  ;;  %vm1762_vm5 = vmor %vm696_vm4, %vm697_vm3 }
 0x1e2   : > { %v624_v54 = vsel %vm621_vm13, %v623_v43, %v619_v42  ;;  %v831_v26 = vadd.f32 0.00028619796, %v830_v1  ;;  %vm658_vm2 = vmor %vm656_vm15, %vm657_vm14  ;;  %v694_v42 = vmul.f32 %v1714_v28, %v693_v12  ;;  %v729_v43 = vmul.f32 %v728_v31, %v1589_v55 }
 0x1e3   : > { %v653_v46 = vsub.f32 1.0, %v652_v62  ;;  %v625_v61 = vmul.f32 %v624_v54, %v600_v39  ;;  %v870_v22 = vmul.f32 2.1237322e-06, %v1735_v57  ;;  %v663_v39 = vor.u32 1.1754944e-38, %v662_v40 }
 0x1e4   : > { %v766_v23 = vadd.f32 0.112945676, %v765_v34  ;;  %v795_v62 = vadd.f32 0.05243302, %v794_v44  ;;  %v832_v32 = vmul.f32 %v831_v26, %v1717_v24  ;;  %v1751_v6 = vadd.f32 1.0, %v729_v43 }
 0x1e5   : > { %v654_v33 = vmul.f32 %v1252_v15, %v653_v46  ;;  %v1127_v36 = vclamps-f32 %v625_v61, 1.0  ;;  %v871_v1 = vadd.f32 0.00028619796, %v870_v22  ;;  %v804_v8 = vadd.f32 0.014752088, %v803_v60 }
 0x1e6   : > { %v767_v46 = vmul.f32 %v766_v23, %v1617_v52  ;;  %v695_v19 = vadd.f32 %v1714_v28, %v694_v42  ;;  %v842_v55 = vadd.f32 0.001143296, %v841_v53  ;;  %1253 = vrcp.f32 %v1751_v6 }
 0x1e7   : > { %v655_v45 = vadd.f32 %v1252_v15, %v654_v33  ;;  %v908_v18 = vadd.f32 1.0, %v1127_v36  ;;  %v796_v44 = vmul.f32 %v795_v62, %v1655_v13  ;;  %v700_v40 = vand.u32 2147483647, %v1672_v48 }
 0x1e8   : > { %v702_v12 = vand.u32 2147483648, %v1672_v48  ;;  %v768_v38 = vadd.f32 0.4994258, %v767_v46  ;;  %v833_v49 = vadd.f32 0.0036580483, %v832_v32  ;;  %v843_v26 = vmul.f32 %v842_v55, %v1717_v24 }
 0x1e9   : > { %v659_v51 = vsel %vm658_vm2, %v1252_v15, %v655_v45  ;;  %v881_v15 = vmul.f32 3.8918573e-05, %v1735_v57  ;;  %v872_v22 = vmul.f32 %v871_v1, %v1735_v57  ;;  %v699_v31 = vsel %vm1762_vm5, %v1714_v28, %v695_v19 }
 0x1ea   : > { %v664_v54 = vsel %vm661_vm1, %v663_v39, %v659_v51  ;;  %v769_v45 = vmul.f32 %v768_v38, %v1617_v52  ;;  %v916_v34 = vmul.f32 %v908_v18, %v1693_v50  ;;  %v844_v42 = vadd.f32 0.014752088, %v843_v26 }
 0x1eb   : > { %v665_v0 = vmul.f32 %v664_v54, %v640_v25  ;;  %v805_v25 = vmul.f32 %v804_v8, %v1655_v13  ;;  %v882_v48 = vadd.f32 0.001143296, %v881_v15  ;;  %v719_v43 = vadd.f32 1.1283791, %v1724_v59 }
 0x1ec   : > { %v703_v51 = vor.u32 1.1754944e-38, %v702_v12  ;;  %v1776_v23 = vadd.f32 1.0, %v769_v45  ;;  %v1254_v53 = vpop.eup %1253  ;;  %vm701_vm6 = vcmp.eq.f32.partialorder %v700_v40, 8.507059e+37  ;;  %v845_v62 = vmul.f32 %v844_v42, %v1717_v24 }
 0x1ed   : > { %v1128_v61 = vclamps-f32 %v665_v0, 1.0  ;;  %v806_v39 = vadd.f32 0.112945676, %v805_v25  ;;  %v883_v60 = vmul.f32 %v882_v48, %v1735_v57  ;;  %v758_v50 = vmul.f32 %v1730_v35, %v1617_v52 }
 0x1ee   : > { %v732_v32 = vmul.f32 %v1254_v53, %v1751_v6  ;;  %1255 = vrcp.f32 %v1776_v23  ;;  %v797_v59 = vadd.f32 0.18741608, %v796_v44  ;;  %v834_v1 = vmul.f32 %v833_v49, %v1717_v24 }
 0x1ef   : > { %v909_v33 = vadd.f32 1.0, %v1128_v61  ;;  %v807_v28 = vmul.f32 %v806_v39, %v1655_v13  ;;  %v873_v0 = vadd.f32 0.0036580483, %v872_v22  ;;  %v720_v8 = vmul.f32 %v719_v43, %v1570_v37 }
 0x1f0   : > { %v733_v19 = vsub.f32 1.0, %v732_v32  ;;  %v846_v55 = vadd.f32 0.112945676, %v845_v62  ;;  %v884_v15 = vadd.f32 0.014752088, %v883_v60  ;;  %v742_v35 = vand.u32 2147483648, %v1751_v6 }
 0x1f1   : > { %v917_v36 = vmul.f32 %v909_v33, %v1712_v27  ;;  %v704_v27 = vsel %vm701_vm6, %v703_v51, %v699_v31  ;;  %v808_v46 = vadd.f32 0.4994258, %v807_v28  ;;  %v740_v52 = vand.u32 2147483647, %v1751_v6 }
 0x1f2   : > { %v705_v18 = vmul.f32 %v704_v27, %v1707_v21  ;;  %v734_v40 = vmul.f32 %v1254_v53, %v733_v19  ;;  %vm737_vm7 = vweird.f32 %v1254_v53  ;;  %v847_v44 = vmul.f32 %v846_v55, %v1717_v24 }
 0x1f3   : > { %v924_v54 = vpack.c.bf16 %v917_v36, %v916_v34  ;;  %v809_v61 = vmul.f32 %v808_v46, %v1655_v13  ;;  %v885_v12 = vmul.f32 %v884_v15, %v1735_v57  ;;  %v759_v38 = vadd.f32 1.1283791, %v758_v50 }
 0x1f4   : > { %v835_v33 = vadd.f32 0.05243302, %v834_v1  ;;  %v874_v37 = vmul.f32 %v873_v0, %v1735_v57  ;;  %v1256_v47 = vpop.eup %1255  ;;  %v735_v21 = vadd.f32 %v1254_v53, %v734_v40  ;;  %vm736_vm8 = vweird.f32 %v1751_v6 }
 0x1f5   : > { %1004 = vmatmul.bf16.vlgmr.msrb.gmra.mxu0 %v924_v54  ;;  %v1794_v49 = vadd.f32 1.0, %v809_v61  ;;  %v848_v25 = vadd.f32 0.4994258, %v847_v44  ;;  %v886_v26 = vadd.f32 0.112945676, %v885_v12  ;;  %v798_v22 = vmul.f32 %v797_v59, %v1655_v13  ;;  %vm738_vm9 = vmor %vm736_vm8, %vm737_vm7 }
 0x1f6   : > { %v743_v31 = vor.u32 1.1754944e-38, %v742_v35  ;;  %v772_v45 = vmul.f32 %v1256_v47, %v1776_v23  ;;  %v1129_v48 = vclamps-f32 %v705_v18, 1.0  ;;  %v739_v34 = vsel %vm738_vm9, %v1254_v53, %v735_v21 }
 0x1f7   : > { %1257 = vrcp.f32 %v1794_v49  ;;  %vm741_vm10 = vcmp.eq.f32.partialorder %v740_v52, 8.507059e+37  ;;  %v849_v36 = vmul.f32 %v848_v25, %v1717_v24  ;;  %v875_v39 = vadd.f32 0.05243302, %v874_v37 }
 0x1f8   : > { %v744_v42 = vsel %vm741_vm10, %v743_v31, %v739_v34  ;;  %v773_v43 = vsub.f32 1.0, %v772_v45  ;;  %v887_v6 = vmul.f32 %v886_v26, %v1735_v57  ;;  %v836_v51 = vmul.f32 %v835_v33, %v1717_v24 }
 0x1f9   : > { %v745_v60 = vmul.f32 %v744_v42, %v720_v8  ;;  %v782_v13 = vand.u32 2147483648, %v1776_v23  ;;  %v1804_v54 = vadd.f32 1.0, %v849_v36  ;;  %vm777_vm0 = vweird.f32 %v1256_v47 }
 0x1fa   : > { %v774_v28 = vmul.f32 %v1256_v47, %v773_v43  ;;  %v780_v62 = vand.u32 2147483647, %v1776_v23  ;;  %v888_v53 = vadd.f32 0.4994258, %v887_v6  ;;  %v760_v50 = vmul.f32 %v759_v38, %v1603_v2 }
 0x1fb   : > { %v1130_v27 = vclamps-f32 %v745_v60, 1.0  ;;  %v910_v32 = vadd.f32 1.0, %v1129_v48  ;;  %1259 = vrcp.f32 %v1804_v54  ;;  %v876_v1 = vmul.f32 %v875_v39, %v1735_v57 }
 0x1fc   : > { %v775_v0 = vadd.f32 %v1256_v47, %v774_v28  ;;  %vm776_vm11 = vweird.f32 %v1776_v23  ;;  %v889_v46 = vmul.f32 %v888_v53, %v1735_v57  ;;  %v799_v8 = vadd.f32 1.1283791, %v798_v22 }
 0x1fd   : > { %v1258_v59 = vpop.eup %1257  ;;  %v911_v19 = vadd.f32 1.0, %v1130_v27  ;;  %vm778_vm12 = vmor %vm776_vm11, %vm777_vm0  ;;  %v783_v55 = vor.u32 1.1754944e-38, %v782_v13  ;;  %v837_v18 = vadd.f32 0.18741608, %v836_v51  ;;  %vm781_vm13 = vcmp.eq.f32.partialorder %v780_v62, 8.507059e+37 }
 0x1fe   : > { %v812_v15 = vmul.f32 %v1258_v59, %v1794_v49  ;;  %v779_v2 = vsel %vm778_vm12, %v1256_v47, %v775_v0  ;;  %v1813_v52 = vadd.f32 1.0, %v889_v46  ;;  %v918_v35 = vmul.f32 %v910_v32, %v1679_v58 }
 0x1ff   : > { %v919_v61 = vmul.f32 %v911_v19, %v1687_v63  ;;  %v784_v40 = vsel %vm781_vm13, %v783_v55, %v779_v2  ;;  %v877_v23 = vadd.f32 0.18741608, %v876_v1  ;;  %v820_v12 = vand.u32 2147483647, %v1794_v49 }
 0x200   : > { %v813_v44 = vsub.f32 1.0, %v812_v15  ;;  %v822_v38 = vand.u32 2147483648, %v1794_v49  ;;  %1261 = vrcp.f32 %v1813_v52  ;;  %v785_v21 = vmul.f32 %v784_v40, %v760_v50 }
 0x201   : > { %v1260_v33 = vpop.eup %1259  ;;  %v925_v37 = vpack.c.bf16 %v919_v61, %v918_v35  ;;  %vm817_vm14 = vweird.f32 %v1258_v59  ;;  %v800_v58 = vmul.f32 %v799_v8, %v1636_v30  ;;  %vm816_vm15 = vweird.f32 %v1794_v49 }
 0x202   : > { %v814_v47 = vmul.f32 %v1258_v59, %v813_v44  ;;  %v852_v25 = vmul.f32 %v1260_v33, %v1804_v54  ;;  %v838_v26 = vmul.f32 %v837_v18, %v1717_v24  ;;  %v878_v22 = vmul.f32 %v877_v23, %v1735_v57  ;;  %vm818_vm1 = vmor %vm816_vm15, %vm817_vm14 }
 0x203   : > { %1009 = vmatmul.bf16.vlgmr.msra.gmra.mxu1 %v925_v37  ;;  %v823_v31 = vor.u32 1.1754944e-38, %v822_v38  ;;  %v1131_v48 = vclamps-f32 %v785_v21, 1.0  ;;  %vm821_vm2 = vcmp.eq.f32.partialorder %v820_v12, 8.507059e+37  ;;  %v860_v36 = vand.u32 2147483647, %v1804_v54 }
 0x204   : > { %v815_v63 = vadd.f32 %v1258_v59, %v814_v47  ;;  %v853_v45 = vsub.f32 1.0, %v852_v25  ;;  %vm857_vm3 = vweird.f32 %v1260_v33  ;;  %v862_v30 = vand.u32 2147483648, %v1804_v54  ;;  %v1228_v37 = vld [vmem:[%s1881_s6] ss:$0 sm:$0xff] }
 0x205   : > { %v576_v49 = vmul.f32 0.5, %v1594_v56  ;;  %v577_v57 = vmul.f32 0.5, %v1625_v20  ;;  %v839_v51 = vadd.f32 1.1283791, %v838_v26  ;;  %vm856_vm4 = vweird.f32 %v1804_v54 }
 0x206   : > { %v819_v34 = vsel %vm818_vm1, %v1258_v59, %v815_v63  ;;  %v1262_v39 = vpop.eup %1261  ;;  %v854_v43 = vmul.f32 %v1260_v33, %v853_v45  ;;  %v879_v13 = vadd.f32 1.1283791, %v878_v22  ;;  %v912_v62 = vadd.f32 1.0, %v1131_v48  ;;  %vm858_vm5 = vmor %vm856_vm4, %vm857_vm3 }
 0x207   : > { %v824_v42 = vsel %vm821_vm2, %v823_v31, %v819_v34  ;;  %v892_v24 = vmul.f32 %v1262_v39, %v1813_v52  ;;  %vm861_vm6 = vcmp.eq.f32.partialorder %v860_v36, 8.507059e+37  ;;  %v863_v27 = vor.u32 1.1754944e-38, %v862_v30 }
 0x208   : > { %v825_v6 = vmul.f32 %v824_v42, %v800_v58  ;;  %v855_v60 = vadd.f32 %v1260_v33, %v854_v43  ;;  %v902_v32 = vand.u32 2147483648, %v1813_v52  ;;  %vm897_vm7 = vweird.f32 %v1262_v39 }
 0x209   : > { %v893_v53 = vsub.f32 1.0, %v892_v24  ;;  %v900_v1 = vand.u32 2147483647, %v1813_v52  ;;  %v840_v20 = vmul.f32 %v839_v51, %v1676_v41  ;;  %v920_v46 = vmul.f32 %v912_v62, %v576_v49 }
 0x20a   : > { %v1132_v28 = vclamps-f32 %v825_v6, 1.0  ;;  %v859_v50 = vsel %vm858_vm5, %v1260_v33, %v855_v60  ;;  %vm896_vm8 = vweird.f32 %v1813_v52  ;;  %v880_v19 = vmul.f32 %v879_v13, %v1703_v14 }
 0x20b   : > { %v894_v59 = vmul.f32 %v1262_v39, %v893_v53  ;;  %v864_v0 = vsel %vm861_vm6, %v863_v27, %v859_v50  ;;  %vm898_vm9 = vmor %vm896_vm8, %vm897_vm7  ;;  %v903_v55 = vor.u32 1.1754944e-38, %v902_v32  ;;  %vm901_vm10 = vcmp.eq.f32.partialorder %v900_v1, 8.507059e+37 }
 0x20c   : > { %v913_v56 = vadd.f32 1.0, %v1132_v28  ;;  %v865_v18 = vmul.f32 %v864_v0, %v840_v20  ;;  %v579_v23 = vmul.f32 0.5, %v1684_v29  ;;  %v578_v52 = vmul.f32 0.5, %v1667_v7 }
 0x20d   : > { %v895_v8 = vadd.f32 %v1262_v39, %v894_v59  ;;  %vm1041_vm0 = vcmask 257024  }
 0x20e   : > { %v921_v54 = vmul.f32 %v913_v56, %v577_v57  ;;  %v1133_v40 = vclamps-f32 %v865_v18, 1.0 }
 0x20f   : > { %v899_v2 = vsel %vm898_vm9, %v1262_v39, %v895_v8 }
 0x210   : > { %v926_v15 = vpack.c.bf16 %v921_v54, %v920_v46  ;;  %v904_v35 = vsel %vm901_vm10, %v903_v55, %v899_v2  ;;  %v914_v12 = vadd.f32 1.0, %v1133_v40 }
 0x211   : > { %v905_v61 = vmul.f32 %v904_v35, %v880_v19 }
 0x212   : > { %1014 = vmatmul.bf16.vlgmr.msra.gmra.mxu2 %v926_v15  ;;  %v922_v14 = vmul.f32 %v914_v12, %v578_v52 }
 0x213   : > { %v1134_v41 = vclamps-f32 %v905_v61, 1.0 }
 0x215   : > { %v915_v44 = vadd.f32 1.0, %v1134_v41 }
 0x217   : > { %v923_v38 = vmul.f32 %v915_v44, %v579_v23 }
 0x219   : > { %v927_v33 = vpack.c.bf16 %v923_v38, %v922_v14 }
 0x222   : > { %1019 = vmatmul.bf16.gmra.mxu2 %v927_v33 }
 0x272   : > { %v1005_v21 = vpop.f32.mrf.mxu0 }
 0x273   : > { %v1006_v47 = vadd.f32 %v1228_v37, %v1005_v21 }
 0x275   : > { %v1025_v25 = vadd.f32 %v1354_v17, %v1006_v47 }
 0x277   : > { %v1033_v58 = vpack.c.bf16 %v1025_v25, %v1025_v25 }
 0x279   : > { %1042 = vst.msk [vmem:[%s1847_s18] sm:$0xf] %vm1041_vm0, %v1033_v58 }
 0x27a   : > { %v1007_v7 = vpop.f32.mrf.mxu0 }
 0x27b   : > { %v1008_v29 = vadd.f32 %v1228_v37, %v1007_v7 }
 0x27d   : > { %v1026_v63 = vadd.f32 %v1352_v16, %v1008_v29 }
 0x27f   : > { %v1034_v26 = vpack.c.bf16 %v1026_v63, %v1026_v63 }
 0x280   : > { %v1010_v17 = vpop.f32.mrf.mxu1 }
 0x281   : > { %1043 = vst.msk [vmem:[%s1847_s18 + $0x4] sm:$0xf] %vm1041_vm0, %v1034_v26  ;;  %v1011_v22 = vadd.f32 %v1228_v37, %v1010_v17 }
 0x283   : > { %v1027_v31 = vadd.f32 %v1332_v5, %v1011_v22 }
 0x285   : > { %v1035_v45 = vpack.c.bf16 %v1027_v31, %v1027_v31 }
 0x287   : > { %1044 = vst.msk [vmem:[%s1847_s18 + $0x8] sm:$0xf] %vm1041_vm0, %v1035_v45 }
 0x288   : > { %v1012_v48 = vpop.f32.mrf.mxu1 }
 0x289   : > { %v1013_v34 = vadd.f32 %v1228_v37, %v1012_v48 }
 0x28b   : > { %v1028_v36 = vadd.f32 %v1344_v11, %v1013_v34 }
 0x28d   : > { %v1036_v39 = vpack.c.bf16 %v1028_v36, %v1028_v36 }
 0x28f   : > { %1045 = vst.msk [vmem:[%s1847_s18 + $0xc] sm:$0xf] %vm1041_vm0, %v1036_v39 }
 0x295   : > { %v1015_v16 = vpop.f32.mrf.mxu2 }
 0x296   : > { %v1016_v42 = vadd.f32 %v1228_v37, %v1015_v16 }
 0x298   : > { %v1029_v43 = vadd.f32 %v1330_v4, %v1016_v42 }
 0x29a   : > { %v1037_v30 = vpack.c.bf16 %v1029_v43, %v1029_v43 }
 0x29c   : > { %1046 = vst.msk [vmem:[%s1847_s18 + $0x10] sm:$0xf] %vm1041_vm0, %v1037_v30 }
 0x29d   : > { %v1017_v5 = vpop.f32.mrf.mxu2 }
 0x29e   : > { %v1018_v49 = vadd.f32 %v1228_v37, %v1017_v5 }
 0x2a0   : > { %v1030_v6 = vadd.f32 %v1342_v10, %v1018_v49 }
 0x2a2   : > { %v1038_v24 = vpack.c.bf16 %v1030_v6, %v1030_v6 }
 0x2a4   : > { %1047 = vst.msk [vmem:[%s1847_s18 + $0x14] sm:$0xf] %vm1041_vm0, %v1038_v24 }
 0x2a5   : > { %v1020_v11 = vpop.f32.mrf.mxu2 }
 0x2a6   : > { %v1021_v57 = vadd.f32 %v1228_v37, %v1020_v11 }
 0x2a8   : > { %v1031_v51 = vadd.f32 %v1328_v3, %v1021_v57 }
 0x2aa   : > { %v1039_v60 = vpack.c.bf16 %v1031_v51, %v1031_v51 }
 0x2ac   : > { %1048 = vst.msk [vmem:[%s1847_s18 + $0x18] sm:$0xf] %vm1041_vm0, %v1039_v60 }
 0x2ad   : > { %v1022_v13 = vpop.f32.mrf.mxu2 }
 0x2ae   : > { %v1023_v4 = vadd.f32 %v1228_v37, %v1022_v13 }
 0x2b0   : > { %v1032_v28 = vadd.f32 %v1340_v9, %v1023_v4 }
 0x2b2   : > { %v1040_v62 = vpack.c.bf16 %v1032_v28, %v1032_v28 }
 0x2b4   : > { %1049 = vst.msk [vmem:[%s1847_s18 + $0x1c] sm:$0xf] %vm1041_vm0, %v1040_v62 }
 0x2b5 PF: > { %s17_s24 = sadd.s32 1, %s1269_s24  }
 0x2b6   : > { %p14_p4 = scmp.ge.s32.totalorder %s17_s24, 4  }
 0x2b8   :  { %16 = sbr.rel (!%p14_p4) target bundleno = 1 (0x1), region = 78 }

// kernel: dinat_forward.17
= control target key start
LH: loop header
LB: loop body
LE: loop exit
PB: predicated region body
PF: predicated region fallthrough
CT: control target
= control target key end

     0   :  { %s3715_s30 = smov 0   ;;  %s3717_s10 = smov 0   ;;  %s5749_s0 = inlined_call_operand.vmem [shape: bf16[2,64,32], index: 0, kind: input, shape index: {}]   ;;  %s5750_s1 = inlined_call_operand.vmem [shape: bf16[2,64,288], index: 1, kind: input, shape index: {}]   ;;  %s5751_s2 = inlined_call_operand.vmem [shape: bf16[2,64,288], index: 2, kind: input, shape index: {}]   ;;  %s5752_s3 = inlined_call_operand.vmem [shape: f32[64,18], index: 3, kind: input, shape index: {}]   ;;  %s5753_s4 = inlined_call_operand.vmem [shape: bf16[32,2], index: 4, kind: input, shape index: {}]   ;;  %s5754_s5 = inlined_call_operand.vmem [shape: bf16[2,32], index: 5, kind: input, shape index: {}]   ;;  %s5755_s6 = inlined_call_operand.vmem [shape: bf16[32,32], index: 6, kind: input, shape index: {}]   ;;  %s5756_s7 = inlined_call_operand.vmem [shape: f32[1,32], index: 7, kind: input, shape index: {}]   ;;  %s5757_s8 = inlined_call_operand.vmem [shape: bf16[2,64,32], index: 8, kind: input, shape index: {}]   ;;  %s5758_s9 = inlined_call_operand.vmem [shape: bf16[2,64,32], index: 9, kind: output, shape index: {}]  }
   0x1   :  { %s3719_s11 = smov 0  }
   0x2 LB: > { %s31_s12 = sadd.s32 1, %s3648_s10  ;;  %p3039_p0 = scmp.ge.s32.totalorder %s3652_s11, 1  ;;  %s3652_s11 = sphi %s3719_s11, %s19_s11   ;;  %s3648_s10 = sphi %s3717_s10, %s5984_s10   ;;  %s3644_s30 = sphi %s3715_s30, %s5983_s30  }
   0x3   : > { %p33_p1 = scmp.ge.s32.totalorder %s31_s12, 2  ;;  %p372_p2 = scmp.lt.s32.totalorder %s3652_s11, 3 }
   0x5   : > { %s5986_s12 = smov (%p33_p1, %s31_s12), 0  ;;  %p373_p3 = pnand %p3039_p0, %p372_p2 }
   0x7   : > { %376 = sbr.rel (%p373_p3) target bundleno = 912 (0x390), region = 56 }
   0xc   : > { %p451_p4 = scmp.lt.s32.totalorder %s3644_s30, 1  ;;  %s3654_s17 = smov 32   ;;  %v3822_v25 = vld [vmem:[%s5753_s4 + $0x8] sm:$0xff]  ;;  %v3828_v26 = vld [vmem:[%s5753_s4] sm:$0xff]  ;;  %vm569_vm0 = vcmask 261120   ;;  %vm1957_vm1 = vcmask 1040384  }
   0xd   : > { %s3655_s18 = smov 96   ;;  %s5759_s19 = smov 64   ;;  %3187 = vmatpush.bf16.msra.mxu3 %v3822_v25  ;;  %588 = vmatpush.bf16.msra.mxu0 %v3822_v25  ;;  %v3900_v49 = vld [vmem:[%s5752_s3 + $0x8] sm:$0xff]  ;;  %v3905_v50 = vld [vmem:[%s5752_s3] sm:$0xff]  ;;  %vm1944_vm2 = vcmask 15360   ;;  %vm2863_vm3 = vcmask 257024  }
   0xe   : > { %s5988_s30 = smov (!%p451_p4, %s3644_s30), 1  ;;  %3189 = vmatpush.bf16.msra.mxu1 %v3822_v25  ;;  %3191 = vmatpush.bf16.msra.mxu2 %v3822_v25  ;;  %s3657_s21 = smov 124  }
   0xf   : > { %s3193_s13 = smul.u32 96, %s5988_s30  ;;  %s3806_s20 = sshll.u32 %s5988_s30, 5 }
  0x10   : > { %s3813_s23 = scalar_lea.vmem %s5749_s0, %s3806_s20  ;;  %s3658_s22 = smov 126  }
  0x11   : > { %s3741_s16 = scalar_lea.vmem %s5750_s1, %s3193_s13  ;;  %v3181_v27 = vld [vmem:[%s3813_s23 + $0x8] sm:$0xff]   ;;  %3188 = vmatpush.bf16.msra.mxu3 %v3828_v26  ;;  %589 = vmatpush.bf16.msra.mxu0 %v3828_v26  ;;  %v3182_v39 = vld [vmem:[%s3813_s23 + $0x10] sm:$0xff]   ;;  %v3150_v46 = vld [vmem:[%s3813_s23] sm:$0xff]   ;;  %s3659_s24 = smov 122  }
  0x12   : > { %v3744_v0 = vld [vmem:[%s3741_s16 + $0x18] sm:$0xff]   ;;  %v3747_v1 = vld [vmem:[%s3741_s16 + $0x24] sm:$0xff]   ;;  %v3755_v5 = vld [vmem:[%s3741_s16 + $0xc] sm:$0xff]   ;;  %v3836_v29 = vunpack.c.l.bf16 %v3181_v27  ;;  %v3838_v30 = vunpack.c.h.bf16 %v3181_v27  ;;  %3190 = vmatpush.bf16.msra.mxu1 %v3828_v26  ;;  %3192 = vmatpush.bf16.msra.mxu2 %v3828_v26  ;;  %v3878_v41 = vunpack.c.l.bf16 %v3182_v39  ;;  %v3880_v42 = vunpack.c.h.bf16 %v3182_v39  ;;  %s3661_s25 = smov 120   ;;  %s3662_s26 = smov 116  }
  0x13   : > { %v3750_v2 = vld [vmem:[%s3741_s16] sm:$0xff]   ;;  %v539_v3 = vunpack.c.l.bf16 %v3744_v0  ;;  %v540_v4 = vunpack.c.l.bf16 %v3747_v1  ;;  %v538_v7 = vunpack.c.l.bf16 %v3755_v5  ;;  %v3767_v10 = vld [vmem:[%s3741_s16 + $0x30] sm:$0xff]   ;;  %v3782_v15 = vld [vmem:[%s3741_s16 + $0x48] sm:$0xff]   ;;  %v1011_v21 = vunpack.c.h.bf16 %v3755_v5  ;;  %s3663_s27 = smov 112   ;;  %s3664_s28 = smov 114  }
  0x14   : > { %v537_v6 = vunpack.c.l.bf16 %v3750_v2  ;;  %v3770_v11 = vld [vmem:[%s3741_s16 + $0x3c] sm:$0xff]   ;;  %v541_v12 = vunpack.c.l.bf16 %v3767_v10  ;;  %v3785_v16 = vld [vmem:[%s3741_s16 + $0x54] sm:$0xff]   ;;  %v543_v17 = vunpack.c.l.bf16 %v3782_v15  ;;  %v1010_v20 = vunpack.c.h.bf16 %v3750_v2  ;;  %v4065_v2 = vld [vmem:[%s5752_s3 + $0x28] sm:$0xff]  ;;  %s5938_s30 = smov 64  }
  0x15   : > { %v3249_v8 = vpack.i.bf16 %v540_v4, %v539_v3  ;;  %v542_v13 = vunpack.c.l.bf16 %v3770_v11  ;;  %v544_v18 = vunpack.c.l.bf16 %v3785_v16  ;;  %v1012_v23 = vunpack.c.h.bf16 %v3744_v0  ;;  %939 = vmatpush.bf16.msrb.mxu3 %v3822_v25  ;;  %697 = vmatpush.bf16.msrb.mxu0 %v3822_v25  ;;  %v3183_v54 = vld [vmem:[%s3813_s23 + $0x18] sm:$0xff]   ;;  %s3660_s23 = smov 118  }
  0x16   : > { %v3239_v9 = vpack.i.bf16 %v538_v7, %v537_v6  ;;  %v3299_v22 = vpack.i.bf16 %v1011_v21, %v1010_v20  ;;  %v1013_v24 = vunpack.c.h.bf16 %v3747_v1  ;;  %v547_v31 = vmul.f32 %v3836_v29, %v539_v3  ;;  %1173 = vmatpush.bf16.msrb.mxu1 %v3822_v25  ;;  %1290 = vmatpush.bf16.msrb.mxu2 %v3822_v25 }
  0x17   : > { %3250 = vrot.lane.b32.xlu2 %v3249_v8, %s3654_s17  ;;  %v3269_v14 = vpack.i.bf16 %v542_v13, %v541_v12  ;;  %v3284_v19 = vpack.i.bf16 %v544_v18, %v543_v17  ;;  %v548_v32 = vmul.f32 %v3838_v30, %v540_v4  ;;  %v1014_v34 = vunpack.c.h.bf16 %v3767_v10 }
  0x18   : > { %3240 = vrot.lane.b32.xlu1 %v3239_v9, %s3654_s17  ;;  %3230 = vrot.lane.b32.xlu0 %v3239_v9, %s3655_s18  ;;  %v3314_v28 = vpack.i.bf16 %v1013_v24, %v1012_v23  ;;  %v1015_v35 = vunpack.c.h.bf16 %v3770_v11  ;;  %v1016_v37 = vunpack.c.h.bf16 %v3782_v15  ;;  %v1017_v38 = vunpack.c.h.bf16 %v3785_v16 }
  0x19   : > { %v554_v33 = vpack.c.bf16 %v548_v32, %v547_v31  ;;  %940 = vmatpush.bf16.msrb.mxu3 %v3828_v26  ;;  %698 = vmatpush.bf16.msrb.mxu0 %v3828_v26  ;;  %v549_v43 = vmul.f32 %v3878_v41, %v541_v12  ;;  %v550_v44 = vmul.f32 %v3880_v42, %v542_v13  ;;  %v3893_v47 = vunpack.c.l.bf16 %v3150_v46 }
  0x1a   : > { %v3329_v36 = vpack.i.bf16 %v1015_v35, %v1014_v34  ;;  %1174 = vmatpush.bf16.msrb.mxu1 %v3828_v26  ;;  %1291 = vmatpush.bf16.msrb.mxu2 %v3828_v26  ;;  %v3344_v40 = vpack.i.bf16 %v1017_v38, %v1016_v37  ;;  %v3895_v48 = vunpack.c.h.bf16 %v3150_v46  ;;  %v3922_v55 = vunpack.c.l.bf16 %v3183_v54 }
  0x1b   : > { %3057 = vmatmul.msk.bf16.vlgmr.msra.gmra.mxu3 %vm569_vm0, %v554_v33  ;;  %v555_v45 = vpack.c.bf16 %v550_v44, %v549_v43  ;;  %v545_v51 = vmul.f32 %v3893_v47, %v537_v6  ;;  %v3924_v56 = vunpack.c.h.bf16 %v3183_v54  ;;  %v3965_v6 = vld [vmem:[%s5752_s3 + $0x10] sm:$0xff] }
  0x1c   : > { %v546_v52 = vmul.f32 %v3895_v48, %v538_v7  ;;  %v551_v57 = vmul.f32 %v3922_v55, %v543_v17 }
  0x1d   : > { %1407 = vmatpush.bf16.msra.mxu3 %v3822_v25  ;;  %v552_v58 = vmul.f32 %v3924_v56, %v544_v18 }
  0x1e   : > { %v553_v53 = vpack.c.bf16 %v546_v52, %v545_v51 }
  0x1f   : > { %3255 = vrot.lane.b32.xlu2 %v3249_v8, %s3655_s18  ;;  %v556_v59 = vpack.c.bf16 %v552_v58, %v551_v57 }
  0x20   : > { %3245 = vrot.lane.b32.xlu1 %v3249_v8, %s5759_s19  ;;  %3235 = vrot.lane.b32.xlu0 %v3239_v9, %s5759_s19  ;;  %v3970_v8 = vld [vmem:[%s5752_s3 + $0x18] sm:$0xff] }
  0x21   : > { %1408 = vmatpush.bf16.msra.mxu3 %v3828_v26  ;;  %3056 = vmatmul.msk.bf16.vlgmr.msra.gmra.mxu0 %vm569_vm0, %v553_v53 }
  0x22   : > { %822 = vmatpush.bf16.msra.mxu0 %v3822_v25 }
  0x26   : > { %823 = vmatpush.bf16.msra.mxu0 %v3828_v26 }
  0x27   : > { %3270 = vrot.lane.b32.xlu2 %v3269_v14, %s3655_s18 }
  0x28   : > { %3265 = vrot.lane.b32.xlu1 %v3269_v14, %s3654_s17  ;;  %3260 = vrot.lane.b32.xlu0 %v3269_v14, %s5759_s19 }
  0x2b   : > { %3058 = vmatmul.msk.bf16.gmra.mxu3 %vm569_vm0, %v555_v45 }
  0x2f   : > { %3285 = vrot.lane.b32.xlu2 %v3284_v19, %s3655_s18 }
  0x30   : > { %3280 = vrot.lane.b32.xlu1 %v3284_v19, %s3654_s17  ;;  %3275 = vrot.lane.b32.xlu0 %v3284_v19, %s5759_s19 }
  0x37   : > { %3300 = vrot.lane.b32.xlu2 %v3299_v22, %s3655_s18 }
  0x38   : > { %3295 = vrot.lane.b32.xlu1 %v3299_v22, %s3654_s17  ;;  %3290 = vrot.lane.b32.xlu0 %v3299_v22, %s5759_s19 }
  0x3b   : > { %3059 = vmatmul.msk.bf16.gmra.mxu3 %vm569_vm0, %v556_v59 }
  0x3f   : > { %3315 = vrot.lane.b32.xlu2 %v3314_v28, %s3655_s18 }
  0x40   : > { %3310 = vrot.lane.b32.xlu1 %v3314_v28, %s3654_s17  ;;  %3305 = vrot.lane.b32.xlu0 %v3314_v28, %s5759_s19 }
  0x47   : > { %3330 = vrot.lane.b32.xlu2 %v3329_v36, %s3655_s18 }
  0x48   : > { %3325 = vrot.lane.b32.xlu1 %v3329_v36, %s3654_s17  ;;  %3320 = vrot.lane.b32.xlu0 %v3329_v36, %s5759_s19 }
  0x4f   : > { %3345 = vrot.lane.b32.xlu2 %v3344_v40, %s3655_s18 }
  0x50   : > { %3340 = vrot.lane.b32.xlu1 %v3344_v40, %s3654_s17  ;;  %3335 = vrot.lane.b32.xlu0 %v3344_v40, %s5759_s19 }
  0x57   : > { %853 = vrot.lane.b32.xlu2 %v3905_v50, %s3657_s21 }
  0x58   : > { %738 = vrot.lane.b32.xlu1 %v3900_v49, %s3658_s22  ;;  %736 = vrot.lane.b32.xlu0 %v3905_v50, %s3658_s22 }
  0x5f   : > { %972 = vrot.lane.b32.xlu2 %v3900_v49, %s3659_s24 }
  0x60   : > { %970 = vrot.lane.b32.xlu1 %v3905_v50, %s3659_s24  ;;  %855 = vrot.lane.b32.xlu0 %v3900_v49, %s3657_s21 }
  0x67   : > { %1204 = vrot.lane.b32.xlu2 %v3905_v50, %s3660_s23 }
  0x68   : > { %1081 = vrot.lane.b32.xlu1 %v3900_v49, %s3661_s25  ;;  %1079 = vrot.lane.b32.xlu0 %v3905_v50, %s3661_s25 }
  0x6f   : > { %1323 = vrot.lane.b32.xlu2 %v3900_v49, %s3662_s26 }
  0x70   : > { %1321 = vrot.lane.b32.xlu1 %v3905_v50, %s3662_s26  ;;  %1206 = vrot.lane.b32.xlu0 %v3900_v49, %s3660_s23 }
  0x71   : > { %v3952_v60 = vpop.permute.xlu2 %3250 }
  0x77   : > { %1547 = vrot.lane.b32.xlu2 %v3905_v50, %s3663_s27 }
  0x78   : > { %1440 = vrot.lane.b32.xlu1 %v3900_v49, %s3664_s28  ;;  %1438 = vrot.lane.b32.xlu0 %v3905_v50, %s3664_s28 }
  0x79   : > { %v3256_v61 = vpop.permute.xlu2 %3255 }
  0x7a   : > { %v3258_v62 = vunpack.i.h.bf16 %v3256_v61  ;;  %v3257_v63 = vunpack.i.l.bf16 %v3256_v61 }
  0x7c   : > { %v669_v3 = vmul.f32 %v3257_v63, %v3836_v29  ;;  %v670_v4 = vmul.f32 %v3258_v62, %v3838_v30 }
  0x7e   : > { %v676_v7 = vpack.c.bf16 %v670_v4, %v669_v3  ;;  %v3253_v3 = vunpack.i.h.bf16 %v3952_v60  ;;  %v3252_v4 = vunpack.i.l.bf16 %v3952_v60 }
  0x7f   : > { %742 = vrot.lane.b32.xlu2 %v3970_v8, %s3658_s22 }
  0x80   : > { %740 = vrot.lane.b32.xlu1 %v3965_v6, %s3658_s22  ;;  %1549 = vrot.lane.b32.xlu0 %v3900_v49, %s3663_s27 }
  0x81   : > { %3061 = vmatmul.msk.bf16.vlgmr.msra.gmra.mxu1 %vm569_vm0, %v676_v7  ;;  %v3271_v9 = vpop.permute.xlu2 %3270 }
  0x82   : > { %v3273_v12 = vunpack.i.h.bf16 %v3271_v9  ;;  %v3272_v13 = vunpack.i.l.bf16 %v3271_v9 }
  0x84   : > { %v671_v14 = vmul.f32 %v3272_v13, %v3878_v41  ;;  %v672_v17 = vmul.f32 %v3273_v12, %v3880_v42 }
  0x86   : > { %v677_v33 = vpack.c.bf16 %v672_v17, %v671_v14  ;;  %v911_v17 = vmul.f32 %v3252_v4, %v3836_v29 }
  0x87   : > { %974 = vrot.lane.b32.xlu2 %v3965_v6, %s3659_s24 }
  0x88   : > { %859 = vrot.lane.b32.xlu1 %v3970_v8, %s3657_s21  ;;  %857 = vrot.lane.b32.xlu0 %v3965_v6, %s3657_s21 }
  0x89   : > { %v3286_v18 = vpop.permute.xlu2 %3285 }
  0x8a   : > { %v3241_v19 = vpop.permute.xlu1 %3240  ;;  %v3231_v22 = vpop.permute.xlu0 %3230  ;;  %v3288_v57 = vunpack.i.h.bf16 %v3286_v18  ;;  %v3287_v58 = vunpack.i.l.bf16 %v3286_v18  ;;  %v912_v18 = vmul.f32 %v3253_v3, %v3838_v30 }
  0x8b   : > { %v3243_v27 = vunpack.i.h.bf16 %v3241_v19  ;;  %v3242_v28 = vunpack.i.l.bf16 %v3241_v19  ;;  %v3233_v31 = vunpack.i.h.bf16 %v3231_v22  ;;  %v3232_v32 = vunpack.i.l.bf16 %v3231_v22 }
  0x8c   : > { %v673_v13 = vmul.f32 %v3287_v58, %v3922_v55  ;;  %v674_v60 = vmul.f32 %v3288_v57, %v3924_v56  ;;  %v4038_v57 = vld [vmem:[%s5752_s3 + $0x20] sm:$0xff]  ;;  %v1018_v58 = vmul.f32 %v3893_v47, %v1010_v20 }
  0x8d   : > { %v909_v36 = vmul.f32 %v3242_v28, %v3893_v47  ;;  %v910_v39 = vmul.f32 %v3243_v27, %v3895_v48  ;;  %v667_v40 = vmul.f32 %v3232_v32, %v3893_v47  ;;  %v668_v43 = vmul.f32 %v3233_v31, %v3895_v48 }
  0x8e   : > { %v678_v32 = vpack.c.bf16 %v674_v60, %v673_v13 }
  0x8f   : > { %v917_v44 = vpack.c.bf16 %v910_v39, %v909_v36  ;;  %v675_v45 = vpack.c.bf16 %v668_v43, %v667_v40  ;;  %1085 = vrot.lane.b32.xlu2 %v3970_v8, %s3661_s25 }
  0x90   : > { %1083 = vrot.lane.b32.xlu1 %v3965_v6, %s3661_s25  ;;  %976 = vrot.lane.b32.xlu0 %v3970_v8, %s3659_s24 }
  0x91   : > { %3060 = vmatmul.msk.bf16.vlgmr.msrb.gmra.mxu0 %vm569_vm0, %v675_v45  ;;  %3062 = vmatmul.msk.bf16.gmra.mxu1 %vm569_vm0, %v677_v33  ;;  %v3301_v46 = vpop.permute.xlu2 %3300  ;;  %v918_v33 = vpack.c.bf16 %v912_v18, %v911_v17 }
  0x92   : > { %3068 = vmatmul.msk.bf16.vlgmr.msrb.gmra.mxu3 %vm569_vm0, %v917_v44  ;;  %v3246_v51 = vpop.permute.xlu1 %3245  ;;  %v3236_v52 = vpop.permute.xlu0 %3235  ;;  %1048 = vmatpush.bf16.msrb.mxu0 %v3822_v25  ;;  %v3303_v45 = vunpack.i.h.bf16 %v3301_v46 }
  0x93   : > { %v3248_v53 = vunpack.i.h.bf16 %v3246_v51  ;;  %v3247_v54 = vunpack.i.l.bf16 %v3246_v51  ;;  %v3238_v62 = vunpack.i.h.bf16 %v3236_v52  ;;  %v3237_v63 = vunpack.i.l.bf16 %v3236_v52 }
  0x94   : > { %v3302_v51 = vunpack.i.l.bf16 %v3301_v46  ;;  %v1144_v46 = vmul.f32 %v3303_v45, %v3895_v48 }
  0x95   : > { %v794_v59 = vmul.f32 %v3247_v54, %v3836_v29  ;;  %v795_v61 = vmul.f32 %v3248_v53, %v3838_v30  ;;  %v792_v9 = vmul.f32 %v3237_v63, %v3893_v47  ;;  %v793_v12 = vmul.f32 %v3238_v62, %v3895_v48 }
  0x96   : > { %1049 = vmatpush.bf16.msrb.mxu0 %v3828_v26 }
  0x97   : > { %v801_v7 = vpack.c.bf16 %v795_v61, %v794_v59  ;;  %1325 = vrot.lane.b32.xlu2 %v3965_v6, %s3662_s26  ;;  %v800_v27 = vpack.c.bf16 %v793_v12, %v792_v9 }
  0x98   : > { %1210 = vrot.lane.b32.xlu1 %v3970_v8, %s3660_s23  ;;  %1208 = vrot.lane.b32.xlu0 %v3965_v6, %s3660_s23 }
  0x99   : > { %3065 = vmatmul.msk.bf16.vlgmr.msra.gmra.mxu2 %vm569_vm0, %v801_v7  ;;  %v4017_v14 = vpop.permute.xlu2 %3315 }
  0x9a   : > { %v3266_v19 = vpop.permute.xlu1 %3265  ;;  %v3261_v22 = vpop.permute.xlu0 %3260  ;;  %v3318_v18 = vunpack.i.h.bf16 %v4017_v14 }
  0x9b   : > { %v3263_v28 = vunpack.i.h.bf16 %v3261_v22  ;;  %v3262_v31 = vunpack.i.l.bf16 %v3261_v22  ;;  %v3268_v53 = vunpack.i.h.bf16 %v3266_v19  ;;  %v3267_v54 = vunpack.i.l.bf16 %v3266_v19 }
  0x9c   : > { %v3317_v19 = vunpack.i.l.bf16 %v4017_v14  ;;  %v1020_v14 = vmul.f32 %v3836_v29, %v1012_v23 }
  0x9d   : > { %v796_v36 = vmul.f32 %v3262_v31, %v3878_v41  ;;  %v797_v39 = vmul.f32 %v3263_v28, %v3880_v42  ;;  %v913_v61 = vmul.f32 %v3267_v54, %v3878_v41  ;;  %v914_v62 = vmul.f32 %v3268_v53, %v3880_v42 }
  0x9e   : > { %v1145_v31 = vmul.f32 %v3317_v19, %v3836_v29 }
  0x9f   : > { %1444 = vrot.lane.b32.xlu2 %v3970_v8, %s3664_s28  ;;  %v802_v52 = vpack.c.bf16 %v797_v39, %v796_v36  ;;  %v919_v20 = vpack.c.bf16 %v914_v62, %v913_v61 }
  0xa0   : > { %1442 = vrot.lane.b32.xlu1 %v3965_v6, %s3664_s28  ;;  %1327 = vrot.lane.b32.xlu0 %v3970_v8, %s3662_s26 }
  0xa1   : > { %3063 = vmatmul.msk.bf16.gmra.mxu1 %vm569_vm0, %v678_v32  ;;  %3064 = vmatmul.msk.bf16.vlgmr.msra.gmra.mxu0 %vm569_vm0, %v800_v27  ;;  %v4031_v40 = vpop.permute.xlu2 %3330  ;;  %v1146_v32 = vmul.f32 %v3318_v18, %v3838_v30 }
  0xa2   : > { %3069 = vmatmul.msk.bf16.gmra.mxu3 %vm569_vm0, %v918_v33  ;;  %v3281_v43 = vpop.permute.xlu1 %3280  ;;  %v3276_v44 = vpop.permute.xlu0 %3275  ;;  %1516 = vmatpush.bf16.msra.mxu0 %v3822_v25  ;;  %v1143_v25 = vmul.f32 %v3302_v51, %v3893_v47  ;;  %v1021_v33 = vmul.f32 %v3838_v30, %v1013_v24  ;;  %v3333_v61 = vunpack.i.h.bf16 %v4031_v40  ;;  %v3332_v62 = vunpack.i.l.bf16 %v4031_v40 }
  0xa3   : > { %v3278_v7 = vunpack.i.h.bf16 %v3276_v44  ;;  %v3277_v9 = vunpack.i.l.bf16 %v3276_v44  ;;  %v3283_v27 = vunpack.i.h.bf16 %v3281_v43  ;;  %v3282_v28 = vunpack.i.l.bf16 %v3281_v43 }
  0xa4   : > { %v1151_v4 = vpack.c.bf16 %v1144_v46, %v1143_v25  ;;  %v1027_v53 = vpack.c.bf16 %v1021_v33, %v1020_v14  ;;  %v1152_v0 = vpack.c.bf16 %v1146_v32, %v1145_v31  ;;  %v1022_v40 = vmul.f32 %v3878_v41, %v1014_v34 }
  0xa5   : > { %v799_v12 = vmul.f32 %v3278_v7, %v3924_v56  ;;  %v915_v39 = vmul.f32 %v3282_v28, %v3922_v55  ;;  %v916_v43 = vmul.f32 %v3283_v27, %v3924_v56  ;;  %v1147_v7 = vmul.f32 %v3332_v62, %v3878_v41 }
  0xa6   : > { %1517 = vmatpush.bf16.msra.mxu0 %v3828_v26  ;;  %v1019_v26 = vmul.f32 %v3895_v48, %v1011_v21  ;;  %v798_v21 = vmul.f32 %v3277_v9, %v3922_v55  ;;  %v1148_v9 = vmul.f32 %v3333_v61, %v3880_v42 }
  0xa7   : > { %744 = vrot.lane.b32.xlu2 %v4038_v57, %s3658_s22  ;;  %v920_v54 = vpack.c.bf16 %v916_v43, %v915_v39  ;;  %v4181_v43 = vld [vmem:[%s5752_s3 + $0x38] sm:$0xff] }
  0xa8   : > { %1553 = vrot.lane.b32.xlu1 %v3970_v8, %s3663_s27  ;;  %1551 = vrot.lane.b32.xlu0 %v3965_v6, %s3663_s27  ;;  %v1026_v5 = vpack.c.bf16 %v1019_v26, %v1018_v58  ;;  %v803_v22 = vpack.c.bf16 %v799_v12, %v798_v21  ;;  %v4126_v58 = vpop.f32.mrf.mxu3  ;;  %v1153_v11 = vpack.c.bf16 %v1148_v9, %v1147_v7 }
  0xa9   : > { %3066 = vmatmul.msk.bf16.gmra.mxu2 %vm569_vm0, %v802_v52  ;;  %v4056_v59 = vpop.permute.xlu2 %3345 }
  0xaa   : > { %v4060_v63 = vpop.permute.xlu1 %3295  ;;  %v3291_v3 = vpop.permute.xlu0 %3290  ;;  %v3348_v33 = vunpack.i.h.bf16 %v4056_v59  ;;  %v3347_v39 = vunpack.i.l.bf16 %v4056_v59 }
  0xab   : > { %v3293_v51 = vunpack.i.h.bf16 %v3291_v3  ;;  %v3292_v52 = vunpack.i.l.bf16 %v3291_v3  ;;  %v3298_v3 = vunpack.i.h.bf16 %v4060_v63 }
  0xad   : > { %v1260_v1 = vmul.f32 %v3292_v52, %v3893_v47  ;;  %v1261_v23 = vmul.f32 %v3293_v51, %v3895_v48  ;;  %v1378_v21 = vmul.f32 %v3298_v3, %v3895_v48  ;;  %v4186_v51 = vld [vmem:[%s5752_s3 + $0x30] sm:$0xff] }
  0xaf   : > { %863 = vrot.lane.b32.xlu2 %v4065_v2, %s3657_s21  ;;  %v1268_v26 = vpack.c.bf16 %v1261_v23, %v1260_v1  ;;  %v1149_v1 = vmul.f32 %v3347_v39, %v3922_v55  ;;  %v1150_v23 = vmul.f32 %v3348_v33, %v3924_v56 }
  0xb0   : > { %861 = vrot.lane.b32.xlu1 %v4038_v57, %s3657_s21  ;;  %746 = vrot.lane.b32.xlu0 %v4065_v2, %s3658_s22  ;;  %v4155_v19 = vpop.f32.mrf.mxu3 }
  0xb1   : > { %3072 = vmatmul.msk.bf16.vlgmr.msrb.gmra.mxu0 %vm569_vm0, %v1026_v5  ;;  %3076 = vmatmul.msk.bf16.vlgmr.msrb.gmra.mxu1 %vm569_vm0, %v1151_v4  ;;  %v4077_v13 = vpop.permute.xlu2 %853  ;;  %v3297_v4 = vunpack.i.l.bf16 %v4060_v63  ;;  %v1023_v63 = vmul.f32 %v3880_v42, %v1015_v35 }
  0xb2   : > { %3070 = vmatmul.msk.bf16.gmra.mxu3 %vm569_vm0, %v919_v20  ;;  %v4080_v60 = vpop.permute.xlu1 %3310  ;;  %v4082_v17 = vpop.permute.xlu0 %3305 }
  0xb3   : > { %v1377_v20 = vmul.f32 %v3297_v4, %v3893_v47  ;;  %v3308_v10 = vunpack.i.h.bf16 %v4082_v17  ;;  %v3307_v34 = vunpack.i.l.bf16 %v4082_v17 }
  0xb5   : > { %v1385_v27 = vpack.c.bf16 %v1378_v21, %v1377_v20  ;;  %v1262_v35 = vmul.f32 %v3307_v34, %v3836_v29  ;;  %v1263_v28 = vmul.f32 %v3308_v10, %v3838_v30  ;;  %v1470_v21 = vld [vmem:[%s3741_s16 + $0x8] sm:$0xf]  ;;  %v1471_v10 = vld [vmem:[%s3741_s16 + $0x14] sm:$0xf] }
  0xb7   : > { %1087 = vrot.lane.b32.xlu2 %v4038_v57, %s3661_s25  ;;  %v1269_v52 = vpack.c.bf16 %v1263_v28, %v1262_v35  ;;  %v1479_v35 = vunpack.c.l.bf16 %v1471_v10 }
  0xb8   : > { %980 = vrot.lane.b32.xlu1 %v4065_v2, %s3659_s24  ;;  %978 = vrot.lane.b32.xlu0 %v4038_v57, %s3659_s24  ;;  %v601_v14 = vpop.f32.mrf.mxu3 }
  0xb9   : > { %3067 = vmatmul.msk.bf16.gmra.mxu2 %vm569_vm0, %v803_v22  ;;  %v4101_v36 = vpop.permute.xlu2 %972  ;;  %v1028_v22 = vpack.c.bf16 %v1023_v63, %v1022_v40 }
  0xba   : > { %v4105_v44 = vpop.permute.xlu1 %3325  ;;  %v4107_v45 = vpop.permute.xlu0 %3320 }
  0xbb   : > { %v3323_v15 = vunpack.i.h.bf16 %v4107_v45  ;;  %v3322_v16 = vunpack.i.l.bf16 %v4107_v45  ;;  %v3327_v33 = vunpack.i.l.bf16 %v4105_v44 }
  0xbd   : > { %v1264_v40 = vmul.f32 %v3322_v16, %v3878_v41  ;;  %v1265_v63 = vmul.f32 %v3323_v15, %v3880_v42  ;;  %v1472_v16 = vld [vmem:[%s3741_s16 + $0x20] sm:$0xf] }
  0xbf   : > { %1214 = vrot.lane.b32.xlu2 %v4065_v2, %s3660_s23 }
  0xc0   : > { %1212 = vrot.lane.b32.xlu1 %v4038_v57, %s3660_s23  ;;  %1089 = vrot.lane.b32.xlu0 %v4065_v2, %s3661_s25  ;;  %v4216_v7 = vpop.f32.mrf.mxu3 }
  0xc1   : > { %3073 = vmatmul.msk.bf16.gmra.mxu0 %vm569_vm0, %v1027_v53  ;;  %3077 = vmatmul.msk.bf16.gmra.mxu1 %vm569_vm0, %v1152_v0  ;;  %v4119_v24 = vpop.permute.xlu2 %1204  ;;  %v615_v53 = vmul.f32 0.25, %v601_v14  ;;  %v3313_v0 = vunpack.i.h.bf16 %v4080_v60  ;;  %v3328_v14 = vunpack.i.h.bf16 %v4105_v44  ;;  %v1381_v44 = vmul.f32 %v3327_v33, %v3878_v41 }
  0xc2   : > { %3071 = vmatmul.msk.bf16.gmra.mxu3 %vm569_vm0, %v920_v54  ;;  %v4122_v25 = vpop.permute.xlu1 %3340  ;;  %v4124_v46 = vpop.permute.xlu0 %3335  ;;  %v3312_v54 = vunpack.i.l.bf16 %v4080_v60  ;;  %v1024_v60 = vmul.f32 %v3922_v55, %v1016_v37 }
  0xc3   : > { %v4193_v59 = vadd.f32 %v4038_v57, %v615_v53  ;;  %v1380_v61 = vmul.f32 %v3313_v0, %v3838_v30  ;;  %v1487_v53 = vmul.f32 %v3895_v48, %v1479_v35  ;;  %v1382_v0 = vmul.f32 %v3328_v14, %v3880_v42 }
  0xc4   : > { %v613_v14 = vmul.f32 0.25, %v4126_v58  ;;  %v1474_v58 = vld [vmem:[%s3741_s16 + $0x38] sm:$0xf] }
  0xc5   : > { %5825 = vst [vmem:[#allocation2_spill] sm:$0xff] %v4193_v59 }
  0xc7   : > { %1446 = vrot.lane.b32.xlu2 %v4038_v57, %s3664_s28 }
  0xc8   : > { %1331 = vrot.lane.b32.xlu1 %v4065_v2, %s3662_s26  ;;  %1329 = vrot.lane.b32.xlu0 %v4038_v57, %s3662_s26  ;;  %v606_v34 = vpop.f32.mrf.mxu3 }
  0xc9   : > { %3080 = vmatmul.msk.bf16.vlgmr.msrb.gmra.mxu2 %vm569_vm0, %v1268_v26  ;;  %v4147_v5 = vpop.permute.xlu2 %1323  ;;  %v1379_v26 = vmul.f32 %v3312_v54, %v3836_v29  ;;  %v617_v28 = vmul.f32 0.25, %v606_v34 }
  0xca   : > { %v4151_v12 = vpop.permute.xlu1 %738  ;;  %v4153_v18 = vpop.permute.xlu0 %736 }
  0xcb   : > { %v1386_v9 = vpack.c.bf16 %v1380_v61, %v1379_v26  ;;  %v4242_v39 = vadd.f32 %v4186_v51, %v617_v28  ;;  %v1387_v26 = vpack.c.bf16 %v1382_v0, %v1381_v44  ;;  %v591_v28 = vpop.f32.mrf.mxu0 }
  0xcd   : > { %5826 = vst [vmem:[#allocation3_spill] sm:$0xff] %v4242_v39 }
  0xcf   : > { %1557 = vrot.lane.b32.xlu2 %v4065_v2, %s3663_s27 }
  0xd0   : > { %1555 = vrot.lane.b32.xlu1 %v4038_v57, %s3663_s27  ;;  %1448 = vrot.lane.b32.xlu0 %v4065_v2, %s3664_s28  ;;  %v1025_v57 = vmul.f32 %v3924_v56, %v1017_v38  ;;  %v1154_v38 = vpack.c.bf16 %v1150_v23, %v1149_v1  ;;  %v3338_v23 = vunpack.i.h.bf16 %v4124_v46 }
  0xd1   : > { %3074 = vmatmul.msk.bf16.gmra.mxu0 %vm569_vm0, %v1028_v22  ;;  %3078 = vmatmul.msk.bf16.gmra.mxu1 %vm569_vm0, %v1153_v11  ;;  %v4169_v17 = vpop.permute.xlu2 %1547  ;;  %v1270_v22 = vpack.c.bf16 %v1265_v63, %v1264_v40  ;;  %v3343_v63 = vunpack.i.h.bf16 %v4122_v25 }
  0xd2   : > { %3084 = vmatmul.msk.bf16.vlgmr.msra.gmra.mxu3 %vm569_vm0, %v1385_v27  ;;  %v4172_v31 = vpop.permute.xlu1 %970  ;;  %v4174_v32 = vpop.permute.xlu0 %855  ;;  %v1029_v37 = vpack.c.bf16 %v1025_v57, %v1024_v60  ;;  %v1478_v27 = vunpack.c.l.bf16 %v1470_v21  ;;  %v3337_v60 = vunpack.i.l.bf16 %v4124_v46  ;;  %v1267_v48 = vmul.f32 %v3338_v23, %v3924_v56 }
  0xd3   : > { %v3342_v21 = vunpack.i.l.bf16 %v4122_v25  ;;  %v1384_v25 = vmul.f32 %v3343_v63, %v3924_v56  ;;  %v611_v63 = vmul.f32 0.25, %v591_v28  ;;  %v1476_v28 = vld [vmem:[%s3741_s16 + $0x50] sm:$0xf] }
  0xd7   : > { %865 = vrot.lane.b32.xlu2 %v4186_v51, %s3657_s21 }
  0xd8   : > { %750 = vrot.lane.b32.xlu1 %v4181_v43, %s3658_s22  ;;  %748 = vrot.lane.b32.xlu0 %v4186_v51, %s3658_s22 }
  0xd9   : > { %3081 = vmatmul.msk.bf16.gmra.mxu2 %vm569_vm0, %v1269_v52  ;;  %v4214_v4 = vpop.permute.xlu2 %742  ;;  %v1486_v52 = vmul.f32 %v3893_v47, %v1478_v27  ;;  %v1266_v47 = vmul.f32 %v3337_v60, %v3922_v55  ;;  %v1383_v27 = vmul.f32 %v3342_v21, %v3922_v55  ;;  %v1475_v60 = vld [vmem:[%s3741_s16 + $0x44] sm:$0xf] }
  0xda   : > { %v4210_v62 = vpop.permute.xlu1 %1081  ;;  %v4212_v3 = vpop.permute.xlu0 %1079 }
  0xdb   : > { %v1494_v57 = vpack.c.bf16 %v1487_v53, %v1486_v52  ;;  %v1388_v53 = vpack.c.bf16 %v1384_v25, %v1383_v27 }
  0xdf   : > { %984 = vrot.lane.b32.xlu2 %v4181_v43, %s3659_s24 }
  0xe0   : > { %982 = vrot.lane.b32.xlu1 %v4186_v51, %s3659_s24  ;;  %867 = vrot.lane.b32.xlu0 %v4181_v43, %s3657_s21 }
  0xe1   : > { %3075 = vmatmul.msk.bf16.gmra.mxu0 %vm569_vm0, %v1029_v37  ;;  %3079 = vmatmul.msk.bf16.gmra.mxu1 %vm569_vm0, %v1154_v38  ;;  %v4237_v11 = vpop.permute.xlu2 %974  ;;  %v1473_v37 = vld [vmem:[%s3741_s16 + $0x2c] sm:$0xf]  ;;  %v1271_v38 = vpack.c.bf16 %v1267_v48, %v1266_v47  ;;  %v1482_v47 = vunpack.c.l.bf16 %v1474_v58  ;;  %v4316_v48 = vpop.f32.mrf.mxu0 }
  0xe2   : > { %3085 = vmatmul.msk.bf16.gmra.mxu3 %vm569_vm0, %v1386_v9  ;;  %v4231_v45 = vpop.permute.xlu1 %1321  ;;  %v4233_v20 = vpop.permute.xlu0 %1206  ;;  %v1480_v9 = vunpack.c.l.bf16 %v1472_v16  ;;  %v1481_v40 = vunpack.c.l.bf16 %v1473_v37 }
  0xe3   : > { %v1490_v16 = vmul.f32 %v3878_v41, %v1482_v47  ;;  %v1484_v47 = vunpack.c.l.bf16 %v1476_v28 }
  0xe4   : > { %v1488_v34 = vmul.f32 %v3836_v29, %v1480_v9  ;;  %v4300_v29 = vadd.f32 %v3965_v6, %v613_v14  ;;  %v1483_v6 = vunpack.c.l.bf16 %v1475_v60 }
  0xe6   : > { %5828 = vst [vmem:[#allocation5_spill] sm:$0xff] %v4300_v29  ;;  %v1491_v37 = vmul.f32 %v3880_v42, %v1483_v6 }
  0xe7   : > { %1216 = vrot.lane.b32.xlu2 %v4186_v51, %s3660_s23 }
  0xe8   : > { %1091 = vrot.lane.b32.xlu0 %v4186_v51, %s3661_s25  ;;  %1093 = vrot.lane.b32.xlu1 %v4181_v43, %s3661_s25 }
  0xe9   : > { %3082 = vmatmul.msk.bf16.gmra.mxu2 %vm569_vm0, %v1270_v22  ;;  %v4261_v61 = vpop.permute.xlu2 %1085  ;;  %v1489_v22 = vmul.f32 %v3838_v30, %v1481_v40  ;;  %v4324_v40 = vpop.f32.mrf.mxu3 }
  0xea   : > { %v4255_v54 = vpop.permute.xlu1 %1440  ;;  %v4257_v1 = vpop.permute.xlu0 %1438 }
  0xeb   : > { %v1495_v33 = vpack.c.bf16 %v1489_v22, %v1488_v34  ;;  %v1496_v34 = vpack.c.bf16 %v1491_v37, %v1490_v16 }
  0xef   : > { %1335 = vrot.lane.b32.xlu2 %v4181_v43, %s3662_s26 }
  0xf0   : > { %1218 = vrot.lane.b32.xlu0 %v4181_v43, %s3660_s23  ;;  %1333 = vrot.lane.b32.xlu1 %v4186_v51, %s3662_s26  ;;  %s4996_s23 = scalar_lea.vmem %s5751_s2, %s3193_s13 }
  0xf1   : > { %3088 = vmatmul.msk.bf16.vlgmr.msra.gmra.mxu0 %vm569_vm0, %v1494_v57  ;;  %v4286_v10 = vpop.permute.xlu2 %1325 }
  0xf2   : > { %3086 = vmatmul.msk.bf16.gmra.mxu3 %vm569_vm0, %v1387_v26  ;;  %v741_v46 = vpop.permute.xlu1 %740  ;;  %v4273_v15 = vpop.permute.xlu0 %1549 }
  0xf3   : > { %5827 = vst [vmem:[#allocation4_spill] sm:$0xff] %v4273_v15 }
  0xf7   : > { %1559 = vrot.lane.b32.xlu2 %v4186_v51, %s3663_s27 }
  0xf8   : > { %1450 = vrot.lane.b32.xlu0 %v4186_v51, %s3664_s28  ;;  %1452 = vrot.lane.b32.xlu1 %v4181_v43, %s3664_s28  ;;  %s5709_s28 = scalar_lea.vmem %s5757_s8, %s3806_s20 }
  0xf9   : > { %3083 = vmatmul.msk.bf16.gmra.mxu2 %vm569_vm0, %v1271_v38  ;;  %v4314_v26 = vpop.permute.xlu2 %1444 }
  0xfa   : > { %v4292_v35 = vpop.permute.xlu1 %859  ;;  %v4294_v51 = vpop.permute.xlu0 %857  ;;  %5830 = vst [vmem:[#allocation7_spill] sm:$0xff] %v4314_v26 }
  0xfe   : > { %v705_v52 = vpop.f32.mrf.mxu1 }
  0xff   : > { %v722_v44 = vmul.f32 0.25, %v705_v52 }
 0x100   : > { %1561 = vrot.lane.b32.xlu0 %v4181_v43, %s3663_s27 }
 0x101   : > { %v4302_v30 = vadd.f32 %v741_v46, %v722_v44  ;;  %3089 = vmatmul.msk.bf16.gmra.mxu0 %vm569_vm0, %v1495_v33  ;;  %v745_v21 = vpop.permute.xlu2 %744  ;;  %v4327_v33 = vadd.f32 %v3905_v50, %v611_v63  ;;  %v1477_v44 = vld [vmem:[%s3741_s16 + $0x5c] sm:$0xf]  ;;  %s5719_s16 = scalar_lea.vmem %s5758_s9, %s3806_s20 }
 0x102   : > { %3087 = vmatmul.msk.bf16.gmra.mxu3 %vm569_vm0, %v1388_v53  ;;  %v4306_v0 = vpop.permute.xlu1 %1083  ;;  %v4308_v23 = vpop.permute.xlu0 %976 }
 0x103   : > { %5829 = vst [vmem:[#allocation6_spill] sm:$0xff] %v4302_v30  ;;  %v1581_v57 = vmax.f32 %v4300_v29, %v4302_v30 }
 0x104   : > { %5831 = vst [vmem:[#allocation8_spill] sm:$0xff] %v4327_v33 }
 0x106   : > { %v707_v46 = vpop.f32.mrf.mxu1 }
 0x107   : > { %v723_v30 = vmul.f32 0.25, %v707_v46 }
 0x109   : > { %v4345_v6 = vpop.permute.xlu2 %863  ;;  %v4378_v46 = vadd.f32 %v4214_v4, %v723_v30 }
 0x10a   : > { %v4320_v38 = vpop.permute.xlu1 %1210  ;;  %v4322_v9 = vpop.permute.xlu0 %1208 }
 0x10b   : > { %5841 = vst [vmem:[#allocation18_spill] sm:$0xff] %v4378_v46 }
 0x10e   : > { %v700_v22 = vpop.f32.mrf.mxu0  ;;  %v710_v27 = vpop.f32.mrf.mxu1 }
 0x10f   : > { %v720_v25 = vmul.f32 0.25, %v700_v22  ;;  %v724_v14 = vmul.f32 0.25, %v710_v27 }
 0x111   : > { %v4330_v41 = vadd.f32 %v4153_v18, %v720_v25  ;;  %v4332_v42 = vadd.f32 %v745_v21, %v724_v14  ;;  %3090 = vmatmul.msk.bf16.gmra.mxu0 %vm569_vm0, %v1496_v34  ;;  %v1485_v18 = vunpack.c.l.bf16 %v1477_v44  ;;  %v1492_v34 = vmul.f32 %v3922_v55, %v1484_v47  ;;  %v4367_v55 = vpop.permute.xlu2 %1087 }
 0x112   : > { %v4335_v52 = vpop.permute.xlu1 %1442  ;;  %v4337_v53 = vpop.permute.xlu0 %1327 }
 0x113   : > { %5832 = vst [vmem:[#allocation9_spill] sm:$0xff] %v4330_v41  ;;  %v1579_v58 = vmax.f32 %v4327_v33, %v4330_v41  ;;  %v1583_v50 = vmax.f32 %v4193_v59, %v4332_v42  ;;  %v1493_v22 = vmul.f32 %v3924_v56, %v1485_v18  ;;  %v614_v56 = vmul.f32 0.25, %v4155_v19 }
 0x114   : > { %5833 = vst [vmem:[#allocation10_spill] sm:$0xff] %v4332_v42 }
 0x115   : > { %5834 = vst [vmem:[#allocation11_spill] sm:$0xff] %v4335_v52  ;;  %v942_v60 = vpop.f32.mrf.mxu3 }
 0x116   : > { %5835 = vst [vmem:[#allocation12_spill] sm:$0xff] %v4337_v53  ;;  %v962_v16 = vmul.f32 0.25, %v942_v60  ;;  %v4347_v37 = vpop.f32.mrf.mxu0  ;;  %v4349_v63 = vpop.f32.mrf.mxu1  ;;  %v1497_v60 = vpack.c.bf16 %v1493_v22, %v1492_v34 }
 0x118   : > { %v4352_v21 = vadd.f32 %v4172_v31, %v962_v16 }
 0x11a   : > { %5836 = vst [vmem:[#allocation13_spill] sm:$0xff] %v4352_v21  ;;  %v4356_v27 = vpop.permute.xlu1 %1553  ;;  %v4358_v25 = vpop.permute.xlu0 %1551 }
 0x11b   : > { %5837 = vst [vmem:[#allocation14_spill] sm:$0xff] %v4356_v27 }
 0x11c   : > { %5838 = vst [vmem:[#allocation15_spill] sm:$0xff] %v4358_v25  ;;  %v830_v14 = vpop.f32.mrf.mxu2 }
 0x11d   : > { %v847_v28 = vmul.f32 0.25, %v830_v14  ;;  %v4360_v44 = vpop.f32.mrf.mxu3  ;;  %v4382_v14 = vadd.f32 %v3970_v8, %v614_v56 }
 0x11e   : > { %v4362_v42 = vpop.f32.mrf.mxu1  ;;  %v825_v59 = vpop.f32.mrf.mxu0 }
 0x11f   : > { %v4365_v31 = vadd.f32 %v4294_v51, %v847_v28  ;;  %v845_v16 = vmul.f32 0.25, %v825_v59  ;;  %5842 = vst [vmem:[#allocation19_spill] sm:$0xff] %v4382_v14 }
 0x121   : > { %5839 = vst [vmem:[#allocation16_spill] sm:$0xff] %v4365_v31  ;;  %v1589_v47 = vmax.f32 %v1581_v57, %v4365_v31  ;;  %v4372_v18 = vadd.f32 %v4077_v13, %v845_v16  ;;  %3091 = vmatmul.msk.bf16.gmra.mxu0 %vm569_vm0, %v1497_v60  ;;  %v1582_v31 = vmax.f32 %v4382_v14, %v4378_v46 }
 0x122   : > { %v862_v34 = vpop.permute.xlu1 %861  ;;  %v4375_v22 = vpop.permute.xlu0 %746 }
 0x123   : > { %5840 = vst [vmem:[#allocation17_spill] sm:$0xff] %v4372_v18  ;;  %v1587_v51 = vmax.f32 %v1579_v58, %v4372_v18  ;;  %v4400_v58 = vpop.permute.xlu2 %1214 }
 0x124   : > { %v832_v59 = vpop.f32.mrf.mxu2 }
 0x125   : > { %v848_v19 = vmul.f32 0.25, %v832_v59  ;;  %v947_v28 = vpop.f32.mrf.mxu3  ;;  %v1595_v57 = vmax.f32 %v1587_v51, %v4352_v21 }
 0x126   : > { %v964_v13 = vmul.f32 0.25, %v947_v28  ;;  %v4385_v16 = vpop.f32.mrf.mxu1  ;;  %v4387_v60 = vpop.f32.mrf.mxu0 }
 0x127   : > { %v4392_v4 = vadd.f32 %v4292_v35, %v848_v19 }
 0x128   : > { %v4395_v30 = vadd.f32 %v4237_v11, %v964_v13 }
 0x129   : > { %5843 = vst [vmem:[#allocation20_spill] sm:$0xff] %v4392_v4  ;;  %v4398_v8 = vmax.f32 %v1582_v31, %v4392_v4 }
 0x12a   : > { %5844 = vst [vmem:[#allocation21_spill] sm:$0xff] %v4395_v30  ;;  %v1597_v56 = vmax.f32 %v1589_v47, %v4395_v30  ;;  %v4403_v51 = vpop.permute.xlu1 %980  ;;  %v979_v59 = vpop.permute.xlu0 %978 }
 0x12c   : > { %v835_v28 = vpop.f32.mrf.mxu2 }
 0x12d   : > { %v849_v27 = vmul.f32 0.25, %v835_v28  ;;  %v949_v29 = vpop.f32.mrf.mxu3 }
 0x12e   : > { %v965_v46 = vmul.f32 0.25, %v949_v29  ;;  %v1051_v14 = vpop.f32.mrf.mxu0  ;;  %v4405_v35 = vpop.f32.mrf.mxu1 }
 0x12f   : > { %v4407_v19 = vadd.f32 %v862_v34, %v849_v27  ;;  %v1071_v11 = vmul.f32 0.25, %v1051_v14  ;;  %v4425_v27 = vpop.permute.xlu2 %1446 }
 0x130   : > { %v4410_v31 = vadd.f32 %v4308_v23, %v965_v46  ;;  %5847 = vst [vmem:[#allocation24_spill] sm:$0xff] %v4425_v27 }
 0x131   : > { %5845 = vst [vmem:[#allocation22_spill] sm:$0xff] %v4407_v19  ;;  %v1591_v13 = vmax.f32 %v1583_v50, %v4407_v19  ;;  %v4414_v47 = vadd.f32 %v4212_v3, %v1071_v11 }
 0x132   : > { %v4418_v28 = vpop.permute.xlu1 %1212  ;;  %v4420_v29 = vpop.permute.xlu0 %1089 }
 0x133   : > { %5846 = vst [vmem:[#allocation23_spill] sm:$0xff] %v4414_v47  ;;  %v4423_v30 = vmax.f32 %v1595_v57, %v4414_v47 }
 0x134   : > { %v4427_v34 = vpop.f32.mrf.mxu2 }
 0x135   : > { %v952_v23 = vpop.f32.mrf.mxu3 }
 0x136   : > { %v966_v46 = vmul.f32 0.25, %v952_v23  ;;  %v4429_v50 = vpop.f32.mrf.mxu0  ;;  %v4431_v3 = vpop.f32.mrf.mxu1 }
 0x137   : > { %v4442_v27 = vpop.permute.xlu2 %1557 }
 0x138   : > { %v4433_v14 = vadd.f32 %v979_v59, %v966_v46  ;;  %5851 = vst [vmem:[#allocation28_spill] sm:$0xff] %v4442_v27 }
 0x13a   : > { %5848 = vst [vmem:[#allocation25_spill] sm:$0xff] %v4433_v14  ;;  %v1599_v11 = vmax.f32 %v1591_v13, %v4433_v14  ;;  %v4436_v4 = vpop.permute.xlu1 %1331  ;;  %v4438_v19 = vpop.permute.xlu0 %1329 }
 0x13b   : > { %5849 = vst [vmem:[#allocation26_spill] sm:$0xff] %v4436_v4 }
 0x13c   : > { %5850 = vst [vmem:[#allocation27_spill] sm:$0xff] %v4438_v19  ;;  %v840_v57 = vpop.f32.mrf.mxu2 }
 0x13d   : > { %v4440_v25 = vpop.f32.mrf.mxu3 }
 0x13e   : > { %v1056_v15 = vpop.f32.mrf.mxu0  ;;  %v1181_v26 = vpop.f32.mrf.mxu1 }
 0x13f   : > { %v1073_v23 = vmul.f32 0.25, %v1056_v15  ;;  %v1198_v47 = vmul.f32 0.25, %v1181_v26 }
 0x141   : > { %v4445_v52 = vadd.f32 %v4306_v0, %v1073_v23  ;;  %v4455_v14 = vadd.f32 %v4322_v9, %v1198_v47  ;;  %v1931_v0 = vld [vmem:[%s5754_s5] sm:$0x1]  ;;  %v866_v9 = vpop.permute.xlu2 %865 }
 0x142   : > { %v4447_v59 = vpop.permute.xlu1 %1555  ;;  %v4449_v46 = vpop.permute.xlu0 %1448  ;;  %v4466_v23 = vsel %vm1957_vm1, %v1931_v0, 0 }
 0x143   : > { %5852 = vst [vmem:[#allocation29_spill] sm:$0xff] %v4445_v52  ;;  %v4452_v13 = vmax.f32 %v1597_v56, %v4445_v52  ;;  %v726_v56 = vmul.f32 0.25, %v4362_v42  ;;  %1968 = vmatpush.bf16.msra.mxu1 %v4466_v23  ;;  %2053 = vmatpush.bf16.msra.mxu2 %v4466_v23 }
 0x144   : > { %5853 = vst [vmem:[#allocation30_spill] sm:$0xff] %v4447_v59  ;;  %v4457_v4 = vpop.f32.mrf.mxu2  ;;  %v851_v59 = vmul.f32 0.25, %v840_v57  ;;  %2154 = vmatpush.bf16.msrb.mxu3 %v4466_v23  ;;  %2247 = vmatpush.bf16.msrb.mxu0 %v4466_v23 }
 0x145   : > { %5854 = vst [vmem:[#allocation31_spill] sm:$0xff] %v4449_v46  ;;  %v957_v15 = vpop.f32.mrf.mxu3 }
 0x146   : > { %5855 = vst [vmem:[#allocation32_spill] sm:$0xff] %v4452_v13  ;;  %v4464_v26 = vpop.f32.mrf.mxu0  ;;  %v4479_v42 = vpop.f32.mrf.mxu1  ;;  %v4483_v27 = vadd.f32 %v866_v9, %v851_v59  ;;  %v968_v21 = vmul.f32 0.25, %v957_v15  ;;  %v721_v15 = vmul.f32 0.25, %v4347_v37  ;;  %v616_v37 = vmul.f32 0.25, %v4216_v7 }
 0x147   : > { %5856 = vst [vmem:[#allocation33_spill] sm:$0xff] %v4455_v14  ;;  %2340 = vmatpush.bf16.msrb.mxu1 %v4466_v23  ;;  %2425 = vmatpush.bf16.msrb.mxu2 %v4466_v23 }
 0x148   : > { %5857 = vst [vmem:[#allocation34_spill] sm:$0xff] %v4466_v23  ;;  %2526 = vmatpush.bf16.msra.mxu3 %v4466_v23  ;;  %2619 = vmatpush.bf16.msra.mxu0 %v4466_v23 }
 0x149   : > { %5859 = vst [vmem:[#allocation36_spill] sm:$0xff] %v4483_v27 }
 0x14a   : > { %v4475_v47 = vpop.permute.xlu1 %750  ;;  %v749_v0 = vpop.permute.xlu0 %748 }
 0x14b   : > { %v4481_v57 = vadd.f32 %v749_v0, %v726_v56 }
 0x14c   : > { %v1293_v52 = vpop.f32.mrf.mxu2 }
 0x14d   : > { %5858 = vst [vmem:[#allocation35_spill] sm:$0xff] %v4481_v57  ;;  %v1585_v46 = vmax.f32 %v4242_v39, %v4481_v57  ;;  %v4487_v19 = vpop.f32.mrf.mxu3 }
 0x14e   : > { %v1061_v53 = vpop.f32.mrf.mxu0  ;;  %v1186_v59 = vpop.f32.mrf.mxu1 }
 0x14f   : > { %v1593_v18 = vmax.f32 %v1585_v46, %v4483_v27  ;;  %v1075_v41 = vmul.f32 0.25, %v1061_v53  ;;  %v612_v53 = vmul.f32 0.25, %v4316_v48  ;;  %v963_v48 = vmul.f32 0.25, %v4360_v44 }
 0x150   : > { %v4526_v44 = vadd.f32 %v4065_v2, %v616_v37  ;;  %v967_v2 = vmul.f32 0.25, %v4440_v25 }
 0x151   : > { %v4491_v33 = vadd.f32 %v4367_v55, %v1075_v41  ;;  %v846_v41 = vmul.f32 0.25, %v4387_v60  ;;  %v4503_v55 = vadd.f32 %v4151_v12, %v721_v15  ;;  %v4506_v46 = vadd.f32 %v3900_v49, %v612_v53 }
 0x152   : > { %v983_v23 = vpop.permute.xlu1 %982  ;;  %v868_v14 = vpop.permute.xlu0 %867  ;;  %v850_v15 = vmul.f32 0.25, %v4427_v34  ;;  %v1072_v49 = vmul.f32 0.25, %v4429_v50  ;;  %v727_v50 = vmul.f32 0.25, %v4385_v16  ;;  %v852_v16 = vmul.f32 0.25, %v4457_v4 }
 0x153   : > { %5860 = vst [vmem:[#allocation37_spill] sm:$0xff] %v4491_v33  ;;  %v4494_v56 = vmax.f32 %v1599_v11, %v4491_v33  ;;  %v4496_v9 = vadd.f32 %v983_v23, %v968_v21  ;;  %v725_v21 = vmul.f32 0.25, %v4349_v63  ;;  %v1580_v12 = vmax.f32 %v4506_v46, %v4503_v55 }
 0x154   : > { %v1295_v0 = vpop.f32.mrf.mxu2  ;;  %5862 = vst [vmem:[#allocation39_spill] sm:$0xff] %v4503_v55  ;;  %v618_v33 = vmul.f32 0.25, %v4324_v40  ;;  %v4530_v55 = vadd.f32 %v4101_v36, %v963_v48  ;;  %v4533_v34 = vadd.f32 %v4345_v6, %v850_v15  ;;  %v1074_v40 = vmul.f32 0.25, %v4464_v26 }
 0x155   : > { %5861 = vst [vmem:[#allocation38_spill] sm:$0xff] %v4496_v9  ;;  %v1601_v57 = vmax.f32 %v1593_v18, %v4496_v9  ;;  %v1410_v39 = vpop.f32.mrf.mxu3  ;;  %v4510_v18 = vadd.f32 %v4174_v32, %v846_v41  ;;  %v4519_v63 = vadd.f32 %v4375_v22, %v725_v21  ;;  %v1196_v41 = vmul.f32 0.25, %v4405_v35  ;;  %v985_v21 = vpop.permute.xlu2 %984 }
 0x156   : > { %v1063_v13 = vpop.f32.mrf.mxu0  ;;  %v1188_v23 = vpop.f32.mrf.mxu1  ;;  %v4536_v22 = vadd.f32 %v4210_v62, %v1072_v49  ;;  %v1313_v48 = vmul.f32 0.25, %v1293_v52  ;;  %v4570_v52 = vadd.f32 %v4475_v47, %v727_v50  ;;  %v969_v4 = vmul.f32 0.25, %v4487_v19 }
 0x157   : > { %v1588_v32 = vmax.f32 %v1580_v12, %v4510_v18  ;;  %v1584_v6 = vmax.f32 %v4526_v44, %v4519_v63  ;;  %v4548_v37 = vadd.f32 %v4119_v24, %v1196_v41  ;;  %v1076_v25 = vmul.f32 0.25, %v1063_v13 }
 0x158   : > { %5864 = vst [vmem:[#allocation41_spill] sm:$0xff] %v4570_v52  ;;  %v1314_v13 = vmul.f32 0.25, %v1295_v0  ;;  %v4576_v41 = vadd.f32 %v868_v14, %v852_v16 }
 0x159   : > { %v1596_v62 = vmax.f32 %v1588_v32, %v4530_v55  ;;  %v1611_v26 = vmax.f32 %v4423_v30, %v4548_v37  ;;  %v1592_v12 = vmax.f32 %v1584_v6, %v4533_v34  ;;  %v1200_v30 = vmul.f32 0.25, %v1186_v59 }
 0x15a   : > { %v1092_v60 = vpop.permute.xlu0 %1091  ;;  %v1430_v32 = vmul.f32 0.25, %v1410_v39  ;;  %5865 = vst [vmem:[#allocation42_spill] sm:$0xff] %v4576_v41  ;;  %v5866_v39 = vmax.f32 %v4398_v8, %v4410_v31 }
 0x15b   : > { %v1604_v15 = vmax.f32 %v1596_v62, %v4536_v22  ;;  %v4595_v0 = vadd.f32 %v4418_v28, %v1200_v30 }
 0x15c   : > { %v1298_v11 = vpop.f32.mrf.mxu2  ;;  %v4603_v8 = vadd.f32 %v4257_v1, %v1430_v32 }
 0x15d   : > { %v1412_v9 = vpop.f32.mrf.mxu3  ;;  %v1217_v14 = vpop.permute.xlu2 %1216 }
 0x15e   : > { %v1066_v27 = vpop.f32.mrf.mxu0  ;;  %v1191_v49 = vpop.f32.mrf.mxu1 }
 0x15f   : > { %v1077_v53 = vmul.f32 0.25, %v1066_v27  ;;  %v1197_v27 = vmul.f32 0.25, %v4431_v3  ;;  %v1202_v47 = vmul.f32 0.25, %v1191_v49 }
 0x161   : > { %v4523_v7 = vadd.f32 %v1092_v60, %v1077_v53  ;;  %v4560_v24 = vadd.f32 %v4233_v20, %v1197_v27  ;;  %v4563_v53 = vadd.f32 %v4403_v51, %v967_v2  ;;  %v4574_v20 = vadd.f32 %v4231_v45, %v1313_v48 }
 0x162   : > { %v4579_v51 = vadd.f32 %v4420_v29, %v1076_v25  ;;  %v1431_v2 = vmul.f32 0.25, %v1412_v9  ;;  %v4597_v9 = vadd.f32 %v985_v21, %v969_v4  ;;  %v4619_v1 = vadd.f32 %v1217_v14, %v1202_v47 }
 0x163   : > { %v4540_v35 = vmax.f32 %v1601_v57, %v4523_v7  ;;  %v4552_v57 = vadd.f32 %v4181_v43, %v618_v33  ;;  %v4566_v43 = vadd.f32 %v4261_v61, %v1074_v40  ;;  %v1199_v33 = vmul.f32 0.25, %v4479_v42 }
 0x164   : > { %v1300_v36 = vpop.f32.mrf.mxu2  ;;  %v1201_v61 = vmul.f32 0.25, %v1188_v23  ;;  %v1612_v27 = vmax.f32 %v1604_v15, %v4560_v24  ;;  %v1315_v42 = vmul.f32 0.25, %v1298_v11  ;;  %v1600_v50 = vmax.f32 %v1592_v12, %v4563_v53  ;;  %5867 = vst [vmem:[#allocation43_spill] sm:$0xff] %v4597_v9 }
 0x165   : > { %v1415_v3 = vpop.f32.mrf.mxu3  ;;  %5863 = vst [vmem:[#allocation40_spill] sm:$0xff] %v4552_v57  ;;  %v4587_v19 = vmax.f32 %v5866_v39, %v4566_v43  ;;  %v4590_v45 = vadd.f32 %v4320_v38, %v1199_v33  ;;  %v1586_v29 = vmax.f32 %v4552_v57, %v4570_v52  ;;  %v4600_v11 = vadd.f32 %v4147_v5, %v1314_v13  ;;  %v5869_v13 = vld [vmem:[#allocation33_spill] sm:$0xff]  ;;  %v5872_v39 = vld [vmem:[#allocation8_spill] sm:$0xff] }
 0x166   : > { %v1068_v60 = vpop.f32.mrf.mxu0  ;;  %v1619_v38 = vmax.f32 %v1611_v26, %v4574_v20  ;;  %v4608_v6 = vmax.f32 %v1600_v50, %v4579_v51  ;;  %v4611_v62 = vadd.f32 %v4400_v58, %v1201_v61  ;;  %v4614_v21 = vadd.f32 %v4286_v10, %v1315_v42  ;;  %v1094_v10 = vpop.permute.xlu1 %1093 }
 0x167   : > { %v1594_v40 = vmax.f32 %v1586_v29, %v4576_v41  ;;  %v4617_v5 = vadd.f32 %v4255_v54, %v1431_v2  ;;  %v1614_v48 = vmax.f32 %v4587_v19, %v4590_v45  ;;  %v1078_v25 = vmul.f32 0.25, %v1068_v60  ;;  %v1193_v15 = vpop.f32.mrf.mxu1  ;;  %v5868_v60 = vld [vmem:[#allocation32_spill] sm:$0xff]  ;;  %v5873_v29 = vld [vmem:[#allocation9_spill] sm:$0xff] }
 0x168   : > { %v1615_v26 = vmax.f32 %v4494_v56, %v4595_v0  ;;  %v4626_v58 = vmax.f32 %v1612_v27, %v4600_v11  ;;  %v1627_v12 = vmax.f32 %v1619_v38, %v4603_v8  ;;  %v1316_v4 = vmul.f32 0.25, %v1300_v36  ;;  %v5874_v38 = vld [vmem:[#allocation17_spill] sm:$0xff] }
 0x169   : > { %v1602_v49 = vmax.f32 %v1594_v40, %v4597_v9  ;;  %v1432_v30 = vmul.f32 0.25, %v1415_v3  ;;  %v5870_v56 = vmax.f32 %v5868_v60, %v5869_v13  ;;  %v4643_v42 = vadd.f32 %v1094_v10, %v1078_v25  ;;  %v1219_v3 = vpop.permute.xlu0 %1218  ;;  %v5876_v60 = vld [vmem:[#allocation12_spill] sm:$0xff]  ;;  %v5878_v10 = vld [vmem:[#allocation23_spill] sm:$0xff] }
 0x16a   : > { %v1628_v61 = vmax.f32 %v4626_v58, %v4617_v5  ;;  %v1203_v2 = vmul.f32 0.25, %v1193_v15 }
 0x16b   : > { %v4637_v32 = vmax.f32 %v5870_v56, %v4614_v21  ;;  %5871 = vst [vmem:[#allocation32_spill] sm:$0xff] %v4643_v42  ;;  %v4650_v56 = vadd.f32 %v5876_v60, %v1316_v4  ;;  %v5879_v4 = vld [vmem:[#allocation27_spill] sm:$0xff] }
 0x16c   : > { %v1303_v59 = vpop.f32.mrf.mxu2 }
 0x16d   : > { %v1417_v23 = vpop.f32.mrf.mxu3  ;;  %v1317_v47 = vmul.f32 0.25, %v1303_v59 }
 0x16e   : > { %v1519_v28 = vpop.f32.mrf.mxu0  ;;  %v1433_v50 = vmul.f32 0.25, %v1417_v23 }
 0x16f   : > { %v1539_v16 = vmul.f32 0.25, %v1519_v28  ;;  %v5875_v28 = vld [vmem:[#allocation13_spill] sm:$0xff]  ;;  %v4664_v60 = vadd.f32 %v5879_v4, %v1317_v47 }
 0x171   : > { %v1571_v54 = vadd.f32 %v4169_v17, %v1539_v16 }
 0x173   : > { %v1635_v17 = vmax.f32 %v1627_v12, %v1571_v54  ;;  %v5877_v12 = vld [vmem:[#allocation11_spill] sm:$0xff] }
 0x174   : > { %v1305_v36 = vpop.f32.mrf.mxu2  ;;  %v4653_v25 = vadd.f32 %v5877_v12, %v1432_v30  ;;  %v5880_v12 = vld [vmem:[#allocation7_spill] sm:$0xff] }
 0x175   : > { %v1643_v19 = vsub.f32 %v5872_v39, %v1635_v17  ;;  %v1667_v14 = vsub.f32 %v5873_v29, %v1635_v17  ;;  %v1691_v40 = vsub.f32 %v5874_v38, %v1635_v17  ;;  %v1715_v16 = vsub.f32 %v5875_v28, %v1635_v17  ;;  %v1420_v58 = vpop.f32.mrf.mxu3 }
 0x176   : > { %v1739_v59 = vsub.f32 %v5878_v10, %v1635_v17  ;;  %v1763_v23 = vsub.f32 %v4548_v37, %v1635_v17  ;;  %v1521_v15 = vpop.f32.mrf.mxu0  ;;  %v1787_v29 = vsub.f32 %v4574_v20, %v1635_v17  ;;  %v4659_v38 = vmax.f32 %v1602_v49, %v4643_v42 }
 0x177   : > { %v1651_v27 = vmul.f32 1.442695, %v1643_v19  ;;  %v1675_v39 = vmul.f32 1.442695, %v1667_v14  ;;  %v1699_v33 = vmul.f32 1.442695, %v1691_v40  ;;  %v4661_v28 = vadd.f32 %v1219_v3, %v1203_v2 }
 0x178   : > { %v1723_v30 = vmul.f32 1.442695, %v1715_v16  ;;  %v4667_v9 = vadd.f32 %v5880_v12, %v1433_v50  ;;  %v1747_v37 = vmul.f32 1.442695, %v1739_v59  ;;  %v1811_v19 = vsub.f32 %v4603_v8, %v1635_v17  ;;  %v5881_v50 = vld [vmem:[#allocation4_spill] sm:$0xff] }
 0x179   : > { %3470 = vpow2.f32 %v1651_v27  ;;  %v1771_v14 = vmul.f32 1.442695, %v1763_v23  ;;  %v1835_v40 = vsub.f32 %v1571_v54, %v1635_v17  ;;  %v1540_v20 = vmul.f32 0.25, %v1521_v15  ;;  %v5882_v15 = vld [vmem:[#allocation26_spill] sm:$0xff] }
 0x17a   : > { %3472 = vpow2.f32 %v1675_v39  ;;  %v1795_v49 = vmul.f32 1.442695, %v1787_v29  ;;  %v1318_v10 = vmul.f32 0.25, %v1305_v36  ;;  %v1434_v2 = vmul.f32 0.25, %v1420_v58  ;;  %v5883_v29 = vld [vmem:[#allocation24_spill] sm:$0xff] }
 0x17b   : > { %3474 = vpow2.f32 %v1699_v33  ;;  %v4671_v3 = vmax.f32 %v1614_v48, %v4650_v56  ;;  %v1629_v47 = vmax.f32 %v4637_v32, %v4653_v25  ;;  %v4676_v27 = vadd.f32 %v5881_v50, %v1540_v20 }
 0x17c   : > { %3476 = vpow2.f32 %v1723_v30  ;;  %v1308_v16 = vpop.f32.mrf.mxu2  ;;  %v4681_v54 = vmax.f32 %v1615_v26, %v4664_v60  ;;  %v1819_v33 = vmul.f32 1.442695, %v1811_v19  ;;  %v1843_v36 = vmul.f32 1.442695, %v1835_v40 }
 0x17d   : > { %3478 = vpow2.f32 %v1747_v37  ;;  %v1422_v17 = vpop.f32.mrf.mxu3  ;;  %v1636_v58 = vmax.f32 %v1628_v61, %v4676_v27  ;;  %v4689_v39 = vadd.f32 %v5882_v15, %v1318_v10  ;;  %v4692_v26 = vadd.f32 %v5883_v29, %v1434_v2  ;;  %v5884_v37 = vld [vmem:[#allocation39_spill] sm:$0xff] }
 0x17e   : > { %3480 = vpow2.f32 %v1771_v14  ;;  %v1524_v59 = vpop.f32.mrf.mxu0  ;;  %v1319_v4 = vmul.f32 0.25, %v1308_v16 }
 0x17f   : > { %v4686_v23 = vpop.eup %3470  ;;  %3482 = vpow2.f32 %v1795_v49  ;;  %v1644_v12 = vsub.f32 %v4506_v46, %v1636_v58  ;;  %v1668_v19 = vsub.f32 %v5884_v37, %v1636_v58  ;;  %v1692_v14 = vsub.f32 %v4510_v18, %v1636_v58  ;;  %v1334_v37 = vpop.permute.xlu1 %1333 }
 0x180   : > { %v4694_v30 = vpop.eup %3472  ;;  %v1541_v61 = vmul.f32 0.25, %v1524_v59  ;;  %3484 = vpow2.f32 %v1819_v33  ;;  %v1716_v49 = vsub.f32 %v4530_v55, %v1636_v58  ;;  %v1740_v10 = vsub.f32 %v4536_v22, %v1636_v58 }
 0x181   : > { %v4699_v40 = vpop.eup %3474  ;;  %v1859_v20 = vadd.f32 %v4694_v30, %v4686_v23  ;;  %v1653_v50 = vmul.f32 1.442695, %v1644_v12  ;;  %v1677_v16 = vmul.f32 1.442695, %v1668_v19  ;;  %v1701_v46 = vmul.f32 1.442695, %v1692_v14 }
 0x182   : > { %v4705_v2 = vpop.eup %3476  ;;  %v1764_v15 = vsub.f32 %v4560_v24, %v1636_v58  ;;  %3486 = vpow2.f32 %v1843_v36  ;;  %v1725_v33 = vmul.f32 1.442695, %v1716_v49  ;;  %v1788_v59 = vsub.f32 %v4600_v11, %v1636_v58 }
 0x183   : > { %v4708_v29 = vpop.eup %3478  ;;  %v1867_v18 = vadd.f32 %v4699_v40, %v1859_v20  ;;  %3488 = vpow2.f32 %v1653_v50  ;;  %v1749_v55 = vmul.f32 1.442695, %v1740_v10  ;;  %v1812_v22 = vsub.f32 %v4617_v5, %v1636_v58 }
 0x184   : > { %5885 = vst [vmem:[#allocation33_spill] sm:$0xff] %v4708_v29  ;;  %v4712_v8 = vpop.eup %3480  ;;  %v1435_v12 = vmul.f32 0.25, %v1422_v17  ;;  %3490 = vpow2.f32 %v1677_v16  ;;  %v1773_v14 = vmul.f32 1.442695, %v1764_v15  ;;  %v1836_v36 = vsub.f32 %v4676_v27, %v1636_v58  ;;  %v5890_v27 = vld [vmem:[#allocation15_spill] sm:$0xff]  ;;  %v1310_v15 = vpop.f32.mrf.mxu2 }
 0x185   : > { %5886 = vst [vmem:[#allocation8_spill] sm:$0xff] %v4712_v8  ;;  %v4715_v19 = vpop.eup %3482  ;;  %v1875_v24 = vadd.f32 %v4705_v2, %v1867_v18  ;;  %v5888_v11 = vmax.f32 %v4608_v6, %v4611_v62  ;;  %3492 = vpow2.f32 %v1701_v46  ;;  %v1797_v49 = vmul.f32 1.442695, %v1788_v59  ;;  %v1425_v6 = vpop.f32.mrf.mxu3  ;;  %v5891_v46 = vld [vmem:[#allocation31_spill] sm:$0xff] }
 0x186   : > { %5887 = vst [vmem:[#allocation9_spill] sm:$0xff] %v4715_v19  ;;  %v4725_v10 = vadd.f32 %v1334_v37, %v1319_v4  ;;  %v1526_v5 = vpop.f32.mrf.mxu0  ;;  %v4727_v17 = vpop.eup %3484  ;;  %3494 = vpow2.f32 %v1725_v33  ;;  %v4733_v58 = vadd.f32 %v5890_v27, %v1541_v61  ;;  %v1821_v18 = vmul.f32 1.442695, %v1812_v22 }
 0x187   : > { %v4723_v20 = vmax.f32 %v5888_v11, %v4689_v39  ;;  %5889 = vst [vmem:[#allocation17_spill] sm:$0xff] %v4727_v17  ;;  %v1883_v50 = vadd.f32 %v4708_v29, %v1875_v24  ;;  %3496 = vpow2.f32 %v1749_v55  ;;  %v4736_v59 = vadd.f32 %v5891_v46, %v1435_v12  ;;  %v5894_v46 = vld [vmem:[#allocation6_spill] sm:$0xff] }
 0x188   : > { %v1542_v4 = vmul.f32 0.25, %v1526_v5  ;;  %v4738_v37 = vpop.eup %3486  ;;  %3498 = vpow2.f32 %v1773_v14  ;;  %v1845_v24 = vmul.f32 1.442695, %v1836_v36  ;;  %v1637_v61 = vmax.f32 %v1629_v47, %v4733_v58  ;;  %v5893_v36 = vld [vmem:[#allocation5_spill] sm:$0xff]  ;;  %v5895_v47 = vld [vmem:[#allocation14_spill] sm:$0xff] }
 0x189   : > { %v1891_v11 = vadd.f32 %v4712_v8, %v1883_v50  ;;  %v4745_v33 = vpop.eup %3488  ;;  %3500 = vpow2.f32 %v1797_v49  ;;  %v5892_v55 = vmax.f32 %v4540_v35, %v4619_v1  ;;  %v1320_v12 = vmul.f32 0.25, %v1310_v15 }
 0x18a   : > { %v1436_v5 = vmul.f32 0.25, %v1425_v6  ;;  %v4753_v27 = vpop.eup %3490  ;;  %v1645_v50 = vsub.f32 %v5893_v36, %v1637_v61  ;;  %v1669_v32 = vsub.f32 %v5894_v46, %v1637_v61  ;;  %v4759_v16 = vadd.f32 %v5895_v47, %v1542_v4  ;;  %v5897_v6 = vld [vmem:[#allocation21_spill] sm:$0xff] }
 0x18b   : > { %v4751_v22 = vmax.f32 %v5892_v55, %v4725_v10  ;;  %v1899_v14 = vadd.f32 %v4715_v19, %v1891_v11  ;;  %v4761_v49 = vpop.eup %3492  ;;  %3502 = vpow2.f32 %v1821_v18  ;;  %v1860_v35 = vadd.f32 %v4753_v27, %v4745_v33  ;;  %v5896_v55 = vld [vmem:[#allocation16_spill] sm:$0xff]  ;;  %v5898_v46 = vld [vmem:[#allocation29_spill] sm:$0xff] }
 0x18c   : > { %v1693_v15 = vsub.f32 %v5896_v55, %v1637_v61  ;;  %v1717_v48 = vsub.f32 %v5897_v6, %v1637_v61  ;;  %v4767_v8 = vpop.eup %3494  ;;  %v1655_v36 = vmul.f32 1.442695, %v1645_v50  ;;  %v1679_v19 = vmul.f32 1.442695, %v1669_v32  ;;  %v1336_v50 = vpop.permute.xlu2 %1335 }
 0x18d   : > { %v1907_v11 = vadd.f32 %v4727_v17, %v1899_v14  ;;  %v1741_v29 = vsub.f32 %v5898_v46, %v1637_v61  ;;  %v4771_v4 = vpop.eup %3496  ;;  %3504 = vpow2.f32 %v1845_v24  ;;  %v1868_v18 = vadd.f32 %v4761_v49, %v1860_v35 }
 0x18e   : > { %5899 = vst [vmem:[#allocation13_spill] sm:$0xff] %v4771_v4  ;;  %v1703_v47 = vmul.f32 1.442695, %v1693_v15  ;;  %v1765_v42 = vsub.f32 %v5869_v13, %v1637_v61  ;;  %v1529_v41 = vpop.f32.mrf.mxu0  ;;  %v4775_v55 = vpop.eup %3498  ;;  %3506 = vpow2.f32 %v1655_v36  ;;  %v1727_v52 = vmul.f32 1.442695, %v1717_v48 }
 0x18f   : > { %5900 = vst [vmem:[#allocation12_spill] sm:$0xff] %v4775_v55  ;;  %v1915_v6 = vadd.f32 %v4738_v37, %v1907_v11  ;;  %v1789_v14 = vsub.f32 %v4614_v21, %v1637_v61  ;;  %v4779_v32 = vpop.eup %3500  ;;  %v1876_v46 = vadd.f32 %v4767_v8, %v1868_v18  ;;  %3508 = vpow2.f32 %v1679_v19  ;;  %v1451_v15 = vpop.permute.xlu0 %1450 }
 0x190   : > { %5901 = vst [vmem:[#allocation11_spill] sm:$0xff] %v4779_v32  ;;  %v1751_v24 = vmul.f32 1.442695, %v1741_v29  ;;  %v1813_v35 = vsub.f32 %v4653_v25, %v1637_v61  ;;  %v1775_v17 = vmul.f32 1.442695, %v1765_v42  ;;  %v1837_v11 = vsub.f32 %v4733_v58, %v1637_v61  ;;  %v1427_v48 = vpop.f32.mrf.mxu3 }
 0x191   : > { %3510 = vrcp.f32 %v1915_v6  ;;  %v4786_v36 = vpop.eup %3502  ;;  %v1884_v21 = vadd.f32 %v4771_v4, %v1876_v46  ;;  %v1799_v57 = vmul.f32 1.442695, %v1789_v14  ;;  %v4789_v18 = vadd.f32 %v1336_v50, %v1320_v12  ;;  %v5904_v12 = vld [vmem:[#allocation19_spill] sm:$0xff]  ;;  %v5905_v14 = vld [vmem:[#allocation18_spill] sm:$0xff]  ;;  %v5906_v50 = vld [vmem:[#allocation20_spill] sm:$0xff] }
 0x192   : > { %5902 = vst [vmem:[#allocation23_spill] sm:$0xff] %v4786_v36  ;;  %3512 = vpow2.f32 %v1703_v47  ;;  %v1823_v29 = vmul.f32 1.442695, %v1813_v35  ;;  %v4791_v25 = vadd.f32 %v1451_v15, %v1436_v5  ;;  %v5903_v19 = vmax.f32 %v4671_v3, %v4667_v9 }
 0x193   : > { %3514 = vpow2.f32 %v1727_v52  ;;  %v4797_v6 = vpop.eup %3504  ;;  %v1892_v58 = vadd.f32 %v4775_v55, %v1884_v21  ;;  %v1847_v61 = vmul.f32 1.442695, %v1837_v11  ;;  %v1437_v46 = vmul.f32 0.25, %v1427_v48 }
 0x194   : > { %v1638_v42 = vmax.f32 %v5903_v19, %v4759_v16  ;;  %3516 = vpow2.f32 %v1751_v24  ;;  %v4800_v47 = vpop.eup %3506 }
 0x195   : > { %3518 = vpow2.f32 %v1775_v17  ;;  %v4805_v15 = vpop.eup %3508  ;;  %v1900_v3 = vadd.f32 %v4779_v32, %v1892_v58 }
 0x196   : > { %v1646_v52 = vsub.f32 %v5904_v12, %v1638_v42  ;;  %v1670_v5 = vsub.f32 %v5905_v14, %v1638_v42  ;;  %v1694_v35 = vsub.f32 %v5906_v50, %v1638_v42  ;;  %3520 = vpow2.f32 %v1799_v57  ;;  %v1531_v11 = vpop.f32.mrf.mxu0 }
 0x197   : > { %v1718_v19 = vsub.f32 %v4410_v31, %v1638_v42  ;;  %v1742_v24 = vsub.f32 %v4566_v43, %v1638_v42  ;;  %v4810_v48 = vpop.eup %3510  ;;  %3522 = vpow2.f32 %v1823_v29  ;;  %v1861_v17 = vadd.f32 %v4805_v15, %v4800_v47  ;;  %v1453_v29 = vpop.permute.xlu1 %1452 }
 0x198   : > { %5907 = vst [vmem:[#allocation27_spill] sm:$0xff] %v4810_v48  ;;  %v1657_v21 = vmul.f32 1.442695, %v1646_v52  ;;  %v1681_v12 = vmul.f32 1.442695, %v1670_v5  ;;  %v4814_v14 = vpop.eup %3512  ;;  %v1908_v50 = vadd.f32 %v4786_v36, %v1900_v3  ;;  %3524 = vpow2.f32 %v1847_v61 }
 0x199   : > { %v1705_v58 = vmul.f32 1.442695, %v1694_v35  ;;  %v1543_v57 = vmul.f32 0.25, %v1529_v41  ;;  %v4817_v13 = vpop.eup %3514  ;;  %v1869_v31 = vadd.f32 %v4814_v14, %v1861_v17  ;;  %v1729_v43 = vmul.f32 1.442695, %v1718_v19 }
 0x19a   : > { %5908 = vst [vmem:[#allocation7_spill] sm:$0xff] %v4817_v13  ;;  %3526 = vpow2.f32 %v1657_v21  ;;  %v1753_v32 = vmul.f32 1.442695, %v1742_v24  ;;  %v4820_v55 = vpop.eup %3516  ;;  %v1916_v52 = vadd.f32 %v4797_v6, %v1908_v50  ;;  %v1766_v5 = vsub.f32 %v4590_v45, %v1638_v42 }
 0x19b   : > { %5909 = vst [vmem:[#allocation4_spill] sm:$0xff] %v4820_v55  ;;  %3528 = vpow2.f32 %v1681_v12  ;;  %v1790_v3 = vsub.f32 %v4650_v56, %v1638_v42  ;;  %v4825_v61 = vpop.eup %3518  ;;  %v1877_v41 = vadd.f32 %v4817_v13, %v1869_v31  ;;  %v1814_v35 = vsub.f32 %v4667_v9, %v1638_v42  ;;  %v5914_v31 = vld [vmem:[#allocation30_spill] sm:$0xff] }
 0x19c   : > { %5910 = vst [vmem:[#allocation26_spill] sm:$0xff] %v4825_v61  ;;  %3530 = vpow2.f32 %v1705_v58  ;;  %v1838_v19 = vsub.f32 %v4759_v16, %v1638_v42  ;;  %v4830_v24 = vpop.eup %3520  ;;  %v1777_v17 = vmul.f32 1.442695, %v1766_v5  ;;  %v4832_v50 = vadd.f32 %v1453_v29, %v1437_v46 }
 0x19d   : > { %5911 = vst [vmem:[#allocation24_spill] sm:$0xff] %v4830_v24  ;;  %3532 = vrcp.f32 %v1916_v52  ;;  %v1801_v21 = vmul.f32 1.442695, %v1790_v3  ;;  %v4834_v12 = vpop.eup %3522  ;;  %v1885_v45 = vadd.f32 %v4820_v55, %v1877_v41  ;;  %v5913_v56 = vmax.f32 %v4659_v38, %v4661_v28 }
 0x19e   : > { %5912 = vst [vmem:[#allocation39_spill] sm:$0xff] %v4834_v12  ;;  %3534 = vpow2.f32 %v1729_v43  ;;  %v1825_v9 = vmul.f32 1.442695, %v1814_v35  ;;  %v4843_v16 = vpop.eup %3524  ;;  %v1849_v42 = vmul.f32 1.442695, %v1838_v19  ;;  %v4846_v52 = vadd.f32 %v5914_v31, %v1543_v57  ;;  %v1534_v29 = vpop.f32.mrf.mxu0  ;;  %v5918_v31 = vld [vmem:[#allocation2_spill] sm:$0xff] }
 0x19f   : > { %v4841_v58 = vmax.f32 %v5913_v56, %v4789_v18  ;;  %3536 = vpow2.f32 %v1753_v32  ;;  %v1544_v46 = vmul.f32 0.25, %v1531_v11  ;;  %v4852_v3 = vmul.f32 %v4810_v48, %v4738_v37  ;;  %v5919_v43 = vld [vmem:[#allocation10_spill] sm:$0xff] }
 0x1a0   : > { %v4848_v5 = vpop.eup %3526  ;;  %v1893_v38 = vadd.f32 %v4825_v61, %v1885_v45  ;;  %3538 = vpow2.f32 %v1777_v17  ;;  %v5916_v11 = vmax.f32 %v4681_v54, %v4692_v26  ;;  %v1545_v35 = vmul.f32 0.25, %v1534_v29  ;;  %v5917_v45 = vld [vmem:[#allocation28_spill] sm:$0xff] }
 0x1a1   : > { %5915 = vst [vmem:[#allocation15_spill] sm:$0xff] %v4852_v3  ;;  %v4857_v41 = vpop.eup %3528  ;;  %3540 = vpow2.f32 %v1801_v21  ;;  %v4871_v56 = vadd.f32 %v5917_v45, %v1544_v46  ;;  %v5922_v45 = vld [vmem:[#allocation25_spill] sm:$0xff] }
 0x1a2   : > { %v1639_v57 = vmax.f32 %v5916_v11, %v4846_v52  ;;  %v4865_v37 = vpop.eup %3530  ;;  %v1901_v19 = vadd.f32 %v4830_v24, %v1893_v38  ;;  %3542 = vpow2.f32 %v1825_v9  ;;  %v1862_v17 = vadd.f32 %v4857_v41, %v4848_v5  ;;  %v5920_v11 = vld [vmem:[#allocation22_spill] sm:$0xff] }
 0x1a3   : > { %v4873_v21 = vpop.eup %3532  ;;  %3544 = vpow2.f32 %v1849_v42 }
 0x1a4   : > { %v1647_v32 = vsub.f32 %v5918_v31, %v1639_v57  ;;  %v1671_v54 = vsub.f32 %v5919_v43, %v1639_v57  ;;  %v1695_v29 = vsub.f32 %v5920_v11, %v1639_v57  ;;  %v4878_v36 = vpop.eup %3534  ;;  %v4882_v9 = vmul.f32 %v4873_v21, %v4797_v6  ;;  %v5923_v43 = vld [vmem:[#allocation37_spill] sm:$0xff] }
 0x1a5   : > { %v1909_v38 = vadd.f32 %v4834_v12, %v1901_v19  ;;  %v1870_v46 = vadd.f32 %v4865_v37, %v1862_v17  ;;  %v1719_v4 = vsub.f32 %v5922_v45, %v1639_v57  ;;  %v4887_v24 = vpop.eup %3536  ;;  %v1743_v55 = vsub.f32 %v5923_v43, %v1639_v57 }
 0x1a6   : > { %5921 = vst [vmem:[#allocation31_spill] sm:$0xff] %v4882_v9  ;;  %v1659_v42 = vmul.f32 1.442695, %v1647_v32  ;;  %v1683_v31 = vmul.f32 1.442695, %v1671_v54  ;;  %v4890_v11 = vpop.eup %3538  ;;  %v1767_v32 = vsub.f32 %v4595_v0, %v1639_v57  ;;  %v1791_v54 = vsub.f32 %v4664_v60, %v1639_v57 }
 0x1a7   : > { %v1707_v61 = vmul.f32 1.442695, %v1695_v29  ;;  %v1917_v6 = vadd.f32 %v4843_v16, %v1909_v38  ;;  %v1878_v19 = vadd.f32 %v4878_v36, %v1870_v46  ;;  %v1731_v12 = vmul.f32 1.442695, %v1719_v4  ;;  %v4896_v17 = vpop.eup %3540  ;;  %v1560_v46 = vpop.permute.xlu2 %1559 }
 0x1a8   : > { %3546 = vpow2.f32 %v1659_v42  ;;  %v1755_v45 = vmul.f32 1.442695, %v1743_v55  ;;  %v4900_v29 = vpop.eup %3542  ;;  %v1815_v13 = vsub.f32 %v4692_v26, %v1639_v57  ;;  %v1839_v38 = vsub.f32 %v4846_v52, %v1639_v57 }
 0x1a9   : > { %3548 = vrcp.f32 %v1917_v6  ;;  %v1886_v43 = vadd.f32 %v4887_v24, %v1878_v19  ;;  %v4905_v3 = vpop.eup %3544  ;;  %v1779_v4 = vmul.f32 1.442695, %v1767_v32  ;;  %v5924_v55 = vmax.f32 %v4723_v20, %v4736_v59 }
 0x1aa   : > { %3550 = vpow2.f32 %v1683_v31  ;;  %v4913_v60 = vmul.f32 %v4810_v48, %v4686_v23  ;;  %v1803_v26 = vmul.f32 1.442695, %v1791_v54  ;;  %v1827_v6 = vmul.f32 1.442695, %v1815_v13 }
 0x1ab   : > { %v1640_v0 = vmax.f32 %v5924_v55, %v4871_v56  ;;  %v1894_v42 = vadd.f32 %v4890_v11, %v1886_v43  ;;  %3552 = vpow2.f32 %v1707_v61  ;;  %v1851_v19 = vmul.f32 1.442695, %v1839_v38 }
 0x1ac   : > { %3554 = vpow2.f32 %v1731_v12  ;;  %v4920_v32 = vadd.f32 %v1560_v46, %v1545_v35 }
 0x1ad   : > { %v1648_v52 = vsub.f32 %v4526_v44, %v1640_v0  ;;  %v1672_v57 = vsub.f32 %v4519_v63, %v1640_v0  ;;  %v1696_v31 = vsub.f32 %v4533_v34, %v1640_v0  ;;  %v1902_v20 = vadd.f32 %v4896_v17, %v1894_v42 }
 0x1ae   : > { %3556 = vpow2.f32 %v1755_v45  ;;  %v4922_v23 = vpop.eup %3546  ;;  %v1720_v61 = vsub.f32 %v4563_v53, %v1640_v0  ;;  %v1744_v13 = vsub.f32 %v4579_v51, %v1640_v0  ;;  %v1768_v35 = vsub.f32 %v4611_v62, %v1640_v0 }
 0x1af   : > { %3558 = vpow2.f32 %v1779_v4  ;;  %v1661_v43 = vmul.f32 1.442695, %v1648_v52  ;;  %v4926_v12 = vpop.eup %3548  ;;  %v1910_v63 = vadd.f32 %v4900_v29, %v1902_v20  ;;  %v1685_v44 = vmul.f32 1.442695, %v1672_v57 }
 0x1b0   : > { %3560 = vpow2.f32 %v1803_v26  ;;  %v1709_v34 = vmul.f32 1.442695, %v1696_v31  ;;  %v4929_v54 = vpop.eup %3550  ;;  %v1792_v45 = vsub.f32 %v4689_v39, %v1640_v0  ;;  %v1816_v38 = vsub.f32 %v4736_v59, %v1640_v0 }
 0x1b1   : > { %3562 = vpow2.f32 %v1827_v6  ;;  %v4934_v4 = vpop.eup %3552  ;;  %v1918_v53 = vadd.f32 %v4905_v3, %v1910_v63  ;;  %v1863_v51 = vadd.f32 %v4929_v54, %v4922_v23  ;;  %v1840_v55 = vsub.f32 %v4871_v56, %v1640_v0 }
 0x1b2   : > { %3564 = vpow2.f32 %v1851_v19  ;;  %v4940_v46 = vpop.eup %3554  ;;  %v1733_v42 = vmul.f32 1.442695, %v1720_v61  ;;  %v1757_v62 = vmul.f32 1.442695, %v1744_v13  ;;  %v1781_v26 = vmul.f32 1.442695, %v1768_v35 }
 0x1b3   : > { %3566 = vpow2.f32 %v1661_v43  ;;  %v1871_v59 = vadd.f32 %v4934_v4, %v1863_v51  ;;  %v1805_v6 = vmul.f32 1.442695, %v1792_v45  ;;  %v5925_v52 = vmax.f32 %v4751_v22, %v4791_v25  ;;  %v5926_v61 = vld [vmem:[#allocation3_spill] sm:$0xff] }
 0x1b4   : > { %v4942_v39 = vpop.eup %3556  ;;  %3568 = vrcp.f32 %v1918_v53  ;;  %v1829_v0 = vmul.f32 1.442695, %v1816_v38  ;;  %v1853_v31 = vmul.f32 1.442695, %v1840_v55  ;;  %v1933_v20 = vmul.f32 %v4873_v21, %v4745_v33  ;;  %v5927_v22 = vld [vmem:[#allocation35_spill] sm:$0xff]  ;;  %v5929_v38 = vld [vmem:[#allocation38_spill] sm:$0xff] }
 0x1b5   : > { %v4949_v57 = vmax.f32 %v5925_v52, %v4920_v32  ;;  %v4951_v56 = vpop.eup %3558  ;;  %3570 = vpow2.f32 %v1685_v44  ;;  %v1879_v43 = vadd.f32 %v4940_v46, %v1871_v59  ;;  %v5928_v44 = vld [vmem:[#allocation36_spill] sm:$0xff]  ;;  %v2022_v55 = vmul.f32 %v4810_v48, %v4694_v30 }
 0x1b6   : > { %v4955_v19 = vpop.eup %3560  ;;  %3572 = vpow2.f32 %v1709_v34 }
 0x1b7   : > { %v1649_v13 = vsub.f32 %v5926_v61, %v4949_v57  ;;  %v1673_v63 = vsub.f32 %v5927_v22, %v4949_v57  ;;  %v4962_v35 = vpop.eup %3562  ;;  %3574 = vpow2.f32 %v1733_v42  ;;  %v1697_v45 = vsub.f32 %v5928_v44, %v4949_v57 }
 0x1b8   : > { %v1721_v33 = vsub.f32 %v5929_v38, %v4949_v57  ;;  %v1745_v53 = vsub.f32 %v4523_v7, %v4949_v57  ;;  %v4970_v51 = vpop.eup %3564  ;;  %v1887_v34 = vadd.f32 %v4942_v39, %v1879_v43  ;;  %3576 = vpow2.f32 %v1757_v62 }
 0x1b9   : > { %v2023_v42 = vmul.f32 %v4873_v21, %v4753_v27  ;;  %v4977_v59 = vpop.eup %3566  ;;  %3578 = vpow2.f32 %v1781_v26  ;;  %v1663_v52 = vmul.f32 1.442695, %v1649_v13  ;;  %v1687_v61 = vmul.f32 1.442695, %v1673_v63 }
 0x1ba   : > { %v1711_v22 = vmul.f32 1.442695, %v1697_v45  ;;  %v4979_v44 = vpop.eup %3568  ;;  %v1895_v7 = vadd.f32 %v4951_v56, %v1887_v34  ;;  %3580 = vpow2.f32 %v1805_v6  ;;  %v1769_v62 = vsub.f32 %v4619_v1, %v4949_v57  ;;  %v5013_v34 = vld [vmem:[%s4996_s23] sm:$0xff]  }
 0x1bb   : > { %v1793_v30 = vsub.f32 %v4725_v10, %v4949_v57  ;;  %v4986_v43 = vpop.eup %3570  ;;  %3582 = vpow2.f32 %v1829_v0  ;;  %v1735_v27 = vmul.f32 1.442695, %v1721_v33  ;;  %v1817_v26 = vsub.f32 %v4791_v25, %v4949_v57 }
 0x1bc   : > { %v1940_v13 = vpack.c.bf16 %v1933_v20, %v4913_v60  ;;  %v4998_v6 = vpop.eup %3572  ;;  %v1903_v1 = vadd.f32 %v4955_v19, %v1895_v7  ;;  %3584 = vpow2.f32 %v1853_v31  ;;  %v1864_v10 = vadd.f32 %v4986_v43, %v4977_v59 }
 0x1bd   : > { %v1759_v0 = vmul.f32 1.442695, %v1745_v53  ;;  %v5003_v63 = vpop.eup %3574  ;;  %3586 = vpow2.f32 %v1663_v52  ;;  %v1783_v25 = vmul.f32 1.442695, %v1769_v62  ;;  %v1807_v60 = vmul.f32 1.442695, %v1793_v30  ;;  %v1536_v53 = vpop.f32.mrf.mxu0 }
 0x1be   : > { %v1841_v20 = vsub.f32 %v4920_v32, %v4949_v57  ;;  %3092 = vmatmul.msk.bf16.vlgmr.msra.gmra.mxu1 %vm1944_vm2, %v1940_v13  ;;  %v5008_v45 = vpop.eup %3576  ;;  %v1911_v38 = vadd.f32 %v4962_v35, %v1903_v1  ;;  %v1872_v31 = vadd.f32 %v4998_v6, %v1864_v10  ;;  %3588 = vpow2.f32 %v1687_v61  ;;  %v5930_v52 = vld [vmem:[#allocation34_spill] sm:$0xff]  ;;  %v5023_v30 = vld [vmem:[%s4996_s23 + $0xc] sm:$0xff]  }
 0x1bf   : > { %v2030_v33 = vpack.c.bf16 %v2023_v42, %v2022_v55  ;;  %2712 = vmatpush.bf16.msra.mxu1 %v5930_v52  ;;  %v5016_v7 = vpop.eup %3578  ;;  %3590 = vpow2.f32 %v1711_v22  ;;  %v1831_v62 = vmul.f32 1.442695, %v1817_v26  ;;  %v2123_v32 = vmul.f32 %v4810_v48, %v4699_v40  ;;  %v1562_v40 = vpop.permute.xlu0 %1561 }
 0x1c0   : > { %v2124_v57 = vmul.f32 %v4873_v21, %v4761_v49  ;;  %v5025_v13 = vpop.eup %3580  ;;  %v1919_v55 = vadd.f32 %v4970_v51, %v1911_v38  ;;  %v1880_v42 = vadd.f32 %v5003_v63, %v1872_v31  ;;  %v2216_v61 = vmul.f32 %v4810_v48, %v4705_v2 }
 0x1c1   : > { %3096 = vmatmul.msk.bf16.vlgmr.msra.gmra.mxu2 %vm1944_vm2, %v2030_v33  ;;  %v2217_v22 = vmul.f32 %v4873_v21, %v4767_v8  ;;  %v5034_v26 = vpop.eup %3582  ;;  %v1855_v49 = vmul.f32 1.442695, %v1841_v20  ;;  %v1546_v10 = vmul.f32 0.25, %v1536_v53  ;;  %v5809_v52 = vunpack.c.l.bf16 %v5013_v34 }
 0x1c2   : > { %v2131_v1 = vpack.c.bf16 %v2124_v57, %v2123_v32  ;;  %v5037_v9 = vpop.eup %3584  ;;  %v1888_v38 = vadd.f32 %v5008_v45, %v1880_v42  ;;  %3592 = vpow2.f32 %v1735_v27  ;;  %v5808_v33 = vunpack.c.l.bf16 %v5023_v30 }
 0x1c3   : > { %v2224_v31 = vpack.c.bf16 %v2217_v22, %v2216_v61  ;;  %v5041_v2 = vpop.eup %3586  ;;  %3594 = vpow2.f32 %v1759_v0  ;;  %v5044_v8 = vadd.f32 %v1562_v40, %v1546_v10  ;;  %v1934_v20 = vmul.f32 %v4926_v12, %v4800_v47  ;;  %v5932_v40 = vld [vmem:[#allocation40_spill] sm:$0xff]  ;;  %v5933_v10 = vld [vmem:[#allocation41_spill] sm:$0xff] }
 0x1c4   : > { %3100 = vmatmul.msk.bf16.vlgmr.msrb.gmra.mxu3 %vm1944_vm2, %v2131_v1  ;;  %v1935_v53 = vmul.f32 %v4979_v44, %v4848_v5  ;;  %v5050_v32 = vpop.eup %3588  ;;  %3596 = vrcp.f32 %v1919_v55  ;;  %v1896_v27 = vadd.f32 %v5016_v7, %v1888_v38  ;;  %v5058_v0 = vpack.i.bf16 %v5808_v33, %v5809_v52  ;;  %v5934_v38 = vld [vmem:[#allocation42_spill] sm:$0xff]  ;;  %v5936_v33 = vld [vmem:[#allocation32_spill] sm:$0xff] }
 0x1c5   : > { %3104 = vmatmul.msk.bf16.vlgmr.msrb.gmra.mxu0 %vm1944_vm2, %v2224_v31  ;;  %v5060_v57 = vpop.eup %3590  ;;  %3598 = vpow2.f32 %v1783_v25  ;;  %v1865_v47 = vadd.f32 %v5050_v32, %v5041_v2  ;;  %v5931_v5 = vmax.f32 %v4841_v58, %v4832_v50  ;;  %v2024_v25 = vmul.f32 %v4926_v12, %v4805_v15  ;;  %v5935_v15 = vld [vmem:[#allocation43_spill] sm:$0xff] }
 0x1c6   : > { %v1941_v42 = vpack.c.bf16 %v1935_v53, %v1934_v20  ;;  %v1904_v61 = vadd.f32 %v5025_v13, %v1896_v27  ;;  %3600 = vpow2.f32 %v1807_v60  ;;  %3360 = vrot.lane.b32.xlu0 %v5058_v0, %s3654_s17  ;;  %3350 = vrot.lane.b32.xlu1 %v5058_v0, %s3655_s18  ;;  %v2025_v22 = vmul.f32 %v4979_v44, %v4857_v41 }
 0x1c7   : > { %v5068_v55 = vmax.f32 %v5931_v5, %v5044_v8  ;;  %v1873_v58 = vadd.f32 %v5060_v57, %v1865_v47  ;;  %3602 = vpow2.f32 %v1831_v62  ;;  %3355 = vrot.lane.b32.xlu2 %v5058_v0, %s5938_s30 }
 0x1c8   : > { %v5086_v20 = vpop.eup %3592  ;;  %v1912_v53 = vadd.f32 %v5034_v26, %v1904_v61  ;;  %3604 = vpow2.f32 %v1855_v49 }
 0x1c9   : > { %v1650_v1 = vsub.f32 %v5932_v40, %v5068_v55  ;;  %v1674_v60 = vsub.f32 %v5933_v10, %v5068_v55  ;;  %v1698_v31 = vsub.f32 %v5934_v38, %v5068_v55  ;;  %v1722_v27 = vsub.f32 %v5935_v15, %v5068_v55  ;;  %v5091_v41 = vpop.eup %3594 }
 0x1ca   : > { %v1881_v47 = vadd.f32 %v5086_v20, %v1873_v58  ;;  %v1746_v10 = vsub.f32 %v5936_v33, %v5068_v55  ;;  %v5096_v52 = vpop.eup %3596  ;;  %v1920_v38 = vadd.f32 %v5037_v9, %v1912_v53  ;;  %v1770_v62 = vsub.f32 %v4661_v28, %v5068_v55 }
 0x1cb   : > { %v1665_v5 = vmul.f32 1.442695, %v1650_v1  ;;  %v1689_v40 = vmul.f32 1.442695, %v1674_v60  ;;  %v5101_v61 = vpop.eup %3598  ;;  %v1713_v48 = vmul.f32 1.442695, %v1698_v31  ;;  %v2031_v60 = vpack.c.bf16 %v2025_v22, %v2024_v25 }
 0x1cc   : > { %v1889_v15 = vadd.f32 %v5091_v41, %v1881_v47  ;;  %v5104_v58 = vpop.eup %3600  ;;  %v1737_v1 = vmul.f32 1.442695, %v1722_v27  ;;  %v2125_v33 = vmul.f32 %v4926_v12, %v4814_v14  ;;  %v1761_v49 = vmul.f32 1.442695, %v1746_v10  ;;  %v5937_v14 = vld [vmem:[#allocation7_spill] sm:$0xff] }
 0x1cd   : > { %3606 = vpow2.f32 %v1665_v5  ;;  %v1794_v28 = vsub.f32 %v4789_v18, %v5068_v55  ;;  %v5112_v47 = vpop.eup %3602  ;;  %v1785_v31 = vmul.f32 1.442695, %v1770_v62  ;;  %v1818_v27 = vsub.f32 %v4832_v50, %v5068_v55 }
 0x1ce   : > { %3608 = vrcp.f32 %v1920_v38  ;;  %v1897_v53 = vadd.f32 %v5101_v61, %v1889_v15  ;;  %3093 = vmatmul.msk.bf16.gmra.mxu1 %vm1944_vm2, %v1941_v42  ;;  %v2126_v25 = vmul.f32 %v4979_v44, %v4865_v37  ;;  %v2218_v22 = vmul.f32 %v4926_v12, %v5937_v14  ;;  %v5131_v38 = vld [vmem:[%s4996_s23 + $0x18] sm:$0xff]  }
 0x1cf   : > { %3610 = vpow2.f32 %v1689_v40  ;;  %v2219_v18 = vmul.f32 %v4979_v44, %v4878_v36  ;;  %v5813_v42 = vunpack.c.h.bf16 %v5013_v34  ;;  %v5124_v40 = vpop.eup %3604  ;;  %v1842_v50 = vsub.f32 %v5044_v8, %v5068_v55 }
 0x1d0   : > { %v1905_v5 = vadd.f32 %v5104_v58, %v1897_v53  ;;  %3612 = vpow2.f32 %v1713_v48  ;;  %v2132_v37 = vpack.c.bf16 %v2126_v25, %v2125_v33  ;;  %v5812_v10 = vunpack.c.h.bf16 %v5023_v30  ;;  %v5137_v53 = vld [vmem:[%s4996_s23 + $0x24] sm:$0xff]  }
 0x1d1   : > { %3097 = vmatmul.msk.bf16.gmra.mxu2 %vm1944_vm2, %v2031_v60  ;;  %3614 = vpow2.f32 %v1737_v1  ;;  %v1809_v36 = vmul.f32 1.442695, %v1794_v28  ;;  %v2225_v15 = vpack.c.bf16 %v2219_v18, %v2218_v22  ;;  %v1936_v55 = vmul.f32 %v5096_v52, %v4922_v23 }
 0x1d2   : > { %v1913_v48 = vadd.f32 %v5112_v47, %v1905_v5  ;;  %3616 = vpow2.f32 %v1761_v49  ;;  %v3374_v8 = vpack.i.bf16 %v5812_v10, %v5813_v42  ;;  %v1833_v1 = vmul.f32 1.442695, %v1818_v27 }
 0x1d3   : > { %v5133_v62 = vpop.eup %3606  ;;  %3618 = vpow2.f32 %v1785_v31  ;;  %v5819_v28 = vunpack.c.l.bf16 %v5131_v38  ;;  %v5816_v25 = vunpack.c.l.bf16 %v5137_v53  ;;  %v2026_v31 = vmul.f32 %v5096_v52, %v4929_v54 }
 0x1d4   : > { %v5139_v14 = vpop.eup %3608  ;;  %v1921_v33 = vadd.f32 %v5124_v40, %v1913_v48  ;;  %3101 = vmatmul.msk.bf16.gmra.mxu3 %vm1944_vm2, %v2132_v37  ;;  %3375 = vrot.lane.b32.xlu0 %v3374_v8, %s3654_s17  ;;  %v2127_v5 = vmul.f32 %v5096_v52, %v4934_v4  ;;  %v2220_v54 = vmul.f32 %v5096_v52, %v4940_v46 }
 0x1d5   : > { %v5147_v60 = vpop.eup %3610  ;;  %3105 = vmatmul.msk.bf16.gmra.mxu0 %vm1944_vm2, %v2225_v15  ;;  %v1937_v23 = vmul.f32 %v5139_v14, %v4977_v59  ;;  %3365 = vrot.lane.b32.xlu1 %v3374_v8, %s3655_s18  ;;  %v2027_v22 = vmul.f32 %v5139_v14, %v4986_v43  ;;  %v2128_v18 = vmul.f32 %v5139_v14, %v4998_v6 }
 0x1d6   : > { %v1866_v49 = vadd.f32 %v5147_v60, %v5133_v62  ;;  %v5161_v27 = vpop.eup %3612  ;;  %3620 = vrcp.f32 %v1921_v33  ;;  %v2221_v48 = vmul.f32 %v5139_v14, %v5003_v63  ;;  %v1857_v33 = vmul.f32 1.442695, %v1842_v50  ;;  %3370 = vrot.lane.b32.xlu2 %v3374_v8, %s5938_s30  ;;  %v5941_v8 = vld [vmem:[#allocation24_spill] sm:$0xff] }
 0x1d7   : > { %v1942_v59 = vpack.c.bf16 %v1937_v23, %v1936_v55  ;;  %v5175_v15 = vpop.eup %3614  ;;  %3622 = vpow2.f32 %v1809_v36  ;;  %v2032_v43 = vpack.c.bf16 %v2027_v22, %v2026_v31  ;;  %v2133_v10 = vpack.c.bf16 %v2128_v18, %v2127_v5  ;;  %v5216_v5 = vld [vmem:[%s4996_s23 + $0x30] sm:$0xff]   ;;  %v5219_v18 = vld [vmem:[%s4996_s23 + $0x3c] sm:$0xff]  }
 0x1d8   : > { %v1874_v37 = vadd.f32 %v5161_v27, %v1866_v49  ;;  %v5177_v42 = vpop.eup %3616  ;;  %v5184_v6 = vpack.i.bf16 %v5816_v25, %v5819_v28  ;;  %v2226_v46 = vpack.c.bf16 %v2221_v48, %v2220_v54  ;;  %3624 = vpow2.f32 %v1833_v1 }
 0x1d9   : > { %v5186_v55 = vpop.eup %3618  ;;  %3626 = vpow2.f32 %v1857_v33  ;;  %v5817_v36 = vunpack.c.h.bf16 %v5131_v38  ;;  %v5814_v49 = vunpack.c.h.bf16 %v5137_v53  ;;  %v5818_v54 = vunpack.c.l.bf16 %v5216_v5 }
 0x1da   : > { %v1882_v4 = vadd.f32 %v5175_v15, %v1874_v37  ;;  %v5815_v48 = vunpack.c.l.bf16 %v5219_v18  ;;  %v5299_v25 = vmul.f32 %v5096_v52, %v4951_v56  ;;  %v5321_v56 = vmul.f32 %v5096_v52, %v4970_v51  ;;  %v5380_v51 = vld [vmem:[%s4996_s23 + $0x54] sm:$0xff]  }
 0x1dc   : > { %v1890_v63 = vadd.f32 %v5177_v42, %v1882_v4  ;;  %v5191_v50 = vpop.eup %3620  ;;  %3390 = vrot.lane.b32.xlu0 %v5184_v6, %s3654_s17  ;;  %v5939_v4 = vld [vmem:[#allocation4_spill] sm:$0xff] }
 0x1dd   : > { %v5200_v1 = vmul.f32 %v5191_v50, %v5041_v2  ;;  %v5204_v31 = vmul.f32 %v5191_v50, %v5050_v32  ;;  %v5208_v0 = vmul.f32 %v5191_v50, %v5060_v57  ;;  %v5210_v22 = vpop.eup %3622  ;;  %3380 = vrot.lane.b32.xlu1 %v5184_v6, %s3655_s18  ;;  %v5223_v2 = vmul.f32 %v5191_v50, %v5086_v20 }
 0x1de   : > { %v1898_v23 = vadd.f32 %v5186_v55, %v1890_v63  ;;  %3094 = vmatmul.msk.bf16.gmra.mxu1 %vm1944_vm2, %v1942_v59  ;;  %v5226_v37 = vpop.eup %3624  ;;  %v5234_v59 = vpack.i.bf16 %v5814_v49, %v5817_v36  ;;  %v5244_v63 = vmul.f32 %v4926_v12, %v5939_v4  ;;  %v2374_v49 = vunpack.c.h.bf16 %v5216_v5  ;;  %3385 = vrot.lane.b32.xlu2 %v5184_v6, %s5938_s30 }
 0x1df   : > { %v5238_v20 = vpop.eup %3626  ;;  %v5262_v4 = vmul.f32 %v4926_v12, %v5941_v8  ;;  %v5291_v8 = vmul.f32 %v4979_v44, %v4900_v29  ;;  %v5303_v36 = vmul.f32 %v5096_v52, %v4955_v19  ;;  %v5325_v19 = vmul.f32 %v5139_v14, %v5008_v45 }
 0x1e0   : > { %v1906_v32 = vadd.f32 %v5210_v22, %v1898_v23  ;;  %v5940_v23 = vld [vmem:[#allocation26_spill] sm:$0xff] }
 0x1e1   : > { %3098 = vmatmul.msk.bf16.gmra.mxu2 %vm1944_vm2, %v2032_v43  ;;  %v5248_v43 = vmul.f32 %v4979_v44, %v4887_v24  ;;  %v5266_v24 = vmul.f32 %v4979_v44, %v4896_v17 }
 0x1e2   : > { %v1914_v57 = vadd.f32 %v5226_v37, %v1906_v32  ;;  %v5252_v32 = vmul.f32 %v4926_v12, %v5940_v23 }
 0x1e4   : > { %v1922_v33 = vadd.f32 %v5238_v20, %v1914_v57  ;;  %3102 = vmatmul.msk.bf16.gmra.mxu3 %vm1944_vm2, %v2133_v10  ;;  %v5258_v57 = vmul.f32 %v4979_v44, %v4890_v11  ;;  %3405 = vrot.lane.b32.xlu0 %v5234_v59, %s3654_s17  ;;  %v5275_v11 = vpack.i.bf16 %v5815_v48, %v5818_v54 }
 0x1e5   : > { %3106 = vmatmul.msk.bf16.gmra.mxu0 %vm1944_vm2, %v2226_v46  ;;  %v2318_v10 = vpack.c.bf16 %v5248_v43, %v5244_v63  ;;  %3395 = vrot.lane.b32.xlu1 %v5234_v59, %s3655_s18  ;;  %v2504_v46 = vpack.c.bf16 %v5266_v24, %v5262_v4  ;;  %v5295_v48 = vmul.f32 %v5096_v52, %v4942_v39  ;;  %v5822_v63 = vunpack.c.h.bf16 %v5380_v51  ;;  %v5954_v24 = vld [vmem:[#allocation31_spill] sm:$0xff] }
 0x1e6   : > { %3628 = vrcp.f32 %v1922_v33  ;;  %v2403_v17 = vpack.c.bf16 %v5258_v57, %v5252_v32  ;;  %v5942_v33 = vld [vmem:[#allocation39_spill] sm:$0xff]  ;;  %v5313_v54 = vmul.f32 %v4926_v12, %v4843_v16  ;;  %v5317_v39 = vmul.f32 %v4979_v44, %v4905_v3  ;;  %3400 = vrot.lane.b32.xlu2 %v5234_v59, %s5938_s30  ;;  %v5943_v59 = vld [vmem:[#allocation13_spill] sm:$0xff] }
 0x1e7   : > { %v5287_v23 = vmul.f32 %v4926_v12, %v5942_v33  ;;  %v5307_v33 = vmul.f32 %v5096_v52, %v4962_v35  ;;  %v5329_v35 = vmul.f32 %v5139_v14, %v5016_v7  ;;  %v5333_v16 = vmul.f32 %v5139_v14, %v5025_v13 }
 0x1e8   : > { %v5337_v3 = vmul.f32 %v5139_v14, %v5034_v26  ;;  %v5821_v12 = vunpack.c.h.bf16 %v5219_v18  ;;  %v5344_v44 = vmul.f32 %v5139_v14, %v5037_v9  ;;  %v2319_v7 = vpack.c.bf16 %v5325_v19, %v5295_v48 }
 0x1e9   : > { %v2597_v29 = vpack.c.bf16 %v5291_v8, %v5287_v23  ;;  %v2404_v13 = vpack.c.bf16 %v5329_v35, %v5299_v25  ;;  %v5952_v32 = vpack.c.bf16 %v5333_v16, %v5303_v36  ;;  %v5957_v19 = vunpack.c.l.bf16 %v5013_v34 }
 0x1ea   : > { %v5953_v57 = vpack.c.bf16 %v5337_v3, %v5307_v33 }
 0x1ec   : > { %v3629_v45 = vpop.eup %3628  ;;  %3420 = vrot.lane.b32.xlu0 %v5275_v11, %s3654_s17 }
 0x1ed   : > { %v1939_v9 = vmul.f32 %v3629_v45, %v5133_v62  ;;  %v2029_v14 = vmul.f32 %v3629_v45, %v5147_v60  ;;  %v2130_v6 = vmul.f32 %v3629_v45, %v5161_v27  ;;  %v2223_v28 = vmul.f32 %v3629_v45, %v5175_v15  ;;  %3410 = vrot.lane.b32.xlu1 %v5275_v11, %s3655_s18  ;;  %v5377_v15 = vld [vmem:[%s4996_s23 + $0x48] sm:$0xff]  }
 0x1ee   : > { %v3434_v27 = vpack.i.bf16 %v5821_v12, %v2374_v49  ;;  %3415 = vrot.lane.b32.xlu2 %v5275_v11, %s5938_s30 }
 0x1ef   : > { %v1943_v52 = vpack.c.bf16 %v1939_v9, %v5200_v1  ;;  %v2033_v26 = vpack.c.bf16 %v2029_v14, %v5204_v31  ;;  %v2134_v62 = vpack.c.bf16 %v2130_v6, %v5208_v0  ;;  %v2227_v60 = vpack.c.bf16 %v2223_v28, %v5223_v2  ;;  %v5944_v9 = vld [vmem:[#allocation12_spill] sm:$0xff] }
 0x1f0   : > { %v2315_v1 = vmul.f32 %v5191_v50, %v5091_v41  ;;  %v2400_v31 = vmul.f32 %v5191_v50, %v5101_v61  ;;  %v2501_v28 = vmul.f32 %v5191_v50, %v5104_v58  ;;  %v2594_v0 = vmul.f32 %v5191_v50, %v5112_v47 }
 0x1f1   : > { %3095 = vmatmul.msk.bf16.gmra.mxu1 %vm1944_vm2, %v1943_v52  ;;  %3099 = vmatmul.msk.bf16.gmra.mxu2 %vm1944_vm2, %v2033_v26  ;;  %v5392_v2 = vmul.f32 %v5191_v50, %v5124_v40  ;;  %v2004_v41 = vunpack.c.l.bf16 %v5377_v15  ;;  %v5820_v26 = vunpack.c.l.bf16 %v5380_v51  ;;  %v2316_v58 = vmul.f32 %v3629_v45, %v5177_v42 }
 0x1f2   : > { %v2401_v47 = vmul.f32 %v3629_v45, %v5186_v55  ;;  %v2502_v40 = vmul.f32 %v3629_v45, %v5210_v22  ;;  %v2595_v50 = vmul.f32 %v3629_v45, %v5226_v37  ;;  %v2310_v52 = vmul.f32 %v4873_v21, %v5943_v59  ;;  %v5946_v22 = vld [vmem:[#allocation27_spill] sm:$0xff]  ;;  %v5947_v59 = vld [vmem:[#allocation8_spill] sm:$0xff] }
 0x1f3   : > { %v3449_v61 = vpack.i.bf16 %v5820_v26, %v2004_v41  ;;  %v2395_v14 = vmul.f32 %v4873_v21, %v5944_v9  ;;  %v5415_v6 = vmul.f32 %v3629_v45, %v5238_v20  ;;  %v5945_v26 = vld [vmem:[#allocation33_spill] sm:$0xff]  ;;  %v2394_v9 = vmul.f32 %v5946_v22, %v5947_v59  ;;  %v5948_v45 = vld [vmem:[#allocation11_spill] sm:$0xff] }
 0x1f4   : > { %3103 = vmatmul.msk.bf16.gmra.mxu3 %vm1944_vm2, %v2134_v62  ;;  %3435 = vrot.lane.b32.xlu0 %v3434_v27, %s3654_s17  ;;  %v2320_v62 = vpack.c.bf16 %v2316_v58, %v2315_v1  ;;  %v2405_v42 = vpack.c.bf16 %v2401_v47, %v2400_v31  ;;  %v2599_v55 = vpack.c.bf16 %v2595_v50, %v2594_v0  ;;  %v5949_v31 = vld [vmem:[#allocation23_spill] sm:$0xff]  ;;  %v5950_v0 = vld [vmem:[#allocation9_spill] sm:$0xff] }
 0x1f5   : > { %3107 = vmatmul.msk.bf16.gmra.mxu0 %vm1944_vm2, %v2227_v60  ;;  %3425 = vrot.lane.b32.xlu1 %v3434_v27, %s3655_s18  ;;  %v2506_v60 = vpack.c.bf16 %v2502_v40, %v2501_v28  ;;  %v2309_v12 = vmul.f32 %v5946_v22, %v5945_v26  ;;  %v2692_v37 = vpack.c.bf16 %v5415_v6, %v5392_v2  ;;  %v5951_v58 = vld [vmem:[#allocation17_spill] sm:$0xff] }
 0x1f6   : > { %v2496_v11 = vmul.f32 %v4873_v21, %v5948_v45  ;;  %v2402_v1 = vpack.c.bf16 %v2395_v14, %v2394_v9  ;;  %v2589_v28 = vmul.f32 %v4873_v21, %v5949_v31  ;;  %v2495_v26 = vmul.f32 %v5946_v22, %v5950_v0  ;;  %3430 = vrot.lane.b32.xlu2 %v3434_v27, %s5938_s30 }
 0x1f7   : > { %v2317_v20 = vpack.c.bf16 %v2310_v52, %v2309_v12  ;;  %v2588_v47 = vmul.f32 %v5946_v22, %v5951_v58  ;;  %v5823_v21 = vunpack.c.h.bf16 %v5377_v15  ;;  %v5958_v22 = vpack.c.bf16 %v5317_v39, %v5313_v54 }
 0x1f8   : > { %v2503_v40 = vpack.c.bf16 %v2496_v11, %v2495_v26  ;;  %v5959_v0 = vunpack.c.l.bf16 %v5131_v38 }
 0x1f9   : > { %v2596_v50 = vpack.c.bf16 %v2589_v28, %v2588_v47  ;;  %v3464_v43 = vpack.i.bf16 %v5822_v63, %v5823_v21  ;;  %v5963_v21 = vunpack.c.h.bf16 %v5013_v34 }
 0x1fc   : > { %3450 = vrot.lane.b32.xlu0 %v3449_v61, %s3654_s17 }
 0x1fd   : > { %3440 = vrot.lane.b32.xlu1 %v3449_v61, %s3655_s18 }
 0x1fe   : > { %3445 = vrot.lane.b32.xlu2 %v3449_v61, %s5938_s30 }
 0x201   : > { %3108 = vmatmul.msk.bf16.vlgmr.msrb.gmra.mxu1 %vm1944_vm2, %v2317_v20  ;;  %3112 = vmatmul.msk.bf16.vlgmr.msrb.gmra.mxu2 %vm1944_vm2, %v2402_v1 }
 0x204   : > { %3116 = vmatmul.msk.bf16.vlgmr.msra.gmra.mxu3 %vm1944_vm2, %v2503_v40  ;;  %3465 = vrot.lane.b32.xlu0 %v3464_v43, %s3654_s17 }
 0x205   : > { %3120 = vmatmul.msk.bf16.vlgmr.msra.gmra.mxu0 %vm1944_vm2, %v2596_v50  ;;  %3455 = vrot.lane.b32.xlu1 %v3464_v43, %s3655_s18 }
 0x206   : > { %3460 = vrot.lane.b32.xlu2 %v3464_v43, %s5938_s30 }
 0x211   : > { %3109 = vmatmul.msk.bf16.gmra.mxu1 %vm1944_vm2, %v2318_v10  ;;  %3113 = vmatmul.msk.bf16.gmra.mxu2 %vm1944_vm2, %v2403_v17  ;;  %v5955_v10 = vld [vmem:[#allocation15_spill] sm:$0xff] }
 0x212   : > { %v5956_v17 = vpack.c.bf16 %v5954_v24, %v5955_v10 }
 0x214   : > { %3117 = vmatmul.msk.bf16.gmra.mxu3 %vm1944_vm2, %v2504_v46 }
 0x215   : > { %3121 = vmatmul.msk.bf16.gmra.mxu0 %vm1944_vm2, %v2597_v29 }
 0x221   : > { %3110 = vmatmul.msk.bf16.gmra.mxu1 %vm1944_vm2, %v2319_v7  ;;  %3114 = vmatmul.msk.bf16.gmra.mxu2 %vm1944_vm2, %v2404_v13  ;;  %v5485_v25 = vpop.permute.xlu2 %3355 }
 0x222   : > { %v3357_v33 = vunpack.i.l.bf16 %v5485_v25 }
 0x224   : > { %3118 = vmatmul.msk.bf16.gmra.mxu3 %vm1944_vm2, %v5952_v32 }
 0x225   : > { %3122 = vmatmul.msk.bf16.gmra.mxu0 %vm1944_vm2, %v5953_v57 }
 0x230   : > { %v5490_v4 = vpop.permute.xlu2 %3370 }
 0x231   : > { %3111 = vmatmul.msk.bf16.gmra.mxu1 %vm1944_vm2, %v2320_v62  ;;  %3115 = vmatmul.msk.bf16.gmra.mxu2 %vm1944_vm2, %v2405_v42 }
 0x234   : > { %3119 = vmatmul.msk.bf16.gmra.mxu3 %vm1944_vm2, %v2506_v60 }
 0x235   : > { %3123 = vmatmul.msk.bf16.gmra.mxu0 %vm1944_vm2, %v2599_v55 }
 0x238   : > { %v5488_v48 = vpop.permute.xlu1 %3350  ;;  %v5497_v23 = vpop.permute.xlu0 %3360 }
 0x239   : > { %v3352_v46 = vunpack.i.l.bf16 %v5488_v48  ;;  %v5506_v61 = vpop.permute.xlu2 %3385  ;;  %v3362_v9 = vunpack.i.l.bf16 %v5497_v23 }
 0x23a   : > { %v3387_v1 = vunpack.i.l.bf16 %v5506_v61 }
 0x23b   : > { %v1970_v36 = vpop.f32.mrf.mxu1 }
 0x23c   : > { %v2006_v35 = vmul.f32 %v5957_v19, %v1970_v36 }
 0x241   : > { %3124 = vmatmul.msk.bf16.vlgmr.msra.gmra.mxu1 %vm1944_vm2, %v5956_v17  ;;  %v5526_v11 = vpop.permute.xlu2 %3400 }
 0x242   : > { %v2249_v3 = vpop.f32.mrf.mxu0 }
 0x243   : > { %v5499_v8 = vpop.f32.mrf.mxu1  ;;  %v2293_v28 = vmul.f32 %v3362_v9, %v2249_v3 }
 0x244   : > { %v2055_v29 = vpop.f32.mrf.mxu2 }
 0x245   : > { %v2107_v16 = vmul.f32 %v3352_v46, %v2055_v29 }
 0x246   : > { %v5508_v62 = vpop.permute.xlu0 %3375 }
 0x247   : > { %v2115_v12 = vadd.f32 %v2107_v16, %v2006_v35  ;;  %v2156_v7 = vpop.f32.mrf.mxu3  ;;  %v5504_v27 = vpop.permute.xlu1 %3365 }
 0x248   : > { %v2200_v13 = vmul.f32 %v3357_v33, %v2156_v7  ;;  %v5960_v33 = vpack.c.bf16 %v5344_v44, %v5321_v56 }
 0x249   : > { %v5537_v10 = vpop.permute.xlu2 %3415 }
 0x24a   : > { %v2208_v52 = vadd.f32 %v2200_v13, %v2115_v12  ;;  %v5514_v55 = vpop.f32.mrf.mxu0  ;;  %v3417_v12 = vunpack.i.l.bf16 %v5537_v10 }
 0x24b   : > { %v1975_v14 = vpop.f32.mrf.mxu1 }
 0x24c   : > { %v5510_v42 = vpop.f32.mrf.mxu2  ;;  %v2008_v26 = vmul.f32 %v5959_v0, %v1975_v14  ;;  %v2301_v40 = vadd.f32 %v2293_v28, %v2208_v52  ;;  %v5961_v52 = vunpack.c.l.bf16 %v5216_v5  ;;  %v5968_v5 = vunpack.c.l.bf16 %v5023_v30 }
 0x24e   : > { %v5531_v39 = vpop.permute.xlu0 %3390 }
 0x24f   : > { %v5512_v60 = vpop.f32.mrf.mxu3  ;;  %v5520_v59 = vpop.permute.xlu1 %3380  ;;  %v3392_v19 = vunpack.i.l.bf16 %v5531_v39 }
 0x250   : > { %v3382_v20 = vunpack.i.l.bf16 %v5520_v59 }
 0x251   : > { %3125 = vmatmul.msk.bf16.gmra.mxu1 %vm1944_vm2, %v5958_v22  ;;  %v5558_v9 = vpop.permute.xlu2 %3430 }
 0x252   : > { %v2254_v32 = vpop.f32.mrf.mxu0 }
 0x253   : > { %v5524_v45 = vpop.f32.mrf.mxu1  ;;  %v2295_v13 = vmul.f32 %v3392_v19, %v2254_v32 }
 0x254   : > { %v2060_v31 = vpop.f32.mrf.mxu2 }
 0x255   : > { %v2109_v54 = vmul.f32 %v3382_v20, %v2060_v31 }
 0x256   : > { %v5541_v46 = vpop.permute.xlu0 %3405 }
 0x257   : > { %v2117_v58 = vadd.f32 %v2109_v54, %v2008_v26  ;;  %v2161_v47 = vpop.f32.mrf.mxu3  ;;  %v5533_v43 = vpop.permute.xlu1 %3395 }
 0x258   : > { %v2202_v50 = vmul.f32 %v3387_v1, %v2161_v47 }
 0x25a   : > { %v2210_v57 = vadd.f32 %v2202_v50, %v2117_v58  ;;  %v5553_v3 = vpop.f32.mrf.mxu0 }
 0x25b   : > { %v1980_v36 = vpop.f32.mrf.mxu1 }
 0x25c   : > { %v5535_v24 = vpop.f32.mrf.mxu2  ;;  %v2010_v14 = vmul.f32 %v5961_v52, %v1980_v36  ;;  %v2303_v20 = vadd.f32 %v2295_v13, %v2210_v57  ;;  %v5575_v57 = vpop.permute.xlu2 %3445 }
 0x25e   : > { %v5562_v28 = vpop.permute.xlu0 %3420 }
 0x25f   : > { %v5539_v17 = vpop.f32.mrf.mxu3  ;;  %v5547_v29 = vpop.permute.xlu1 %3410  ;;  %v3422_v32 = vunpack.i.l.bf16 %v5562_v28 }
 0x260   : > { %v3412_v35 = vunpack.i.l.bf16 %v5547_v29 }
 0x261   : > { %3126 = vmatmul.msk.bf16.gmra.mxu1 %vm1944_vm2, %v5960_v33  ;;  %v3148_v33 = vld [vmem:[%s5755_s6 + $0x8] sm:$0xff] }
 0x262   : > { %v2259_v58 = vpop.f32.mrf.mxu0  ;;  %2808 = vmatpush.bf16.msra.mxu2 %v3148_v33 }
 0x263   : > { %v5551_v16 = vpop.f32.mrf.mxu1  ;;  %v2297_v2 = vmul.f32 %v3422_v32, %v2259_v58 }
 0x264   : > { %v2065_v7 = vpop.f32.mrf.mxu2 }
 0x265   : > { %v2111_v56 = vmul.f32 %v3412_v35, %v2065_v7  ;;  %v3447_v35 = vunpack.i.l.bf16 %v5575_v57 }
 0x266   : > { %v5581_v19 = vpop.permute.xlu0 %3435 }
 0x267   : > { %v2119_v44 = vadd.f32 %v2111_v56, %v2010_v14  ;;  %v2166_v22 = vpop.f32.mrf.mxu3  ;;  %v5560_v31 = vpop.permute.xlu1 %3425 }
 0x268   : > { %v2204_v1 = vmul.f32 %v3417_v12, %v2166_v22 }
 0x26a   : > { %v2212_v0 = vadd.f32 %v2204_v1, %v2119_v44  ;;  %v5588_v56 = vpop.f32.mrf.mxu0 }
 0x26c   : > { %v5564_v26 = vpop.f32.mrf.mxu2  ;;  %v2305_v14 = vadd.f32 %v2297_v2, %v2212_v0  ;;  %v5964_v0 = vunpack.c.h.bf16 %v5131_v38 }
 0x26e   : > { %v1985_v54 = vpop.f32.mrf.mxu1  ;;  %v5590_v63 = vpop.permute.xlu0 %3450 }
 0x26f   : > { %v5566_v47 = vpop.f32.mrf.mxu3  ;;  %v5572_v50 = vpop.permute.xlu1 %3440  ;;  %v2012_v6 = vmul.f32 %v2004_v41, %v1985_v54  ;;  %5962 = vst [vmem:[#allocation5_spill] sm:$0xff] %v5590_v63  ;;  %v3452_v32 = vunpack.i.l.bf16 %v5590_v63 }
 0x270   : > { %v3442_v36 = vunpack.i.l.bf16 %v5572_v50 }
 0x271   : > { %3127 = vmatmul.msk.bf16.gmra.mxu1 %vm1944_vm2, %v2692_v37 }
 0x272   : > { %v2264_v41 = vpop.f32.mrf.mxu0 }
 0x273   : > { %v2299_v54 = vmul.f32 %v3452_v32, %v2264_v41 }
 0x274   : > { %v2070_v12 = vpop.f32.mrf.mxu2 }
 0x275   : > { %v2113_v37 = vmul.f32 %v3442_v36, %v2070_v12 }
 0x276   : > { %v5586_v7 = vpop.f32.mrf.mxu1 }
 0x277   : > { %v2121_v13 = vadd.f32 %v2113_v37, %v2012_v6  ;;  %v2171_v52 = vpop.f32.mrf.mxu3 }
 0x278   : > { %v2206_v44 = vmul.f32 %v3447_v35, %v2171_v52  ;;  %v3147_v35 = vld [vmem:[%s5755_s6] sm:$0xff] }
 0x279   : > { %2809 = vmatpush.bf16.msra.mxu2 %v3147_v35 }
 0x27a   : > { %v2214_v22 = vadd.f32 %v2206_v44, %v2121_v13  ;;  %v5610_v44 = vpop.f32.mrf.mxu0 }
 0x27b   : > { %5966 = vst [vmem:[#allocation14_spill] sm:$0xff] %v5610_v44 }
 0x27c   : > { %v2307_v12 = vadd.f32 %v2299_v54, %v2214_v22 }
 0x27e   : > { %v2342_v1 = vpop.f32.mrf.mxu1 }
 0x27f   : > { %v2378_v33 = vmul.f32 %v5963_v21, %v2342_v1  ;;  %v5604_v21 = vpop.f32.mrf.mxu2 }
 0x281   : > { %v2386_v58 = vadd.f32 %v2378_v33, %v2301_v40  ;;  %v5606_v40 = vpop.f32.mrf.mxu3  ;;  %v3353_v33 = vunpack.i.h.bf16 %v5488_v48  ;;  %v3363_v48 = vunpack.i.h.bf16 %v5497_v23 }
 0x282   : > { %5965 = vst [vmem:[#allocation6_spill] sm:$0xff] %v5606_v40  ;;  %v2621_v32 = vpop.f32.mrf.mxu0 }
 0x286   : > { %v2344_v36 = vpop.f32.mrf.mxu1 }
 0x289   : > { %v2528_v1 = vpop.f32.mrf.mxu3 }
 0x28a   : > { %v2623_v63 = vpop.f32.mrf.mxu0 }
 0x28e   : > { %v2347_v6 = vpop.f32.mrf.mxu1 }
 0x28f   : > { %v2380_v2 = vmul.f32 %v5964_v0, %v2347_v6  ;;  %v2108_v6 = vmul.f32 %v3353_v33, %v5510_v42  ;;  %v5967_v0 = vunpack.c.h.bf16 %v5377_v15  ;;  %v3368_v15 = vunpack.i.h.bf16 %v5504_v27 }
 0x291   : > { %v5597_v37 = vadd.f32 %v2380_v2, %v2303_v20  ;;  %v2427_v20 = vpop.f32.mrf.mxu2 }
 0x296   : > { %v5602_v34 = vpop.f32.mrf.mxu1 }
 0x299   : > { %v2429_v41 = vpop.f32.mrf.mxu2 }
 0x29e   : > { %v2352_v13 = vpop.f32.mrf.mxu1 }
 0x29f   : > { %v2382_v52 = vmul.f32 %v2374_v49, %v2352_v13  ;;  %v3358_v49 = vunpack.i.h.bf16 %v5485_v25  ;;  %v2530_v13 = vpop.f32.mrf.mxu3  ;;  %v3367_v25 = vunpack.i.l.bf16 %v5504_v27  ;;  %v2734_v27 = vld [vmem:[%s4996_s23 + $0x8] sm:$0xf] }
 0x2a1   : > { %v5612_v38 = vadd.f32 %v2382_v52, %v2305_v14  ;;  %v2007_v14 = vmul.f32 %v5968_v5, %v5499_v8  ;;  %v2201_v44 = vmul.f32 %v3358_v49, %v5512_v60  ;;  %v2432_v40 = vpop.f32.mrf.mxu2  ;;  %v2294_v8 = vmul.f32 %v3363_v48, %v5514_v55  ;;  %v2735_v48 = vld [vmem:[%s4996_s23 + $0x14] sm:$0xf] }
 0x2a2   : > { %v2479_v23 = vmul.f32 %v3367_v25, %v2427_v20  ;;  %v2480_v60 = vmul.f32 %v3368_v15, %v2429_v41  ;;  %v3373_v49 = vunpack.i.h.bf16 %v5490_v4  ;;  %v3372_v5 = vunpack.i.l.bf16 %v5490_v4 }
 0x2a3   : > { %v2116_v52 = vadd.f32 %v2108_v6, %v2007_v14  ;;  %v3383_v6 = vunpack.i.h.bf16 %v5520_v59  ;;  %v3378_v59 = vunpack.i.h.bf16 %v5508_v62  ;;  %v3388_v20 = vunpack.i.h.bf16 %v5506_v61 }
 0x2a4   : > { %v2487_v55 = vadd.f32 %v2479_v23, %v2386_v58  ;;  %v5972_v4 = vunpack.c.l.bf16 %v5137_v53  ;;  %v2572_v25 = vmul.f32 %v3372_v5, %v2528_v1 }
 0x2a5   : > { %v2209_v33 = vadd.f32 %v2201_v44, %v2116_v52  ;;  %v2110_v44 = vmul.f32 %v3383_v6, %v5535_v24  ;;  %v3393_v6 = vunpack.i.h.bf16 %v5531_v39  ;;  %v2203_v23 = vmul.f32 %v3388_v20, %v5539_v17 }
 0x2a6   : > { %v5614_v22 = vpop.f32.mrf.mxu1  ;;  %v2009_v15 = vmul.f32 %v5972_v4, %v5524_v45  ;;  %v2580_v58 = vadd.f32 %v2572_v25, %v2487_v55  ;;  %v5973_v39 = vunpack.c.h.bf16 %v5137_v53  ;;  %v3403_v20 = vunpack.i.h.bf16 %v5526_v11 }
 0x2a7   : > { %v3407_v25 = vunpack.i.l.bf16 %v5541_v46 }
 0x2a8   : > { %v2118_v24 = vadd.f32 %v2110_v44, %v2009_v15  ;;  %v2381_v17 = vmul.f32 %v5973_v39, %v5602_v34  ;;  %v3413_v44 = vunpack.i.h.bf16 %v5547_v29  ;;  %v2736_v34 = vld [vmem:[%s4996_s23 + $0x20] sm:$0xf]  ;;  %v3443_v39 = vunpack.i.h.bf16 %v5572_v50 }
 0x2a9   : > { %v2434_v41 = vpop.f32.mrf.mxu2 }
 0x2aa   : > { %v2211_v1 = vadd.f32 %v2203_v23, %v2118_v24  ;;  %v2112_v4 = vmul.f32 %v3413_v44, %v5564_v26  ;;  %v3433_v44 = vunpack.i.h.bf16 %v5558_v9 }
 0x2ae   : > { %v2357_v54 = vpop.f32.mrf.mxu1 }
 0x2af   : > { %v2384_v2 = vmul.f32 %v5967_v0, %v2357_v54  ;;  %v2302_v0 = vadd.f32 %v2294_v8, %v2209_v33  ;;  %v2573_v33 = vmul.f32 %v3373_v49, %v2530_v13  ;;  %v2742_v8 = vunpack.c.l.bf16 %v2734_v27 }
 0x2b0   : > { %v2296_v27 = vmul.f32 %v3393_v6, %v5553_v3  ;;  %v3402_v3 = vunpack.i.l.bf16 %v5526_v11  ;;  %v5974_v11 = vunpack.c.l.bf16 %v5219_v18 }
 0x2b1   : > { %v5624_v35 = vadd.f32 %v2384_v2, %v2307_v12  ;;  %v5971_v12 = vunpack.c.h.bf16 %v5023_v30  ;;  %v2533_v2 = vpop.f32.mrf.mxu3  ;;  %v5640_v30 = vpop.f32.mrf.mxu0 }
 0x2b2   : > { %v2437_v55 = vpop.f32.mrf.mxu2  ;;  %v2011_v24 = vmul.f32 %v5974_v11, %v5551_v16  ;;  %v3427_v16 = vunpack.i.l.bf16 %v5560_v31  ;;  %v3456_v11 = vpop.permute.xlu1 %3455 }
 0x2b3   : > { %5969 = vst [vmem:[#allocation16_spill] sm:$0xff] %v5624_v35  ;;  %v2379_v54 = vmul.f32 %v5971_v12, %v2344_v36  ;;  %v3377_v36 = vunpack.i.l.bf16 %v5508_v62 }
 0x2b4   : > { %v2120_v6 = vadd.f32 %v2112_v4, %v2011_v24 }
 0x2b5   : > { %v2387_v14 = vadd.f32 %v2379_v54, %v2302_v0  ;;  %v2743_v54 = vunpack.c.l.bf16 %v2735_v48  ;;  %v2665_v62 = vmul.f32 %v3377_v36, %v2621_v32  ;;  %v2666_v0 = vmul.f32 %v3378_v59, %v2623_v63 }
 0x2b6   : > { %v5628_v42 = vpop.f32.mrf.mxu1 }
 0x2b7   : > { %5970 = vst [vmem:[#allocation21_spill] sm:$0xff] %v5628_v42  ;;  %v2488_v52 = vadd.f32 %v2480_v60, %v2387_v14  ;;  %v3398_v60 = vunpack.i.h.bf16 %v5533_v43  ;;  %v3397_v14 = vunpack.i.l.bf16 %v5533_v43  ;;  %v2673_v13 = vadd.f32 %v2665_v62, %v2580_v58 }
 0x2b8   : > { %v2574_v58 = vmul.f32 %v3402_v3, %v2533_v2  ;;  %v3448_v3 = vunpack.i.h.bf16 %v5575_v57 }
 0x2b9   : > { %v2581_v12 = vadd.f32 %v2573_v33, %v2488_v52  ;;  %v2535_v42 = vpop.f32.mrf.mxu3  ;;  %v2628_v32 = vpop.f32.mrf.mxu0  ;;  %v2481_v43 = vmul.f32 %v3397_v14, %v2432_v40  ;;  %v2304_v52 = vadd.f32 %v2296_v27, %v2211_v1  ;;  %v2482_v59 = vmul.f32 %v3398_v60, %v2434_v41 }
 0x2ba   : > { %v3408_v40 = vunpack.i.h.bf16 %v5541_v46  ;;  %v3418_v41 = vunpack.i.h.bf16 %v5537_v10  ;;  %v2667_v10 = vmul.f32 %v3407_v25, %v5640_v30 }
 0x2bb   : > { %v2674_v49 = vadd.f32 %v2666_v0, %v2581_v12  ;;  %v2389_v48 = vadd.f32 %v2381_v17, %v2304_v52  ;;  %v2489_v15 = vadd.f32 %v2481_v43, %v5597_v37  ;;  %v2575_v12 = vmul.f32 %v3403_v20, %v2535_v42 }
 0x2bc   : > { %v3423_v0 = vunpack.i.h.bf16 %v5562_v28  ;;  %v2205_v46 = vmul.f32 %v3418_v41, %v5566_v47  ;;  %v2668_v60 = vmul.f32 %v3408_v40, %v2628_v32  ;;  %v5975_v28 = vunpack.c.h.bf16 %v5219_v18 }
 0x2bd   : > { %v2490_v29 = vadd.f32 %v2482_v59, %v2389_v48  ;;  %v2582_v26 = vadd.f32 %v2574_v58, %v2489_v15  ;;  %v2483_v32 = vmul.f32 %v3427_v16, %v2437_v55  ;;  %v3432_v43 = vunpack.i.l.bf16 %v5558_v9  ;;  %v5978_v58 = vld [vmem:[#allocation5_spill] sm:$0xff] }
 0x2be   : > { %v2714_v35 = vpop.f32.mrf.mxu1  ;;  %v2213_v2 = vadd.f32 %v2205_v46, %v2120_v6  ;;  %v2383_v27 = vmul.f32 %v5975_v28, %v5614_v22  ;;  %v2114_v18 = vmul.f32 %v3443_v39, %v5604_v21  ;;  %v3438_v20 = vunpack.i.h.bf16 %v5581_v19  ;;  %v3466_v28 = vpop.permute.xlu0 %3465 }
 0x2bf   : > { %v2750_v61 = vmul.f32 %v2742_v8, %v2714_v35  ;;  %v2737_v8 = vld [vmem:[%s4996_s23 + $0x2c] sm:$0xf]  ;;  %v2583_v23 = vadd.f32 %v2575_v12, %v2490_v29  ;;  %v2675_v1 = vadd.f32 %v2667_v10, %v2582_v26  ;;  %v2491_v50 = vadd.f32 %v2483_v32, %v5612_v38  ;;  %v5977_v38 = vld [vmem:[#allocation6_spill] sm:$0xff]  ;;  %v2740_v32 = vld [vmem:[%s4996_s23 + $0x50] sm:$0xf] }
 0x2c0   : > { %v2745_v62 = vunpack.c.l.bf16 %v2737_v8  ;;  %v5976_v48 = vunpack.c.l.bf16 %v5380_v51  ;;  %v2207_v8 = vmul.f32 %v3448_v3, %v5977_v38  ;;  %v3453_v57 = vunpack.i.h.bf16 %v5978_v58  ;;  %v5979_v10 = vld [vmem:[#allocation14_spill] sm:$0xff] }
 0x2c1   : > { %v2758_v63 = vadd.f32 %v2750_v61, %v2673_v13  ;;  %v2538_v33 = vpop.f32.mrf.mxu3  ;;  %v2631_v37 = vpop.f32.mrf.mxu0  ;;  %v2676_v13 = vadd.f32 %v2668_v60, %v2583_v23  ;;  %v3458_v26 = vunpack.i.h.bf16 %v3456_v11 }
 0x2c2   : > { %v2439_v61 = vpop.f32.mrf.mxu2  ;;  %v2013_v9 = vmul.f32 %v5976_v48, %v5586_v7  ;;  %v2576_v4 = vmul.f32 %v3432_v43, %v2538_v33  ;;  %v2300_v60 = vmul.f32 %v3453_v57, %v5979_v10  ;;  %v3467_v43 = vunpack.i.l.bf16 %v3466_v28  ;;  %v3185_v10 = vld [vmem:[%s5709_s28 + $0x10] sm:$0xff]  }
 0x2c4   : > { %v2122_v29 = vadd.f32 %v2114_v18, %v2013_v9  ;;  %v2584_v40 = vadd.f32 %v2576_v4, %v2491_v50  ;;  %v2748_v18 = vunpack.c.l.bf16 %v2740_v32 }
 0x2c6   : > { %v2716_v45 = vpop.f32.mrf.mxu1  ;;  %v2215_v7 = vadd.f32 %v2207_v8, %v2122_v29  ;;  %v3166_v29 = vld [vmem:[%s5709_s28] sm:$0xff]  }
 0x2c7   : > { %v2751_v5 = vmul.f32 %v2743_v54, %v2716_v45  ;;  %v2744_v54 = vunpack.c.l.bf16 %v2736_v34  ;;  %v3428_v45 = vunpack.i.h.bf16 %v5560_v31  ;;  %v3437_v34 = vunpack.i.l.bf16 %v5581_v19 }
 0x2c8   : > { %v3457_v19 = vunpack.i.l.bf16 %v3456_v11 }
 0x2c9   : > { %v2759_v35 = vadd.f32 %v2751_v5, %v2674_v49  ;;  %v2298_v5 = vmul.f32 %v3423_v0, %v5588_v56  ;;  %v2540_v17 = vpop.f32.mrf.mxu3  ;;  %v2484_v31 = vmul.f32 %v3428_v45, %v2439_v61  ;;  %v2633_v52 = vpop.f32.mrf.mxu0  ;;  %v2669_v12 = vmul.f32 %v3437_v34, %v2631_v37 }
 0x2ca   : > { %v2442_v22 = vpop.f32.mrf.mxu2  ;;  %v2577_v15 = vmul.f32 %v3433_v44, %v2540_v17  ;;  %v5981_v45 = vunpack.c.h.bf16 %v5380_v51  ;;  %v5982_v51 = vld [vmem:[#allocation16_spill] sm:$0xff]  ;;  %v2741_v44 = vld [vmem:[%s4996_s23 + $0x5c] sm:$0xf] }
 0x2cb   : > { %v2766_v36 = vpack.c.bf16 %v2759_v35, %v2758_v63  ;;  %v2306_v63 = vadd.f32 %v2298_v5, %v2213_v2  ;;  %v2677_v33 = vadd.f32 %v2669_v12, %v2584_v40  ;;  %v3461_v2 = vpop.permute.xlu2 %3460  ;;  %v2749_v50 = vunpack.c.l.bf16 %v2741_v44  ;;  %v3469_v40 = vld [vmem:[%s5756_s7] ss:$0 sm:$0xff] }
 0x2cd   : > { %3136 = vmatmul.msk.bf16.vlgmr.msra.gmra.mxu2 %vm569_vm0, %v2766_v36  ;;  %v2391_v56 = vadd.f32 %v2383_v27, %v2306_v63  ;;  %v2738_v36 = vld [vmem:[%s4996_s23 + $0x38] sm:$0xf]  ;;  %v3463_v27 = vunpack.i.h.bf16 %v3461_v2 }
 0x2ce   : > { %v2719_v53 = vpop.f32.mrf.mxu1  ;;  %v2746_v21 = vunpack.c.l.bf16 %v2738_v36 }
 0x2cf   : > { %v2752_v14 = vmul.f32 %v2744_v54, %v2719_v53  ;;  %v2492_v55 = vadd.f32 %v2484_v31, %v2391_v56  ;;  %v2739_v53 = vld [vmem:[%s4996_s23 + $0x44] sm:$0xf]  ;;  %v2670_v54 = vmul.f32 %v3438_v20, %v2633_v52 }
 0x2d0   : > { %v2747_v41 = vunpack.c.l.bf16 %v2739_v53 }
 0x2d1   : > { %v2760_v47 = vadd.f32 %v2752_v14, %v2675_v1  ;;  %v2585_v25 = vadd.f32 %v2577_v15, %v2492_v55  ;;  %v2543_v24 = vpop.f32.mrf.mxu3  ;;  %v2636_v61 = vpop.f32.mrf.mxu0  ;;  %v5980_v14 = vld [vmem:[#allocation21_spill] sm:$0xff]  ;;  %v2485_v1 = vmul.f32 %v3457_v19, %v2442_v22 }
 0x2d2   : > { %v2444_v46 = vpop.f32.mrf.mxu2  ;;  %v2385_v16 = vmul.f32 %v5981_v45, %v5980_v14  ;;  %v2671_v55 = vmul.f32 %v3467_v43, %v2636_v61  ;;  %v3175_v14 = vunpack.c.l.bf16 %v3185_v10 }
 0x2d3   : > { %v2493_v63 = vadd.f32 %v2485_v1, %v5982_v51 }
 0x2d6   : > { %v2721_v42 = vpop.f32.mrf.mxu1 }
 0x2d7   : > { %v2753_v49 = vmul.f32 %v2745_v62, %v2721_v42  ;;  %v2678_v62 = vadd.f32 %v2670_v54, %v2585_v25  ;;  %v3167_v25 = vunpack.c.l.bf16 %v3166_v29  ;;  %v3184_v54 = vld [vmem:[%s5709_s28 + $0x8] sm:$0xff]  }
 0x2d9   : > { %v2761_v30 = vadd.f32 %v2753_v49, %v2676_v13  ;;  %v2308_v13 = vadd.f32 %v2300_v60, %v2215_v7  ;;  %v2486_v49 = vmul.f32 %v3458_v26, %v2444_v46  ;;  %v2545_v39 = vpop.f32.mrf.mxu3  ;;  %v2638_v22 = vpop.f32.mrf.mxu0  ;;  %v3171_v7 = vunpack.c.l.bf16 %v3184_v54 }
 0x2da   : > { %v2579_v52 = vmul.f32 %v3463_v27, %v2545_v39 }
 0x2db   : > { %v2767_v35 = vpack.c.bf16 %v2761_v30, %v2760_v47  ;;  %v3462_v47 = vunpack.i.l.bf16 %v3461_v2  ;;  %v2393_v30 = vadd.f32 %v2385_v16, %v2308_v13  ;;  %v3176_v2 = vunpack.c.h.bf16 %v3185_v10 }
 0x2dd   : > { %3137 = vmatmul.msk.bf16.gmra.mxu2 %vm569_vm0, %v2767_v35  ;;  %v2494_v31 = vadd.f32 %v2486_v49, %v2393_v30  ;;  %v3468_v35 = vunpack.i.h.bf16 %v3466_v28  ;;  %v2578_v56 = vmul.f32 %v3462_v47, %v2543_v24  ;;  %v3168_v24 = vunpack.c.h.bf16 %v3166_v29 }
 0x2de   : > { %v2724_v59 = vpop.f32.mrf.mxu1 }
 0x2df   : > { %v2754_v6 = vmul.f32 %v2746_v21, %v2724_v59  ;;  %v2586_v59 = vadd.f32 %v2578_v56, %v2493_v63  ;;  %v2587_v36 = vadd.f32 %v2579_v52, %v2494_v31  ;;  %v2672_v20 = vmul.f32 %v3468_v35, %v2638_v22 }
 0x2e1   : > { %v2762_v42 = vadd.f32 %v2754_v6, %v2677_v33  ;;  %v2679_v9 = vadd.f32 %v2671_v55, %v2586_v59  ;;  %v2680_v53 = vadd.f32 %v2672_v20, %v2587_v36 }
 0x2e6   : > { %v2726_v23 = vpop.f32.mrf.mxu1 }
 0x2e7   : > { %v2755_v0 = vmul.f32 %v2747_v41, %v2726_v23 }
 0x2e9   : > { %v2763_v37 = vadd.f32 %v2755_v0, %v2678_v62  ;;  %v3172_v62 = vunpack.c.h.bf16 %v3184_v54 }
 0x2eb   : > { %v2768_v5 = vpack.c.bf16 %v2763_v37, %v2762_v42 }
 0x2ed   : > { %3138 = vmatmul.msk.bf16.gmra.mxu2 %vm569_vm0, %v2768_v5  ;;  %v3186_v5 = vld [vmem:[%s5709_s28 + $0x18] sm:$0xff]  }
 0x2ee   : > { %v2729_v17 = vpop.f32.mrf.mxu1  ;;  %v3179_v27 = vunpack.c.l.bf16 %v3186_v5  ;;  %v3180_v32 = vunpack.c.h.bf16 %v3186_v5 }
 0x2ef   : > { %v2756_v3 = vmul.f32 %v2748_v18, %v2729_v17 }
 0x2f1   : > { %v2764_v4 = vadd.f32 %v2756_v3, %v2679_v9 }
 0x2f6   : > { %v2731_v48 = vpop.f32.mrf.mxu1 }
 0x2f7   : > { %v2757_v34 = vmul.f32 %v2749_v50, %v2731_v48 }
 0x2f9   : > { %v2765_v15 = vadd.f32 %v2757_v34, %v2680_v53 }
 0x2fb   : > { %v2769_v21 = vpack.c.bf16 %v2765_v15, %v2764_v4 }
 0x2fd   : > { %3139 = vmatmul.msk.bf16.gmra.mxu2 %vm569_vm0, %v2769_v21 }
 0x350   : > { %v2811_v41 = vpop.f32.mrf.mxu2 }
 0x351   : > { %v2812_v38 = vadd.f32 %v3469_v40, %v2811_v41 }
 0x353   : > { %v2847_v8 = vadd.f32 %v3167_v25, %v2812_v38 }
 0x355   : > { %v2855_v11 = vpack.c.bf16 %v2847_v8, %v2847_v8 }
 0x357   : > { %2864 = vst.msk [vmem:[%s5719_s16] sm:$0xf] %vm2863_vm3, %v2855_v11 }
 0x358   : > { %v2813_v58 = vpop.f32.mrf.mxu2 }
 0x359   : > { %v2814_v57 = vadd.f32 %v3469_v40, %v2813_v58 }
 0x35b   : > { %v2848_v12 = vadd.f32 %v3168_v24, %v2814_v57 }
 0x35d   : > { %v2856_v6 = vpack.c.bf16 %v2848_v12, %v2848_v12 }
 0x35f   : > { %2865 = vst.msk [vmem:[%s5719_s16 + $0x4] sm:$0xf] %vm2863_vm3, %v2856_v6 }
 0x360   : > { %v2816_v26 = vpop.f32.mrf.mxu2 }
 0x361   : > { %v2817_v23 = vadd.f32 %v3469_v40, %v2816_v26 }
 0x363   : > { %v2849_v19 = vadd.f32 %v3171_v7, %v2817_v23 }
 0x365   : > { %v2857_v33 = vpack.c.bf16 %v2849_v19, %v2849_v19 }
 0x367   : > { %2866 = vst.msk [vmem:[%s5719_s16 + $0x8] sm:$0xf] %vm2863_vm3, %v2857_v33 }
 0x368   : > { %v2818_v0 = vpop.f32.mrf.mxu2 }
 0x369   : > { %v2819_v61 = vadd.f32 %v3469_v40, %v2818_v0 }
 0x36b   : > { %v2850_v46 = vadd.f32 %v3172_v62, %v2819_v61 }
 0x36d   : > { %v2858_v60 = vpack.c.bf16 %v2850_v46, %v2850_v46 }
 0x36f   : > { %2867 = vst.msk [vmem:[%s5719_s16 + $0xc] sm:$0xf] %vm2863_vm3, %v2858_v60 }
 0x370   : > { %v2821_v45 = vpop.f32.mrf.mxu2 }
 0x371   : > { %v2822_v16 = vadd.f32 %v3469_v40, %v2821_v45 }
 0x373   : > { %v2851_v42 = vadd.f32 %v3175_v14, %v2822_v16 }
 0x375   : > { %v2859_v37 = vpack.c.bf16 %v2851_v42, %v2851_v42 }
 0x377   : > { %2868 = vst.msk [vmem:[%s5719_s16 + $0x10] sm:$0xf] %vm2863_vm3, %v2859_v37 }
 0x378   : > { %v2823_v1 = vpop.f32.mrf.mxu2 }
 0x379   : > { %v2824_v13 = vadd.f32 %v3469_v40, %v2823_v1 }
 0x37b   : > { %v2852_v49 = vadd.f32 %v3176_v2, %v2824_v13 }
 0x37d   : > { %v2860_v28 = vpack.c.bf16 %v2852_v49, %v2852_v49 }
 0x37f   : > { %2869 = vst.msk [vmem:[%s5719_s16 + $0x14] sm:$0xf] %vm2863_vm3, %v2860_v28 }
 0x380   : > { %v2826_v47 = vpop.f32.mrf.mxu2 }
 0x381   : > { %v2827_v30 = vadd.f32 %v3469_v40, %v2826_v47 }
 0x383   : > { %v2853_v39 = vadd.f32 %v3179_v27, %v2827_v30 }
 0x385   : > { %v2861_v17 = vpack.c.bf16 %v2853_v39, %v2853_v39 }
 0x387   : > { %2870 = vst.msk [vmem:[%s5719_s16 + $0x18] sm:$0xf] %vm2863_vm3, %v2861_v17 }
 0x388   : > { %v2828_v51 = vpop.f32.mrf.mxu2 }
 0x389   : > { %v2829_v63 = vadd.f32 %v3469_v40, %v2828_v51 }
 0x38b   : > { %v2854_v31 = vadd.f32 %v3180_v32, %v2829_v63 }
 0x38d   : > { %v2862_v35 = vpack.c.bf16 %v2854_v31, %v2854_v31 }
 0x38f   : > { %2871 = vst.msk [vmem:[%s5719_s16 + $0x1c] sm:$0xf] %vm2863_vm3, %v2862_v35 }
 0x390 PF: > { %s19_s11 = sadd.s32 1, %s3652_s11   ;;  %s5983_s30 = smov %s3648_s10 }
 0x391   : > { %p16_p5 = scmp.ge.s32.totalorder %s19_s11, 4   ;;  %s5984_s10 = smov %s5986_s12 }
 0x393   :  { %18 = sbr.rel (!%p16_p5) target bundleno = 2 (0x2), region = 98 }

// kernel: dinat_forward.22
= control target key start
LH: loop header
LB: loop body
LE: loop exit
PB: predicated region body
PF: predicated region fallthrough
CT: control target
= control target key end

     0   :  { %s745_s18 = smov 0   ;;  %s833_s0 = inlined_call_operand.vmem [shape: bf16[32,288], index: 0, kind: input, shape index: {}]   ;;  %s834_s1 = inlined_call_operand.vmem [shape: bf16[288,64], index: 1, kind: input, shape index: {}]   ;;  %s835_s2 = inlined_call_operand.vmem [shape: f32[1,64], index: 2, kind: input, shape index: {}]   ;;  %s836_s3 = inlined_call_operand.vmem [shape: f32[1,64], index: 3, kind: input, shape index: {}]   ;;  %s837_s4 = inlined_call_operand.vmem [shape: f32[1,64], index: 4, kind: input, shape index: {}]   ;;  %s838_s5 = inlined_call_operand.vmem [shape: bf16[32,64], index: 5, kind: output, shape index: {}]  }
   0x1 LB: > { %s570_s19 = sadd.s32 4294967295, %s712_s18   ;;  %p574_p0 = scmp.ge.s32.totalorder %s712_s18, 1  ;;  %s712_s18 = sphi %s745_s18, %s15_s18  }
   0x2   : > { %p189_p1 = scmp.lt.s32.totalorder %s712_s18, 3 }
   0x4   : > { %p190_p2 = pnand %p574_p0, %p189_p1 }
   0x5   : > { %s575_s24 = sshll.u32 (!%p190_p2), %s570_s19, 1 }
   0x6   : > { %193 = sbr.rel (%p190_p2) target bundleno = 454 (0x1c6), region = 40  ;;  %p219_p3 = scmp.lt.s32.totalorder (!%p190_p2), %s575_s24, 3 }
   0xb   : > { %v676_v0 = vld [vmem:[%s834_s1 + $0x38] sm:$0xff]  ;;  %v675_v2 = vld [vmem:[%s834_s1 + $0x30] sm:$0xff]  ;;  %v686_v4 = vld [vmem:[%s834_s1 + $0x88] sm:$0xff]  ;;  %s840_s24 = smov (!%p219_p3, %s575_s24), 3  ;;  %vm399_vm0 = vcmask 261120   ;;  %vm445_vm1 = vcmask 523264  }
   0xc   : > { %v684_v1 = vld [vmem:[%s834_s1 + $0x78] sm:$0xff]  ;;  %403 = vmatpush.bf16.msra.mxu0 %v676_v0  ;;  %v683_v3 = vld [vmem:[%s834_s1 + $0x70] sm:$0xff]  ;;  %437 = vmatpush.bf16.msra.mxu2 %v686_v4  ;;  %v685_v5 = vld [vmem:[%s834_s1 + $0x80] sm:$0xff]  ;;  %s687_s12 = smul.u32 12, %s840_s24  ;;  %v714_v42 = vmov 64.0   ;;  %s578_s20 = sshll.u32 %s840_s24, 2 }
   0xd   : > { %417 = vmatpush.bf16.msra.mxu1 %v684_v1  ;;  %v674_v6 = vld [vmem:[%s834_s1 + $0x28] sm:$0xff]  ;;  %v673_v11 = vld [vmem:[%s834_s1 + $0x20] sm:$0xff]  ;;  %v672_v13 = vld [vmem:[%s834_s1 + $0x18] sm:$0xff]  ;;  %700 = vrcp.f32 %v714_v42  ;;  %s229_s23 = scalar_lea.vmem %s838_s5, %s578_s20  ;;  %vm511_vm7 = vcmask 519168  }
   0xe   : > { %v682_v7 = vld [vmem:[%s834_s1 + $0x68] sm:$0xff]  ;;  %s223_s15 = scalar_lea.vmem %s833_s0, %s687_s12  ;;  %v681_v12 = vld [vmem:[%s834_s1 + $0x60] sm:$0xff]  ;;  %v680_v14 = vld [vmem:[%s834_s1 + $0x58] sm:$0xff] }
   0xf   : > { %v589_v8 = vld [vmem:[%s223_s15 + $0x8] sm:$0xf]  ;;  %v668_v9 = vld [vmem:[%s223_s15 + $0x10] sm:$0xf0]  ;;  %v669_v19 = vld [vmem:[%s834_s1] sm:$0xff] }
  0x10   : > { %404 = vmatpush.bf16.msra.mxu0 %v675_v2  ;;  %438 = vmatpush.bf16.msra.mxu2 %v685_v5  ;;  %v590_v10 = vor.u32 %v668_v9, %v589_v8  ;;  %v671_v15 = vld [vmem:[%s834_s1 + $0x10] sm:$0xff]  ;;  %v670_v17 = vld [vmem:[%s834_s1 + $0x8] sm:$0xff]  ;;  %v677_v20 = vld [vmem:[%s834_s1 + $0x40] sm:$0xff] }
  0x11   : > { %418 = vmatpush.bf16.msra.mxu1 %v683_v3  ;;  %v679_v16 = vld [vmem:[%s834_s1 + $0x50] sm:$0xff]  ;;  %v678_v18 = vld [vmem:[%s834_s1 + $0x48] sm:$0xff]  ;;  %v581_v21 = vld [vmem:[%s223_s15] sm:$0xf] }
  0x12   : > { %v667_v22 = vld [vmem:[%s223_s15 + $0x8] sm:$0xf0]  ;;  %v666_v23 = vld [vmem:[%s223_s15 + $0x4] sm:$0xf]  ;;  %v583_v24 = vld [vmem:[%s223_s15 + $0xc] sm:$0xf0] }
  0x13   : > { %663 = vmatmul.msk.bf16.vlgmr.msra.gmra.mxu2 %vm399_vm0, %v590_v10  ;;  %v582_v25 = vor.u32 %v667_v22, %v581_v21  ;;  %v586_v26 = vor.u32 %v666_v23, %v583_v24  ;;  %v697_v27 = vld [vmem:[%s835_s2] ss:$0 sm:$0xff]  ;;  %v701_v43 = vpop.eup %700 }
  0x14   : > { %405 = vmatpush.bf16.msra.mxu0 %v674_v6  ;;  %v453_v44 = vmul.f32 64.0, %v701_v43  ;;  %vm457_vm2 = vweird.f32 %v701_v43  ;;  %v698_v9 = vld [vmem:[%s836_s3] ss:$0 sm:$0xff] }
  0x15   : > { %419 = vmatpush.bf16.msra.mxu1 %v682_v7 }
  0x16   : > { %v454_v45 = vsub.f32 1.0, %v453_v44 }
  0x18   : > { %406 = vmatpush.bf16.msra.mxu0 %v673_v11  ;;  %v455_v46 = vmul.f32 %v701_v43, %v454_v45 }
  0x19   : > { %420 = vmatpush.bf16.msra.mxu1 %v681_v12  ;;  %v699_v12 = vld [vmem:[%s837_s4] ss:$0 sm:$0xff] }
  0x1a   : > { %v456_v47 = vadd.f32 %v701_v43, %v455_v46 }
  0x1c   : > { %407 = vmatpush.bf16.msra.mxu0 %v672_v13  ;;  %v458_v48 = vsel %vm457_vm2, %v701_v43, %v456_v47 }
  0x1d   : > { %421 = vmatpush.bf16.msra.mxu1 %v680_v14 }
  0x20   : > { %408 = vmatpush.bf16.msra.mxu0 %v671_v15 }
  0x21   : > { %422 = vmatpush.bf16.msra.mxu1 %v679_v16 }
  0x24   : > { %409 = vmatpush.bf16.msra.mxu0 %v670_v17 }
  0x25   : > { %423 = vmatpush.bf16.msra.mxu1 %v678_v18 }
  0x28   : > { %410 = vmatpush.bf16.msra.mxu0 %v669_v19 }
  0x29   : > { %424 = vmatpush.bf16.msra.mxu1 %v677_v20 }
  0x2b   : > { %411 = vmatmul.bf16.vlgmr.msra.gmra.mxu0 %v582_v25 }
  0x2c   : > { %425 = vmatmul.bf16.vlgmr.msra.gmra.mxu1 %v586_v26 }
  0x96   : > { %v440_v31 = vpop.f32.mrf.mxu2 }
  0x9e   : > { %v442_v39 = vpop.f32.mrf.mxu2 }
  0xa8   : > { %v412_v28 = vpop.f32.mrf.mxu0 }
  0xa9   : > { %v426_v29 = vpop.f32.mrf.mxu1  ;;  %v413_v30 = vadd.f32 %v697_v27, %v412_v28 }
  0xab   : > { %v427_v32 = vadd.f32 %v426_v29, %v413_v30 }
  0xad   : > { %v441_v33 = vadd.f32 %v440_v31, %v427_v32 }
  0xaf   : > { %v446_v34 = vsel %vm445_vm1, %v441_v33, 0.0 }
  0xb0   : > { %v414_v35 = vpop.f32.mrf.mxu0  ;;  %447 = vadd.xlane.f32.xlu0 %v446_v34 }
  0xb1   : > { %v415_v36 = vadd.f32 %v697_v27, %v414_v35  ;;  %v428_v37 = vpop.f32.mrf.mxu1 }
  0xb3   : > { %v429_v38 = vadd.f32 %v428_v37, %v415_v36 }
  0xb5   : > { %v443_v40 = vadd.f32 %v442_v39, %v429_v38 }
  0xb7   : > { %v449_v41 = vsel %vm445_vm1, %v443_v40, 0.0 }
  0xb8   : > { %450 = vadd.xlane.f32.xlu0 %v449_v41 }
 0x123   : > { %v448_v49 = vpop.xlane.xlu0 %447 }
 0x124   : > { %v459_v50 = vmul.f32 %v458_v48, %v448_v49 }
 0x126   : > { %v461_v51 = vsub.f32 %v441_v33, %v459_v50 }
 0x128   : > { %v463_v52 = vmul.f32 %v461_v51, %v461_v51 }
 0x12a   : > { %v465_v53 = vsel %vm445_vm1, %v463_v52, 0.0 }
 0x12b   : > { %466 = vadd.xlane.f32.xlu1 %v465_v53  ;;  %v451_v54 = vpop.xlane.xlu0 %450 }
 0x12c   : > { %v460_v55 = vmul.f32 %v458_v48, %v451_v54 }
 0x12e   : > { %v462_v56 = vsub.f32 %v443_v40, %v460_v55 }
 0x130   : > { %v464_v57 = vmul.f32 %v462_v56, %v462_v56 }
 0x132   : > { %v468_v58 = vsel %vm445_vm1, %v464_v57, 0.0 }
 0x133   : > { %469 = vadd.xlane.f32.xlu1 %v468_v58 }
 0x19e   : > { %v467_v59 = vpop.xlane.xlu1 %466 }
 0x19f   : > { %v471_v60 = vmul.f32 %v467_v59, %v458_v48 }
 0x1a1   : > { %v473_v61 = vadd.f32 1e-05, %v471_v60 }
 0x1a3   : > { %702 = vrsqrt.f32 %v473_v61  ;;  %vm481_vm4 = vweird.f32 %v473_v61 }
 0x1a6   : > { %v470_v62 = vpop.xlane.xlu1 %469 }
 0x1a7   : > { %v472_v63 = vmul.f32 %v470_v62, %v458_v48 }
 0x1a9   : > { %v703_v0 = vpop.eup %702  ;;  %v474_v1 = vadd.f32 1e-05, %v472_v63 }
 0x1aa   : > { %v476_v2 = vmul.f32 %v703_v0, %v473_v61  ;;  %vm482_vm3 = vweird.f32 %v703_v0 }
 0x1ab   : > { %704 = vrsqrt.f32 %v474_v1  ;;  %vm483_vm5 = vmor %vm481_vm4, %vm482_vm3  ;;  %vm491_vm8 = vweird.f32 %v474_v1 }
 0x1ac   : > { %v477_v3 = vmul.f32 %v703_v0, %v476_v2 }
 0x1ae   : > { %v478_v4 = vmul.f32 0.5, %v477_v3 }
 0x1b0   : > { %v479_v5 = vsub.f32 1.5, %v478_v4 }
 0x1b1   : > { %v705_v6 = vpop.eup %704 }
 0x1b2   : > { %v480_v7 = vmul.f32 %v703_v0, %v479_v5  ;;  %v486_v8 = vmul.f32 %v705_v6, %v474_v1  ;;  %vm492_vm6 = vweird.f32 %v705_v6 }
 0x1b3   : > { %vm493_vm9 = vmor %vm491_vm8, %vm492_vm6 }
 0x1b4   : > { %v484_v10 = vsel %vm483_vm5, %v703_v0, %v480_v7  ;;  %v487_v11 = vmul.f32 %v705_v6, %v486_v8 }
 0x1b5   : > { %v495_v13 = vmul.f32 %v484_v10, %v461_v51 }
 0x1b6   : > { %v488_v14 = vmul.f32 0.5, %v487_v11 }
 0x1b7   : > { %v501_v15 = vmul.f32 %v698_v9, %v495_v13 }
 0x1b8   : > { %v489_v16 = vsub.f32 1.5, %v488_v14 }
 0x1b9   : > { %v507_v17 = vadd.f32 %v699_v12, %v501_v15 }
 0x1ba   : > { %v490_v18 = vmul.f32 %v705_v6, %v489_v16 }
 0x1bb   : > { %v509_v19 = vpack.c.bf16 %v507_v17, %v507_v17 }
 0x1bc   : > { %v494_v20 = vsel %vm493_vm9, %v705_v6, %v490_v18 }
 0x1bd   : > { %512 = vst.msk [vmem:[%s229_s23] sm:$0xf] %vm511_vm7, %v509_v19  ;;  %v496_v21 = vmul.f32 %v494_v20, %v462_v56 }
 0x1bf   : > { %v502_v22 = vmul.f32 %v698_v9, %v496_v21 }
 0x1c1   : > { %v508_v23 = vadd.f32 %v699_v12, %v502_v22 }
 0x1c3   : > { %v510_v24 = vpack.c.bf16 %v508_v23, %v508_v23 }
 0x1c5   : > { %513 = vst.msk [vmem:[%s229_s23 + $0x4] sm:$0xf] %vm511_vm7, %v510_v24 }
 0x1c6 PF: > { %s15_s18 = sadd.s32 1, %s712_s18  }
 0x1c7   : > { %p12_p4 = scmp.ge.s32.totalorder %s15_s18, 4  }
 0x1c9   :  { %14 = sbr.rel (!%p12_p4) target bundleno = 1 (0x1), region = 70 }

// kernel: dinat_forward.24
= control target key start
LH: loop header
LB: loop body
LE: loop exit
PB: predicated region body
PF: predicated region fallthrough
CT: control target
= control target key end

     0   :  { %s736_s24 = smov 0   ;;  %s844_s0 = inlined_call_operand.vmem [shape: bf16[32,64], index: 0, kind: input, shape index: {}]   ;;  %s845_s1 = inlined_call_operand.vmem [shape: f32[1,64], index: 1, kind: input, shape index: {}]   ;;  %s846_s2 = inlined_call_operand.vmem [shape: f32[1,64], index: 2, kind: input, shape index: {}]   ;;  %s847_s3 = inlined_call_operand.vmem [shape: bf16[64,192], index: 3, kind: input, shape index: {}]   ;;  %s848_s4 = inlined_call_operand.vmem [shape: f32[1,192], index: 4, kind: input, shape index: {}]   ;;  %s849_s5 = inlined_call_operand.vmem [shape: bf16[32,64], index: 5, kind: output, shape index: {0}]   ;;  %s850_s6 = inlined_call_operand.vmem [shape: bf16[32,64], index: 6, kind: output, shape index: {1}]   ;;  %s851_s7 = inlined_call_operand.vmem [shape: bf16[32,64], index: 7, kind: output, shape index: {2}]  }
   0x1 LB: > { %s607_s25 = sadd.s32 4294967295, %s692_s24   ;;  %p611_p0 = scmp.ge.s32.totalorder %s692_s24, 1  ;;  %s692_s24 = sphi %s736_s24, %s18_s24  }
   0x2   : > { %p243_p1 = scmp.lt.s32.totalorder %s692_s24, 3 }
   0x4   : > { %p244_p2 = pnand %p611_p0, %p243_p1 }
   0x5   : > { %s612_s26 = sshll.u32 (!%p244_p2), %s607_s25, 1  ;;  %s695_s10 = smov (!%p244_p2), 64  }
   0x6   : > { %247 = sbr.rel (%p244_p2) target bundleno = 525 (0x20d), region = 40  ;;  %p286_p3 = scmp.lt.s32.totalorder (!%p244_p2), %s612_s26, 3 }
   0xb   : > { %s853_s26 = smov (!%p286_p3, %s612_s26), 3  ;;  %vm314_vm0 = vcmask 523264   ;;  %v694_v5 = vmov 64.0   ;;  %v646_v22 = vld [vmem:[%s847_s3 + $0x30] sm:$0xf]  ;;  %vm466_vm8 = vcmask 519168  }
   0xc   : > { %s744_s27 = sshll.u32 %s853_s26, 2  ;;  %680 = vrcp.f32 %v694_v5  ;;  %v663_v23 = vld [vmem:[%s847_s3 + $0x34] sm:$0xf0]  ;;  %v662_v24 = vld [vmem:[%s847_s3 + $0x34] sm:$0xf] }
   0xd   : > { %s289_s30 = scalar_lea.vmem %s844_s0, %s744_s27  ;;  %v647_v25 = vor.u32 %v663_v23, %v646_v22  ;;  %v648_v26 = vld [vmem:[%s847_s3 + $0x38] sm:$0xf0]  ;;  %v638_v28 = vld [vmem:[%s847_s3 + $0x20] sm:$0xf]  ;;  %v661_v29 = vld [vmem:[%s847_s3 + $0x24] sm:$0xf0]  ;;  %s295_s29 = scalar_lea.vmem %s849_s5, %s744_s27 }
   0xe   : > { %v665_v0 = vld [vmem:[%s289_s30] sm:$0xff]   ;;  %v651_v27 = vor.u32 %v662_v24, %v648_v26  ;;  %v639_v31 = vor.u32 %v661_v29, %v638_v28  ;;  %v640_v32 = vld [vmem:[%s847_s3 + $0x28] sm:$0xf0]  ;;  %v630_v34 = vld [vmem:[%s847_s3 + $0x10] sm:$0xf]  ;;  %s307_s9 = scalar_lea.vmem %s851_s7, %s744_s27  ;;  %s301_s13 = scalar_lea.vmem %s850_s6, %s744_s27 }
   0xf   : > { %v666_v1 = vunpack.c.l.bf16 %v665_v0  ;;  %v667_v3 = vunpack.c.h.bf16 %v665_v0  ;;  %440 = vmatpush.bf16.msra.mxu0 %v647_v25  ;;  %v660_v30 = vld [vmem:[%s847_s3 + $0x24] sm:$0xf]  ;;  %v659_v35 = vld [vmem:[%s847_s3 + $0x14] sm:$0xf0]  ;;  %v658_v36 = vld [vmem:[%s847_s3 + $0x14] sm:$0xf] }
  0x10   : > { %454 = vmatpush.bf16.msra.mxu1 %v651_v27  ;;  %v643_v33 = vor.u32 %v660_v30, %v640_v32  ;;  %v631_v37 = vor.u32 %v659_v35, %v630_v34  ;;  %v632_v38 = vld [vmem:[%s847_s3 + $0x18] sm:$0xf0]  ;;  %v622_v40 = vld [vmem:[%s847_s3] sm:$0xf]  ;;  %v657_v41 = vld [vmem:[%s847_s3 + $0x4] sm:$0xf0] }
  0x11   : > { %v315_v2 = vsel %vm314_vm0, %v666_v1, 0.0  ;;  %v318_v4 = vsel %vm314_vm0, %v667_v3, 0.0  ;;  %v635_v39 = vor.u32 %v658_v36, %v632_v38  ;;  %v656_v42 = vld [vmem:[%s847_s3 + $0x4] sm:$0xf]  ;;  %v623_v44 = vor.u32 %v657_v41, %v622_v40  ;;  %v624_v45 = vld [vmem:[%s847_s3 + $0x8] sm:$0xf0] }
  0x12   : > { %316 = vadd.xlane.f32.xlu0 %v315_v2  ;;  %v681_v6 = vpop.eup %680  ;;  %v627_v47 = vor.u32 %v656_v42, %v624_v45 }
  0x13   : > { %v322_v7 = vmul.f32 64.0, %v681_v6  ;;  %vm326_vm1 = vweird.f32 %v681_v6  ;;  %441 = vmatpush.bf16.msra.mxu0 %v639_v31 }
  0x14   : > { %455 = vmatpush.bf16.msra.mxu1 %v643_v33 }
  0x15   : > { %v323_v8 = vsub.f32 1.0, %v322_v7 }
  0x17   : > { %v324_v9 = vmul.f32 %v681_v6, %v323_v8  ;;  %442 = vmatpush.bf16.msra.mxu0 %v631_v37 }
  0x18   : > { %456 = vmatpush.bf16.msra.mxu1 %v635_v39 }
  0x19   : > { %v325_v10 = vadd.f32 %v681_v6, %v324_v9 }
  0x1a   : > { %319 = vadd.xlane.f32.xlu0 %v318_v4 }
  0x1b   : > { %v327_v11 = vsel %vm326_vm1, %v681_v6, %v325_v10  ;;  %443 = vmatpush.bf16.msra.mxu0 %v623_v44  ;;  %v679_v6 = vld [vmem:[%s846_s2] ss:$0 sm:$0xff] }
  0x1c   : > { %457 = vmatpush.bf16.msra.mxu1 %v627_v47 }
  0x85   : > { %v317_v12 = vpop.xlane.xlu0 %316 }
  0x86   : > { %v328_v13 = vmul.f32 %v327_v11, %v317_v12 }
  0x88   : > { %v752_v14 = vsub.f32 %v666_v1, %v328_v13  ;;  %v678_v1 = vld [vmem:[%s845_s1] ss:$0 sm:$0xff] }
  0x8a   : > { %v332_v15 = vmul.f32 %v752_v14, %v752_v14 }
  0x8c   : > { %v334_v16 = vsel %vm314_vm0, %v332_v15, 0.0 }
  0x8d   : > { %335 = vadd.xlane.f32.xlu1 %v334_v16  ;;  %v320_v17 = vpop.xlane.xlu0 %319 }
  0x8e   : > { %v329_v18 = vmul.f32 %v327_v11, %v320_v17 }
  0x90   : > { %v757_v19 = vsub.f32 %v667_v3, %v329_v18 }
  0x92   : > { %v333_v20 = vmul.f32 %v757_v19, %v757_v19 }
  0x94   : > { %v337_v21 = vsel %vm314_vm0, %v333_v20, 0.0 }
  0x95   : > { %338 = vadd.xlane.f32.xlu1 %v337_v21 }
 0x100   : > { %v336_v43 = vpop.xlane.xlu1 %335 }
 0x101   : > { %v340_v46 = vmul.f32 %v336_v43, %v327_v11 }
 0x103   : > { %v342_v48 = vadd.f32 1e-05, %v340_v46 }
 0x105   : > { %682 = vrsqrt.f32 %v342_v48  ;;  %vm350_vm3 = vweird.f32 %v342_v48 }
 0x108   : > { %v339_v49 = vpop.xlane.xlu1 %338 }
 0x109   : > { %v341_v50 = vmul.f32 %v339_v49, %v327_v11  ;;  %v387_v11 = vld [vmem:[%s848_s4] sm:$0x3] }
 0x10a   : > { %v389_v12 = vperm.slane %v387_v11, 0  ;;  %v390_v13 = vperm.slane %v387_v11, 1 }
 0x10b   : > { %v683_v51 = vpop.eup %682  ;;  %v343_v52 = vadd.f32 1e-05, %v341_v50 }
 0x10c   : > { %v345_v53 = vmul.f32 %v683_v51, %v342_v48  ;;  %vm351_vm2 = vweird.f32 %v683_v51 }
 0x10d   : > { %684 = vrsqrt.f32 %v343_v52  ;;  %vm352_vm4 = vmor %vm350_vm3, %vm351_vm2  ;;  %vm360_vm6 = vweird.f32 %v343_v52 }
 0x10e   : > { %v346_v54 = vmul.f32 %v683_v51, %v345_v53 }
 0x110   : > { %v347_v55 = vmul.f32 0.5, %v346_v54 }
 0x112   : > { %v348_v56 = vsub.f32 1.5, %v347_v55 }
 0x113   : > { %v685_v57 = vpop.eup %684 }
 0x114   : > { %v349_v58 = vmul.f32 %v683_v51, %v348_v56  ;;  %v355_v59 = vmul.f32 %v685_v57, %v343_v52  ;;  %vm361_vm5 = vweird.f32 %v685_v57 }
 0x115   : > { %vm362_vm7 = vmor %vm360_vm6, %vm361_vm5 }
 0x116   : > { %v356_v60 = vmul.f32 %v685_v57, %v355_v59  ;;  %v353_v61 = vsel %vm352_vm4, %v683_v51, %v349_v58 }
 0x117   : > { %v364_v0 = vmul.f32 %v353_v61, %v752_v14 }
 0x118   : > { %v357_v62 = vmul.f32 0.5, %v356_v60 }
 0x119   : > { %v370_v5 = vmul.f32 %v678_v1, %v364_v0 }
 0x11a   : > { %v358_v63 = vsub.f32 1.5, %v357_v62 }
 0x11b   : > { %v376_v8 = vadd.f32 %v679_v6, %v370_v5 }
 0x11c   : > { %v359_v2 = vmul.f32 %v685_v57, %v358_v63 }
 0x11e   : > { %v363_v3 = vsel %vm362_vm7, %v685_v57, %v359_v2 }
 0x11f   : > { %v365_v4 = vmul.f32 %v363_v3, %v757_v19 }
 0x121   : > { %v371_v7 = vmul.f32 %v678_v1, %v365_v4 }
 0x123   : > { %v377_v9 = vadd.f32 %v679_v6, %v371_v7 }
 0x125   : > { %v378_v10 = vpack.c.bf16 %v377_v9, %v376_v8 }
 0x127   : > { %652 = vmatmul.msk.bf16.vlgmr.msra.gmra.mxu0 %vm314_vm0, %v378_v10  ;;  %653 = vmatmul.msk.bf16.vlgmr.msra.gmra.mxu1 %vm314_vm0, %v378_v10 }
 0x1a4   : > { %v445_v14 = vpop.f32.mrf.mxu0  ;;  %v459_v15 = vpop.f32.mrf.mxu1 }
 0x1a5   : > { %v446_v16 = vadd.f32 %v445_v14, %v389_v12  ;;  %v460_v17 = vadd.f32 %v459_v15, %v390_v13 }
 0x1a7   : > { %v464_v18 = vpack.c.bf16 %v446_v16, %v446_v16  ;;  %v479_v19 = vpack.c.bf16 %v460_v17, %v460_v17 }
 0x1a9   : > { %467 = vst.msk [vmem:[%s295_s29] sm:$0xf] %vm466_vm8, %v464_v18  ;;  %471 = vrot.lane.b32.xlu2 %v464_v18, %s695_s10 }
 0x1aa   : > { %481 = vst.msk [vmem:[%s307_s9] sm:$0xf] %vm466_vm8, %v479_v19 }
 0x1ac   : > { %v447_v20 = vpop.f32.mrf.mxu0  ;;  %v461_v21 = vpop.f32.mrf.mxu1 }
 0x1ad   : > { %v448_v22 = vadd.f32 %v447_v20, %v389_v12  ;;  %v462_v23 = vadd.f32 %v461_v21, %v390_v13 }
 0x1af   : > { %v465_v24 = vpack.c.bf16 %v448_v22, %v448_v22  ;;  %v480_v25 = vpack.c.bf16 %v462_v23, %v462_v23 }
 0x1b1   : > { %468 = vst.msk [vmem:[%s295_s29 + $0x4] sm:$0xf] %vm466_vm8, %v465_v24  ;;  %473 = vrot.lane.b32.xlu2 %v465_v24, %s695_s10 }
 0x1b2   : > { %482 = vst.msk [vmem:[%s307_s9 + $0x4] sm:$0xf] %vm466_vm8, %v480_v25 }
 0x203   : > { %v472_v26 = vpop.permute.xlu2 %471 }
 0x204   : > { %477 = vst.msk [vmem:[%s301_s13] sm:$0xf] %vm466_vm8, %v472_v26 }
 0x20b   : > { %v474_v27 = vpop.permute.xlu2 %473 }
 0x20c   : > { %478 = vst.msk [vmem:[%s301_s13 + $0x4] sm:$0xf] %vm466_vm8, %v474_v27 }
 0x20d PF: > { %s18_s24 = sadd.s32 1, %s692_s24  }
 0x20e   : > { %p15_p4 = scmp.ge.s32.totalorder %s18_s24, 4  }
 0x210   :  { %17 = sbr.rel (!%p15_p4) target bundleno = 1 (0x1), region = 94 }

// kernel: dinat_forward.26
= control target key start
LH: loop header
LB: loop body
LE: loop exit
PB: predicated region body
PF: predicated region fallthrough
CT: control target
= control target key end

     0   :  { %s1054_s24 = smov 0   ;;  %s1323_s0 = inlined_call_operand.vmem [shape: bf16[32,64], index: 0, kind: input, shape index: {}]   ;;  %s1324_s1 = inlined_call_operand.vmem [shape: f32[1,64], index: 1, kind: input, shape index: {}]   ;;  %s1325_s2 = inlined_call_operand.vmem [shape: f32[1,64], index: 2, kind: input, shape index: {}]   ;;  %s1326_s3 = inlined_call_operand.vmem [shape: bf16[64,256], index: 3, kind: input, shape index: {}]   ;;  %s1327_s4 = inlined_call_operand.vmem [shape: f32[1,256], index: 4, kind: input, shape index: {}]   ;;  %s1328_s5 = inlined_call_operand.vmem [shape: bf16[256,64], index: 5, kind: input, shape index: {}]   ;;  %s1329_s6 = inlined_call_operand.vmem [shape: f32[1,64], index: 6, kind: input, shape index: {}]   ;;  %s1330_s7 = inlined_call_operand.vmem [shape: bf16[32,64], index: 7, kind: output, shape index: {}]  }
   0x1 LB: > { %s838_s25 = sadd.s32 4294967295, %s1011_s24   ;;  %p842_p0 = scmp.ge.s32.totalorder %s1011_s24, 1  ;;  %s1011_s24 = sphi %s1054_s24, %s17_s24  }
   0x2   : > { %p238_p1 = scmp.lt.s32.totalorder %s1011_s24, 3 }
   0x4   : > { %p239_p2 = pnand %p842_p0, %p238_p1 }
   0x5   : > { %s843_s26 = sshll.u32 (!%p239_p2), %s838_s25, 1 }
   0x6   : > { %242 = sbr.rel (%p239_p2) target bundleno = 633 (0x279), region = 48  ;;  %p271_p3 = scmp.lt.s32.totalorder (!%p239_p2), %s843_s26, 3 }
   0xb   : > { %s1334_s26 = smov (!%p271_p3, %s843_s26), 3  ;;  %vm287_vm0 = vcmask 523264   ;;  %v1013_v5 = vmov 64.0   ;;  %v873_v22 = vld [vmem:[%s1326_s3 + $0x30] sm:$0xf] }
   0xc   : > { %s844_s27 = sshll.u32 %s1334_s26, 2  ;;  %991 = vrcp.f32 %v1013_v5  ;;  %v958_v23 = vld [vmem:[%s1326_s3 + $0x34] sm:$0xf0]  ;;  %v957_v24 = vld [vmem:[%s1326_s3 + $0x34] sm:$0xf] }
   0xd   : > { %s274_s30 = scalar_lea.vmem %s1323_s0, %s844_s27  ;;  %v874_v25 = vor.u32 %v958_v23, %v873_v22  ;;  %v875_v26 = vld [vmem:[%s1326_s3 + $0x38] sm:$0xf0]  ;;  %v865_v28 = vld [vmem:[%s1326_s3 + $0x20] sm:$0xf]  ;;  %v956_v29 = vld [vmem:[%s1326_s3 + $0x24] sm:$0xf0]  ;;  %s280_s22 = scalar_lea.vmem %s1330_s7, %s844_s27 }
   0xe   : > { %v976_v0 = vld [vmem:[%s274_s30] sm:$0xff]   ;;  %v878_v27 = vor.u32 %v957_v24, %v875_v26  ;;  %v866_v31 = vor.u32 %v956_v29, %v865_v28  ;;  %v867_v32 = vld [vmem:[%s1326_s3 + $0x28] sm:$0xf0]  ;;  %v857_v34 = vld [vmem:[%s1326_s3 + $0x10] sm:$0xf] }
   0xf   : > { %v1070_v1 = vunpack.c.l.bf16 %v976_v0  ;;  %v1074_v3 = vunpack.c.h.bf16 %v976_v0  ;;  %413 = vmatpush.bf16.msra.mxu0 %v874_v25  ;;  %v955_v30 = vld [vmem:[%s1326_s3 + $0x24] sm:$0xf]  ;;  %v954_v35 = vld [vmem:[%s1326_s3 + $0x14] sm:$0xf0]  ;;  %v953_v36 = vld [vmem:[%s1326_s3 + $0x14] sm:$0xf] }
  0x10   : > { %427 = vmatpush.bf16.msra.mxu1 %v878_v27  ;;  %v870_v33 = vor.u32 %v955_v30, %v867_v32  ;;  %v858_v37 = vor.u32 %v954_v35, %v857_v34  ;;  %v859_v38 = vld [vmem:[%s1326_s3 + $0x18] sm:$0xf0]  ;;  %v849_v40 = vld [vmem:[%s1326_s3] sm:$0xf]  ;;  %v952_v41 = vld [vmem:[%s1326_s3 + $0x4] sm:$0xf0] }
  0x11   : > { %v288_v2 = vsel %vm287_vm0, %v1070_v1, 0.0  ;;  %v291_v4 = vsel %vm287_vm0, %v1074_v3, 0.0  ;;  %v862_v39 = vor.u32 %v953_v36, %v859_v38  ;;  %v951_v42 = vld [vmem:[%s1326_s3 + $0x4] sm:$0xf]  ;;  %v850_v44 = vor.u32 %v952_v41, %v849_v40  ;;  %v851_v45 = vld [vmem:[%s1326_s3 + $0x8] sm:$0xf0] }
  0x12   : > { %289 = vadd.xlane.f32.xlu0 %v288_v2  ;;  %v992_v6 = vpop.eup %991  ;;  %v854_v47 = vor.u32 %v951_v42, %v851_v45  ;;  %v988_v2 = vld [vmem:[%s1324_s1] ss:$0 sm:$0xff]  ;;  %v965_v24 = vld [vmem:[%s1328_s5 + $0x30] sm:$0xff]  ;;  %v964_v28 = vld [vmem:[%s1328_s5 + $0x28] sm:$0xff] }
  0x13   : > { %v295_v7 = vmul.f32 64.0, %v992_v6  ;;  %vm299_vm1 = vweird.f32 %v992_v6  ;;  %414 = vmatpush.bf16.msra.mxu0 %v866_v31  ;;  %v973_v25 = vld [vmem:[%s1328_s5 + $0x70] sm:$0xff]  ;;  %v972_v29 = vld [vmem:[%s1328_s5 + $0x68] sm:$0xff]  ;;  %v971_v38 = vld [vmem:[%s1328_s5 + $0x60] sm:$0xff] }
  0x14   : > { %428 = vmatpush.bf16.msra.mxu1 %v870_v33 }
  0x15   : > { %v296_v8 = vsub.f32 1.0, %v295_v7 }
  0x17   : > { %v297_v9 = vmul.f32 %v992_v6, %v296_v8  ;;  %415 = vmatpush.bf16.msra.mxu0 %v858_v37  ;;  %v989_v8 = vld [vmem:[%s1325_s2] ss:$0 sm:$0xff] }
  0x18   : > { %429 = vmatpush.bf16.msra.mxu1 %v862_v39  ;;  %v963_v37 = vld [vmem:[%s1328_s5 + $0x20] sm:$0xff] }
  0x19   : > { %v298_v10 = vadd.f32 %v992_v6, %v297_v9 }
  0x1a   : > { %292 = vadd.xlane.f32.xlu0 %v291_v4 }
  0x1b   : > { %v300_v11 = vsel %vm299_vm1, %v992_v6, %v298_v10  ;;  %416 = vmatpush.bf16.msra.mxu0 %v850_v44 }
  0x1c   : > { %430 = vmatpush.bf16.msra.mxu1 %v854_v47 }
  0x85   : > { %v290_v12 = vpop.xlane.xlu0 %289 }
  0x86   : > { %v301_v13 = vmul.f32 %v300_v11, %v290_v12 }
  0x88   : > { %v1079_v14 = vsub.f32 %v1070_v1, %v301_v13  ;;  %v360_v13 = vld [vmem:[%s1327_s4] sm:$0x3] }
  0x8a   : > { %v305_v15 = vmul.f32 %v1079_v14, %v1079_v14 }
  0x8c   : > { %v307_v16 = vsel %vm287_vm0, %v305_v15, 0.0  ;;  %v363_v15 = vperm.slane %v360_v13, 1 }
  0x8d   : > { %308 = vadd.xlane.f32.xlu1 %v307_v16  ;;  %v293_v17 = vpop.xlane.xlu0 %292 }
  0x8e   : > { %v302_v18 = vmul.f32 %v300_v11, %v293_v17 }
  0x90   : > { %v1085_v19 = vsub.f32 %v1074_v3, %v302_v18  ;;  %v966_v18 = vld [vmem:[%s1328_s5 + $0x38] sm:$0xff] }
  0x91   : > { %747 = vmatpush.bf16.msra.mxu2 %v966_v18 }
  0x92   : > { %v306_v20 = vmul.f32 %v1085_v19, %v1085_v19 }
  0x94   : > { %v310_v21 = vsel %vm287_vm0, %v306_v20, 0.0 }
  0x95   : > { %311 = vadd.xlane.f32.xlu1 %v310_v21  ;;  %748 = vmatpush.bf16.msra.mxu2 %v965_v24  ;;  %v959_v24 = vld [vmem:[%s1328_s5] sm:$0xff] }
  0x99   : > { %749 = vmatpush.bf16.msra.mxu2 %v964_v28 }
  0x9d   : > { %750 = vmatpush.bf16.msra.mxu2 %v963_v37 }
 0x100   : > { %v309_v43 = vpop.xlane.xlu1 %308 }
 0x101   : > { %v313_v46 = vmul.f32 %v309_v43, %v300_v11 }
 0x103   : > { %v315_v48 = vadd.f32 1e-05, %v313_v46 }
 0x105   : > { %993 = vrsqrt.f32 %v315_v48  ;;  %vm323_vm3 = vweird.f32 %v315_v48 }
 0x108   : > { %v312_v49 = vpop.xlane.xlu1 %311 }
 0x109   : > { %v314_v50 = vmul.f32 %v312_v49, %v300_v11 }
 0x10b   : > { %v994_v51 = vpop.eup %993  ;;  %v316_v52 = vadd.f32 1e-05, %v314_v50  ;;  %v962_v50 = vld [vmem:[%s1328_s5 + $0x18] sm:$0xff] }
 0x10c   : > { %v318_v53 = vmul.f32 %v994_v51, %v315_v48  ;;  %vm324_vm2 = vweird.f32 %v994_v51  ;;  %751 = vmatpush.bf16.msra.mxu2 %v962_v50 }
 0x10d   : > { %995 = vrsqrt.f32 %v316_v52  ;;  %vm325_vm4 = vmor %vm323_vm3, %vm324_vm2  ;;  %vm333_vm6 = vweird.f32 %v316_v52 }
 0x10e   : > { %v319_v54 = vmul.f32 %v994_v51, %v318_v53 }
 0x110   : > { %v320_v55 = vmul.f32 0.5, %v319_v54 }
 0x112   : > { %v321_v56 = vsub.f32 1.5, %v320_v55 }
 0x113   : > { %v996_v57 = vpop.eup %995 }
 0x114   : > { %v322_v58 = vmul.f32 %v994_v51, %v321_v56  ;;  %v328_v59 = vmul.f32 %v996_v57, %v316_v52  ;;  %vm334_vm5 = vweird.f32 %v996_v57 }
 0x115   : > { %vm335_vm7 = vmor %vm333_vm6, %vm334_vm5 }
 0x116   : > { %v329_v60 = vmul.f32 %v996_v57, %v328_v59  ;;  %v326_v61 = vsel %vm325_vm4, %v994_v51, %v322_v58  ;;  %v970_v51 = vld [vmem:[%s1328_s5 + $0x58] sm:$0xff]  ;;  %v961_v58 = vld [vmem:[%s1328_s5 + $0x10] sm:$0xff] }
 0x117   : > { %v337_v0 = vmul.f32 %v326_v61, %v1079_v14  ;;  %v362_v14 = vperm.slane %v360_v13, 0  ;;  %v969_v59 = vld [vmem:[%s1328_s5 + $0x50] sm:$0xff]  ;;  %752 = vmatpush.bf16.msra.mxu2 %v961_v58  ;;  %v960_v13 = vld [vmem:[%s1328_s5 + $0x8] sm:$0xff] }
 0x118   : > { %v330_v62 = vmul.f32 0.5, %v329_v60 }
 0x119   : > { %v343_v7 = vmul.f32 %v988_v2, %v337_v0 }
 0x11a   : > { %v331_v63 = vsub.f32 1.5, %v330_v62 }
 0x11b   : > { %v349_v10 = vadd.f32 %v989_v8, %v343_v7  ;;  %753 = vmatpush.bf16.msra.mxu2 %v960_v13 }
 0x11c   : > { %v332_v4 = vmul.f32 %v996_v57, %v331_v63 }
 0x11e   : > { %v336_v5 = vsel %vm335_vm7, %v996_v57, %v332_v4 }
 0x11f   : > { %v338_v6 = vmul.f32 %v336_v5, %v1085_v19  ;;  %v974_v19 = vld [vmem:[%s1328_s5 + $0x78] sm:$0xff]  ;;  %754 = vmatpush.bf16.msra.mxu2 %v959_v24 }
 0x120   : > { %761 = vmatpush.bf16.msra.mxu3 %v974_v19 }
 0x121   : > { %v344_v9 = vmul.f32 %v988_v2, %v338_v6 }
 0x123   : > { %v350_v11 = vadd.f32 %v989_v8, %v344_v9 }
 0x124   : > { %762 = vmatpush.bf16.msra.mxu3 %v973_v25  ;;  %v967_v25 = vld [vmem:[%s1328_s5 + $0x40] sm:$0xff] }
 0x125   : > { %v351_v12 = vpack.c.bf16 %v350_v11, %v349_v10 }
 0x127   : > { %879 = vmatmul.msk.bf16.vlgmr.msra.gmra.mxu0 %vm287_vm0, %v351_v12  ;;  %880 = vmatmul.msk.bf16.vlgmr.msra.gmra.mxu1 %vm287_vm0, %v351_v12 }
 0x128   : > { %763 = vmatpush.bf16.msra.mxu3 %v972_v29 }
 0x12c   : > { %764 = vmatpush.bf16.msra.mxu3 %v971_v38 }
 0x130   : > { %765 = vmatpush.bf16.msra.mxu3 %v970_v51 }
 0x134   : > { %766 = vmatpush.bf16.msra.mxu3 %v969_v59 }
 0x1a4   : > { %v418_v16 = vpop.f32.mrf.mxu0  ;;  %v432_v17 = vpop.f32.mrf.mxu1 }
 0x1a5   : > { %v1157_v20 = vadd.f32 %v418_v16, %v362_v14  ;;  %v1159_v21 = vadd.f32 %v432_v17, %v363_v15 }
 0x1a7   : > { %v1162_v22 = vmul.f32 0.70710677, %v1157_v20  ;;  %v1165_v23 = vmul.f32 0.70710677, %v1159_v21 }
 0x1a9   : > { %v445_v26 = vmul.f32 %v1162_v22, %v1162_v22  ;;  %v485_v27 = vmul.f32 %v1165_v23, %v1165_v23 }
 0x1ab   : > { %v1183_v30 = vmin.f32 %v445_v26, 16.0  ;;  %v1185_v31 = vmin.f32 %v485_v27, 16.0 }
 0x1ac   : > { %v420_v32 = vpop.f32.mrf.mxu0  ;;  %v434_v33 = vpop.f32.mrf.mxu1 }
 0x1ad   : > { %v447_v34 = vmul.f32 2.1237322e-06, %v1183_v30  ;;  %v1188_v35 = vadd.f32 %v420_v32, %v362_v14  ;;  %v1190_v36 = vadd.f32 %v434_v33, %v363_v15  ;;  %v458_v39 = vmul.f32 3.8918573e-05, %v1183_v30  ;;  %v968_v14 = vld [vmem:[%s1328_s5 + $0x48] sm:$0xff] }
 0x1ae   : > { %v498_v40 = vmul.f32 3.8918573e-05, %v1185_v31  ;;  %v487_v46 = vmul.f32 2.1237322e-06, %v1185_v31  ;;  %767 = vmatpush.bf16.msra.mxu3 %v968_v14 }
 0x1af   : > { %v448_v41 = vadd.f32 0.00028619796, %v447_v34  ;;  %v1201_v42 = vmul.f32 0.70710677, %v1188_v35  ;;  %v1204_v43 = vmul.f32 0.70710677, %v1190_v36 }
 0x1b0   : > { %v459_v44 = vadd.f32 0.001143296, %v458_v39  ;;  %v499_v47 = vadd.f32 0.001143296, %v498_v40  ;;  %v488_v57 = vadd.f32 0.00028619796, %v487_v46 }
 0x1b1   : > { %v449_v45 = vmul.f32 %v448_v41, %v1183_v30  ;;  %v525_v48 = vmul.f32 %v1201_v42, %v1201_v42  ;;  %v565_v49 = vmul.f32 %v1204_v43, %v1204_v43 }
 0x1b2   : > { %v460_v52 = vmul.f32 %v459_v44, %v1183_v30  ;;  %v500_v53 = vmul.f32 %v499_v47, %v1185_v31  ;;  %v489_v8 = vmul.f32 %v488_v57, %v1185_v31  ;;  %768 = vmatpush.bf16.msra.mxu3 %v967_v25 }
 0x1b3   : > { %v1220_v54 = vmin.f32 %v525_v48, 16.0  ;;  %v1222_v55 = vmin.f32 %v565_v49, 16.0  ;;  %v450_v61 = vadd.f32 0.0036580483, %v449_v45 }
 0x1b4   : > { %v461_v56 = vadd.f32 0.014752088, %v460_v52  ;;  %v501_v60 = vadd.f32 0.014752088, %v500_v53  ;;  %v490_v34 = vadd.f32 0.0036580483, %v489_v8 }
 0x1b5   : > { %v527_v62 = vmul.f32 2.1237322e-06, %v1220_v54  ;;  %v538_v0 = vmul.f32 3.8918573e-05, %v1220_v54  ;;  %v578_v4 = vmul.f32 3.8918573e-05, %v1222_v55  ;;  %v451_v11 = vmul.f32 %v450_v61, %v1183_v30 }
 0x1b6   : > { %v462_v63 = vmul.f32 %v461_v56, %v1183_v30  ;;  %v502_v2 = vmul.f32 %v501_v60, %v1185_v31  ;;  %v567_v6 = vmul.f32 2.1237322e-06, %v1222_v55  ;;  %v491_v49 = vmul.f32 %v490_v34, %v1185_v31 }
 0x1b7   : > { %v528_v5 = vadd.f32 0.00028619796, %v527_v62  ;;  %v539_v9 = vadd.f32 0.001143296, %v538_v0  ;;  %v579_v16 = vadd.f32 0.001143296, %v578_v4 }
 0x1b8   : > { %v463_v7 = vadd.f32 0.112945676, %v462_v63  ;;  %v503_v10 = vadd.f32 0.112945676, %v502_v2  ;;  %v568_v19 = vadd.f32 0.00028619796, %v567_v6 }
 0x1b9   : > { %v529_v12 = vmul.f32 %v528_v5, %v1220_v54  ;;  %v540_v17 = vmul.f32 %v539_v9, %v1220_v54  ;;  %v580_v27 = vmul.f32 %v579_v16, %v1222_v55  ;;  %v452_v33 = vadd.f32 0.05243302, %v451_v11 }
 0x1ba   : > { %v464_v15 = vmul.f32 %v463_v7, %v1183_v30  ;;  %v504_v18 = vmul.f32 %v503_v10, %v1185_v31  ;;  %v569_v41 = vmul.f32 %v568_v19, %v1222_v55  ;;  %v492_v58 = vadd.f32 0.05243302, %v491_v49 }
 0x1bb   : > { %v530_v28 = vadd.f32 0.0036580483, %v529_v12  ;;  %v541_v29 = vadd.f32 0.014752088, %v540_v17  ;;  %v581_v38 = vadd.f32 0.014752088, %v580_v27  ;;  %v453_v48 = vmul.f32 %v452_v33, %v1183_v30 }
 0x1bc   : > { %v465_v26 = vadd.f32 0.4994258, %v464_v15  ;;  %v505_v32 = vadd.f32 0.4994258, %v504_v18  ;;  %v570_v52 = vadd.f32 0.0036580483, %v569_v41  ;;  %v493_v7 = vmul.f32 %v492_v58, %v1185_v31 }
 0x1bd   : > { %v542_v39 = vmul.f32 %v541_v29, %v1220_v54  ;;  %v531_v45 = vmul.f32 %v530_v28, %v1220_v54  ;;  %v582_v50 = vmul.f32 %v581_v38, %v1222_v55  ;;  %v454_v57 = vadd.f32 0.18741608, %v453_v48 }
 0x1be   : > { %v466_v37 = vmul.f32 %v465_v26, %v1183_v30  ;;  %v506_v40 = vmul.f32 %v505_v32, %v1185_v31  ;;  %v571_v62 = vmul.f32 %v570_v52, %v1222_v55  ;;  %v494_v17 = vadd.f32 0.18741608, %v493_v7 }
 0x1bf   : > { %v543_v46 = vadd.f32 0.112945676, %v542_v39  ;;  %v532_v53 = vadd.f32 0.05243302, %v531_v45  ;;  %v583_v59 = vadd.f32 0.112945676, %v582_v50  ;;  %v455_v6 = vmul.f32 %v454_v57, %v1183_v30 }
 0x1c0   : > { %v467_v44 = vadd.f32 1.0, %v466_v37  ;;  %v1260_v47 = vadd.f32 1.0, %v506_v40  ;;  %v572_v10 = vadd.f32 0.05243302, %v571_v62  ;;  %v495_v34 = vmul.f32 %v494_v17, %v1185_v31 }
 0x1c1   : > { %v544_v51 = vmul.f32 %v543_v46, %v1220_v54  ;;  %v584_v63 = vmul.f32 %v583_v59, %v1222_v55  ;;  %v533_v2 = vmul.f32 %v532_v53, %v1220_v54  ;;  %v456_v16 = vadd.f32 1.1283791, %v455_v6 }
 0x1c2   : > { %997 = vrcp.f32 %v467_v44  ;;  %v479_v15 = vand.u32 2147483648, %v467_v44  ;;  %v477_v18 = vand.u32 2147483647, %v467_v44  ;;  %vm473_vm9 = vweird.f32 %v467_v44 }
 0x1c3   : > { %999 = vrcp.f32 %v1260_v47  ;;  %v545_v56 = vadd.f32 0.4994258, %v544_v51  ;;  %v585_v12 = vadd.f32 0.4994258, %v584_v63  ;;  %v534_v13 = vadd.f32 0.18741608, %v533_v2 }
 0x1c4   : > { %v573_v25 = vmul.f32 %v572_v10, %v1222_v55  ;;  %v480_v32 = vor.u32 1.1754944e-38, %v479_v15  ;;  %v457_v33 = vmul.f32 %v456_v16, %v1162_v22  ;;  %vm478_vm11 = vcmp.eq.f32.partialorder %v477_v18, 8.507059e+37 }
 0x1c5   : > { %v546_v60 = vmul.f32 %v545_v56, %v1220_v54  ;;  %v586_v19 = vmul.f32 %v585_v12, %v1222_v55  ;;  %v535_v28 = vmul.f32 %v534_v13, %v1220_v54  ;;  %v519_v54 = vand.u32 2147483648, %v1260_v47 }
 0x1c6   : > { %v574_v40 = vadd.f32 0.18741608, %v573_v25  ;;  %vm513_vm13 = vweird.f32 %v1260_v47  ;;  %v496_v50 = vadd.f32 1.1283791, %v495_v34  ;;  %v437_v10 = vmul.f32 0.5, %v1157_v20 }
 0x1c7   : > { %v547_v5 = vadd.f32 1.0, %v546_v60  ;;  %v1280_v26 = vadd.f32 1.0, %v586_v19  ;;  %v536_v45 = vadd.f32 1.1283791, %v535_v28  ;;  %v520_v56 = vor.u32 1.1754944e-38, %v519_v54 }
 0x1c8   : > { %v998_v61 = vpop.eup %997  ;;  %v575_v52 = vmul.f32 %v574_v40, %v1222_v55  ;;  %v497_v63 = vmul.f32 %v496_v50, %v1165_v23  ;;  %v438_v25 = vmul.f32 0.5, %v1159_v21 }
 0x1c9   : > { %v1270_v0 = vpop.eup %999  ;;  %v469_v4 = vmul.f32 %v998_v61, %v467_v44  ;;  %1001 = vrcp.f32 %v547_v5  ;;  %vm474_vm8 = vweird.f32 %v998_v61  ;;  %v517_v44 = vand.u32 2147483647, %v1260_v47 }
 0x1ca   : > { %v509_v8 = vmul.f32 %v1270_v0, %v1260_v47  ;;  %vm475_vm10 = vmor %vm473_vm9, %vm474_vm8  ;;  %vm514_vm12 = vweird.f32 %v1270_v0  ;;  %1003 = vrcp.f32 %v1280_v26  ;;  %v557_v46 = vand.u32 2147483647, %v547_v5 }
 0x1cb   : > { %v470_v9 = vsub.f32 1.0, %v469_v4  ;;  %v559_v22 = vand.u32 2147483648, %v547_v5  ;;  %vm1291_vm15 = vmor %vm513_vm13, %vm514_vm12  ;;  %vm553_vm0 = vweird.f32 %v547_v5  ;;  %v537_v47 = vmul.f32 %v536_v45, %v1201_v42 }
 0x1cc   : > { %v510_v11 = vsub.f32 1.0, %v509_v8  ;;  %vm558_vm2 = vcmp.eq.f32.partialorder %v557_v46, 8.507059e+37  ;;  %vm518_vm3 = vcmp.eq.f32.partialorder %v517_v44, 8.507059e+37  ;;  %v576_v4 = vadd.f32 1.1283791, %v575_v52 }
 0x1cd   : > { %v471_v14 = vmul.f32 %v998_v61, %v470_v9  ;;  %v560_v58 = vor.u32 1.1754944e-38, %v559_v22  ;;  %v597_v6 = vand.u32 2147483647, %v1280_v26  ;;  %v599_v42 = vand.u32 2147483648, %v1280_v26 }
 0x1ce   : > { %v511_v24 = vmul.f32 %v1270_v0, %v510_v11  ;;  %v439_v11 = vmul.f32 0.5, %v1188_v35  ;;  %vm593_vm5 = vweird.f32 %v1280_v26  ;;  %v577_v23 = vmul.f32 %v576_v4, %v1204_v43 }
 0x1cf   : > { %v472_v30 = vadd.f32 %v998_v61, %v471_v14  ;;  %v1002_v27 = vpop.eup %1001  ;;  %v600_v15 = vor.u32 1.1754944e-38, %v599_v42  ;;  %vm598_vm7 = vcmp.eq.f32.partialorder %v597_v6, 8.507059e+37  ;;  %vm779_vm8 = vcmask 519168  }
 0x1d0   : > { %v549_v37 = vmul.f32 %v1002_v27, %v547_v5  ;;  %v512_v39 = vadd.f32 %v1270_v0, %v511_v24  ;;  %vm554_vm14 = vweird.f32 %v1002_v27  ;;  %v1004_v57 = vpop.eup %1003 }
 0x1d1   : > { %v476_v29 = vsel %vm475_vm10, %v998_v61, %v472_v30  ;;  %vm555_vm1 = vmor %vm553_vm0, %vm554_vm14  ;;  %v589_v62 = vmul.f32 %v1004_v57, %v1280_v26  ;;  %vm594_vm4 = vweird.f32 %v1004_v57  ;;  %v440_v26 = vmul.f32 0.5, %v1190_v36 }
 0x1d2   : > { %v481_v38 = vsel %vm478_vm11, %v480_v32, %v476_v29  ;;  %v550_v41 = vsub.f32 1.0, %v549_v37  ;;  %v516_v51 = vsel %vm1291_vm15, %v1270_v0, %v512_v39  ;;  %vm595_vm6 = vmor %vm593_vm5, %vm594_vm4 }
 0x1d3   : > { %v482_v31 = vmul.f32 %v481_v38, %v457_v33  ;;  %v521_v61 = vsel %vm518_vm3, %v520_v56, %v516_v51  ;;  %v590_v55 = vsub.f32 1.0, %v589_v62  ;;  %v990_v33 = vld [vmem:[%s1329_s6] ss:$0 sm:$0xff] }
 0x1d4   : > { %v551_v48 = vmul.f32 %v1002_v27, %v550_v41  ;;  %v522_v5 = vmul.f32 %v521_v61, %v497_v63 }
 0x1d5   : > { %v881_v59 = vclamps-f32 %v482_v31, 1.0  ;;  %v591_v9 = vmul.f32 %v1004_v57, %v590_v55 }
 0x1d6   : > { %v552_v53 = vadd.f32 %v1002_v27, %v551_v48  ;;  %v882_v14 = vclamps-f32 %v522_v5, 1.0 }
 0x1d7   : > { %v605_v8 = vadd.f32 1.0, %v881_v59  ;;  %v592_v13 = vadd.f32 %v1004_v57, %v591_v9 }
 0x1d8   : > { %v556_v60 = vsel %vm555_vm1, %v1002_v27, %v552_v53  ;;  %v606_v35 = vadd.f32 1.0, %v882_v14 }
 0x1d9   : > { %v561_v0 = vsel %vm558_vm2, %v560_v58, %v556_v60  ;;  %v609_v16 = vmul.f32 %v605_v8, %v437_v10  ;;  %v596_v18 = vsel %vm595_vm6, %v1004_v57, %v592_v13 }
 0x1da   : > { %v562_v2 = vmul.f32 %v561_v0, %v537_v47  ;;  %v601_v19 = vsel %vm598_vm7, %v600_v15, %v596_v18  ;;  %v610_v43 = vmul.f32 %v606_v35, %v438_v25 }
 0x1db   : > { %v602_v24 = vmul.f32 %v601_v19, %v577_v23 }
 0x1dc   : > { %v883_v7 = vclamps-f32 %v562_v2, 1.0 }
 0x1dd   : > { %v884_v20 = vclamps-f32 %v602_v24, 1.0 }
 0x1de   : > { %v607_v12 = vadd.f32 1.0, %v883_v7 }
 0x1df   : > { %v608_v27 = vadd.f32 1.0, %v884_v20 }
 0x1e0   : > { %v611_v17 = vmul.f32 %v607_v12, %v439_v11 }
 0x1e1   : > { %v612_v28 = vmul.f32 %v608_v27, %v440_v26 }
 0x1e2   : > { %v613_v30 = vpack.c.bf16 %v611_v17, %v609_v16 }
 0x1e3   : > { %v614_v29 = vpack.c.bf16 %v612_v28, %v610_v43 }
 0x1e4   : > { %755 = vmatmul.bf16.vlgmr.msra.gmra.mxu2 %v613_v30 }
 0x1e5   : > { %769 = vmatmul.bf16.vlgmr.msra.gmra.mxu3 %v614_v29 }
 0x267   : > { %v756_v32 = vpop.f32.mrf.mxu2 }
 0x268   : > { %v757_v34 = vadd.f32 %v990_v33, %v756_v32  ;;  %v770_v37 = vpop.f32.mrf.mxu3 }
 0x26a   : > { %v771_v38 = vadd.f32 %v770_v37, %v757_v34 }
 0x26c   : > { %v775_v40 = vadd.f32 %v1070_v1, %v771_v38 }
 0x26e   : > { %v777_v21 = vpack.c.bf16 %v775_v40, %v775_v40 }
 0x26f   : > { %v758_v39 = vpop.f32.mrf.mxu2 }
 0x270   : > { %v759_v36 = vadd.f32 %v990_v33, %v758_v39  ;;  %780 = vst.msk [vmem:[%s280_s22] sm:$0xf] %vm779_vm8, %v777_v21  ;;  %v772_v41 = vpop.f32.mrf.mxu3 }
 0x272   : > { %v773_v44 = vadd.f32 %v772_v41, %v759_v36 }
 0x274   : > { %v776_v54 = vadd.f32 %v1074_v3, %v773_v44 }
 0x276   : > { %v778_v45 = vpack.c.bf16 %v776_v54, %v776_v54 }
 0x278   : > { %781 = vst.msk [vmem:[%s280_s22 + $0x4] sm:$0xf] %vm779_vm8, %v778_v45 }
 0x279 PF: > { %s17_s24 = sadd.s32 1, %s1011_s24  }
 0x27a   : > { %p14_p4 = scmp.ge.s32.totalorder %s17_s24, 4  }
 0x27c   :  { %16 = sbr.rel (!%p14_p4) target bundleno = 1 (0x1), region = 78 }

// kernel: dinat_forward.25
= control target key start
LH: loop header
LB: loop body
LE: loop exit
PB: predicated region body
PF: predicated region fallthrough
CT: control target
= control target key end

     0   :  { %s1739_s30 = smov 0   ;;  %s1741_s10 = smov 0   ;;  %s2107_s0 = inlined_call_operand.vmem [shape: bf16[2,16,64], index: 0, kind: input, shape index: {}]   ;;  %s2108_s1 = inlined_call_operand.vmem [shape: bf16[2,16,576], index: 1, kind: input, shape index: {}]   ;;  %s2109_s2 = inlined_call_operand.vmem [shape: bf16[2,16,576], index: 2, kind: input, shape index: {}]   ;;  %s2110_s3 = inlined_call_operand.vmem [shape: f32[16,36], index: 3, kind: input, shape index: {}]   ;;  %s2111_s4 = inlined_call_operand.vmem [shape: bf16[64,4], index: 4, kind: input, shape index: {}]   ;;  %s2112_s5 = inlined_call_operand.vmem [shape: bf16[4,64], index: 5, kind: input, shape index: {}]   ;;  %s2113_s6 = inlined_call_operand.vmem [shape: bf16[64,64], index: 6, kind: input, shape index: {}]   ;;  %s2114_s7 = inlined_call_operand.vmem [shape: f32[1,64], index: 7, kind: input, shape index: {}]   ;;  %s2115_s8 = inlined_call_operand.vmem [shape: bf16[2,16,64], index: 8, kind: input, shape index: {}]   ;;  %s2116_s9 = inlined_call_operand.vmem [shape: bf16[2,16,64], index: 9, kind: output, shape index: {}]  }
   0x1   :  { %s1743_s11 = smov 0  }
   0x2 LB: > { %s31_s12 = sadd.s32 1, %s1674_s10  ;;  %p1460_p0 = scmp.ge.s32.totalorder %s1678_s11, 1  ;;  %s1678_s11 = sphi %s1743_s11, %s19_s11   ;;  %s1674_s10 = sphi %s1741_s10, %s2118_s10   ;;  %s1670_s30 = sphi %s1739_s30, %s2117_s30  }
   0x3   : > { %p33_p1 = scmp.ge.s32.totalorder %s31_s12, 2  ;;  %p372_p2 = scmp.lt.s32.totalorder %s1678_s11, 3 }
   0x5   : > { %s2120_s12 = smov (%p33_p1, %s31_s12), 0  ;;  %p373_p3 = pnand %p1460_p0, %p372_p2 }
   0x6   : > { %p451_p4 = scmp.lt.s32.totalorder (!%p373_p3), %s1670_s30, 1  ;;  %s1680_s29 = smov (!%p373_p3), 64  }
   0x7   : > { %376 = sbr.rel (%p373_p3) target bundleno = 672 (0x2a0), region = 56  ;;  %s1681_s19 = smov (!%p373_p3), 120  }
   0x8   : > { %s1682_s20 = smov (!%p373_p3), 124   ;;  %s1684_s22 = smov (!%p373_p3), 116  }
   0x9   : > { %s1685_s23 = smov (!%p373_p3), 108   ;;  %s1687_s25 = smov (!%p373_p3), 104  }
   0xa   : > { %s1688_s26 = smov (!%p373_p3), 96  }
   0xc   : > { %v1760_v0 = vld [vmem:[%s2111_s4 + $0x18] sm:$0xff]  ;;  %s2122_s30 = smov (!%p451_p4, %s1670_s30), 1  ;;  %v1769_v1 = vld [vmem:[%s2111_s4 + $0x10] sm:$0xff]  ;;  %v1791_v3 = vld [vmem:[%s2111_s4 + $0x8] sm:$0xff]  ;;  %vm552_vm0 = vcmask 523264   ;;  %vm962_vm1 = vcmask 1041408  }
   0xd   : > { %560 = vmatpush.bf16.msra.mxu0 %v1760_v0  ;;  %630 = vmatpush.bf16.msra.mxu2 %v1760_v0  ;;  %s1541_s17 = smul.u32 40, %s2122_s30  ;;  %s1775_s18 = sshll.u32 %s2122_s30, 3  ;;  %v1525_v21 = vld [vmem:[%s2111_s4] sm:$0xff]  ;;  %v1853_v36 = vld [vmem:[%s2110_s3 + $0x8] sm:$0xff]  ;;  %vm958_vm2 = vcmask 31744   ;;  %vm1290_vm3 = vcmask 519168  }
   0xe   : > { %668 = vmatpush.bf16.msra.mxu3 %v1760_v0  ;;  %594 = vmatpush.bf16.msra.mxu1 %v1760_v0  ;;  %s458_s21 = scalar_lea.vmem %s2107_s0, %s1775_s18  ;;  %v1858_v37 = vld [vmem:[%s2110_s3] sm:$0xff]  ;;  %s506_s14 = scalar_lea.vmem %s2116_s9, %s1775_s18 }
   0xf   : > { %s469_s24 = scalar_lea.vmem %s2108_s1, %s1541_s17  ;;  %v1534_v2 = vld [vmem:[%s458_s21] sm:$0xff]   ;;  %608 = vrot.lane.b32.xlu2 %v1858_v37, %s1682_s20  ;;  %s1683_s21 = smov 112  }
  0x10   : > { %v1793_v4 = vld [vmem:[%s469_s24 + $0x4] sm:$0xff]   ;;  %v1795_v5 = vld [vmem:[%s469_s24 + $0x18] sm:$0xff]   ;;  %v519_v6 = vld [vmem:[%s469_s24] sm:$0xf]  ;;  %v1801_v9 = vunpack.c.l.bf16 %v1534_v2  ;;  %v1803_v10 = vunpack.c.h.bf16 %v1534_v2  ;;  %s1984_s15 = scalar_lea.vmem %s2109_s2, %s1541_s17 }
  0x11   : > { %561 = vmatpush.bf16.msra.mxu0 %v1769_v1  ;;  %631 = vmatpush.bf16.msra.mxu2 %v1769_v1  ;;  %v618_v7 = vunpack.c.l.bf16 %v1793_v4  ;;  %v619_v8 = vunpack.c.l.bf16 %v1795_v5  ;;  %v520_v11 = vld [vmem:[%s469_s24 + $0x14] sm:$0xf]  ;;  %v1805_v12 = vld [vmem:[%s469_s24 + $0xc] sm:$0xff]   ;;  %v1807_v13 = vld [vmem:[%s469_s24 + $0x20] sm:$0xff]   ;;  %v523_v14 = vunpack.c.l.bf16 %v519_v6  ;;  %v690_v25 = vunpack.c.h.bf16 %v1793_v4  ;;  %s1686_s24 = smov 100  }
  0x12   : > { %669 = vmatpush.bf16.msra.mxu3 %v1769_v1  ;;  %595 = vmatpush.bf16.msra.mxu1 %v1769_v1  ;;  %v762_v15 = vunpack.c.l.bf16 %v1805_v12  ;;  %v763_v16 = vunpack.c.l.bf16 %v1807_v13  ;;  %v524_v20 = vunpack.c.l.bf16 %v520_v11  ;;  %v691_v26 = vunpack.c.h.bf16 %v1795_v5 }
  0x13   : > { %v1575_v17 = vpack.i.bf16 %v619_v8, %v618_v7  ;;  %v620_v18 = vmul.f32 %v1801_v9, %v618_v7  ;;  %v621_v19 = vmul.f32 %v1803_v10, %v619_v8  ;;  %v525_v23 = vmul.f32 %v1801_v9, %v523_v14 }
  0x14   : > { %v1585_v22 = vpack.i.bf16 %v763_v16, %v762_v15  ;;  %v526_v24 = vmul.f32 %v1803_v10, %v524_v20  ;;  %v1580_v29 = vpack.i.bf16 %v524_v20, %v523_v14  ;;  %v1590_v30 = vpack.i.bf16 %v691_v26, %v690_v25 }
  0x15   : > { %562 = vmatpush.bf16.msra.mxu0 %v1791_v3  ;;  %632 = vmatpush.bf16.msra.mxu2 %v1791_v3  ;;  %v622_v28 = vpack.c.bf16 %v621_v19, %v620_v18  ;;  %v692_v31 = vmul.f32 %v1801_v9, %v690_v25  ;;  %v693_v32 = vmul.f32 %v1803_v10, %v691_v26  ;;  %v834_v39 = vunpack.c.h.bf16 %v1805_v12 }
  0x16   : > { %1576 = vrot.lane.b32.xlu0 %v1575_v17, %s1680_s29  ;;  %1586 = vrot.lane.b32.xlu1 %v1585_v22, %s1680_s29  ;;  %v527_v27 = vpack.c.bf16 %v526_v24, %v525_v23  ;;  %v764_v33 = vmul.f32 %v1801_v9, %v762_v15  ;;  %v765_v34 = vmul.f32 %v1803_v10, %v763_v16  ;;  %v835_v40 = vunpack.c.h.bf16 %v1807_v13 }
  0x17   : > { %670 = vmatpush.bf16.msra.mxu3 %v1791_v3  ;;  %596 = vmatpush.bf16.msra.mxu1 %v1791_v3  ;;  %v694_v35 = vpack.c.bf16 %v693_v32, %v692_v31  ;;  %v836_v41 = vmul.f32 %v1801_v9, %v834_v39 }
  0x18   : > { %v766_v38 = vpack.c.bf16 %v765_v34, %v764_v33  ;;  %v837_v42 = vmul.f32 %v1803_v10, %v835_v40  ;;  %610 = vrot.lane.b32.xlu2 %v1853_v36, %s1682_s20 }
  0x19   : > { %563 = vmatpush.bf16.msra.mxu0 %v1525_v21  ;;  %633 = vmatpush.bf16.msra.mxu2 %v1525_v21 }
  0x1a   : > { %v838_v43 = vpack.c.bf16 %v837_v42, %v836_v41 }
  0x1b   : > { %671 = vmatpush.bf16.msra.mxu3 %v1525_v21  ;;  %597 = vmatpush.bf16.msra.mxu1 %v1525_v21 }
  0x1c   : > { %1485 = vmatmul.msk.bf16.vlgmr.msra.gmra.mxu0 %vm552_vm0, %v527_v27  ;;  %1487 = vmatmul.msk.bf16.vlgmr.msra.gmra.mxu2 %vm552_vm0, %v622_v28 }
  0x1d   : > { %702 = vmatpush.bf16.msrb.mxu0 %v1760_v0  ;;  %774 = vmatpush.bf16.msrb.mxu2 %v1760_v0 }
  0x1e   : > { %1581 = vrot.lane.b32.xlu0 %v1580_v29, %s1680_s29  ;;  %1591 = vrot.lane.b32.xlu1 %v1590_v30, %s1680_s29 }
  0x1f   : > { %812 = vmatpush.bf16.msrb.mxu3 %v1760_v0  ;;  %740 = vmatpush.bf16.msrb.mxu1 %v1760_v0 }
  0x20   : > { %680 = vrot.lane.b32.xlu2 %v1858_v37, %s1684_s22 }
  0x21   : > { %703 = vmatpush.bf16.msrb.mxu0 %v1769_v1  ;;  %775 = vmatpush.bf16.msrb.mxu2 %v1769_v1 }
  0x23   : > { %813 = vmatpush.bf16.msrb.mxu3 %v1769_v1  ;;  %741 = vmatpush.bf16.msrb.mxu1 %v1769_v1 }
  0x25   : > { %704 = vmatpush.bf16.msrb.mxu0 %v1791_v3  ;;  %776 = vmatpush.bf16.msrb.mxu2 %v1791_v3 }
  0x26   : > { %644 = vrot.lane.b32.xlu1 %v1853_v36, %s1681_s19  ;;  %642 = vrot.lane.b32.xlu0 %v1858_v37, %s1681_s19 }
  0x27   : > { %814 = vmatpush.bf16.msrb.mxu3 %v1791_v3  ;;  %742 = vmatpush.bf16.msrb.mxu1 %v1791_v3 }
  0x28   : > { %716 = vrot.lane.b32.xlu2 %v1853_v36, %s1683_s21 }
  0x29   : > { %705 = vmatpush.bf16.msrb.mxu0 %v1525_v21  ;;  %777 = vmatpush.bf16.msrb.mxu2 %v1525_v21 }
  0x2b   : > { %815 = vmatpush.bf16.msrb.mxu3 %v1525_v21  ;;  %743 = vmatpush.bf16.msrb.mxu1 %v1525_v21 }
  0x2c   : > { %1489 = vmatmul.msk.bf16.vlgmr.msrb.gmra.mxu0 %vm552_vm0, %v694_v35  ;;  %1491 = vmatmul.msk.bf16.vlgmr.msrb.gmra.mxu2 %vm552_vm0, %v766_v38 }
  0x2d   : > { %846 = vmatpush.bf16.msra.mxu0 %v1760_v0 }
  0x2e   : > { %714 = vrot.lane.b32.xlu1 %v1858_v37, %s1683_s21  ;;  %682 = vrot.lane.b32.xlu0 %v1853_v36, %s1684_s22 }
  0x30   : > { %786 = vrot.lane.b32.xlu2 %v1858_v37, %s1687_s25 }
  0x31   : > { %847 = vmatpush.bf16.msra.mxu0 %v1769_v1 }
  0x35   : > { %848 = vmatpush.bf16.msra.mxu0 %v1791_v3 }
  0x36   : > { %754 = vrot.lane.b32.xlu1 %v1853_v36, %s1685_s23  ;;  %752 = vrot.lane.b32.xlu0 %v1858_v37, %s1685_s23 }
  0x38   : > { %826 = vrot.lane.b32.xlu2 %v1853_v36, %s1686_s24 }
  0x39   : > { %849 = vmatpush.bf16.msra.mxu0 %v1525_v21 }
  0x3c   : > { %1493 = vmatmul.msk.bf16.vlgmr.msra.gmra.mxu0 %vm552_vm0, %v838_v43 }
  0x3e   : > { %824 = vrot.lane.b32.xlu1 %v1858_v37, %s1686_s24  ;;  %788 = vrot.lane.b32.xlu0 %v1853_v36, %s1687_s25  ;;  %s496_s25 = scalar_lea.vmem %s2115_s8, %s1775_s18 }
  0x46   : > { %860 = vrot.lane.b32.xlu1 %v1853_v36, %s1688_s26  ;;  %858 = vrot.lane.b32.xlu0 %v1858_v37, %s1688_s26 }
  0x69   : > { %v609_v5 = vpop.permute.xlu2 %608 }
  0x72   : > { %v611_v8 = vpop.permute.xlu2 %610 }
  0x7a   : > { %v681_v16 = vpop.permute.xlu2 %680 }
  0x82   : > { %v717_v27 = vpop.permute.xlu2 %716 }
  0x88   : > { %v1577_v44 = vpop.permute.xlu0 %1576  ;;  %v1587_v50 = vpop.permute.xlu1 %1586 }
  0x89   : > { %v1579_v45 = vunpack.i.h.bf16 %v1577_v44  ;;  %v1578_v46 = vunpack.i.l.bf16 %v1577_v44  ;;  %v1589_v56 = vunpack.i.h.bf16 %v1587_v50  ;;  %v1588_v57 = vunpack.i.l.bf16 %v1587_v50 }
  0x8b   : > { %v658_v47 = vmul.f32 %v1578_v46, %v1801_v9  ;;  %v659_v48 = vmul.f32 %v1579_v45, %v1803_v10  ;;  %v802_v59 = vmul.f32 %v1588_v57, %v1801_v9  ;;  %v803_v60 = vmul.f32 %v1589_v56, %v1803_v10 }
  0x8d   : > { %v660_v49 = vpack.c.bf16 %v659_v48, %v658_v47  ;;  %v804_v62 = vpack.c.bf16 %v803_v60, %v802_v59 }
  0x8f   : > { %1488 = vmatmul.msk.bf16.vlgmr.msra.gmra.mxu3 %vm552_vm0, %v660_v49 }
  0x90   : > { %v1582_v51 = vpop.permute.xlu0 %1581  ;;  %v1592_v61 = vpop.permute.xlu1 %1591 }
  0x91   : > { %v1584_v52 = vunpack.i.h.bf16 %v1582_v51  ;;  %v1583_v53 = vunpack.i.l.bf16 %v1582_v51  ;;  %v1594_v63 = vunpack.i.h.bf16 %v1592_v61  ;;  %v1593_v0 = vunpack.i.l.bf16 %v1592_v61 }
  0x93   : > { %v584_v54 = vmul.f32 %v1583_v53, %v1801_v9  ;;  %v585_v55 = vmul.f32 %v1584_v52, %v1803_v10  ;;  %v730_v1 = vmul.f32 %v1593_v0, %v1801_v9  ;;  %v731_v2 = vmul.f32 %v1594_v63, %v1803_v10  ;;  %v787_v52 = vpop.permute.xlu2 %786 }
  0x95   : > { %v586_v58 = vpack.c.bf16 %v585_v55, %v584_v54  ;;  %v732_v3 = vpack.c.bf16 %v731_v2, %v730_v1 }
  0x97   : > { %1486 = vmatmul.msk.bf16.vlgmr.msra.gmra.mxu1 %vm552_vm0, %v586_v58 }
  0x98   : > { %v643_v6 = vpop.permute.xlu0 %642  ;;  %v645_v11 = vpop.permute.xlu1 %644 }
  0x99   : > { %v565_v4 = vpop.f32.mrf.mxu0 }
  0x9a   : > { %v570_v10 = vmul.f32 0.25, %v565_v4 }
  0x9c   : > { %v1897_v21 = vadd.f32 %v1858_v37, %v570_v10  ;;  %v827_v10 = vpop.permute.xlu2 %826 }
  0x9f   : > { %1492 = vmatmul.msk.bf16.vlgmr.msrb.gmra.mxu3 %vm552_vm0, %v804_v62  ;;  %v635_v13 = vpop.f32.mrf.mxu2 }
  0xa0   : > { %v683_v12 = vpop.permute.xlu0 %682  ;;  %v715_v17 = vpop.permute.xlu1 %714  ;;  %v640_v22 = vmul.f32 0.25, %v635_v13 }
  0xa1   : > { %v567_v7 = vpop.f32.mrf.mxu0 }
  0xa2   : > { %v648_v29 = vadd.f32 %v643_v6, %v640_v22  ;;  %v571_v38 = vmul.f32 0.25, %v567_v7 }
  0xa4   : > { %v1904_v44 = vadd.f32 %v1853_v36, %v571_v38 }
  0xa7   : > { %1490 = vmatmul.msk.bf16.vlgmr.msrb.gmra.mxu1 %vm552_vm0, %v732_v3  ;;  %v637_v23 = vpop.f32.mrf.mxu2 }
  0xa8   : > { %v753_v18 = vpop.permute.xlu0 %752  ;;  %v755_v31 = vpop.permute.xlu1 %754  ;;  %v641_v45 = vmul.f32 0.25, %v637_v23 }
  0xa9   : > { %v707_v14 = vpop.f32.mrf.mxu0 }
  0xaa   : > { %v712_v34 = vmul.f32 0.25, %v707_v14  ;;  %v1908_v57 = vadd.f32 %v645_v11, %v641_v45 }
  0xac   : > { %v720_v41 = vadd.f32 %v715_v17, %v712_v34 }
  0xaf   : > { %v779_v40 = vpop.f32.mrf.mxu2 }
  0xb0   : > { %v789_v33 = vpop.permute.xlu0 %788  ;;  %v784_v42 = vmul.f32 0.25, %v779_v40  ;;  %v825_v59 = vpop.permute.xlu1 %824 }
  0xb1   : > { %v709_v26 = vpop.f32.mrf.mxu0 }
  0xb2   : > { %v792_v54 = vadd.f32 %v787_v52, %v784_v42  ;;  %v713_v2 = vmul.f32 0.25, %v709_v26 }
  0xb4   : > { %v1922_v14 = vadd.f32 %v717_v27, %v713_v2 }
  0xb7   : > { %v781_v3 = vpop.f32.mrf.mxu2 }
  0xb8   : > { %v859_v36 = vpop.permute.xlu0 %858  ;;  %v785_v11 = vmul.f32 0.25, %v781_v3 }
  0xb9   : > { %v851_v48 = vpop.f32.mrf.mxu0 }
  0xba   : > { %v856_v51 = vmul.f32 0.25, %v851_v48  ;;  %v1933_v23 = vadd.f32 %v789_v33, %v785_v11 }
  0xbc   : > { %v1913_v63 = vadd.f32 %v859_v36, %v856_v51 }
 0x112   : > { %v673_v15 = vpop.f32.mrf.mxu3 }
 0x113   : > { %v678_v30 = vmul.f32 0.25, %v673_v15 }
 0x114   : > { %v599_v9 = vpop.f32.mrf.mxu1 }
 0x115   : > { %v604_v19 = vmul.f32 0.25, %v599_v9  ;;  %v686_v39 = vadd.f32 %v681_v16, %v678_v30 }
 0x117   : > { %v1894_v20 = vadd.f32 %v609_v5, %v604_v19 }
 0x119   : > { %v866_v25 = vmax.f32 %v1897_v21, %v1894_v20 }
 0x11a   : > { %v675_v24 = vpop.f32.mrf.mxu3 }
 0x11b   : > { %v868_v35 = vmax.f32 %v866_v25, %v648_v29  ;;  %v679_v58 = vmul.f32 0.25, %v675_v24 }
 0x11c   : > { %v601_v28 = vpop.f32.mrf.mxu1 }
 0x11d   : > { %v605_v32 = vmul.f32 0.25, %v601_v28  ;;  %v870_v43 = vmax.f32 %v868_v35, %v686_v39  ;;  %v1915_v1 = vadd.f32 %v683_v12, %v679_v58  ;;  %v853_v12 = vpop.f32.mrf.mxu0 }
 0x11e   : > { %v857_v26 = vmul.f32 0.25, %v853_v12 }
 0x11f   : > { %v1901_v37 = vadd.f32 %v611_v8, %v605_v32  ;;  %v872_v56 = vmax.f32 %v870_v43, %v720_v41 }
 0x121   : > { %v867_v50 = vmax.f32 %v1904_v44, %v1901_v37 }
 0x122   : > { %v817_v46 = vpop.f32.mrf.mxu3 }
 0x123   : > { %v822_v53 = vmul.f32 0.25, %v817_v46  ;;  %v869_v61 = vmax.f32 %v867_v50, %v1908_v57 }
 0x124   : > { %v745_v47 = vpop.f32.mrf.mxu1 }
 0x125   : > { %v750_v49 = vmul.f32 0.25, %v745_v47  ;;  %v1911_v62 = vadd.f32 %v825_v59, %v822_v53  ;;  %v871_v8 = vmax.f32 %v869_v61, %v1915_v1 }
 0x127   : > { %v758_v55 = vadd.f32 %v753_v18, %v750_v49  ;;  %v873_v22 = vmax.f32 %v871_v8, %v1922_v14 }
 0x129   : > { %v874_v60 = vmax.f32 %v872_v56, %v758_v55 }
 0x12a   : > { %v819_v7 = vpop.f32.mrf.mxu3 }
 0x12b   : > { %v876_v0 = vmax.f32 %v874_v60, %v792_v54  ;;  %v823_v16 = vmul.f32 0.25, %v819_v7  ;;  %v2005_v7 = vld [vmem:[%s1984_s15 + $0x18] sm:$0xff]  }
 0x12c   : > { %v747_v4 = vpop.f32.mrf.mxu1 }
 0x12d   : > { %v878_v5 = vmax.f32 %v876_v0, %v1911_v62  ;;  %v751_v6 = vmul.f32 0.25, %v747_v4  ;;  %v1937_v30 = vadd.f32 %v827_v10, %v823_v16 }
 0x12f   : > { %v1920_v13 = vmax.f32 %v878_v5, %v1913_v63  ;;  %v1924_v15 = vadd.f32 %v755_v31, %v751_v6  ;;  %v2002_v6 = vld [vmem:[%s1984_s15 + $0x4] sm:$0xff]  }
 0x131   : > { %v882_v17 = vsub.f32 %v1897_v21, %v1920_v13  ;;  %v888_v9 = vsub.f32 %v1894_v20, %v1920_v13  ;;  %v894_v18 = vsub.f32 %v648_v29, %v1920_v13  ;;  %v900_v19 = vsub.f32 %v686_v39, %v1920_v13  ;;  %v861_v20 = vpop.permute.xlu1 %860 }
 0x132   : > { %v906_v28 = vsub.f32 %v720_v41, %v1920_v13  ;;  %v875_v21 = vmax.f32 %v873_v22, %v1924_v15  ;;  %v912_v31 = vsub.f32 %v758_v55, %v1920_v13  ;;  %v918_v33 = vsub.f32 %v792_v54, %v1920_v13  ;;  %v954_v55 = vld [vmem:[%s2112_s5] sm:$0x3] }
 0x133   : > { %v884_v24 = vmul.f32 1.442695, %v882_v17  ;;  %v890_v25 = vmul.f32 1.442695, %v888_v9  ;;  %v896_v27 = vmul.f32 1.442695, %v894_v18  ;;  %v1942_v34 = vadd.f32 %v861_v20, %v857_v26 }
 0x134   : > { %v902_v29 = vmul.f32 1.442695, %v900_v19  ;;  %v877_v32 = vmax.f32 %v875_v21, %v1933_v23  ;;  %v908_v35 = vmul.f32 1.442695, %v906_v28  ;;  %v914_v39 = vmul.f32 1.442695, %v912_v31 }
 0x135   : > { %1616 = vpow2.f32 %v884_v24  ;;  %v920_v42 = vmul.f32 1.442695, %v918_v33  ;;  %v924_v43 = vsub.f32 %v1911_v62, %v1920_v13  ;;  %v930_v58 = vsub.f32 %v1913_v63, %v1920_v13 }
 0x136   : > { %1618 = vpow2.f32 %v890_v25  ;;  %v879_v38 = vmax.f32 %v877_v32, %v1937_v30  ;;  %v1988_v62 = vsel %vm962_vm1, %v954_v55, 0  ;;  %v1042_v13 = vunpack.c.l.bf16 %v2002_v6 }
 0x137   : > { %1620 = vpow2.f32 %v896_v27  ;;  %973 = vmatpush.bf16.msra.mxu1 %v1988_v62  ;;  %1001 = vmatpush.bf16.msra.mxu2 %v1988_v62  ;;  %v932_v3 = vmul.f32 1.442695, %v930_v58 }
 0x138   : > { %1622 = vpow2.f32 %v902_v29  ;;  %v1946_v40 = vmax.f32 %v879_v38, %v1942_v34  ;;  %1033 = vmatpush.bf16.msra.mxu3 %v1988_v62  ;;  %1061 = vmatpush.bf16.msrb.mxu0 %v1988_v62 }
 0x139   : > { %1624 = vpow2.f32 %v908_v35 }
 0x13a   : > { %v883_v46 = vsub.f32 %v1904_v44, %v1946_v40  ;;  %v889_v47 = vsub.f32 %v1901_v37, %v1946_v40  ;;  %v895_v48 = vsub.f32 %v1908_v57, %v1946_v40  ;;  %v901_v50 = vsub.f32 %v1915_v1, %v1946_v40 }
 0x13b   : > { %v1948_v41 = vpop.eup %1616  ;;  %1626 = vpow2.f32 %v914_v39  ;;  %v907_v37 = vsub.f32 %v1922_v14, %v1946_v40  ;;  %v926_v57 = vmul.f32 1.442695, %v924_v43  ;;  %v913_v59 = vsub.f32 %v1924_v15, %v1946_v40  ;;  %1093 = vmatpush.bf16.msrb.mxu1 %v1988_v62  ;;  %1121 = vmatpush.bf16.msrb.mxu2 %v1988_v62 }
 0x13c   : > { %v1952_v45 = vpop.eup %1618  ;;  %v886_v52 = vmul.f32 1.442695, %v883_v46  ;;  %v892_v53 = vmul.f32 1.442695, %v889_v47  ;;  %1628 = vpow2.f32 %v920_v42  ;;  %v898_v54 = vmul.f32 1.442695, %v895_v48  ;;  %1153 = vmatpush.bf16.msrb.mxu3 %v1988_v62  ;;  %1181 = vmatpush.bf16.msra.mxu0 %v1988_v62 }
 0x13d   : > { %v936_v49 = vadd.f32 %v1952_v45, %v1948_v41  ;;  %v1964_v51 = vpop.eup %1620  ;;  %v904_v60 = vmul.f32 1.442695, %v901_v50  ;;  %v910_v0 = vmul.f32 1.442695, %v907_v37  ;;  %v919_v1 = vsub.f32 %v1933_v23, %v1946_v40 }
 0x13e   : > { %v1972_v56 = vpop.eup %1622  ;;  %1630 = vpow2.f32 %v886_v52  ;;  %v916_v4 = vmul.f32 1.442695, %v913_v59  ;;  %v925_v5 = vsub.f32 %v1937_v30, %v1946_v40  ;;  %v1043_v14 = vunpack.c.l.bf16 %v2005_v7 }
 0x13f   : > { %v938_v44 = vadd.f32 %v1964_v51, %v936_v49  ;;  %1632 = vpow2.f32 %v892_v53  ;;  %v1986_v61 = vpop.eup %1624  ;;  %v922_v12 = vmul.f32 1.442695, %v919_v1  ;;  %v931_v17 = vsub.f32 %v1942_v34, %v1946_v40 }
 0x140   : > { %1634 = vpow2.f32 %v898_v54  ;;  %v1600_v9 = vpack.i.bf16 %v1043_v14, %v1042_v13  ;;  %v928_v22 = vmul.f32 1.442695, %v925_v5  ;;  %v1102_v42 = vunpack.c.h.bf16 %v2002_v6 }
 0x141   : > { %v940_v36 = vadd.f32 %v1972_v56, %v938_v44  ;;  %v1995_v2 = vpop.eup %1626  ;;  %1636 = vpow2.f32 %v926_v57  ;;  %v934_v26 = vmul.f32 1.442695, %v931_v17  ;;  %v1103_v43 = vunpack.c.h.bf16 %v2005_v7 }
 0x142   : > { %v1629_v8 = vpop.eup %1628  ;;  %1638 = vpow2.f32 %v904_v60  ;;  %1601 = vrot.lane.b32.xlu0 %v1600_v9, %s1680_s29  ;;  %v2042_v9 = vld [vmem:[%s1984_s15 + $0xc] sm:$0xff]  }
 0x143   : > { %v942_v63 = vadd.f32 %v1986_v61, %v940_v36  ;;  %1640 = vpow2.f32 %v910_v0  ;;  %v1605_v46 = vpack.i.bf16 %v1103_v43, %v1102_v42 }
 0x144   : > { %v1631_v15 = vpop.eup %1630  ;;  %1642 = vpow2.f32 %v932_v3 }
 0x145   : > { %v944_v11 = vadd.f32 %v1995_v2, %v942_v63  ;;  %v1633_v16 = vpop.eup %1632  ;;  %1644 = vpow2.f32 %v916_v4  ;;  %1606 = vrot.lane.b32.xlu1 %v1605_v46, %s1680_s29 }
 0x146   : > { %v937_v10 = vadd.f32 %v1633_v16, %v1631_v15  ;;  %v1635_v19 = vpop.eup %1634  ;;  %1646 = vpow2.f32 %v922_v12 }
 0x147   : > { %v946_v18 = vadd.f32 %v1629_v8, %v944_v11  ;;  %v1637_v23 = vpop.eup %1636  ;;  %1648 = vpow2.f32 %v928_v22  ;;  %v980_v11 = vld [vmem:[%s1984_s15] sm:$0xf] }
 0x148   : > { %v939_v24 = vadd.f32 %v1635_v19, %v937_v10  ;;  %v1639_v25 = vpop.eup %1638  ;;  %1650 = vpow2.f32 %v934_v26 }
 0x149   : > { %v948_v27 = vadd.f32 %v1637_v23, %v946_v18  ;;  %v1641_v21 = vpop.eup %1640  ;;  %v2045_v18 = vld [vmem:[%s1984_s15 + $0x20] sm:$0xff]  }
 0x14a   : > { %v941_v28 = vadd.f32 %v1639_v25, %v939_v24  ;;  %v1643_v30 = vpop.eup %1642  ;;  %v1163_v22 = vunpack.c.l.bf16 %v2045_v18  ;;  %v1532_v24 = vld [vmem:[%s2113_s6 + $0x18] sm:$0xff] }
 0x14b   : > { %v1645_v29 = vpop.eup %1644  ;;  %v950_v31 = vadd.f32 %v1643_v30, %v948_v27 }
 0x14c   : > { %v943_v20 = vadd.f32 %v1641_v21, %v941_v28  ;;  %v1647_v33 = vpop.eup %1646 }
 0x14d   : > { %v1649_v35 = vpop.eup %1648  ;;  %1652 = vrcp.f32 %v950_v31 }
 0x14e   : > { %v945_v32 = vadd.f32 %v1645_v29, %v943_v20  ;;  %v1651_v39 = vpop.eup %1650 }
 0x150   : > { %v947_v34 = vadd.f32 %v1647_v33, %v945_v32  ;;  %v1529_v32 = vld [vmem:[%s2113_s6] sm:$0xff] }
 0x152   : > { %v949_v38 = vadd.f32 %v1649_v35, %v947_v34 }
 0x153   : > { %v1653_v47 = vpop.eup %1652 }
 0x154   : > { %v951_v40 = vadd.f32 %v1651_v39, %v949_v38  ;;  %v955_v48 = vmul.f32 %v1653_v47, %v1948_v41  ;;  %v988_v49 = vmul.f32 %v1653_v47, %v1952_v45  ;;  %v1020_v50 = vmul.f32 %v1653_v47, %v1964_v51 }
 0x155   : > { %v1048_v52 = vmul.f32 %v1653_v47, %v1972_v56  ;;  %v1080_v44 = vmul.f32 %v1653_v47, %v1986_v61  ;;  %v1108_v54 = vmul.f32 %v1653_v47, %v1995_v2  ;;  %v1140_v37 = vmul.f32 %v1653_v47, %v1629_v8 }
 0x156   : > { %1654 = vrcp.f32 %v951_v40  ;;  %v1168_v55 = vmul.f32 %v1653_v47, %v1637_v23  ;;  %v1200_v5 = vmul.f32 %v1653_v47, %v1643_v30  ;;  %v1530_v30 = vld [vmem:[%s2113_s6 + $0x8] sm:$0xff] }
 0x15c   : > { %v1655_v53 = vpop.eup %1654 }
 0x15d   : > { %v1109_v57 = vmul.f32 %v1655_v53, %v1645_v29  ;;  %v956_v58 = vmul.f32 %v1655_v53, %v1631_v15  ;;  %v989_v59 = vmul.f32 %v1655_v53, %v1633_v16  ;;  %v1021_v36 = vmul.f32 %v1655_v53, %v1635_v19  ;;  %v981_v15 = vld [vmem:[%s1984_s15 + $0x14] sm:$0xf] }
 0x15e   : > { %v1049_v60 = vmul.f32 %v1655_v53, %v1639_v25  ;;  %v1081_v41 = vmul.f32 %v1655_v53, %v1641_v21  ;;  %v1141_v45 = vmul.f32 %v1655_v53, %v1647_v33  ;;  %v1169_v63 = vmul.f32 %v1655_v53, %v1649_v35  ;;  %v1531_v25 = vld [vmem:[%s2113_s6 + $0x10] sm:$0xff] }
 0x15f   : > { %v957_v51 = vpack.c.bf16 %v956_v58, %v955_v48  ;;  %v990_v0 = vpack.c.bf16 %v989_v59, %v988_v49  ;;  %v1022_v56 = vpack.c.bf16 %v1021_v36, %v1020_v50  ;;  %v1110_v1 = vpack.c.bf16 %v1109_v57, %v1108_v54 }
 0x160   : > { %v1050_v3 = vpack.c.bf16 %v1049_v60, %v1048_v52  ;;  %v1082_v61 = vpack.c.bf16 %v1081_v41, %v1080_v44  ;;  %v1142_v2 = vpack.c.bf16 %v1141_v45, %v1140_v37  ;;  %v1170_v4 = vpack.c.bf16 %v1169_v63, %v1168_v55 }
 0x161   : > { %1494 = vmatmul.msk.bf16.vlgmr.msra.gmra.mxu1 %vm958_vm2, %v957_v51  ;;  %1495 = vmatmul.msk.bf16.vlgmr.msra.gmra.mxu2 %vm958_vm2, %v990_v0  ;;  %v1201_v8 = vmul.f32 %v1655_v53, %v1651_v39  ;;  %v982_v16 = vunpack.c.l.bf16 %v980_v11  ;;  %v983_v12 = vunpack.c.l.bf16 %v981_v15  ;;  %v1162_v19 = vunpack.c.l.bf16 %v2042_v9 }
 0x162   : > { %1496 = vmatmul.msk.bf16.vlgmr.msra.gmra.mxu3 %vm958_vm2, %v1022_v56  ;;  %1497 = vmatmul.msk.bf16.vlgmr.msrb.gmra.mxu0 %vm958_vm2, %v1050_v3 }
 0x163   : > { %1213 = vmatpush.bf16.msra.mxu1 %v1988_v62  ;;  %v1202_v17 = vpack.c.bf16 %v1201_v8, %v1200_v5  ;;  %v1595_v10 = vpack.i.bf16 %v983_v12, %v982_v16  ;;  %v1610_v23 = vpack.i.bf16 %v1163_v22, %v1162_v19  ;;  %1272 = vmatpush.bf16.msra.mxu2 %v1532_v24 }
 0x165   : > { %1596 = vrot.lane.b32.xlu2 %v1595_v10, %s1680_s29 }
 0x167   : > { %1273 = vmatpush.bf16.msra.mxu2 %v1531_v25 }
 0x16b   : > { %1274 = vmatpush.bf16.msra.mxu2 %v1530_v30 }
 0x16d   : > { %1611 = vrot.lane.b32.xlu2 %v1610_v23, %s1680_s29 }
 0x16f   : > { %1275 = vmatpush.bf16.msra.mxu2 %v1529_v32 }
 0x171   : > { %1498 = vmatmul.msk.bf16.vlgmr.msrb.gmra.mxu1 %vm958_vm2, %v1082_v61  ;;  %1499 = vmatmul.msk.bf16.vlgmr.msrb.gmra.mxu2 %vm958_vm2, %v1110_v1 }
 0x172   : > { %1500 = vmatmul.msk.bf16.vlgmr.msrb.gmra.mxu3 %vm958_vm2, %v1142_v2  ;;  %1501 = vmatmul.msk.bf16.vlgmr.msra.gmra.mxu0 %vm958_vm2, %v1170_v4 }
 0x181   : > { %1502 = vmatmul.msk.bf16.vlgmr.msra.gmra.mxu1 %vm958_vm2, %v1202_v17 }
 0x1b4   : > { %v1602_v48 = vpop.permute.xlu0 %1601 }
 0x1b5   : > { %v1604_v44 = vunpack.i.h.bf16 %v1602_v48  ;;  %v1603_v54 = vunpack.i.l.bf16 %v1602_v48 }
 0x1b7   : > { %v1607_v52 = vpop.permute.xlu1 %1606 }
 0x1b8   : > { %v1608_v60 = vunpack.i.l.bf16 %v1607_v52  ;;  %v1609_v45 = vunpack.i.h.bf16 %v1607_v52 }
 0x1bf   : > { %v1597_v20 = vpop.permute.xlu2 %1596 }
 0x1c0   : > { %v1599_v29 = vunpack.i.h.bf16 %v1597_v20  ;;  %v1598_v31 = vunpack.i.l.bf16 %v1597_v20 }
 0x1de   : > { %v975_v62 = vpop.f32.mrf.mxu1 }
 0x1df   : > { %v1063_v26 = vpop.f32.mrf.mxu0  ;;  %v984_v46 = vmul.f32 %v982_v16, %v975_v62  ;;  %v1223_v62 = vunpack.c.h.bf16 %v2045_v18  ;;  %v1615_v18 = vld [vmem:[%s2114_s7] ss:$0 sm:$0xff] }
 0x1e0   : > { %v1076_v63 = vmul.f32 %v1603_v54, %v1063_v26 }
 0x1e4   : > { %v1003_v27 = vpop.f32.mrf.mxu2 }
 0x1e5   : > { %v1035_v28 = vpop.f32.mrf.mxu3  ;;  %v1016_v39 = vmul.f32 %v1598_v31, %v1003_v27 }
 0x1e6   : > { %v977_v21 = vpop.f32.mrf.mxu1  ;;  %v1044_v37 = vmul.f32 %v1042_v13, %v1035_v28 }
 0x1e7   : > { %v1065_v35 = vpop.f32.mrf.mxu0  ;;  %v985_v47 = vmul.f32 %v983_v12, %v977_v21  ;;  %v1018_v49 = vadd.f32 %v1016_v39, %v984_v46 }
 0x1e8   : > { %v1077_v51 = vmul.f32 %v1604_v44, %v1065_v35 }
 0x1e9   : > { %v1046_v59 = vadd.f32 %v1044_v37, %v1018_v49 }
 0x1eb   : > { %v1078_v1 = vadd.f32 %v1076_v63, %v1046_v59 }
 0x1ec   : > { %v1005_v33 = vpop.f32.mrf.mxu2 }
 0x1ed   : > { %v1037_v34 = vpop.f32.mrf.mxu3  ;;  %v1017_v40 = vmul.f32 %v1599_v29, %v1005_v33 }
 0x1ee   : > { %v1095_v38 = vpop.f32.mrf.mxu1  ;;  %v1045_v55 = vmul.f32 %v1043_v14, %v1037_v34  ;;  %v1612_v14 = vpop.permute.xlu2 %1611 }
 0x1ef   : > { %v1019_v50 = vadd.f32 %v1017_v40, %v985_v47  ;;  %v1183_v41 = vpop.f32.mrf.mxu0  ;;  %v1104_v0 = vmul.f32 %v1102_v42, %v1095_v38  ;;  %v1614_v12 = vunpack.i.h.bf16 %v1612_v14  ;;  %v1613_v17 = vunpack.i.l.bf16 %v1612_v14 }
 0x1f0   : > { %v1222_v42 = vunpack.c.h.bf16 %v2042_v9  ;;  %v1538_v9 = vld [vmem:[%s496_s25] sm:$0xff]  }
 0x1f1   : > { %v1047_v36 = vadd.f32 %v1045_v55, %v1019_v50  ;;  %v1106_v2 = vadd.f32 %v1104_v0, %v1078_v1  ;;  %v1196_v24 = vmul.f32 %v1613_v17, %v1183_v41  ;;  %v1540_v35 = vunpack.c.h.bf16 %v1538_v9 }
 0x1f3   : > { %v1079_v3 = vadd.f32 %v1077_v51, %v1047_v36 }
 0x1f4   : > { %v1123_v53 = vpop.f32.mrf.mxu2 }
 0x1f5   : > { %v1155_v57 = vpop.f32.mrf.mxu3  ;;  %v1136_v13 = vmul.f32 %v1608_v60, %v1123_v53 }
 0x1f6   : > { %v1097_v58 = vpop.f32.mrf.mxu1  ;;  %v1164_v6 = vmul.f32 %v1162_v19, %v1155_v57 }
 0x1f7   : > { %v1105_v56 = vmul.f32 %v1103_v43, %v1097_v58  ;;  %v1138_v15 = vadd.f32 %v1136_v13, %v1106_v2  ;;  %v1185_v43 = vpop.f32.mrf.mxu0 }
 0x1f8   : > { %v1197_v25 = vmul.f32 %v1614_v12, %v1185_v43 }
 0x1f9   : > { %v1107_v4 = vadd.f32 %v1105_v56, %v1079_v3  ;;  %v1166_v10 = vadd.f32 %v1164_v6, %v1138_v15 }
 0x1fb   : > { %v1198_v28 = vadd.f32 %v1196_v24, %v1166_v10 }
 0x1fc   : > { %v1125_v61 = vpop.f32.mrf.mxu2 }
 0x1fd   : > { %v1137_v5 = vmul.f32 %v1609_v45, %v1125_v61  ;;  %v1157_v8 = vpop.f32.mrf.mxu3 }
 0x1fe   : > { %v1215_v11 = vpop.f32.mrf.mxu1  ;;  %v1165_v7 = vmul.f32 %v1163_v22, %v1157_v8  ;;  %v1539_v22 = vunpack.c.l.bf16 %v1538_v9 }
 0x1ff   : > { %v1139_v16 = vadd.f32 %v1137_v5, %v1107_v4  ;;  %v1224_v26 = vmul.f32 %v1222_v42, %v1215_v11 }
 0x201   : > { %v1167_v23 = vadd.f32 %v1165_v7, %v1139_v16  ;;  %v1226_v19 = vadd.f32 %v1224_v26, %v1198_v28 }
 0x203   : > { %v1199_v21 = vadd.f32 %v1197_v25, %v1167_v23 }
 0x206   : > { %v1217_v27 = vpop.f32.mrf.mxu1 }
 0x207   : > { %v1225_v30 = vmul.f32 %v1223_v62, %v1217_v27 }
 0x209   : > { %v1227_v20 = vadd.f32 %v1225_v30, %v1199_v21 }
 0x20b   : > { %v1228_v29 = vpack.c.bf16 %v1227_v20, %v1226_v19 }
 0x20d   : > { %1519 = vmatmul.msk.bf16.vlgmr.msra.gmra.mxu2 %vm552_vm0, %v1228_v29 }
 0x290   : > { %v1277_v31 = vpop.f32.mrf.mxu2 }
 0x291   : > { %v1278_v32 = vadd.f32 %v1615_v18, %v1277_v31 }
 0x293   : > { %v1286_v33 = vadd.f32 %v1539_v22, %v1278_v32 }
 0x295   : > { %v1288_v34 = vpack.c.bf16 %v1286_v33, %v1286_v33 }
 0x297   : > { %1291 = vst.msk [vmem:[%s506_s14] sm:$0xf] %vm1290_vm3, %v1288_v34 }
 0x298   : > { %v1279_v38 = vpop.f32.mrf.mxu2 }
 0x299   : > { %v1280_v39 = vadd.f32 %v1615_v18, %v1279_v38 }
 0x29b   : > { %v1287_v40 = vadd.f32 %v1540_v35, %v1280_v39 }
 0x29d   : > { %v1289_v46 = vpack.c.bf16 %v1287_v40, %v1287_v40 }
 0x29f   : > { %1292 = vst.msk [vmem:[%s506_s14 + $0x4] sm:$0xf] %vm1290_vm3, %v1289_v46 }
 0x2a0 PF: > { %s19_s11 = sadd.s32 1, %s1678_s11   ;;  %s2117_s30 = smov %s1674_s10 }
 0x2a1   : > { %p16_p5 = scmp.ge.s32.totalorder %s19_s11, 4   ;;  %s2118_s10 = smov %s2120_s12 }
 0x2a3   :  { %18 = sbr.rel (!%p16_p5) target bundleno = 2 (0x2), region = 98 }

// kernel: dinat_forward.27
= control target key start
LH: loop header
LB: loop body
LE: loop exit
PB: predicated region body
PF: predicated region fallthrough
CT: control target
= control target key end

     0   :  { %8 = vsyncpa [#allocation3], 0  ;;  %s570_s0 = inlined_call_operand.vmem [shape: bf16[32,64], index: 0, kind: input, shape index: {}]   ;;  %s571_s1 = inlined_call_operand.vmem [shape: f32[1,64], index: 1, kind: input, shape index: {}]   ;;  %s572_s2 = inlined_call_operand.vmem [shape: f32[1,64], index: 2, kind: input, shape index: {}]   ;;  %s573_s3 = inlined_call_operand.hbm [shape: f32[32,64], index: 3, kind: output, shape index: {}]  }
   0x1   :  { %10 = vsyncpa [#allocation3 + $0x1], 0  ;;  %s474_s12 = smov 0   ;;  %s476_s13 = smov 0  }
   0x2   :  { %s478_s14 = smov 0   ;;  %s480_s15 = smov 0  }
   0x3 LB: > { %s495_s16 = sadd.s32 4294967295, %s449_s15   ;;  %s320_s17 = sadd.s32 4294967294, %s449_s15   ;;  %s449_s15 = sphi %s480_s15, %s579_s15   ;;  %s445_s14 = sphi %s478_s14, %s578_s14   ;;  %s441_s13 = sphi %s476_s13, %s577_s13   ;;  %s437_s12 = sphi %s474_s12, %s576_s12  }
   0x4   : > { %s499_s18 = sadd.s32 1, %s449_s15   ;;  %s91_s19 = sadd.s32 1, %s445_s14 }
   0x5   : > { %s88_s20 = ssub.s32 %s449_s15, %s499_s18  ;;  %p101_p0 = scmp.ne.s32.totalorder %s445_s14, %s441_s13 }
   0x6   : > { %p89_p1 = scmp.eq.s32.totalorder %s88_s20, 0  ;;  %p102_p2 = scmp.eq.s32.totalorder %s495_s16, 1 }
   0x7   : > { %p107_p3 = scmp.ne.s32.totalorder %s441_s13, %s437_s12  ;;  %p108_p4 = scmp.eq.s32.totalorder %s320_s17, 1 }
   0x8   : > { %s510_s21 = scalar_select %p89_p1, %s445_s14, %s91_s19  }
   0x9   : > { %p512_p5 = por %p102_p2, %p101_p0  ;;  %p516_p6 = por %p108_p4, %p107_p3 }
   0xa   : > { %p323_p7 = scmp.ge.s32.totalorder %s449_s15, 1  ;;  %p141_p8 = scmp.lt.s32.totalorder %s449_s15, 3 }
   0xc   : > { %p142_p9 = pnand %p323_p7, %p141_p8 }
   0xd   : > { %s325_s24 = sshll.u32 (!%p142_p9), %s495_s16, 1  ;;  %s162_s29 = sand.u32 (!%p142_p9), 1, %s441_s13  }
   0xe   : > { %145 = sbr.rel (%p142_p9) target bundleno = 305 (0x131), region = 32  ;;  %p166_p10 = scmp.lt.s32.totalorder (!%p142_p9), %s325_s24, 3 }
   0xf   : > { %s324_s7 = sshll.u32 (!%p142_p9), %s162_s29, 4  ;;  %s332_s8 = sshll.u32 (!%p142_p9), %s495_s16, 4 }
  0x10   : > { %s254_s11 = scalar_lea.hbm (!%p142_p9), %s573_s3, %s332_s8  ;;  %s164_s17 = scalar_lea.vmem (!%p142_p9), [#allocation2], %s324_s7 }
  0x11   : > { %s255_s19 = sshll.u32 (!%p142_p9), %s164_s17, 4  ;;  %s257_s20 = sshll.u32 (!%p142_p9), %s254_s11, 4  ;;  %s256_s19 = int_to_ptr.vmem [resolvable:$true] %s255_s19  ;;  %s258_s20 = int_to_ptr.hbm [resolvable:$true] %s257_s20 }
  0x12   : > { %s243_s16 = scalar_lea.sflag (!%p142_p9), [#allocation3], %s162_s29 }
  0x13   : > { %s581_s24 = smov (!%p166_p10, %s325_s24), 3  ;;  %vm176_vm0 = vcmask 523264   ;;  %v451_v5 = vmov 64.0   ;;  %v379_v36 = vld [vmem:[%s571_s1] ss:$0 sm:$0xff] }
  0x14   : > { %s326_s25 = sshll.u32 %s581_s24, 2  ;;  %381 = vrcp.f32 %v451_v5  ;;  %v380_v39 = vld [vmem:[%s572_s2] ss:$0 sm:$0xff]  ;;  %s401_s24 = sshra.s32 %s258_s20, 4  ;;  %s402_s24 = int_to_ptr.hbm [resolvable:$true] %s401_s24 }
  0x15   : > { %s169_s28 = scalar_lea.vmem %s570_s0, %s326_s25  ;;  %s403_s25 = scalar_lea.hbm %s402_s24, 16 }
  0x16   : > { %v334_v0 = vld [vmem:[%s169_s28] sm:$0xff]   ;;  %p404_p11 = scmp.ne.s32.totalorder %s402_s24, %s403_s25  ;;  %s407_s28 = scalar_lea.hbm %s573_s3, 32 }
  0x17   : > { %v335_v1 = vunpack.c.l.bf16 %v334_v0  ;;  %v336_v3 = vunpack.c.h.bf16 %v334_v0  ;;  %p408_p0 = scmp.lt.s32.totalorder %s402_s24, %s573_s3  ;;  %p409_p1 = scmp.lt.s32.totalorder %s407_s28, %s403_s25 }
  0x18   : > { %p405_p12 = pnand %p404_p11, %p512_p5 }
  0x19   : > { %v177_v2 = vsel %vm176_vm0, %v335_v1, 0.0  ;;  %v180_v4 = vsel %vm176_vm0, %v336_v3, 0.0  ;;  %p410_p2 = por %p409_p1, %p408_p0 }
  0x1a   : > { %178 = vadd.xlane.f32.xlu0 %v177_v2  ;;  %v382_v6 = vpop.eup %381  ;;  %p406_p13 = pneg %p405_p12 }
  0x1b   : > { %v184_v7 = vmul.f32 64.0, %v382_v6  ;;  %vm188_vm1 = vweird.f32 %v382_v6 }
  0x1c   : > { %p411_p3 = pnand %p410_p2, %p406_p13 }
  0x1d   : > { %v185_v8 = vsub.f32 1.0, %v184_v7 }
  0x1f   : > { %v186_v9 = vmul.f32 %v382_v6, %v185_v8 }
  0x21   : > { %v187_v10 = vadd.f32 %v382_v6, %v186_v9 }
  0x22   : > { %181 = vadd.xlane.f32.xlu0 %v180_v4 }
  0x23   : > { %v189_v11 = vsel %vm188_vm1, %v382_v6, %v187_v10 }
  0x8d   : > { %v179_v12 = vpop.xlane.xlu0 %178 }
  0x8e   : > { %v190_v13 = vmul.f32 %v189_v11, %v179_v12 }
  0x90   : > { %v192_v14 = vsub.f32 %v335_v1, %v190_v13 }
  0x92   : > { %v194_v15 = vmul.f32 %v192_v14, %v192_v14 }
  0x94   : > { %v196_v16 = vsel %vm176_vm0, %v194_v15, 0.0 }
  0x95   : > { %197 = vadd.xlane.f32.xlu1 %v196_v16  ;;  %v182_v17 = vpop.xlane.xlu0 %181 }
  0x96   : > { %v191_v18 = vmul.f32 %v189_v11, %v182_v17 }
  0x98   : > { %v193_v19 = vsub.f32 %v336_v3, %v191_v18 }
  0x9a   : > { %v195_v20 = vmul.f32 %v193_v19, %v193_v19 }
  0x9c   : > { %v199_v21 = vsel %vm176_vm0, %v195_v20, 0.0 }
  0x9d   : > { %200 = vadd.xlane.f32.xlu1 %v199_v21 }
 0x108   : > { %v198_v22 = vpop.xlane.xlu1 %197 }
 0x109   : > { %v202_v23 = vmul.f32 %v198_v22, %v189_v11 }
 0x10b   : > { %v204_v24 = vadd.f32 1e-05, %v202_v23 }
 0x10d   : > { %383 = vrsqrt.f32 %v204_v24  ;;  %vm212_vm3 = vweird.f32 %v204_v24 }
 0x110   : > { %v201_v25 = vpop.xlane.xlu1 %200 }
 0x111   : > { %v203_v26 = vmul.f32 %v201_v25, %v189_v11 }
 0x113   : > { %v384_v27 = vpop.eup %383  ;;  %v205_v28 = vadd.f32 1e-05, %v203_v26 }
 0x114   : > { %v207_v29 = vmul.f32 %v384_v27, %v204_v24  ;;  %vm213_vm2 = vweird.f32 %v384_v27 }
 0x115   : > { %385 = vrsqrt.f32 %v205_v28  ;;  %vm214_vm4 = vmor %vm212_vm3, %vm213_vm2  ;;  %vm222_vm6 = vweird.f32 %v205_v28 }
 0x116   : > { %v208_v30 = vmul.f32 %v384_v27, %v207_v29 }
 0x118   : > { %v209_v31 = vmul.f32 0.5, %v208_v30 }
 0x11a   : > { %v210_v32 = vsub.f32 1.5, %v209_v31 }
 0x11b   : > { %v386_v33 = vpop.eup %385 }
 0x11c   : > { %v211_v34 = vmul.f32 %v384_v27, %v210_v32  ;;  %v217_v35 = vmul.f32 %v386_v33, %v205_v28  ;;  %vm223_vm5 = vweird.f32 %v386_v33 }
 0x11d   : > { %vm224_vm7 = vmor %vm222_vm6, %vm223_vm5 }
 0x11e   : > { %v215_v37 = vsel %vm214_vm4, %v384_v27, %v211_v34  ;;  %v218_v38 = vmul.f32 %v386_v33, %v217_v35 }
 0x11f   : > { %v226_v40 = vmul.f32 %v215_v37, %v192_v14 }
 0x120   : > { %v219_v41 = vmul.f32 0.5, %v218_v38 }
 0x121   : > { %v232_v42 = vmul.f32 %v379_v36, %v226_v40 }
 0x122   : > { %v220_v43 = vsub.f32 1.5, %v219_v41 }
 0x123   : > { %v238_v44 = vadd.f32 %v380_v39, %v232_v42 }
 0x124   : > { %v221_v45 = vmul.f32 %v386_v33, %v220_v43 }
 0x125   : > { %240 = vst.msk [vmem:[%s164_s17] sm:$0xff] %vm176_vm0, %v238_v44 }
 0x126   : > { %v225_v46 = vsel %vm224_vm7, %v386_v33, %v221_v45 }
 0x127   : > { %v227_v47 = vmul.f32 %v225_v46, %v193_v19 }
 0x129   : > { %v233_v48 = vmul.f32 %v379_v36, %v227_v47 }
 0x12b   : > { %v239_v49 = vadd.f32 %v380_v39, %v233_v48 }
 0x12d   : > { %241 = vst.msk [vmem:[%s164_s17 + $0x8] sm:$0xff] %vm176_vm0, %v239_v49 }
 0x12e   : > { %414 = shalt.err (!%p411_p3)
}
 0x12f   : > { %s452_s29 = smov 128   ;;  %s453_s5 = smov 8  }
 0x130   : > { %337 = dma.vmem_to_hbm [thread:$0]  (%p512_p5), %s256_s19, 256, %s258_s20, %s243_s16, %s452_s29, %s452_s29, %s453_s5  }
 0x131 PF: > { %p343_p4 = scmp.ge.s32.totalorder %s449_s15, 2  ;;  %s272_s6 = sand.u32 1, %s437_s12  }
 0x132   : > { %s273_s7 = scalar_lea.sflag [#allocation3], %s272_s6 }
 0x133   : > { %p340_p7 = pnand %p343_p4, %p516_p6 }
 0x135   : > { %p341_p8 = pneg %p340_p7 }
 0x137   : > { %432 = dma.done.wait (%p341_p8), %s273_s7, 256  }
 0x138   : > { %434 = vsyncadd (%p341_p8), %s273_s7, 4294967040  ;;  %p13_p9 = scmp.ge.s32.totalorder %s499_s18, 4   ;;  %s576_s12 = smov %s441_s13 }
 0x139   : > { %s577_s13 = smov %s445_s14  ;;  %s578_s14 = smov %s510_s21 }
 0x13a   : > { %s579_s15 = smov %s499_s18  ;;  %15 = sbr.rel (!%p13_p9) target bundleno = 3 (0x3), region = 67 }
 0x13f   :  { %279 = vsyncpa [#allocation3], 1 }
 0x140   :  { %281 = vsyncpa [#allocation3 + $0x1], 1 }

// kernel: dinat_forward.23
= control target key start
LH: loop header
LB: loop body
LE: loop exit
PB: predicated region body
PF: predicated region fallthrough
CT: control target
= control target key end

     0   :  { %8 = vsyncpa [#allocation3], 0  ;;  %s905_s0 = inlined_call_operand.vmem [shape: bf16[128,32], index: 0, kind: input, shape index: {}]   ;;  %s906_s1 = inlined_call_operand.vmem [shape: f32[1,32], index: 1, kind: input, shape index: {}]   ;;  %s907_s2 = inlined_call_operand.vmem [shape: f32[1,32], index: 2, kind: input, shape index: {}]   ;;  %s908_s3 = inlined_call_operand.hbm [shape: f32[128,32], index: 3, kind: output, shape index: {}]  }
   0x1   :  { %10 = vsyncpa [#allocation3 + $0x1], 0  ;;  %s663_s12 = smov 0   ;;  %s665_s13 = smov 0  }
   0x2   :  { %s667_s14 = smov 0   ;;  %s669_s15 = smov 0  }
   0x3 LB: > { %s684_s16 = sadd.s32 4294967295, %s638_s15   ;;  %s482_s17 = sadd.s32 4294967294, %s638_s15   ;;  %s638_s15 = sphi %s669_s15, %s916_s15   ;;  %s634_s14 = sphi %s667_s14, %s915_s14   ;;  %s630_s13 = sphi %s665_s13, %s914_s13   ;;  %s626_s12 = sphi %s663_s12, %s913_s12  }
   0x4   : > { %s688_s18 = sadd.s32 1, %s638_s15   ;;  %s91_s19 = sadd.s32 1, %s634_s14 }
   0x5   : > { %s88_s20 = ssub.s32 %s638_s15, %s688_s18  ;;  %p101_p0 = scmp.ne.s32.totalorder %s634_s14, %s630_s13 }
   0x6   : > { %p89_p1 = scmp.eq.s32.totalorder %s88_s20, 0  ;;  %p102_p2 = scmp.eq.s32.totalorder %s684_s16, 1 }
   0x7   : > { %p107_p3 = scmp.ne.s32.totalorder %s630_s13, %s626_s12  ;;  %p108_p4 = scmp.eq.s32.totalorder %s482_s17, 1 }
   0x8   : > { %s699_s21 = scalar_select %p89_p1, %s634_s14, %s91_s19  }
   0x9   : > { %p701_p5 = por %p102_p2, %p101_p0  ;;  %p705_p6 = por %p108_p4, %p107_p3 }
   0xa   : > { %p485_p7 = scmp.ge.s32.totalorder %s638_s15, 1  ;;  %p141_p8 = scmp.lt.s32.totalorder %s638_s15, 3 }
   0xc   : > { %p142_p9 = pnand %p485_p7, %p141_p8 }
   0xd   : > { %s487_s24 = sshll.u32 (!%p142_p9), %s684_s16, 3  ;;  %s162_s29 = sand.u32 (!%p142_p9), 1, %s630_s13  }
   0xe   : > { %145 = sbr.rel (%p142_p9) target bundleno = 322 (0x142), region = 32  ;;  %p166_p10 = scmp.lt.s32.totalorder (!%p142_p9), %s487_s24, 15 }
   0xf   : > { %s486_s7 = sshll.u32 (!%p142_p9), %s162_s29, 6  ;;  %s494_s9 = sshll.u32 (!%p142_p9), %s684_s16, 6 }
  0x10   : > { %s825_s8 = scalar_lea.vmem (!%p142_p9), [#allocation2], %s486_s7  ;;  %s416_s17 = scalar_lea.hbm (!%p142_p9), %s908_s3, %s494_s9 }
  0x11   : > { %s417_s16 = sshll.u32 (!%p142_p9), %s825_s8, 4  ;;  %s419_s19 = sshll.u32 (!%p142_p9), %s416_s17, 4  ;;  %s418_s16 = int_to_ptr.vmem [resolvable:$true] %s417_s16  ;;  %s420_s19 = int_to_ptr.hbm [resolvable:$true] %s419_s19 }
  0x12   : > { %s405_s20 = scalar_lea.sflag (!%p142_p9), [#allocation3], %s162_s29 }
  0x13   : > { %s918_s24 = smov (!%p166_p10, %s487_s24), 15  ;;  %vm188_vm0 = vcmask 261120   ;;  %v640_v20 = vmov 32.0  }
  0x14   : > { %s488_s25 = sshll.u32 %s918_s24, 2  ;;  %558 = vrcp.f32 %v640_v20  ;;  %s590_s24 = sshra.s32 %s420_s19, 4  ;;  %s591_s24 = int_to_ptr.hbm [resolvable:$true] %s590_s24 }
  0x15   : > { %s169_s28 = scalar_lea.vmem %s905_s0, %s488_s25  ;;  %s592_s25 = scalar_lea.hbm %s591_s24, 64 }
  0x16   : > { %v715_v0 = vld [vmem:[%s169_s28 + $0x10] sm:$0xff]   ;;  %v511_v1 = vld [vmem:[%s169_s28 + $0x8] sm:$0xff]   ;;  %v496_v2 = vld [vmem:[%s169_s28] sm:$0xff]   ;;  %p593_p11 = scmp.ne.s32.totalorder %s591_s24, %s592_s25  ;;  %p597_p0 = scmp.lt.s32.totalorder %s591_s24, %s908_s3 }
  0x17   : > { %v505_v3 = vunpack.c.l.bf16 %v715_v0  ;;  %v501_v4 = vunpack.c.l.bf16 %v511_v1  ;;  %v497_v5 = vunpack.c.l.bf16 %v496_v2  ;;  %v506_v9 = vunpack.c.h.bf16 %v715_v0  ;;  %v513_v15 = vld [vmem:[%s169_s28 + $0x18] sm:$0xff]   ;;  %s596_s28 = scalar_lea.hbm %s908_s3, 128 }
  0x18   : > { %v502_v10 = vunpack.c.h.bf16 %v511_v1  ;;  %v498_v11 = vunpack.c.h.bf16 %v496_v2  ;;  %v510_v16 = vunpack.c.h.bf16 %v513_v15  ;;  %v509_v17 = vunpack.c.l.bf16 %v513_v15  ;;  %p594_p12 = pnand %p593_p11, %p701_p5  ;;  %p598_p1 = scmp.lt.s32.totalorder %s596_s28, %s592_s25 }
  0x19   : > { %v201_v6 = vsel %vm188_vm0, %v505_v3, 0.0  ;;  %v195_v7 = vsel %vm188_vm0, %v501_v4, 0.0  ;;  %v189_v8 = vsel %vm188_vm0, %v497_v5, 0.0  ;;  %v204_v12 = vsel %vm188_vm0, %v506_v9, 0.0 }
  0x1a   : > { %202 = vadd.xlane.f32.xlu2 %v201_v6  ;;  %196 = vadd.xlane.f32.xlu1 %v195_v7  ;;  %v198_v13 = vsel %vm188_vm0, %v502_v10, 0.0  ;;  %v192_v14 = vsel %vm188_vm0, %v498_v11, 0.0  ;;  %v210_v18 = vsel %vm188_vm0, %v510_v16, 0.0  ;;  %v207_v19 = vsel %vm188_vm0, %v509_v17, 0.0  ;;  %v559_v21 = vpop.eup %558  ;;  %p595_p13 = pneg %p594_p12  ;;  %p599_p2 = por %p598_p1, %p597_p0 }
  0x1b   : > { %190 = vadd.xlane.f32.xlu0 %v189_v8  ;;  %v214_v22 = vmul.f32 32.0, %v559_v21  ;;  %vm218_vm1 = vweird.f32 %v559_v21 }
  0x1c   : > { %p600_p3 = pnand %p599_p2, %p595_p13 }
  0x1d   : > { %v215_v23 = vsub.f32 1.0, %v214_v22 }
  0x1f   : > { %v216_v24 = vmul.f32 %v559_v21, %v215_v23 }
  0x21   : > { %v217_v25 = vadd.f32 %v559_v21, %v216_v24 }
  0x22   : > { %205 = vadd.xlane.f32.xlu2 %v204_v12  ;;  %199 = vadd.xlane.f32.xlu1 %v198_v13 }
  0x23   : > { %193 = vadd.xlane.f32.xlu0 %v192_v14  ;;  %v727_v26 = vsel %vm218_vm1, %v559_v21, %v217_v25 }
  0x2a   : > { %211 = vadd.xlane.f32.xlu1 %v210_v18 }
  0x2b   : > { %208 = vadd.xlane.f32.xlu0 %v207_v19 }
  0x8d   : > { %v203_v27 = vpop.xlane.xlu2 %202  ;;  %v197_v28 = vpop.xlane.xlu1 %196 }
  0x8e   : > { %v222_v29 = vmul.f32 %v727_v26, %v197_v28  ;;  %v191_v30 = vpop.xlane.xlu0 %190  ;;  %v224_v43 = vmul.f32 %v727_v26, %v203_v27 }
  0x8f   : > { %v220_v31 = vmul.f32 %v727_v26, %v191_v30 }
  0x90   : > { %v731_v32 = vsub.f32 %v501_v4, %v222_v29  ;;  %v755_v50 = vsub.f32 %v505_v3, %v224_v43 }
  0x91   : > { %v733_v33 = vsub.f32 %v497_v5, %v220_v31 }
  0x92   : > { %v238_v34 = vmul.f32 %v731_v32, %v731_v32  ;;  %v240_v59 = vmul.f32 %v755_v50, %v755_v50 }
  0x93   : > { %v236_v35 = vmul.f32 %v733_v33, %v733_v33 }
  0x94   : > { %v250_v36 = vsel %vm188_vm0, %v238_v34, 0.0  ;;  %v256_v62 = vsel %vm188_vm0, %v240_v59, 0.0 }
  0x95   : > { %v206_v37 = vpop.xlane.xlu2 %205  ;;  %251 = vadd.xlane.f32.xlu1 %v250_v36  ;;  %v200_v38 = vpop.xlane.xlu1 %199  ;;  %v244_v39 = vsel %vm188_vm0, %v236_v35, 0.0 }
  0x96   : > { %v225_v40 = vmul.f32 %v727_v26, %v206_v37  ;;  %v223_v41 = vmul.f32 %v727_v26, %v200_v38  ;;  %245 = vadd.xlane.f32.xlu2 %v244_v39  ;;  %v194_v42 = vpop.xlane.xlu0 %193 }
  0x97   : > { %v221_v44 = vmul.f32 %v727_v26, %v194_v42 }
  0x98   : > { %v745_v45 = vsub.f32 %v506_v9, %v225_v40  ;;  %v747_v46 = vsub.f32 %v502_v10, %v223_v41  ;;  %v796_v41 = vld [vmem:[%s906_s1] ss:$0 sm:$0xff] }
  0x99   : > { %v749_v47 = vsub.f32 %v498_v11, %v221_v44 }
  0x9a   : > { %v241_v48 = vmul.f32 %v745_v45, %v745_v45  ;;  %v239_v49 = vmul.f32 %v747_v46, %v747_v46 }
  0x9b   : > { %v237_v51 = vmul.f32 %v749_v47, %v749_v47 }
  0x9c   : > { %v259_v52 = vsel %vm188_vm0, %v241_v48, 0.0  ;;  %v253_v53 = vsel %vm188_vm0, %v239_v49, 0.0 }
  0x9d   : > { %260 = vadd.xlane.f32.xlu1 %v259_v52  ;;  %v247_v54 = vsel %vm188_vm0, %v237_v51, 0.0  ;;  %v212_v55 = vpop.xlane.xlu1 %211  ;;  %v806_v52 = vld [vmem:[%s907_s2] ss:$0 sm:$0xff] }
  0x9e   : > { %254 = vadd.xlane.f32.xlu2 %v253_v53  ;;  %248 = vadd.xlane.f32.xlu0 %v247_v54  ;;  %v209_v56 = vpop.xlane.xlu0 %208  ;;  %v227_v58 = vmul.f32 %v727_v26, %v212_v55 }
  0x9f   : > { %v226_v57 = vmul.f32 %v727_v26, %v209_v56 }
  0xa0   : > { %v768_v61 = vsub.f32 %v510_v16, %v227_v58 }
  0xa1   : > { %v766_v60 = vsub.f32 %v509_v17, %v226_v57 }
  0xa2   : > { %v243_v1 = vmul.f32 %v768_v61, %v768_v61 }
  0xa3   : > { %v242_v63 = vmul.f32 %v766_v60, %v766_v60 }
  0xa4   : > { %v265_v2 = vsel %vm188_vm0, %v243_v1, 0.0 }
  0xa5   : > { %v262_v0 = vsel %vm188_vm0, %v242_v63, 0.0 }
  0xa6   : > { %257 = vadd.xlane.f32.xlu0 %v256_v62  ;;  %263 = vadd.xlane.f32.xlu2 %v262_v0 }
  0xae   : > { %266 = vadd.xlane.f32.xlu0 %v265_v2 }
 0x108   : > { %v252_v3 = vpop.xlane.xlu1 %251 }
 0x109   : > { %v270_v4 = vmul.f32 %v252_v3, %v727_v26  ;;  %v246_v5 = vpop.xlane.xlu2 %245 }
 0x10a   : > { %v268_v6 = vmul.f32 %v246_v5, %v727_v26 }
 0x10b   : > { %v278_v7 = vadd.f32 1e-05, %v270_v4 }
 0x10c   : > { %v276_v8 = vadd.f32 1e-05, %v268_v6 }
 0x10d   : > { %560 = vrsqrt.f32 %v278_v7  ;;  %vm310_vm2 = vweird.f32 %v278_v7 }
 0x10e   : > { %562 = vrsqrt.f32 %v276_v8  ;;  %vm290_vm6 = vweird.f32 %v276_v8 }
 0x110   : > { %v261_v9 = vpop.xlane.xlu1 %260 }
 0x111   : > { %v273_v10 = vmul.f32 %v261_v9, %v727_v26  ;;  %v255_v11 = vpop.xlane.xlu2 %254  ;;  %v249_v12 = vpop.xlane.xlu0 %248 }
 0x112   : > { %v271_v13 = vmul.f32 %v255_v11, %v727_v26  ;;  %v269_v14 = vmul.f32 %v249_v12, %v727_v26 }
 0x113   : > { %v561_v15 = vpop.eup %560  ;;  %v281_v16 = vadd.f32 1e-05, %v273_v10 }
 0x114   : > { %v563_v17 = vpop.eup %562  ;;  %v305_v18 = vmul.f32 %v561_v15, %v278_v7  ;;  %v782_v19 = vadd.f32 1e-05, %v271_v13  ;;  %v784_v20 = vadd.f32 1e-05, %v269_v14  ;;  %vm311_vm3 = vweird.f32 %v561_v15 }
 0x115   : > { %v285_v21 = vmul.f32 %v563_v17, %v276_v8  ;;  %564 = vrsqrt.f32 %v281_v16  ;;  %vm291_vm4 = vweird.f32 %v563_v17  ;;  %vm312_vm5 = vmor %vm310_vm2, %vm311_vm3  ;;  %vm340_vm8 = vweird.f32 %v281_v16 }
 0x116   : > { %v306_v22 = vmul.f32 %v561_v15, %v305_v18  ;;  %566 = vrsqrt.f32 %v782_v19  ;;  %vm292_vm7 = vmor %vm290_vm6, %vm291_vm4  ;;  %vm320_vm10 = vweird.f32 %v782_v19  ;;  %vm300_vm15 = vweird.f32 %v784_v20 }
 0x117   : > { %v286_v23 = vmul.f32 %v563_v17, %v285_v21  ;;  %568 = vrsqrt.f32 %v784_v20 }
 0x118   : > { %v307_v24 = vmul.f32 0.5, %v306_v22 }
 0x119   : > { %v287_v25 = vmul.f32 0.5, %v286_v23  ;;  %v264_v27 = vpop.xlane.xlu2 %263  ;;  %v258_v28 = vpop.xlane.xlu0 %257 }
 0x11a   : > { %v308_v29 = vsub.f32 1.5, %v307_v24  ;;  %v274_v30 = vmul.f32 %v264_v27, %v727_v26  ;;  %v272_v31 = vmul.f32 %v258_v28, %v727_v26 }
 0x11b   : > { %v565_v34 = vpop.eup %564  ;;  %v288_v35 = vsub.f32 1.5, %v287_v25 }
 0x11c   : > { %v567_v36 = vpop.eup %566  ;;  %v309_v37 = vmul.f32 %v561_v15, %v308_v29  ;;  %v335_v38 = vmul.f32 %v565_v34, %v281_v16  ;;  %v791_v39 = vadd.f32 1e-05, %v274_v30  ;;  %v800_v44 = vadd.f32 1e-05, %v272_v31 }
 0x11d   : > { %v569_v40 = vpop.eup %568  ;;  %v289_v42 = vmul.f32 %v563_v17, %v288_v35  ;;  %v315_v43 = vmul.f32 %v567_v36, %v782_v19  ;;  %vm341_vm9 = vweird.f32 %v565_v34  ;;  %vm321_vm12 = vweird.f32 %v567_v36 }
 0x11e   : > { %v313_v48 = vsel %vm312_vm5, %v561_v15, %v309_v37  ;;  %v336_v49 = vmul.f32 %v565_v34, %v335_v38  ;;  %v295_v51 = vmul.f32 %v569_v40, %v784_v20  ;;  %570 = vrsqrt.f32 %v791_v39  ;;  %vm820_vm11 = vmor %vm340_vm8, %vm341_vm9 }
 0x11f   : > { %v366_v53 = vmul.f32 %v313_v48, %v731_v32  ;;  %v293_v54 = vsel %vm292_vm7, %v563_v17, %v289_v42  ;;  %v316_v55 = vmul.f32 %v567_v36, %v315_v43  ;;  %572 = vrsqrt.f32 %v800_v44  ;;  %vm322_vm14 = vmor %vm320_vm10, %vm321_vm12 }
 0x120   : > { %v364_v56 = vmul.f32 %v293_v54, %v733_v33  ;;  %v337_v57 = vmul.f32 0.5, %v336_v49  ;;  %v296_v58 = vmul.f32 %v569_v40, %v295_v51  ;;  %vm301_vm13 = vweird.f32 %v569_v40 }
 0x121   : > { %v378_v59 = vmul.f32 %v796_v41, %v366_v53  ;;  %v317_v62 = vmul.f32 0.5, %v316_v55  ;;  %v267_v63 = vpop.xlane.xlu0 %266  ;;  %vm302_vm1 = vmor %vm300_vm15, %vm301_vm13  ;;  %vm350_vm2 = vweird.f32 %v791_v39  ;;  %vm330_vm6 = vweird.f32 %v800_v44 }
 0x122   : > { %v376_v0 = vmul.f32 %v796_v41, %v364_v56  ;;  %v338_v32 = vsub.f32 1.5, %v337_v57  ;;  %v297_v1 = vmul.f32 0.5, %v296_v58  ;;  %v275_v2 = vmul.f32 %v267_v63, %v727_v26 }
 0x123   : > { %v390_v3 = vadd.f32 %v806_v52, %v378_v59  ;;  %v318_v4 = vsub.f32 1.5, %v317_v62 }
 0x124   : > { %v388_v5 = vadd.f32 %v806_v52, %v376_v0  ;;  %v339_v6 = vmul.f32 %v565_v34, %v338_v32  ;;  %v298_v7 = vsub.f32 1.5, %v297_v1  ;;  %v283_v8 = vadd.f32 1e-05, %v275_v2  ;;  %v571_v9 = vpop.eup %570 }
 0x125   : > { %398 = vst.msk [vmem:[%s825_s8 + $0x10] sm:$0xff] %vm188_vm0, %v390_v3  ;;  %v319_v26 = vmul.f32 %v567_v36, %v318_v4  ;;  %v345_v12 = vmul.f32 %v571_v9, %v791_v39  ;;  %v573_v13 = vpop.eup %572  ;;  %vm351_vm3 = vweird.f32 %v571_v9 }
 0x126   : > { %396 = vst.msk [vmem:[%s825_s8] sm:$0xff] %vm188_vm0, %v388_v5  ;;  %v343_v10 = vsel %vm820_vm11, %v565_v34, %v339_v6  ;;  %v299_v11 = vmul.f32 %v569_v40, %v298_v7  ;;  %574 = vrsqrt.f32 %v283_v8  ;;  %v325_v19 = vmul.f32 %v573_v13, %v800_v44  ;;  %vm352_vm5 = vmor %vm350_vm2, %vm351_vm3 }
 0x127   : > { %v369_v14 = vmul.f32 %v343_v10, %v745_v45  ;;  %v323_v15 = vsel %vm322_vm14, %v567_v36, %v319_v26  ;;  %v346_v18 = vmul.f32 %v571_v9, %v345_v12  ;;  %vm331_vm4 = vweird.f32 %v573_v13 }
 0x128   : > { %v367_v16 = vmul.f32 %v323_v15, %v747_v46  ;;  %v303_v17 = vsel %vm302_vm1, %v569_v40, %v299_v11  ;;  %v326_v45 = vmul.f32 %v573_v13, %v325_v19  ;;  %vm332_vm7 = vmor %vm330_vm6, %vm331_vm4  ;;  %vm360_vm9 = vweird.f32 %v283_v8 }
 0x129   : > { %v381_v21 = vmul.f32 %v796_v41, %v369_v14  ;;  %v365_v20 = vmul.f32 %v303_v17, %v749_v47  ;;  %v347_v23 = vmul.f32 0.5, %v346_v18 }
 0x12a   : > { %v379_v22 = vmul.f32 %v796_v41, %v367_v16  ;;  %v327_v28 = vmul.f32 0.5, %v326_v45 }
 0x12b   : > { %v393_v24 = vadd.f32 %v806_v52, %v381_v21  ;;  %v377_v25 = vmul.f32 %v796_v41, %v365_v20  ;;  %v348_v27 = vsub.f32 1.5, %v347_v23 }
 0x12c   : > { %v391_v46 = vadd.f32 %v806_v52, %v379_v22  ;;  %v575_v29 = vpop.eup %574  ;;  %v328_v31 = vsub.f32 1.5, %v327_v28 }
 0x12d   : > { %401 = vst.msk [vmem:[%s825_s8 + $0x28] sm:$0xff] %vm188_vm0, %v393_v24  ;;  %v389_v47 = vadd.f32 %v806_v52, %v377_v25  ;;  %v349_v30 = vmul.f32 %v571_v9, %v348_v27  ;;  %v355_v34 = vmul.f32 %v575_v29, %v283_v8  ;;  %vm361_vm8 = vweird.f32 %v575_v29 }
 0x12e   : > { %399 = vst.msk [vmem:[%s825_s8 + $0x18] sm:$0xff] %vm188_vm0, %v391_v46  ;;  %v329_v36 = vmul.f32 %v573_v13, %v328_v31  ;;  %vm362_vm10 = vmor %vm360_vm9, %vm361_vm8 }
 0x12f   : > { %397 = vst.msk [vmem:[%s825_s8 + $0x8] sm:$0xff] %vm188_vm0, %v389_v47  ;;  %v353_v35 = vsel %vm352_vm5, %v571_v9, %v349_v30  ;;  %v356_v37 = vmul.f32 %v575_v29, %v355_v34 }
 0x130   : > { %v370_v38 = vmul.f32 %v353_v35, %v766_v60  ;;  %v333_v39 = vsel %vm332_vm7, %v573_v13, %v329_v36 }
 0x131   : > { %v357_v40 = vmul.f32 0.5, %v356_v37  ;;  %v368_v43 = vmul.f32 %v333_v39, %v755_v50 }
 0x132   : > { %v382_v42 = vmul.f32 %v796_v41, %v370_v38 }
 0x133   : > { %v358_v48 = vsub.f32 1.5, %v357_v40  ;;  %v380_v51 = vmul.f32 %v796_v41, %v368_v43 }
 0x134   : > { %v394_v49 = vadd.f32 %v806_v52, %v382_v42 }
 0x135   : > { %v359_v44 = vmul.f32 %v575_v29, %v358_v48  ;;  %v392_v60 = vadd.f32 %v806_v52, %v380_v51 }
 0x136   : > { %402 = vst.msk [vmem:[%s825_s8 + $0x30] sm:$0xff] %vm188_vm0, %v394_v49 }
 0x137   : > { %v363_v50 = vsel %vm362_vm10, %v575_v29, %v359_v44  ;;  %400 = vst.msk [vmem:[%s825_s8 + $0x20] sm:$0xff] %vm188_vm0, %v392_v60 }
 0x138   : > { %v371_v53 = vmul.f32 %v363_v50, %v768_v61 }
 0x13a   : > { %v383_v54 = vmul.f32 %v796_v41, %v371_v53 }
 0x13c   : > { %v395_v55 = vadd.f32 %v806_v52, %v383_v54 }
 0x13e   : > { %403 = vst.msk [vmem:[%s825_s8 + $0x38] sm:$0xff] %vm188_vm0, %v395_v55 }
 0x13f   : > { %603 = shalt.err (!%p600_p3)
}
 0x140   : > { %s641_s29 = smov 128   ;;  %s642_s5 = smov 8  }
 0x141   : > { %514 = dma.vmem_to_hbm [thread:$0]  (%p701_p5), %s418_s16, 1024, %s420_s19, %s405_s20, %s641_s29, %s641_s29, %s642_s5  }
 0x142 PF: > { %p520_p4 = scmp.ge.s32.totalorder %s638_s15, 2  ;;  %s434_s6 = sand.u32 1, %s626_s12  }
 0x143   : > { %s435_s7 = scalar_lea.sflag [#allocation3], %s434_s6 }
 0x144   : > { %p517_p7 = pnand %p520_p4, %p705_p6 }
 0x146   : > { %p518_p8 = pneg %p517_p7 }
 0x148   : > { %621 = dma.done.wait (%p518_p8), %s435_s7, 1024  }
 0x149   : > { %623 = vsyncadd (%p518_p8), %s435_s7, 4294966272  ;;  %p13_p9 = scmp.ge.s32.totalorder %s688_s18, 4   ;;  %s913_s12 = smov %s630_s13 }
 0x14a   : > { %s914_s13 = smov %s634_s14  ;;  %s915_s14 = smov %s699_s21 }
 0x14b   : > { %s916_s15 = smov %s688_s18  ;;  %15 = sbr.rel (!%p13_p9) target bundleno = 3 (0x3), region = 67 }
 0x150   :  { %441 = vsyncpa [#allocation3], 1 }
 0x151   :  { %443 = vsyncpa [#allocation3 + $0x1], 1 }

</bundles_post_ra>
